<compile_context>
chip_gen: v5e
topology: v5e:2x2
jax: 0.10.0
libtpu: 0.0.40
codegen_flags: <defaults>
</compile_context>

<pallas_src>
import functools

import jax
import jax.numpy as jnp
from jax.experimental import pallas as pl
from jax.experimental.pallas import tpu as pltpu

_EPS = 1e-5


def _round_up(x, m):
    return (x + m - 1) // m * m


# --------------------------------------------------------------------------
# Fused kernel: one grid step = one (batch element, row tile).
# --------------------------------------------------------------------------
def _bottleneck_kernel(xc_ref, xt_ref, xb_ref,
                       w1_ref, w2_ref, w3_ref,
                       b1_ref, b2_ref, b3_ref,
                       o_ref, y1_ref, acc_ref, *, dilation, pad_l):
    d = dilation
    _, TH, W, Cin = xc_ref.shape
    planes = w1_ref.shape[1]
    Cout = w3_ref.shape[1]
    rows_pad, WP, _ = y1_ref.shape            # rows_pad = TH + 2d + 1

    i = pl.program_id(1)
    nt = pl.num_programs(1)
    zdt = y1_ref.dtype

    w1 = w1_ref[...]
    b1 = b1_ref[...]

    def conv1(x3d):
        # (R, W, Cin) bf16 -> (R, W, planes) bf16; BN1 scale folded into w1,
        # bias + ReLU here; f32 accumulation on the MXU.
        r = x3d.shape[0]
        y = jnp.dot(x3d.reshape(r * W, Cin), w1,
                    preferred_element_type=jnp.float32)
        y = jnp.maximum(y + b1, 0.0)
        return y.reshape(r, W, planes).astype(zdt)

    # Zero only the conv padding strips (NOT the whole scratch): left/right
    # column pads every step; top/bottom halo rows only at the image edges.
    y1_ref[:, 0:pad_l, :] = jnp.zeros((rows_pad, pad_l, planes), zdt)
    y1_ref[:, pad_l + W:WP, :] = jnp.zeros(
        (rows_pad, WP - pad_l - W, planes), zdt)

    @pl.when(i == 0)
    def _():
        y1_ref[0:d, :, :] = jnp.zeros((d, WP, planes), zdt)

    @pl.when(i == nt - 1)
    def _():
        y1_ref[d + TH:2 * d + TH, :, :] = jnp.zeros((d, WP, planes), zdt)

    # conv1 + bias + relu on the tile interior; stores start at column pad_l
    # (multiple of 8) -> sublane aligned.
    y1_ref[d:d + TH, pad_l:pad_l + W, :] = conv1(xc_ref[0])

    # conv1 on the H-halo rows (skipped at the image top/bottom -> zero pad).
    @pl.when(i > 0)
    def _():
        y1_ref[0:d, pad_l:pad_l + W, :] = conv1(xt_ref[0])

    @pl.when(i < nt - 1)
    def _():
        y1_ref[d + TH:2 * d + TH, pad_l:pad_l + W, :] = conv1(xb_ref[0])

    # conv2: 3x3 (dilation d) as nine shifted channel-matmuls on the flattened
    # padded plane.  The scratch is loaded/flattened once; the nine taps are
    # static slices at offset kh*d*WP + kw*d; all nine accumulate into one
    # explicit f32 VMEM accumulator (first tap initializes it).
    M = TH * WP
    flat = y1_ref[...].reshape(rows_pad * WP, planes)
    for kh in range(3):
        for kw in range(3):
            off = kh * d * WP + kw * d
            tap = flat[off:off + M, :]
            t = jnp.dot(tap, w2_ref[kh, kw],
                        preferred_element_type=jnp.float32)
            if kh == 0 and kw == 0:
                acc_ref[...] = t
            else:
                acc_ref[...] += t

    # bias + relu, cast to bf16, then drop the padded garbage columns BEFORE
    # conv3 (saves MXU/VPU work on (WP - W) columns; relayout happens on a
    # narrow bf16 tensor instead of a wide f32 one).
    y2 = jnp.maximum(acc_ref[...] + b2_ref[...], 0.0).astype(zdt)
    y2 = y2.reshape(TH, WP, planes)[:, pad_l - d:pad_l - d + W, :]
    y2 = y2.reshape(TH * W, planes)

    # conv3 + bias + residual add + relu; bf16 output.
    y3 = jnp.dot(y2, w3_ref[...], preferred_element_type=jnp.float32)
    y3 = (y3 + b3_ref[...]).reshape(TH, W, Cout)
    out = jnp.maximum(y3 + xc_ref[0].astype(jnp.float32), 0.0)
    o_ref[0] = out.astype(o_ref.dtype)


# --------------------------------------------------------------------------
# Host-side parameter preparation (BN folding) and tile selection
# --------------------------------------------------------------------------
def _fold_bn(gamma, beta, mean, var):
    scale = gamma / jnp.sqrt(var + _EPS)
    bias = beta - mean * scale
    return scale.astype(jnp.float32), bias.astype(jnp.float32)


def _prepare_params(params):
    """Fold BN scales into the conv weights (zero runtime cost); only BN
    biases remain for the kernel.  bf16 weights, f32 biases."""
    s1, b1 = _fold_bn(*params["bn1"])
    s2, b2 = _fold_bn(*params["bn2"])
    s3, b3 = _fold_bn(*params["bn3"])
    w1 = (params["w1"] * s1[None, :]).astype(jnp.bfloat16)
    w2 = (params["w2"] * s2[None, None, None, :]).astype(jnp.bfloat16)
    w3 = (params["w3"] * s3[None, :]).astype(jnp.bfloat16)
    return w1, w2, w3, b1, b2, b3


def _vmem_bytes(TH, W, WP, Cin, planes, Cout, d):
    bf, f4 = 2, 4
    xblk = (TH + 2 * d) * W * Cin * bf          # center + both halo blocks
    oblk = TH * W * Cout * bf
    wgt = (Cin * planes + 9 * planes * planes + planes * Cout) * bf
    bias = (2 * planes + Cout) * f4
    scratch = (TH + 2 * d + 1) * WP * planes * bf + TH * WP * planes * f4
    return 2 * (xblk + oblk + wgt + bias) + scratch     # 2x: double buffering


def _pick_row_tile(H, d, target, min_tiles, fits):
    cands = [th for th in range(1, H + 1) if H % th == 0 and th % d == 0]
    if not cands:
        return H                       # degenerate: whole image, halos unused
    ok = [th for th in cands if H // th >= min_tiles] or cands
    good = [th for th in ok if th <= target and fits(th)]
    return max(good) if good else min(ok)


# --------------------------------------------------------------------------
# Wrappers
# --------------------------------------------------------------------------
def bottleneck_forward_nhwc(x_nhwc, params, *, stride=1, dilation=1,
                            row_tile=32, vmem_budget=40 * 1024 * 1024,
                            vmem_limit_bytes=64 * 1024 * 1024):
    """Fused Bottleneck (identity residual, stride=1) on NHWC activations.
    Returns bf16 NHWC.  Keep activations NHWC bf16 end-to-end in a network to
    avoid extra HBM passes for layout/dtype conversion around this kernel."""
    if stride != 1:
        # TODO(synk): stride > 1 (strided 3x3 taps + downsample) not implemented.
        raise NotImplementedError("stride > 1 not supported")
    d = dilation
    N, H, W, Cin = x_nhwc.shape
    w1, w2, w3, b1, b2, b3 = _prepare_params(params)
    planes = w1.shape[1]
    Cout = w3.shape[1]
    assert Cin == Cout, "identity residual requires inplanes == planes * 4"

    x_bf = x_nhwc.astype(jnp.bfloat16)

    pad_l = _round_up(d, 8)                   # sublane-aligned interior column
    WP = _round_up(pad_l + W + d, 8)          # padded scratch width

    min_tiles = 2 if N < 2 else 1             # keep >= 2 parallel grid units
    fits = lambda th: _vmem_bytes(th, W, WP, Cin, planes, Cout, d) <= vmem_budget
    TH = _pick_row_tile(H, d, row_tile, min_tiles, fits)
    nt = H // TH
    kd = TH // d if TH % d == 0 else 1        # halo block stride (nt==1 if unused)
    max_hblk = (H + d - 1) // d - 1

    c_map = lambda n, i: (n, i, 0, 0)         # center tile (also the residual)
    top_map = lambda n, i: (n, jnp.maximum(i * kd - 1, 0), 0, 0)
    bot_map = lambda n, i: (n, jnp.minimum((i + 1) * kd, max_hblk), 0, 0)
    const2 = lambda n, i: (0, 0)
    const4 = lambda n, i: (0, 0, 0, 0)

    flops = 2 * N * H * W * (Cin * planes + 9 * planes * planes + planes * Cout)
    bytes_accessed = (N * H * W * (Cin + Cout) * 2
                      + (Cin * planes + 9 * planes * planes + planes * Cout) * 2
                      + (2 * planes + Cout) * 4)

    kernel = functools.partial(_bottleneck_kernel, dilation=d, pad_l=pad_l)
    out = pl.pallas_call(
        kernel,
        out_shape=jax.ShapeDtypeStruct((N, H, W, Cout), jnp.bfloat16),
        grid=(N, nt),
        in_specs=[
            pl.BlockSpec((1, TH, W, Cin), c_map),           # center rows of x
            pl.BlockSpec((1, d, W, Cin), top_map),          # top halo rows
            pl.BlockSpec((1, d, W, Cin), bot_map),          # bottom halo rows
            pl.BlockSpec((Cin, planes), const2),            # w1 (BN1 folded)
            pl.BlockSpec((3, 3, planes, planes), const4),   # w2 (BN2 folded)
            pl.BlockSpec((planes, Cout), const2),           # w3 (BN3 folded)
            pl.BlockSpec((1, planes), const2),              # b1
            pl.BlockSpec((1, planes), const2),              # b2
            pl.BlockSpec((1, Cout), const2),                # b3
        ],
        out_specs=pl.BlockSpec((1, TH, W, Cout), c_map),
        scratch_shapes=[
            pltpu.VMEM((TH + 2 * d + 1, WP, planes), jnp.bfloat16),  # conv1 plane
            pltpu.VMEM((TH * WP, planes), jnp.float32),              # conv2 acc
        ],
        compiler_params=pltpu.CompilerParams(
            dimension_semantics=("parallel", "parallel"),
            vmem_limit_bytes=vmem_limit_bytes),
        cost_estimate=pl.CostEstimate(flops=flops, transcendentals=0,
                                      bytes_accessed=bytes_accessed),
    )(x_bf, x_bf, x_bf, w1, w2, w3,
      b1.reshape(1, planes), b2.reshape(1, planes), b3.reshape(1, Cout))
    return out


def bottleneck_forward(x_nchw, params, **kwargs):
    """PyTorch-layout (NCHW) entry point; layout/dtype conversion happens only
    at the module boundary (use bottleneck_forward_nhwc inside a network)."""
    x = jnp.transpose(x_nchw, (0, 2, 3, 1))                    # NCHW -> NHWC
    out = bottleneck_forward_nhwc(x, params, **kwargs)
    return jnp.transpose(out, (0, 3, 1, 2))                    # NHWC -> NCHW


# --------------------------------------------------------------------------
# Pure-JAX reference (mirrors the kernel's bf16-operand / f32-accumulate math)
# --------------------------------------------------------------------------
def _ref_forward(x_nchw, params, *, dilation=1):
    d = dilation
    w1, w2, w3, b1, b2, b3 = _prepare_params(params)
    x = jnp.transpose(x_nchw, (0, 2, 3, 1)).astype(jnp.bfloat16)

    y = jnp.einsum("nhwc,cd->nhwd", x, w1, preferred_element_type=jnp.float32)
    y = jnp.maximum(y + b1, 0.0).astype(jnp.bfloat16)
    y = jax.lax.conv_general_dilated(
        y, w2, window_strides=(1, 1), padding=[(d, d), (d, d)],
        rhs_dilation=(d, d), dimension_numbers=("NHWC", "HWIO", "NHWC"),
        preferred_element_type=jnp.float32)
    y = jnp.maximum(y + b2, 0.0).astype(jnp.bfloat16)
    y = jnp.einsum("nhwc,cd->nhwd", y, w3, preferred_element_type=jnp.float32)
    y = jnp.maximum(y + b3 + x.astype(jnp.float32), 0.0)
    return jnp.transpose(y, (0, 3, 1, 2))


# --------------------------------------------------------------------------
# Deterministic parameters + demo
# --------------------------------------------------------------------------
def make_params(key, inplanes, planes):
    ks = jax.random.split(key, 6)

    def bn_params(k, c):
        k1, k2, k3, k4 = jax.random.split(k, 4)
        gamma = jax.random.uniform(k1, (c,), jnp.float32, 0.5, 1.5)
        beta = 0.1 * jax.random.normal(k2, (c,), jnp.float32)
        mean = 0.1 * jax.random.normal(k3, (c,), jnp.float32)
        var = jax.random.uniform(k4, (c,), jnp.float32, 0.5, 1.5)
        return (gamma, beta, mean, var)

    return {
        # 1x1 conv weights stored (Cin, Cout); 3x3 stored HWIO (3,3,Cin,Cout)
        "w1": 0.1 * jax.random.normal(ks[0], (inplanes, planes), jnp.float32),
        "w2": 0.1 * jax.random.normal(ks[1], (3, 3, planes, planes), jnp.float32),
        "w3": 0.1 * jax.random.normal(ks[2], (planes, 4 * planes), jnp.float32),
        "bn1": bn_params(ks[3], planes),
        "bn2": bn_params(ks[4], planes),
        "bn3": bn_params(ks[5], 4 * planes),
    }


if __name__ == "__main__":
    key = jax.random.PRNGKey(0)
    k_x, k_p = jax.random.split(key)

    # Small shapes: batch=2, planes=4 -> inplanes = planes*4 = 16, spatial 16x16.
    N, planes, H, W = 2, 4, 16, 16
    inplanes = 4 * planes
    x = jax.random.normal(k_x, (N, inplanes, H, W), jnp.float32)   # NCHW input
    params = make_params(k_p, inplanes, planes)

    out = jax.block_until_ready(bottleneck_forward(x, params))
    assert out.shape == (N, inplanes, H, W), out.shape

    ref = jax.block_until_ready(_ref_forward(x, params))
    out_f32 = out.astype(jnp.float32)
    err = float(jnp.max(jnp.abs(out_f32 - ref)))
    assert jnp.allclose(out_f32, ref, atol=5e-2, rtol=3e-2), err

    print("KERNEL_OK")
</pallas_src>

<mosaic_0001>
module attributes {stable_mosaic.version = 11 : i64} {
  func.func @_bottleneck_kernel(%arg0: i32, %arg1: i32, %arg2: memref<1x16x16x16xbf16, #tpu.memory_space<vmem>>, %arg3: memref<1x1x16x16xbf16, #tpu.memory_space<vmem>>, %arg4: memref<1x1x16x16xbf16, #tpu.memory_space<vmem>>, %arg5: memref<16x4xbf16, #tpu.memory_space<vmem>>, %arg6: memref<3x3x4x4xbf16, #tpu.memory_space<vmem>>, %arg7: memref<4x16xbf16, #tpu.memory_space<vmem>>, %arg8: memref<1x4xf32, #tpu.memory_space<vmem>>, %arg9: memref<1x4xf32, #tpu.memory_space<vmem>>, %arg10: memref<1x16xf32, #tpu.memory_space<vmem>>, %arg11: memref<1x16x16x16xbf16, #tpu.memory_space<vmem>>, %arg12: memref<19x32x4xbf16, #tpu.memory_space<vmem>>, %arg13: memref<512x4xf32, #tpu.memory_space<vmem>>) attributes {dimension_semantics = [#tpu.dimension_semantics<parallel>, #tpu.dimension_semantics<parallel>], iteration_bounds = array<i64: 2, 1>, scalar_prefetch = 0 : i64, scratch_operands = 2 : i64, tpu.core_type = #tpu.core_type<tc>, window_params = [{transform_indices = @transform_0, window_bounds = array<i64: 1, 16, 16, 16>}, {transform_indices = @transform_1, window_bounds = array<i64: 1, 1, 16, 16>}, {transform_indices = @transform_2, window_bounds = array<i64: 1, 1, 16, 16>}, {pipeline_mode = #tpu.pipeline_mode<synchronous>, transform_indices = @transform_3, window_bounds = array<i64: 16, 4>}, {pipeline_mode = #tpu.pipeline_mode<synchronous>, transform_indices = @transform_4, window_bounds = array<i64: 3, 3, 4, 4>}, {pipeline_mode = #tpu.pipeline_mode<synchronous>, transform_indices = @transform_5, window_bounds = array<i64: 4, 16>}, {pipeline_mode = #tpu.pipeline_mode<synchronous>, transform_indices = @transform_6, window_bounds = array<i64: 1, 4>}, {pipeline_mode = #tpu.pipeline_mode<synchronous>, transform_indices = @transform_7, window_bounds = array<i64: 1, 4>}, {pipeline_mode = #tpu.pipeline_mode<synchronous>, transform_indices = @transform_8, window_bounds = array<i64: 1, 16>}, {transform_indices = @transform_9, window_bounds = array<i64: 1, 16, 16, 16>}]} {
    %c0 = arith.constant 0 : index
    %c0_0 = arith.constant 0 : index
    %0 = vector.load %arg5[%c0, %c0_0] : memref<16x4xbf16, #tpu.memory_space<vmem>>, vector<16x4xbf16>
    %c0_1 = arith.constant 0 : index
    %c0_2 = arith.constant 0 : index
    %1 = vector.load %arg8[%c0_1, %c0_2] : memref<1x4xf32, #tpu.memory_space<vmem>>, vector<1x4xf32>
    %cst = arith.constant 0.000000e+00 : bf16
    %2 = vector.broadcast %cst : bf16 to vector<19x8x4xbf16>
    %c0_3 = arith.constant 0 : index
    %c0_4 = arith.constant 0 : index
    %c0_5 = arith.constant 0 : index
    %3 = vector.load %arg12[%c0_3, %c0_4, %c0_5] : memref<19x32x4xbf16, #tpu.memory_space<vmem>>, vector<19x8x4xbf16>
    tpu.vector_store %arg12[%c0_3, %c0_4, %c0_5], %2 {strides = array<i32>} : memref<19x32x4xbf16, #tpu.memory_space<vmem>>, vector<19x8x4xbf16>,
    %cst_6 = arith.constant 0.000000e+00 : bf16
    %4 = vector.broadcast %cst_6 : bf16 to vector<19x8x4xbf16>
    %c0_7 = arith.constant 0 : index
    %c24 = arith.constant 24 : index
    %c0_8 = arith.constant 0 : index
    %5 = vector.load %arg12[%c0_7, %c24, %c0_8] : memref<19x32x4xbf16, #tpu.memory_space<vmem>>, vector<19x8x4xbf16>
    tpu.vector_store %arg12[%c0_7, %c24, %c0_8], %4 {strides = array<i32>} : memref<19x32x4xbf16, #tpu.memory_space<vmem>>, vector<19x8x4xbf16>,
    %c0_i32 = arith.constant 0 : i32
    %6 = arith.cmpi eq, %arg1, %c0_i32 : i32
    %7 = arith.extui %6 : i1 to i32
    %c0_i32_9 = arith.constant 0 : i32
    %8 = arith.cmpi ne, %7, %c0_i32_9 : i32
    scf.if %8 {
      %cst_123 = arith.constant 0.000000e+00 : bf16
      %118 = vector.broadcast %cst_123 : bf16 to vector<1x32x4xbf16>
      %c0_124 = arith.constant 0 : index
      %c0_125 = arith.constant 0 : index
      %c0_126 = arith.constant 0 : index
      %119 = vector.load %arg12[%c0_124, %c0_125, %c0_126] : memref<19x32x4xbf16, #tpu.memory_space<vmem>>, vector<1x32x4xbf16>
      tpu.vector_store %arg12[%c0_124, %c0_125, %c0_126], %118 {strides = array<i32>} : memref<19x32x4xbf16, #tpu.memory_space<vmem>>, vector<1x32x4xbf16>,
    } else {
    }
    %c0_i32_10 = arith.constant 0 : i32
    %9 = arith.cmpi eq, %arg1, %c0_i32_10 : i32
    %10 = arith.extui %9 : i1 to i32
    %c0_i32_11 = arith.constant 0 : i32
    %11 = arith.cmpi ne, %10, %c0_i32_11 : i32
    scf.if %11 {
      %cst_123 = arith.constant 0.000000e+00 : bf16
      %118 = vector.broadcast %cst_123 : bf16 to vector<1x32x4xbf16>
      %c17 = arith.constant 17 : index
      %c0_124 = arith.constant 0 : index
      %c0_125 = arith.constant 0 : index
      %119 = vector.load %arg12[%c17, %c0_124, %c0_125] : memref<19x32x4xbf16, #tpu.memory_space<vmem>>, vector<1x32x4xbf16>
      tpu.vector_store %arg12[%c17, %c0_124, %c0_125], %118 {strides = array<i32>} : memref<19x32x4xbf16, #tpu.memory_space<vmem>>, vector<1x32x4xbf16>,
    } else {
    }
    %c0_12 = arith.constant 0 : index
    %c0_13 = arith.constant 0 : index
    %c0_14 = arith.constant 0 : index
    %c0_15 = arith.constant 0 : index
    %12 = vector.load %arg2[%c0_12, %c0_13, %c0_14, %c0_15] : memref<1x16x16x16xbf16, #tpu.memory_space<vmem>>, vector<1x16x16x16xbf16>
    %13 = vector.shape_cast %12 : vector<1x16x16x16xbf16> to vector<16x16x16xbf16>
    %14 = vector.shape_cast %13 : vector<16x16x16xbf16> to vector<256x16xbf16>
    %cst_16 = arith.constant dense<0.000000e+00> : vector<256x4xf32>
    %15 = tpu.matmul %14, %0, %cst_16 {dimension_numbers = #tpu.dot_dimension_numbers<[1], [0], [0], [1], [0, 0, 1, 1], [], []>} : vector<256x16xbf16>, vector<16x4xbf16>, vector<256x4xf32> -> vector<256x4xf32>
    %16 = vector.broadcast %1 : vector<1x4xf32> to vector<256x4xf32>
    %17 = arith.addf %15, %16 : vector<256x4xf32>
    %cst_17 = arith.constant 0.000000e+00 : f32
    %18 = vector.broadcast %cst_17 : f32 to vector<256x4xf32>
    %19 = arith.maximumf %17, %18 : vector<256x4xf32>
    %20 = vector.shape_cast %19 : vector<256x4xf32> to vector<16x16x4xf32>
    %21 = arith.truncf %20 : vector<16x16x4xf32> to vector<16x16x4xbf16>
    %c1 = arith.constant 1 : index
    %c8 = arith.constant 8 : index
    %c0_18 = arith.constant 0 : index
    %22 = vector.load %arg12[%c1, %c8, %c0_18] : memref<19x32x4xbf16, #tpu.memory_space<vmem>>, vector<16x16x4xbf16>
    tpu.vector_store %arg12[%c1, %c8, %c0_18], %21 {strides = array<i32>} : memref<19x32x4xbf16, #tpu.memory_space<vmem>>, vector<16x16x4xbf16>,
    %c0_i32_19 = arith.constant 0 : i32
    %23 = arith.cmpi sgt, %arg1, %c0_i32_19 : i32
    %24 = arith.extui %23 : i1 to i32
    %c0_i32_20 = arith.constant 0 : i32
    %25 = arith.cmpi ne, %24, %c0_i32_20 : i32
    scf.if %25 {
      %c0_123 = arith.constant 0 : index
      %c0_124 = arith.constant 0 : index
      %c0_125 = arith.constant 0 : index
      %c0_126 = arith.constant 0 : index
      %118 = vector.load %arg3[%c0_123, %c0_124, %c0_125, %c0_126] : memref<1x1x16x16xbf16, #tpu.memory_space<vmem>>, vector<1x1x16x16xbf16>
      %119 = vector.shape_cast %118 : vector<1x1x16x16xbf16> to vector<1x16x16xbf16>
      %120 = vector.shape_cast %119 : vector<1x16x16xbf16> to vector<16x16xbf16>
      %cst_127 = arith.constant dense<0.000000e+00> : vector<16x4xf32>
      %121 = tpu.matmul %120, %0, %cst_127 {dimension_numbers = #tpu.dot_dimension_numbers<[1], [0], [0], [1], [0, 0, 1, 1], [], []>} : vector<16x16xbf16>, vector<16x4xbf16>, vector<16x4xf32> -> vector<16x4xf32>
      %122 = vector.broadcast %1 : vector<1x4xf32> to vector<16x4xf32>
      %123 = arith.addf %121, %122 : vector<16x4xf32>
      %cst_128 = arith.constant 0.000000e+00 : f32
      %124 = vector.broadcast %cst_128 : f32 to vector<16x4xf32>
      %125 = arith.maximumf %123, %124 : vector<16x4xf32>
      %126 = vector.shape_cast %125 : vector<16x4xf32> to vector<1x16x4xf32>
      %127 = arith.truncf %126 : vector<1x16x4xf32> to vector<1x16x4xbf16>
      %c0_129 = arith.constant 0 : index
      %c8_130 = arith.constant 8 : index
      %c0_131 = arith.constant 0 : index
      %128 = vector.load %arg12[%c0_129, %c8_130, %c0_131] : memref<19x32x4xbf16, #tpu.memory_space<vmem>>, vector<1x16x4xbf16>
      tpu.vector_store %arg12[%c0_129, %c8_130, %c0_131], %127 {strides = array<i32>} : memref<19x32x4xbf16, #tpu.memory_space<vmem>>, vector<1x16x4xbf16>,
    } else {
    }
    %c0_i32_21 = arith.constant 0 : i32
    %26 = arith.cmpi slt, %arg1, %c0_i32_21 : i32
    %27 = arith.extui %26 : i1 to i32
    %c0_i32_22 = arith.constant 0 : i32
    %28 = arith.cmpi ne, %27, %c0_i32_22 : i32
    scf.if %28 {
      %c0_123 = arith.constant 0 : index
      %c0_124 = arith.constant 0 : index
      %c0_125 = arith.constant 0 : index
      %c0_126 = arith.constant 0 : index
      %118 = vector.load %arg4[%c0_123, %c0_124, %c0_125, %c0_126] : memref<1x1x16x16xbf16, #tpu.memory_space<vmem>>, vector<1x1x16x16xbf16>
      %119 = vector.shape_cast %118 : vector<1x1x16x16xbf16> to vector<1x16x16xbf16>
      %120 = vector.shape_cast %119 : vector<1x16x16xbf16> to vector<16x16xbf16>
      %cst_127 = arith.constant dense<0.000000e+00> : vector<16x4xf32>
      %121 = tpu.matmul %120, %0, %cst_127 {dimension_numbers = #tpu.dot_dimension_numbers<[1], [0], [0], [1], [0, 0, 1, 1], [], []>} : vector<16x16xbf16>, vector<16x4xbf16>, vector<16x4xf32> -> vector<16x4xf32>
      %122 = vector.broadcast %1 : vector<1x4xf32> to vector<16x4xf32>
      %123 = arith.addf %121, %122 : vector<16x4xf32>
      %cst_128 = arith.constant 0.000000e+00 : f32
      %124 = vector.broadcast %cst_128 : f32 to vector<16x4xf32>
      %125 = arith.maximumf %123, %124 : vector<16x4xf32>
      %126 = vector.shape_cast %125 : vector<16x4xf32> to vector<1x16x4xf32>
      %127 = arith.truncf %126 : vector<1x16x4xf32> to vector<1x16x4xbf16>
      %c17 = arith.constant 17 : index
      %c8_129 = arith.constant 8 : index
      %c0_130 = arith.constant 0 : index
      %128 = vector.load %arg12[%c17, %c8_129, %c0_130] : memref<19x32x4xbf16, #tpu.memory_space<vmem>>, vector<1x16x4xbf16>
      tpu.vector_store %arg12[%c17, %c8_129, %c0_130], %127 {strides = array<i32>} : memref<19x32x4xbf16, #tpu.memory_space<vmem>>, vector<1x16x4xbf16>,
    } else {
    }
    %c0_23 = arith.constant 0 : index
    %c0_24 = arith.constant 0 : index
    %c0_25 = arith.constant 0 : index
    %29 = vector.load %arg12[%c0_23, %c0_24, %c0_25] : memref<19x32x4xbf16, #tpu.memory_space<vmem>>, vector<19x32x4xbf16>
    %30 = vector.shape_cast %29 : vector<19x32x4xbf16> to vector<608x4xbf16>
    %31 = vector.extract_strided_slice %30 {offsets = [0, 0], sizes = [512, 4], strides = [1, 1]} : vector<608x4xbf16> to vector<512x4xbf16>
    %c0_26 = arith.constant 0 : index
    %c0_27 = arith.constant 0 : index
    %c0_28 = arith.constant 0 : index
    %c0_29 = arith.constant 0 : index
    %32 = vector.load %arg6[%c0_26, %c0_27, %c0_28, %c0_29] : memref<3x3x4x4xbf16, #tpu.memory_space<vmem>>, vector<1x1x4x4xbf16>
    %33 = vector.shape_cast %32 : vector<1x1x4x4xbf16> to vector<4x4xbf16>
    %cst_30 = arith.constant dense<0.000000e+00> : vector<512x4xf32>
    %34 = tpu.matmul %31, %33, %cst_30 {dimension_numbers = #tpu.dot_dimension_numbers<[1], [0], [0], [1], [0, 0, 1, 1], [], []>} : vector<512x4xbf16>, vector<4x4xbf16>, vector<512x4xf32> -> vector<512x4xf32>
    %c0_31 = arith.constant 0 : index
    %c0_32 = arith.constant 0 : index
    %35 = vector.load %arg13[%c0_31, %c0_32] : memref<512x4xf32, #tpu.memory_space<vmem>>, vector<512x4xf32>
    tpu.vector_store %arg13[%c0_31, %c0_32], %34 {strides = array<i32>} : memref<512x4xf32, #tpu.memory_space<vmem>>, vector<512x4xf32>,
    %36 = vector.extract_strided_slice %30 {offsets = [1, 0], sizes = [512, 4], strides = [1, 1]} : vector<608x4xbf16> to vector<512x4xbf16>
    %c0_33 = arith.constant 0 : index
    %c1_34 = arith.constant 1 : index
    %c0_35 = arith.constant 0 : index
    %c0_36 = arith.constant 0 : index
    %37 = vector.load %arg6[%c0_33, %c1_34, %c0_35, %c0_36] : memref<3x3x4x4xbf16, #tpu.memory_space<vmem>>, vector<1x1x4x4xbf16>
    %38 = vector.shape_cast %37 : vector<1x1x4x4xbf16> to vector<4x4xbf16>
    %cst_37 = arith.constant dense<0.000000e+00> : vector<512x4xf32>
    %39 = tpu.matmul %36, %38, %cst_37 {dimension_numbers = #tpu.dot_dimension_numbers<[1], [0], [0], [1], [0, 0, 1, 1], [], []>} : vector<512x4xbf16>, vector<4x4xbf16>, vector<512x4xf32> -> vector<512x4xf32>
    %c0_38 = arith.constant 0 : index
    %c0_39 = arith.constant 0 : index
    %40 = vector.load %arg13[%c0_38, %c0_39] : memref<512x4xf32, #tpu.memory_space<vmem>>, vector<512x4xf32>
    %41 = arith.addf %40, %39 : vector<512x4xf32>
    %c0_40 = arith.constant 0 : index
    %c0_41 = arith.constant 0 : index
    %42 = vector.load %arg13[%c0_40, %c0_41] : memref<512x4xf32, #tpu.memory_space<vmem>>, vector<512x4xf32>
    tpu.vector_store %arg13[%c0_40, %c0_41], %41 {strides = array<i32>} : memref<512x4xf32, #tpu.memory_space<vmem>>, vector<512x4xf32>,
    %43 = vector.extract_strided_slice %30 {offsets = [2, 0], sizes = [512, 4], strides = [1, 1]} : vector<608x4xbf16> to vector<512x4xbf16>
    %c0_42 = arith.constant 0 : index
    %c2 = arith.constant 2 : index
    %c0_43 = arith.constant 0 : index
    %c0_44 = arith.constant 0 : index
    %44 = vector.load %arg6[%c0_42, %c2, %c0_43, %c0_44] : memref<3x3x4x4xbf16, #tpu.memory_space<vmem>>, vector<1x1x4x4xbf16>
    %45 = vector.shape_cast %44 : vector<1x1x4x4xbf16> to vector<4x4xbf16>
    %cst_45 = arith.constant dense<0.000000e+00> : vector<512x4xf32>
    %46 = tpu.matmul %43, %45, %cst_45 {dimension_numbers = #tpu.dot_dimension_numbers<[1], [0], [0], [1], [0, 0, 1, 1], [], []>} : vector<512x4xbf16>, vector<4x4xbf16>, vector<512x4xf32> -> vector<512x4xf32>
    %c0_46 = arith.constant 0 : index
    %c0_47 = arith.constant 0 : index
    %47 = vector.load %arg13[%c0_46, %c0_47] : memref<512x4xf32, #tpu.memory_space<vmem>>, vector<512x4xf32>
    %48 = arith.addf %47, %46 : vector<512x4xf32>
    %c0_48 = arith.constant 0 : index
    %c0_49 = arith.constant 0 : index
    %49 = vector.load %arg13[%c0_48, %c0_49] : memref<512x4xf32, #tpu.memory_space<vmem>>, vector<512x4xf32>
    tpu.vector_store %arg13[%c0_48, %c0_49], %48 {strides = array<i32>} : memref<512x4xf32, #tpu.memory_space<vmem>>, vector<512x4xf32>,
    %50 = vector.extract_strided_slice %30 {offsets = [32, 0], sizes = [512, 4], strides = [1, 1]} : vector<608x4xbf16> to vector<512x4xbf16>
    %c1_50 = arith.constant 1 : index
    %c0_51 = arith.constant 0 : index
    %c0_52 = arith.constant 0 : index
    %c0_53 = arith.constant 0 : index
    %51 = vector.load %arg6[%c1_50, %c0_51, %c0_52, %c0_53] : memref<3x3x4x4xbf16, #tpu.memory_space<vmem>>, vector<1x1x4x4xbf16>
    %52 = vector.shape_cast %51 : vector<1x1x4x4xbf16> to vector<4x4xbf16>
    %cst_54 = arith.constant dense<0.000000e+00> : vector<512x4xf32>
    %53 = tpu.matmul %50, %52, %cst_54 {dimension_numbers = #tpu.dot_dimension_numbers<[1], [0], [0], [1], [0, 0, 1, 1], [], []>} : vector<512x4xbf16>, vector<4x4xbf16>, vector<512x4xf32> -> vector<512x4xf32>
    %c0_55 = arith.constant 0 : index
    %c0_56 = arith.constant 0 : index
    %54 = vector.load %arg13[%c0_55, %c0_56] : memref<512x4xf32, #tpu.memory_space<vmem>>, vector<512x4xf32>
    %55 = arith.addf %54, %53 : vector<512x4xf32>
    %c0_57 = arith.constant 0 : index
    %c0_58 = arith.constant 0 : index
    %56 = vector.load %arg13[%c0_57, %c0_58] : memref<512x4xf32, #tpu.memory_space<vmem>>, vector<512x4xf32>
    tpu.vector_store %arg13[%c0_57, %c0_58], %55 {strides = array<i32>} : memref<512x4xf32, #tpu.memory_space<vmem>>, vector<512x4xf32>,
    %57 = vector.extract_strided_slice %30 {offsets = [33, 0], sizes = [512, 4], strides = [1, 1]} : vector<608x4xbf16> to vector<512x4xbf16>
    %c1_59 = arith.constant 1 : index
    %c1_60 = arith.constant 1 : index
    %c0_61 = arith.constant 0 : index
    %c0_62 = arith.constant 0 : index
    %58 = vector.load %arg6[%c1_59, %c1_60, %c0_61, %c0_62] : memref<3x3x4x4xbf16, #tpu.memory_space<vmem>>, vector<1x1x4x4xbf16>
    %59 = vector.shape_cast %58 : vector<1x1x4x4xbf16> to vector<4x4xbf16>
    %cst_63 = arith.constant dense<0.000000e+00> : vector<512x4xf32>
    %60 = tpu.matmul %57, %59, %cst_63 {dimension_numbers = #tpu.dot_dimension_numbers<[1], [0], [0], [1], [0, 0, 1, 1], [], []>} : vector<512x4xbf16>, vector<4x4xbf16>, vector<512x4xf32> -> vector<512x4xf32>
    %c0_64 = arith.constant 0 : index
    %c0_65 = arith.constant 0 : index
    %61 = vector.load %arg13[%c0_64, %c0_65] : memref<512x4xf32, #tpu.memory_space<vmem>>, vector<512x4xf32>
    %62 = arith.addf %61, %60 : vector<512x4xf32>
    %c0_66 = arith.constant 0 : index
    %c0_67 = arith.constant 0 : index
    %63 = vector.load %arg13[%c0_66, %c0_67] : memref<512x4xf32, #tpu.memory_space<vmem>>, vector<512x4xf32>
    tpu.vector_store %arg13[%c0_66, %c0_67], %62 {strides = array<i32>} : memref<512x4xf32, #tpu.memory_space<vmem>>, vector<512x4xf32>,
    %64 = vector.extract_strided_slice %30 {offsets = [34, 0], sizes = [512, 4], strides = [1, 1]} : vector<608x4xbf16> to vector<512x4xbf16>
    %c1_68 = arith.constant 1 : index
    %c2_69 = arith.constant 2 : index
    %c0_70 = arith.constant 0 : index
    %c0_71 = arith.constant 0 : index
    %65 = vector.load %arg6[%c1_68, %c2_69, %c0_70, %c0_71] : memref<3x3x4x4xbf16, #tpu.memory_space<vmem>>, vector<1x1x4x4xbf16>
    %66 = vector.shape_cast %65 : vector<1x1x4x4xbf16> to vector<4x4xbf16>
    %cst_72 = arith.constant dense<0.000000e+00> : vector<512x4xf32>
    %67 = tpu.matmul %64, %66, %cst_72 {dimension_numbers = #tpu.dot_dimension_numbers<[1], [0], [0], [1], [0, 0, 1, 1], [], []>} : vector<512x4xbf16>, vector<4x4xbf16>, vector<512x4xf32> -> vector<512x4xf32>
    %c0_73 = arith.constant 0 : index
    %c0_74 = arith.constant 0 : index
    %68 = vector.load %arg13[%c0_73, %c0_74] : memref<512x4xf32, #tpu.memory_space<vmem>>, vector<512x4xf32>
    %69 = arith.addf %68, %67 : vector<512x4xf32>
    %c0_75 = arith.constant 0 : index
    %c0_76 = arith.constant 0 : index
    %70 = vector.load %arg13[%c0_75, %c0_76] : memref<512x4xf32, #tpu.memory_space<vmem>>, vector<512x4xf32>
    tpu.vector_store %arg13[%c0_75, %c0_76], %69 {strides = array<i32>} : memref<512x4xf32, #tpu.memory_space<vmem>>, vector<512x4xf32>,
    %71 = vector.extract_strided_slice %30 {offsets = [64, 0], sizes = [512, 4], strides = [1, 1]} : vector<608x4xbf16> to vector<512x4xbf16>
    %c2_77 = arith.constant 2 : index
    %c0_78 = arith.constant 0 : index
    %c0_79 = arith.constant 0 : index
    %c0_80 = arith.constant 0 : index
    %72 = vector.load %arg6[%c2_77, %c0_78, %c0_79, %c0_80] : memref<3x3x4x4xbf16, #tpu.memory_space<vmem>>, vector<1x1x4x4xbf16>
    %73 = vector.shape_cast %72 : vector<1x1x4x4xbf16> to vector<4x4xbf16>
    %cst_81 = arith.constant dense<0.000000e+00> : vector<512x4xf32>
    %74 = tpu.matmul %71, %73, %cst_81 {dimension_numbers = #tpu.dot_dimension_numbers<[1], [0], [0], [1], [0, 0, 1, 1], [], []>} : vector<512x4xbf16>, vector<4x4xbf16>, vector<512x4xf32> -> vector<512x4xf32>
    %c0_82 = arith.constant 0 : index
    %c0_83 = arith.constant 0 : index
    %75 = vector.load %arg13[%c0_82, %c0_83] : memref<512x4xf32, #tpu.memory_space<vmem>>, vector<512x4xf32>
    %76 = arith.addf %75, %74 : vector<512x4xf32>
    %c0_84 = arith.constant 0 : index
    %c0_85 = arith.constant 0 : index
    %77 = vector.load %arg13[%c0_84, %c0_85] : memref<512x4xf32, #tpu.memory_space<vmem>>, vector<512x4xf32>
    tpu.vector_store %arg13[%c0_84, %c0_85], %76 {strides = array<i32>} : memref<512x4xf32, #tpu.memory_space<vmem>>, vector<512x4xf32>,
    %78 = vector.extract_strided_slice %30 {offsets = [65, 0], sizes = [512, 4], strides = [1, 1]} : vector<608x4xbf16> to vector<512x4xbf16>
    %c2_86 = arith.constant 2 : index
    %c1_87 = arith.constant 1 : index
    %c0_88 = arith.constant 0 : index
    %c0_89 = arith.constant 0 : index
    %79 = vector.load %arg6[%c2_86, %c1_87, %c0_88, %c0_89] : memref<3x3x4x4xbf16, #tpu.memory_space<vmem>>, vector<1x1x4x4xbf16>
    %80 = vector.shape_cast %79 : vector<1x1x4x4xbf16> to vector<4x4xbf16>
    %cst_90 = arith.constant dense<0.000000e+00> : vector<512x4xf32>
    %81 = tpu.matmul %78, %80, %cst_90 {dimension_numbers = #tpu.dot_dimension_numbers<[1], [0], [0], [1], [0, 0, 1, 1], [], []>} : vector<512x4xbf16>, vector<4x4xbf16>, vector<512x4xf32> -> vector<512x4xf32>
    %c0_91 = arith.constant 0 : index
    %c0_92 = arith.constant 0 : index
    %82 = vector.load %arg13[%c0_91, %c0_92] : memref<512x4xf32, #tpu.memory_space<vmem>>, vector<512x4xf32>
    %83 = arith.addf %82, %81 : vector<512x4xf32>
    %c0_93 = arith.constant 0 : index
    %c0_94 = arith.constant 0 : index
    %84 = vector.load %arg13[%c0_93, %c0_94] : memref<512x4xf32, #tpu.memory_space<vmem>>, vector<512x4xf32>
    tpu.vector_store %arg13[%c0_93, %c0_94], %83 {strides = array<i32>} : memref<512x4xf32, #tpu.memory_space<vmem>>, vector<512x4xf32>,
    %85 = vector.extract_strided_slice %30 {offsets = [66, 0], sizes = [512, 4], strides = [1, 1]} : vector<608x4xbf16> to vector<512x4xbf16>
    %c2_95 = arith.constant 2 : index
    %c2_96 = arith.constant 2 : index
    %c0_97 = arith.constant 0 : index
    %c0_98 = arith.constant 0 : index
    %86 = vector.load %arg6[%c2_95, %c2_96, %c0_97, %c0_98] : memref<3x3x4x4xbf16, #tpu.memory_space<vmem>>, vector<1x1x4x4xbf16>
    %87 = vector.shape_cast %86 : vector<1x1x4x4xbf16> to vector<4x4xbf16>
    %cst_99 = arith.constant dense<0.000000e+00> : vector<512x4xf32>
    %88 = tpu.matmul %85, %87, %cst_99 {dimension_numbers = #tpu.dot_dimension_numbers<[1], [0], [0], [1], [0, 0, 1, 1], [], []>} : vector<512x4xbf16>, vector<4x4xbf16>, vector<512x4xf32> -> vector<512x4xf32>
    %c0_100 = arith.constant 0 : index
    %c0_101 = arith.constant 0 : index
    %89 = vector.load %arg13[%c0_100, %c0_101] : memref<512x4xf32, #tpu.memory_space<vmem>>, vector<512x4xf32>
    %90 = arith.addf %89, %88 : vector<512x4xf32>
    %c0_102 = arith.constant 0 : index
    %c0_103 = arith.constant 0 : index
    %91 = vector.load %arg13[%c0_102, %c0_103] : memref<512x4xf32, #tpu.memory_space<vmem>>, vector<512x4xf32>
    tpu.vector_store %arg13[%c0_102, %c0_103], %90 {strides = array<i32>} : memref<512x4xf32, #tpu.memory_space<vmem>>, vector<512x4xf32>,
    %c0_104 = arith.constant 0 : index
    %c0_105 = arith.constant 0 : index
    %92 = vector.load %arg13[%c0_104, %c0_105] : memref<512x4xf32, #tpu.memory_space<vmem>>, vector<512x4xf32>
    %c0_106 = arith.constant 0 : index
    %c0_107 = arith.constant 0 : index
    %93 = vector.load %arg9[%c0_106, %c0_107] : memref<1x4xf32, #tpu.memory_space<vmem>>, vector<1x4xf32>
    %94 = vector.broadcast %93 : vector<1x4xf32> to vector<512x4xf32>
    %95 = arith.addf %92, %94 : vector<512x4xf32>
    %cst_108 = arith.constant 0.000000e+00 : f32
    %96 = vector.broadcast %cst_108 : f32 to vector<512x4xf32>
    %97 = arith.maximumf %95, %96 : vector<512x4xf32>
    %98 = arith.truncf %97 : vector<512x4xf32> to vector<512x4xbf16>
    %99 = vector.shape_cast %98 : vector<512x4xbf16> to vector<16x32x4xbf16>
    %100 = vector.extract_strided_slice %99 {offsets = [0, 7, 0], sizes = [16, 16, 4], strides = [1, 1, 1]} : vector<16x32x4xbf16> to vector<16x16x4xbf16>
    %101 = vector.shape_cast %100 : vector<16x16x4xbf16> to vector<256x4xbf16>
    %c0_109 = arith.constant 0 : index
    %c0_110 = arith.constant 0 : index
    %102 = vector.load %arg7[%c0_109, %c0_110] : memref<4x16xbf16, #tpu.memory_space<vmem>>, vector<4x16xbf16>
    %cst_111 = arith.constant dense<0.000000e+00> : vector<256x16xf32>
    %103 = tpu.matmul %101, %102, %cst_111 {dimension_numbers = #tpu.dot_dimension_numbers<[1], [0], [0], [1], [0, 0, 1, 1], [], []>} : vector<256x4xbf16>, vector<4x16xbf16>, vector<256x16xf32> -> vector<256x16xf32>
    %c0_112 = arith.constant 0 : index
    %c0_113 = arith.constant 0 : index
    %104 = vector.load %arg10[%c0_112, %c0_113] : memref<1x16xf32, #tpu.memory_space<vmem>>, vector<1x16xf32>
    %105 = vector.broadcast %104 : vector<1x16xf32> to vector<256x16xf32>
    %106 = arith.addf %103, %105 : vector<256x16xf32>
    %107 = vector.shape_cast %106 : vector<256x16xf32> to vector<16x16x16xf32>
    %c0_114 = arith.constant 0 : index
    %c0_115 = arith.constant 0 : index
    %c0_116 = arith.constant 0 : index
    %c0_117 = arith.constant 0 : index
    %108 = vector.load %arg2[%c0_114, %c0_115, %c0_116, %c0_117] : memref<1x16x16x16xbf16, #tpu.memory_space<vmem>>, vector<1x16x16x16xbf16>
    %109 = vector.shape_cast %108 : vector<1x16x16x16xbf16> to vector<16x16x16xbf16>
    %110 = arith.extf %109 : vector<16x16x16xbf16> to vector<16x16x16xf32>
    %111 = arith.addf %107, %110 : vector<16x16x16xf32>
    %cst_118 = arith.constant 0.000000e+00 : f32
    %112 = vector.broadcast %cst_118 : f32 to vector<16x16x16xf32>
    %113 = arith.maximumf %111, %112 : vector<16x16x16xf32>
    %114 = arith.truncf %113 : vector<16x16x16xf32> to vector<16x16x16xbf16>
    %c0_119 = arith.constant 0 : index
    %c0_120 = arith.constant 0 : index
    %c0_121 = arith.constant 0 : index
    %c0_122 = arith.constant 0 : index
    %115 = vector.load %arg11[%c0_119, %c0_120, %c0_121, %c0_122] : memref<1x16x16x16xbf16, #tpu.memory_space<vmem>>, vector<1x16x16x16xbf16>
    %116 = vector.shape_cast %115 : vector<1x16x16x16xbf16> to vector<16x16x16xbf16>
    %117 = vector.shape_cast %114 : vector<16x16x16xbf16> to vector<1x16x16x16xbf16>
    tpu.vector_store %arg11[%c0_119, %c0_120, %c0_121, %c0_122], %117 {strides = array<i32>} : memref<1x16x16x16xbf16, #tpu.memory_space<vmem>>, vector<1x16x16x16xbf16>,
    return
  }
  func.func @transform_0(%arg0: i32, %arg1: i32) -> (i32, i32, i32, i32) {
    %c0_i32 = arith.constant 0 : i32
    %c0_i32_0 = arith.constant 0 : i32
    %c0_i32_1 = arith.constant 0 : i32
    return %arg0, %arg1, %c0_i32, %c0_i32_0 : i32, i32, i32, i32
  }
  func.func @transform_1(%arg0: i32, %arg1: i32) -> (i32, i32, i32, i32) {
    %c16_i32 = arith.constant 16 : i32
    %0 = arith.muli %arg1, %c16_i32 : i32
    %c1_i32 = arith.constant 1 : i32
    %1 = arith.subi %0, %c1_i32 : i32
    %c0_i32 = arith.constant 0 : i32
    %2 = arith.maxsi %1, %c0_i32 : i32
    %c0_i32_0 = arith.constant 0 : i32
    %c0_i32_1 = arith.constant 0 : i32
    %c0_i32_2 = arith.constant 0 : i32
    return %arg0, %2, %c0_i32_0, %c0_i32_1 : i32, i32, i32, i32
  }
  func.func @transform_2(%arg0: i32, %arg1: i32) -> (i32, i32, i32, i32) {
    %c1_i32 = arith.constant 1 : i32
    %0 = arith.addi %arg1, %c1_i32 : i32
    %c16_i32 = arith.constant 16 : i32
    %1 = arith.muli %0, %c16_i32 : i32
    %c15_i32 = arith.constant 15 : i32
    %2 = arith.minsi %1, %c15_i32 : i32
    %c0_i32 = arith.constant 0 : i32
    %c0_i32_0 = arith.constant 0 : i32
    %c0_i32_1 = arith.constant 0 : i32
    return %arg0, %2, %c0_i32, %c0_i32_0 : i32, i32, i32, i32
  }
  func.func @transform_3(%arg0: i32, %arg1: i32) -> (i32, i32) {
    %c0_i32 = arith.constant 0 : i32
    %c0_i32_0 = arith.constant 0 : i32
    %c0_i32_1 = arith.constant 0 : i32
    return %c0_i32, %c0_i32_0 : i32, i32
  }
  func.func @transform_4(%arg0: i32, %arg1: i32) -> (i32, i32, i32, i32) {
    %c0_i32 = arith.constant 0 : i32
    %c0_i32_0 = arith.constant 0 : i32
    %c0_i32_1 = arith.constant 0 : i32
    %c0_i32_2 = arith.constant 0 : i32
    %c0_i32_3 = arith.constant 0 : i32
    return %c0_i32, %c0_i32_0, %c0_i32_1, %c0_i32_2 : i32, i32, i32, i32
  }
  func.func @transform_5(%arg0: i32, %arg1: i32) -> (i32, i32) {
    %c0_i32 = arith.constant 0 : i32
    %c0_i32_0 = arith.constant 0 : i32
    %c0_i32_1 = arith.constant 0 : i32
    return %c0_i32, %c0_i32_0 : i32, i32
  }
  func.func @transform_6(%arg0: i32, %arg1: i32) -> (i32, i32) {
    %c0_i32 = arith.constant 0 : i32
    %c0_i32_0 = arith.constant 0 : i32
    %c0_i32_1 = arith.constant 0 : i32
    return %c0_i32, %c0_i32_0 : i32, i32
  }
  func.func @transform_7(%arg0: i32, %arg1: i32) -> (i32, i32) {
    %c0_i32 = arith.constant 0 : i32
    %c0_i32_0 = arith.constant 0 : i32
    %c0_i32_1 = arith.constant 0 : i32
    return %c0_i32, %c0_i32_0 : i32, i32
  }
  func.func @transform_8(%arg0: i32, %arg1: i32) -> (i32, i32) {
    %c0_i32 = arith.constant 0 : i32
    %c0_i32_0 = arith.constant 0 : i32
    %c0_i32_1 = arith.constant 0 : i32
    return %c0_i32, %c0_i32_0 : i32, i32
  }
  func.func @transform_9(%arg0: i32, %arg1: i32) -> (i32, i32, i32, i32) {
    %c0_i32 = arith.constant 0 : i32
    %c0_i32_0 = arith.constant 0 : i32
    %c0_i32_1 = arith.constant 0 : i32
    return %arg0, %arg1, %c0_i32, %c0_i32_0 : i32, i32, i32, i32
  }
}

</mosaic_0001>

<bundles_post_ra>
// kernel: tpu_custom_call.1
= control target key start
LH: loop header
LB: loop body
LE: loop exit
PB: predicated region body
PF: predicated region fallthrough
CT: control target
= control target key end

     0   :  { %s10175_s0 = inlined_call_operand.hbm [shape: bf16[2,16,16,16], index: 0, kind: input, shape index: {}]   ;;  %s10176_s1 = inlined_call_operand.hbm [shape: bf16[2,16,16,16], index: 1, kind: input, shape index: {}]   ;;  %s10177_s2 = inlined_call_operand.hbm [shape: bf16[2,16,16,16], index: 2, kind: input, shape index: {}]   ;;  %s10178_s3 = inlined_call_operand.vmem [shape: bf16[16,4], index: 3, kind: input, shape index: {}]   ;;  %s10179_s4 = inlined_call_operand.hbm [shape: bf16[3,3,4,4], index: 4, kind: input, shape index: {}]   ;;  %s10180_s5 = inlined_call_operand.vmem [shape: bf16[4,16], index: 5, kind: input, shape index: {}]   ;;  %s10181_s6 = inlined_call_operand.vmem [shape: f32[1,4], index: 6, kind: input, shape index: {}]   ;;  %s10182_s7 = inlined_call_operand.vmem [shape: f32[1,4], index: 7, kind: input, shape index: {}]   ;;  %s10183_s8 = inlined_call_operand.vmem [shape: f32[1,16], index: 8, kind: input, shape index: {}]   ;;  %s10184_s9 = inlined_call_operand.hbm [shape: bf16[2,16,16,16], index: 9, kind: output, shape index: {}]  }
   0x1   :  { %10241 = sst [smem:[#allocation87_spill]] %s10175_s0 }
   0x2   :  { %10242 = sst [smem:[#allocation88_spill]] %s10176_s1 }
   0x3   :  { %10243 = sst [smem:[#allocation89_spill]] %s10179_s4 }
   0x4   :  { %10244 = sst [smem:[#allocation90_spill]] %s10183_s8 }
   0x5   :  { %10245 = sst [smem:[#allocation91_spill]] %s10184_s9 }
   0x6   :  { %14 = vsyncpa [#allocation5], 0 }
   0x7   :  { %16 = vsyncpa [#allocation5 + $0x1], 0 }
   0x8   :  { %17 = vsyncpa [#allocation8], 0 }
   0x9   :  { %19 = vsyncpa [#allocation8 + $0x1], 0 }
   0xa   :  { %20 = vsyncpa [#allocation11], 0 }
   0xb   :  { %21 = vsyncpa [#allocation6], 0 }
   0xc   :  { %23 = vsyncpa [#allocation6 + $0x1], 0  ;;  %s7358_s30 = smov 0   ;;  %s7360_s10 = smov 0  }
   0xd   :  { %s7362_s11 = smov 0   ;;  %s7364_s12 = smov 0  }
   0xe   :  { %s7366_s13 = smov 0   ;;  %s7368_s14 = smov 0  }
   0xf LB: > { %10246 = sst [smem:[#allocation17_spill]] %s7278_s30  ;;  %s41_s15 = sadd.s32 1, %s7294_s13  ;;  %s7298_s14 = sphi %s7368_s14, %s29_s14   ;;  %s7294_s13 = sphi %s7366_s13, %s10470_s13   ;;  %s7290_s12 = sphi %s7364_s12, %s10469_s12   ;;  %s7286_s11 = sphi %s7362_s11, %s10468_s11   ;;  %s7282_s10 = sphi %s7360_s10, %s10472_s10   ;;  %s7278_s30 = sphi %s7358_s30, %s10471_s30  }
  0x10   : > { %10247 = sst [smem:[#allocation18_spill]] %s7286_s11  ;;  %s50_s16 = sadd.s32 1, %s7286_s11 }
  0x11   : > { %10248 = sst [smem:[#allocation19_spill]] %s7290_s12  ;;  %p43_p0 = scmp.ge.s32.totalorder %s41_s15, 2 }
  0x12   : > { %10249 = sst [smem:[#allocation20_spill]] %s7294_s13  ;;  %p57_p1 = scmp.ne.s32.totalorder %s7286_s11, %s7282_s10 }
  0x13   : > { %10250 = sst [smem:[#allocation21_spill]] %s7298_s14  ;;  %p58_p2 = scmp.eq.s32.totalorder %s7298_s14, 0 }
  0x14   : > { %p6205_p3 = scmp.ge.s32.totalorder %s7298_s14, 2  ;;  %s10474_s15 = smov (%p43_p0, %s41_s15), 0 }
  0x15   : > { %10251 = sst [smem:[#allocation22_spill]] %s10474_s15  ;;  %p59_p4 = por %p58_p2, %p57_p1 }
  0x16   : > { %p6956_p5 = scmp.lt.s32.totalorder %s7298_s14, 2  ;;  %s45_s17 = ssub.s32 %s7294_s13, %s10474_s15 }
  0x17   : > { %s7403_s18 = sand.u32 1, %s7286_s11   ;;  %p48_p6 = scmp.eq.s32.totalorder %s45_s17, 0 }
  0x18   : > { %s7406_s19 = sshll.u32 %s7294_s13, 7  ;;  %p7408_p7 = pnand %p6956_p5, %p59_p4 }
  0x19   : > { %s7413_s21 = scalar_select %p48_p6, %s7286_s11, %s50_s16  }
  0x1a   : > { %s367_s22 = sand.u32 1, %s7298_s14   ;;  %s6209_s23 = sshll.u32 %s7403_s18, 3 }
  0x1b   : > { %10253 = sst [smem:[#allocation23_spill]] %s7413_s21  ;;  %s371_s27 = scalar_lea.vmem [#allocation7], %s6209_s23 }
  0x1c   : > { %s10254_s1 = sld [smem:[#allocation88_spill]]  ;;  %s385_s28 = sshll.u32 %s371_s27, 4  ;;  %s386_s28 = int_to_ptr.vmem [resolvable:$true] %s385_s28 }
  0x1d   : > { %s7421_s17 = scalar_lea.sflag [#allocation8], %s367_s22  ;;  %s10186_s16 = smov 64  }
  0x1e   : > { %s10188_s15 = smov 4   ;;  %s7429_s24 = scalar_lea.vmem [#allocation9], %s6209_s23 }
  0x1f   : > { %s6202_s22 = sadd.s32 4294967294, %s7298_s14   ;;  %p63_p8 = scmp.ne.s32.totalorder %s7282_s10, %s7278_s30 }
  0x20   : > { %p293_p11 = scmp.eq.s32.totalorder %s6202_s22, 1  ;;  %p6203_p13 = scmp.ge.s32.totalorder %s7298_s14, 1 }
  0x21   : > { %p300_p4 = scmp.lt.s32.totalorder %s7298_s14, 3  ;;  %s10260_s4 = sld [smem:[#allocation89_spill]] }
  0x22   : > { %s382_s26 = scalar_lea.hbm %s10254_s1, %s7406_s19  ;;  %p7454_p2 = por %p293_p11, %p63_p8 }
  0x23   : > { %s383_s29 = sshll.u32 %s382_s26, 4  ;;  %s7433_s26 = sadd.s32 4294967295, %s7298_s14   ;;  %s384_s29 = int_to_ptr.hbm [resolvable:$true] %s383_s29 }
  0x24   : > { %6947 = dma.hbm_to_vmem [thread:$0]  (!%p7408_p7), %s384_s29, 128, %s386_s28, %s7421_s17, %s10186_s16, %s10186_s16, %s10188_s15  }
  0x25   : > { %p64_p9 = scmp.eq.s32.totalorder %s7433_s26, 0  ;;  %p287_p10 = scmp.eq.s32.totalorder %s7433_s26, 1 }
  0x26   : > { %s10258_s28 = scalar_select %p7454_p2, 1, 0 }
  0x27   : > { %p7442_p12 = por %p64_p9, %p63_p8  ;;  %p7450_p0 = por %p287_p10, %p57_p1 }
  0x28   : > { %10259 = sst [smem:[#allocation25_spill]] %s10258_s28  ;;  %s314_s22 = sshll.u32 %s10260_s4, 4  ;;  %s315_s22 = int_to_ptr.hbm [resolvable:$true] %s314_s22 }
  0x29   : > { %s10256_s23 = scalar_select %p7450_p0, 1, 0 }
  0x2a   : > { %p7462_p5 = pnand %p6203_p13, %p300_p4  ;;  %s7302_s15 = smov [#allocation10]  }
  0x2b   : > { %10257 = sst [smem:[#allocation24_spill]] %s10256_s23  ;;  %s316_s1 = sshll.u32 %s7302_s15, 4  ;;  %s317_s1 = int_to_ptr.vmem [resolvable:$true] %s316_s1 }
  0x2c   : > { %p6937_p1 = pneg %p7462_p5  ;;  %s6206_s13 = sshll.u32 %s7403_s18, 7 }
  0x2d   : > { %s10262_s0 = sld [smem:[#allocation87_spill]]  ;;  %s7303_s11 = smov 32  }
  0x2e   : > { %p6938_p6 = pnand %p6937_p1, %p64_p9  ;;  %s7304_s14 = smov 2  }
  0x2f   : > { %s346_s15 = scalar_lea.vmem [#allocation4], %s6206_s13  ;;  %s6779_s30 = sadd.s32 120, %s7406_s19 }
  0x30   : > { %6940 = dma.hbm_to_vmem [thread:$0]  (!%p6938_p6), %s315_s22, 288, %s317_s1, [#allocation11], %s7303_s11, %s7303_s11, %s7304_s14  }
  0x31   : > { %s357_s28 = sshll.u32 %s346_s15, 4  ;;  %s343_s23 = scalar_lea.sflag [#allocation5], %s7403_s18  ;;  %s358_s28 = int_to_ptr.vmem [resolvable:$true] %s357_s28 }
  0x32   : > { %s10263_s9 = smov 4   ;;  %s10264_s12 = smov 64  }
  0x33   : > { %s354_s4 = scalar_lea.hbm %s10262_s0, %s7406_s19  ;;  %s10265_s8 = sshll.u32 %s7429_s24, 4  ;;  %s414_s8 = int_to_ptr.vmem [resolvable:$true] %s10265_s8 }
  0x34   : > { %s355_s21 = sshll.u32 %s354_s4, 4  ;;  %s410_s4 = scalar_lea.hbm %s10177_s2, %s6779_s30  ;;  %s356_s21 = int_to_ptr.hbm [resolvable:$true] %s355_s21 }
  0x35   : > { %6944 = dma.hbm_to_vmem [thread:$0]  (!%p7408_p7), %s356_s21, 2048, %s358_s28, %s343_s23, %s10264_s12, %s10264_s12, %s10263_s9  }
  0x36   : > { %s411_s0 = sshll.u32 %s410_s4, 4  ;;  %425 = sbr.rel (%p7462_p5) target bundleno = 1919 (0x77f), region = 56  ;;  %s412_s0 = int_to_ptr.hbm [resolvable:$true] %s411_s0 }
  0x37   : > { %6950 = dma.hbm_to_vmem [thread:$0]  (!%p7408_p7), %s412_s0, 128, %s414_s8, %s7421_s17, %s10264_s12, %s10264_s12, %s10263_s9  }
  0x3b   : > { %s7496_s1 = sand.u32 1, %s7282_s10  }
  0x3c   : > { %s6216_s11 = sshll.u32 %s7496_s1, 7  ;;  %s428_s13 = scalar_lea.sflag [#allocation5], %s7496_s1 }
  0x3d   : > { %s7502_s30 = scalar_lea.vmem [#allocation4], %s6216_s11 }
  0x3e   : > { %7261 = dma.done.wait (%p7442_p12), %s428_s13, 2048  }
  0x3f   : > { %7263 = vsyncadd (%p7442_p12), %s428_s13, 4294965248  ;;  %s437_s0 = sand.u32 1, %s7433_s26  }
  0x40   : > { %s438_s8 = scalar_lea.sflag [#allocation8], %s437_s0 }
  0x41   : > { %7265 = dma.done.wait (%p7442_p12), %s438_s8, 256  }
  0x42   : > { %7267 = vsyncadd (%p7442_p12), %s438_s8, 4294967040 }
  0x43   : > { %7269 = dma.done.wait (%p64_p9), [#allocation11], 288  }
  0x44   : > { %7271 = vsyncadd (%p64_p9), [#allocation11], 4294967008  ;;  %vm516_vm0 = vcmask 27648   ;;  %v7305_v0 = vmov 0   ;;  %v6780_v1 = vld [vmem:[%s10178_s3] sm:$0xff]  ;;  %v6781_v2 = vld [vmem:[%s7502_s30] sm:$0xff] }
  0x45   : > { %517 = vst.msk [vmem:[#allocation2] sm:$0xf] %vm516_vm0, %v7305_v0  ;;  %745 = vmatpush.bf16.msra.mxu0 %v6780_v1  ;;  %vm689_vm1 = vcmask 130048   ;;  %v6782_v3 = vld [vmem:[%s7502_s30 + $0x8] sm:$0xff]  ;;  %v6783_v4 = vld [vmem:[%s7502_s30 + $0x10] sm:$0xff]  ;;  %v6784_v5 = vld [vmem:[%s7502_s30 + $0x18] sm:$0xff] }
  0x46   : > { %518 = vst.msk [vmem:[#allocation2 + $0x10] sm:$0xf] %vm516_vm0, %v7305_v0  ;;  %v6785_v6 = vld [vmem:[%s7502_s30 + $0x20] sm:$0xff]  ;;  %vm1324_vm2 = vcmask 1041408   ;;  %vm1227_vm3 = vcmask 31744   ;;  %v6786_v10 = vld [vmem:[%s7502_s30 + $0x28] sm:$0xff] }
  0x47   : > { %519 = vst.msk [vmem:[#allocation2 + $0x20] sm:$0xf] %vm516_vm0, %v7305_v0  ;;  %v1066_v7 = vld [vmem:[#allocation10] sm:$0x3]  ;;  %v6787_v13 = vld [vmem:[%s7502_s30 + $0x30] sm:$0xff]  ;;  %v6788_v22 = vld [vmem:[%s7502_s30 + $0x38] sm:$0xff] }
  0x48   : > { %520 = vst.msk [vmem:[#allocation2 + $0x30] sm:$0xf] %vm516_vm0, %v7305_v0  ;;  %6289 = vmatmul.msk.bf16.vlgmr.msra.gmra.mxu0 %vm689_vm1, %v6781_v2  ;;  %v1326_v8 = vsel %vm1324_vm2, %v1066_v7, 0  ;;  %v1562_v14 = vld [vmem:[#allocation10 + $0x2] sm:$0x3]  ;;  %v6790_v35 = vld [vmem:[%s7502_s30 + $0x48] sm:$0xff] }
  0x49   : > { %521 = vst.msk [vmem:[#allocation2 + $0x40] sm:$0xf] %vm516_vm0, %v7305_v0  ;;  %1335 = vmatpush.bf16.msra.mxu1 %v1326_v8  ;;  %6924 = vmatpush.bf16.msra.mxu3 %v1326_v8  ;;  %v1892_v18 = vsel %vm1324_vm2, %v1562_v14, 0  ;;  %vm1566_vm4 = vsmask.f32 7424  ;;  %v6789_v24 = vld [vmem:[%s7502_s30 + $0x40] sm:$0xff] }
  0x4a   : > { %522 = vst.msk [vmem:[#allocation2 + $0x50] sm:$0xf] %vm516_vm0, %v7305_v0  ;;  %1901 = vmatpush.bf16.msra.mxu2 %v1892_v18  ;;  %v7590_v23 = vld [vmem:[%s10181_s6] ss:$0 sm:$0xff]  ;;  %v6792_v1 = vld [vmem:[%s7502_s30 + $0x58] sm:$0xff]  ;;  %vm2257_vm5 = vcmask 1046528  }
  0x4b   : > { %523 = vst.msk [vmem:[#allocation2 + $0x60] sm:$0xf] %vm516_vm0, %v7305_v0  ;;  %v6791_v50 = vld [vmem:[%s7502_s30 + $0x50] sm:$0xff]  ;;  %vm5295_vm6 = vsmask.f32 256  ;;  %s10457_s26 = sld [smem:[#allocation90_spill]] }
  0x4c   : > { %524 = vst.msk [vmem:[#allocation2 + $0x70] sm:$0xf] %vm516_vm0, %v7305_v0  ;;  %vm5296_vm7 = vsmask.f32 4368  ;;  %vm6003_vm9 = vcmask 125952   ;;  %s9645_s27 = scalar_lea.vmem [#allocation12], %s6216_s11 }
  0x4d   : > { %525 = vst.msk [vmem:[#allocation2 + $0x80] sm:$0xf] %vm516_vm0, %v7305_v0  ;;  %vm9414_vm8 = vmor %vm5295_vm6, %vm5296_vm7  ;;  %s10461_s4 = sld [smem:[#allocation19_spill]]  ;;  %s6037_s18 = scalar_lea.sflag [#allocation6], %s7496_s1 }
  0x4e   : > { %526 = vst.msk [vmem:[#allocation2 + $0x90] sm:$0xf] %vm516_vm0, %v7305_v0  ;;  %s10462_s8 = sld [smem:[#allocation91_spill]] }
  0x4f   : > { %527 = vst.msk [vmem:[#allocation2 + $0xa0] sm:$0xf] %vm516_vm0, %v7305_v0 }
  0x50   : > { %528 = vst.msk [vmem:[#allocation2 + $0xb0] sm:$0xf] %vm516_vm0, %v7305_v0 }
  0x51   : > { %529 = vst.msk [vmem:[#allocation2 + $0xc0] sm:$0xf] %vm516_vm0, %v7305_v0 }
  0x52   : > { %530 = vst.msk [vmem:[#allocation2 + $0xd0] sm:$0xf] %vm516_vm0, %v7305_v0 }
  0x53   : > { %531 = vst.msk [vmem:[#allocation2 + $0xe0] sm:$0xf] %vm516_vm0, %v7305_v0  ;;  %s6833_s11 = sshll.u32 %s10461_s4, 7 }
  0x54   : > { %532 = vst.msk [vmem:[#allocation2 + $0xf0] sm:$0xf] %vm516_vm0, %v7305_v0  ;;  %s6051_s9 = scalar_lea.hbm %s10462_s8, %s6833_s11  ;;  %s7228_s16 = scalar_lea.hbm %s10462_s8, 256 }
  0x55   : > { %533 = vst.msk [vmem:[#allocation2 + $0x100] sm:$0xf] %vm516_vm0, %v7305_v0  ;;  %s6054_s14 = sshll.u32 %s6051_s9, 4  ;;  %s6055_s14 = int_to_ptr.hbm [resolvable:$true] %s6054_s14 }
  0x56   : > { %534 = vst.msk [vmem:[#allocation2 + $0x110] sm:$0xf] %vm516_vm0, %v7305_v0  ;;  %s7222_s19 = sshra.s32 %s6055_s14, 4  ;;  %s7223_s19 = int_to_ptr.hbm [resolvable:$true] %s7222_s19 }
  0x57   : > { %535 = vst.msk [vmem:[#allocation2 + $0x120] sm:$0xf] %vm516_vm0, %v7305_v0  ;;  %s7224_s20 = scalar_lea.hbm %s7223_s19, 128  ;;  %p7229_p10 = scmp.lt.s32.totalorder %s7223_s19, %s10462_s8 }
  0x58   : > { %536 = vst.msk [vmem:[#allocation2 + $0xc] sm:$0xf] %vm516_vm0, %v7305_v0  ;;  %6290 = vmatmul.msk.bf16.gmra.mxu0 %vm689_vm1, %v6782_v3  ;;  %p7225_p7 = scmp.ne.s32.totalorder %s7223_s19, %s7224_s20  ;;  %p7230_p11 = scmp.lt.s32.totalorder %s7228_s16, %s7224_s20 }
  0x59   : > { %537 = vst.msk [vmem:[#allocation2 + $0x1c] sm:$0xf] %vm516_vm0, %v7305_v0 }
  0x5a   : > { %538 = vst.msk [vmem:[#allocation2 + $0x2c] sm:$0xf] %vm516_vm0, %v7305_v0  ;;  %p7226_p8 = pnand %p7225_p7, %p7450_p0  ;;  %p7231_p12 = por %p7230_p11, %p7229_p10 }
  0x5b   : > { %539 = vst.msk [vmem:[#allocation2 + $0x3c] sm:$0xf] %vm516_vm0, %v7305_v0 }
  0x5c   : > { %540 = vst.msk [vmem:[#allocation2 + $0x4c] sm:$0xf] %vm516_vm0, %v7305_v0  ;;  %p7227_p9 = pneg %p7226_p8 }
  0x5d   : > { %541 = vst.msk [vmem:[#allocation2 + $0x5c] sm:$0xf] %vm516_vm0, %v7305_v0 }
  0x5e   : > { %542 = vst.msk [vmem:[#allocation2 + $0x6c] sm:$0xf] %vm516_vm0, %v7305_v0  ;;  %p7232_p13 = pnand %p7231_p12, %p7227_p9 }
  0x5f   : > { %543 = vst.msk [vmem:[#allocation2 + $0x7c] sm:$0xf] %vm516_vm0, %v7305_v0 }
  0x60   : > { %544 = vst.msk [vmem:[#allocation2 + $0x8c] sm:$0xf] %vm516_vm0, %v7305_v0 }
  0x61   : > { %545 = vst.msk [vmem:[#allocation2 + $0x9c] sm:$0xf] %vm516_vm0, %v7305_v0 }
  0x62   : > { %546 = vst.msk [vmem:[#allocation2 + $0xac] sm:$0xf] %vm516_vm0, %v7305_v0 }
  0x63   : > { %547 = vst.msk [vmem:[#allocation2 + $0xbc] sm:$0xf] %vm516_vm0, %v7305_v0 }
  0x64   : > { %548 = vst.msk [vmem:[#allocation2 + $0xcc] sm:$0xf] %vm516_vm0, %v7305_v0 }
  0x65   : > { %549 = vst.msk [vmem:[#allocation2 + $0xdc] sm:$0xf] %vm516_vm0, %v7305_v0 }
  0x66   : > { %550 = vst.msk [vmem:[#allocation2 + $0xec] sm:$0xf] %vm516_vm0, %v7305_v0 }
  0x67   : > { %551 = vst.msk [vmem:[#allocation2 + $0xfc] sm:$0xf] %vm516_vm0, %v7305_v0 }
  0x68   : > { %552 = vst.msk [vmem:[#allocation2 + $0x10c] sm:$0xf] %vm516_vm0, %v7305_v0  ;;  %6291 = vmatmul.msk.bf16.gmra.mxu0 %vm689_vm1, %v6783_v4 }
  0x69   : > { %553 = vst.msk [vmem:[#allocation2 + $0x11c] sm:$0xf] %vm516_vm0, %v7305_v0 }
  0x6a   : > { %560 = vst.msk [vmem:[#allocation2 + $0x4] sm:$0xf] %vm516_vm0, %v7305_v0 }
  0x6b   : > { %561 = vst.msk [vmem:[#allocation2 + $0x8] sm:$0xf] %vm516_vm0, %v7305_v0 }
  0x6c   : > { %565 = vst.msk [vmem:[#allocation2 + $0x114] sm:$0xf] %vm516_vm0, %v7305_v0 }
  0x6d   : > { %566 = vst.msk [vmem:[#allocation2 + $0x118] sm:$0xf] %vm516_vm0, %v7305_v0 }
  0x6e   : > { %559 = vst.msk [vmem:[#allocation2] sm:$0xf] %vm516_vm0, %v7305_v0 }
  0x6f   : > { %562 = vst.msk [vmem:[#allocation2 + $0xc] sm:$0xf] %vm516_vm0, %v7305_v0 }
  0x70   : > { %564 = vst.msk [vmem:[#allocation2 + $0x110] sm:$0xf] %vm516_vm0, %v7305_v0 }
  0x71   : > { %567 = vst.msk [vmem:[#allocation2 + $0x11c] sm:$0xf] %vm516_vm0, %v7305_v0 }
  0x75   : > { %v6799_v9 = vld [vmem:[#allocation2] sm:$0xff] }
  0x76   : > { %6443 = vmatmul.msk.bf16.vlgmr.msra.gmra.mxu1 %vm1227_vm3, %v6799_v9  ;;  %v6800_v11 = vld [vmem:[#allocation2 + $0x8] sm:$0xff]  ;;  %v1569_v12 = vshll.u32 %v6799_v9, 16  ;;  %v1567_v15 = vshrl.u32 %v6799_v9, 16 }
  0x77   : > { %v1573_v17 = vshll.u32 %v6800_v11, 16  ;;  %v1577_v32 = vshrl.u32 %v6800_v11, 16 }
  0x78   : > { %6292 = vmatmul.msk.bf16.gmra.mxu0 %vm689_vm1, %v6784_v5  ;;  %v1571_v16 = vrot.slane %v1569_v12, 1 }
  0x79   : > { %v1575_v20 = vrot.slane %v1573_v17, 1 }
  0x7a   : > { %v1572_v19 = vor.u32 %v1571_v16, %v1567_v15  ;;  %v6793_v16 = vld [vmem:[%s7502_s30 + $0x60] sm:$0xff] }
  0x7b   : > { %v1579_v37 = vor.u32 %v1577_v32, %v1575_v20 }
  0x7c   : > { %v1576_v21 = vsel %vm1566_vm4, %v1572_v19, %v1575_v20 }
  0x7d   : > { %6475 = vmatmul.msk.bf16.vlgmr.msra.gmra.mxu2 %vm1227_vm3, %v1576_v21 }
  0x86   : > { %6444 = vmatmul.msk.bf16.gmra.mxu1 %vm1227_vm3, %v6800_v11 }
  0x88   : > { %6293 = vmatmul.msk.bf16.gmra.mxu0 %vm689_vm1, %v6785_v6 }
  0x98   : > { %6294 = vmatmul.msk.bf16.gmra.mxu0 %vm689_vm1, %v6786_v10 }
  0xa8   : > { %6295 = vmatmul.msk.bf16.gmra.mxu0 %vm689_vm1, %v6787_v13 }
  0xb8   : > { %6296 = vmatmul.msk.bf16.gmra.mxu0 %vm689_vm1, %v6788_v22 }
  0xc5   : > { %v747_v25 = vpop.f32.mrf.mxu0 }
  0xc6   : > { %v748_v26 = vadd.f32 %v7590_v23, %v747_v25 }
  0xc8   : > { %v827_v27 = vmax.f32 %v748_v26, 0.0  ;;  %6297 = vmatmul.msk.bf16.gmra.mxu0 %vm689_vm1, %v6789_v24 }
  0xca   : > { %v859_v28 = vpack.c.bf16 %v827_v27, %v827_v27 }
  0xcc   : > { %892 = vst.msk [vmem:[#allocation2 + $0x14] sm:$0xf] %vm516_vm0, %v859_v28 }
  0xcd   : > { %v749_v29 = vpop.f32.mrf.mxu0 }
  0xce   : > { %v750_v30 = vadd.f32 %v7590_v23, %v749_v29 }
  0xd0   : > { %v828_v31 = vmax.f32 %v750_v30, 0.0 }
  0xd2   : > { %v860_v33 = vpack.c.bf16 %v828_v31, %v828_v31 }
  0xd3   : > { %v7597_v34 = vld [vmem:[#allocation2 + $0x10] sm:$0xff] }
  0xd4   : > { %893 = vst.msk [vmem:[#allocation2 + $0x18] sm:$0xf] %vm516_vm0, %v860_v33  ;;  %6445 = vmatmul.msk.bf16.gmra.mxu1 %vm1227_vm3, %v7597_v34  ;;  %v1580_v38 = vshll.u32 %v7597_v34, 16  ;;  %v1584_v52 = vshrl.u32 %v7597_v34, 16  ;;  %v6794_v33 = vld [vmem:[%s7502_s30 + $0x68] sm:$0xff] }
  0xd5   : > { %v752_v36 = vpop.f32.mrf.mxu0 }
  0xd6   : > { %v753_v39 = vadd.f32 %v7590_v23, %v752_v36  ;;  %v1582_v40 = vrot.slane %v1580_v38, 1 }
  0xd8   : > { %v829_v41 = vmax.f32 %v753_v39, 0.0  ;;  %6298 = vmatmul.msk.bf16.gmra.mxu0 %vm689_vm1, %v6790_v35  ;;  %v1583_v42 = vsel %vm1566_vm4, %v1579_v37, %v1582_v40  ;;  %v1586_v55 = vor.u32 %v1584_v52, %v1582_v40  ;;  %v2784_v52 = vld [vmem:[#allocation10 + $0x6] sm:$0x3] }
  0xd9   : > { %6476 = vmatmul.msk.bf16.gmra.mxu2 %vm1227_vm3, %v1583_v42 }
  0xda   : > { %v861_v43 = vpack.c.bf16 %v829_v41, %v829_v41 }
  0xdb   : > { %v7609_v45 = vld [vmem:[#allocation2 + $0x18] sm:$0xff] }
  0xdc   : > { %894 = vst.msk [vmem:[#allocation2 + $0x24] sm:$0xf] %vm516_vm0, %v861_v43  ;;  %v1587_v48 = vshll.u32 %v7609_v45, 16  ;;  %v1591_v3 = vshrl.u32 %v7609_v45, 16 }
  0xdd   : > { %v754_v44 = vpop.f32.mrf.mxu0 }
  0xde   : > { %v755_v46 = vadd.f32 %v7590_v23, %v754_v44  ;;  %v1589_v53 = vrot.slane %v1587_v48, 1 }
  0xe0   : > { %v830_v47 = vmax.f32 %v755_v46, 0.0  ;;  %v7621_v57 = vsel %vm1566_vm4, %v1586_v55, %v1589_v53  ;;  %v1593_v6 = vor.u32 %v1591_v3, %v1589_v53  ;;  %v6795_v53 = vld [vmem:[%s7502_s30 + $0x70] sm:$0xff] }
  0xe2   : > { %v862_v49 = vpack.c.bf16 %v830_v47, %v830_v47 }
  0xe3   : > { %v7626_v60 = vld [vmem:[#allocation2 + $0x20] sm:$0xff] }
  0xe4   : > { %895 = vst.msk [vmem:[#allocation2 + $0x28] sm:$0xf] %vm516_vm0, %v862_v49  ;;  %6446 = vmatmul.msk.bf16.gmra.mxu1 %vm1227_vm3, %v7609_v45  ;;  %v1594_v63 = vshll.u32 %v7626_v60, 16  ;;  %v1598_v18 = vshrl.u32 %v7626_v60, 16 }
  0xe5   : > { %v757_v51 = vpop.f32.mrf.mxu0 }
  0xe6   : > { %v758_v54 = vadd.f32 %v7590_v23, %v757_v51  ;;  %v1596_v4 = vrot.slane %v1594_v63, 1 }
  0xe8   : > { %v831_v56 = vmax.f32 %v758_v54, 0.0  ;;  %6299 = vmatmul.msk.bf16.gmra.mxu0 %vm689_vm1, %v6791_v50  ;;  %v7638_v8 = vsel %vm1566_vm4, %v1593_v6, %v1596_v4  ;;  %v1600_v21 = vor.u32 %v1598_v18, %v1596_v4  ;;  %v2800_v54 = vsel %vm1324_vm2, %v2784_v52, 0 }
  0xe9   : > { %6477 = vmatmul.msk.bf16.gmra.mxu2 %vm1227_vm3, %v7621_v57  ;;  %2809 = vmatpush.bf16.msrb.mxu0 %v2800_v54 }
  0xea   : > { %v863_v58 = vpack.c.bf16 %v831_v56, %v831_v56 }
  0xeb   : > { %v7643_v11 = vld [vmem:[#allocation2 + $0x28] sm:$0xff] }
  0xec   : > { %896 = vst.msk [vmem:[#allocation2 + $0x34] sm:$0xf] %vm516_vm0, %v863_v58  ;;  %v1601_v14 = vshll.u32 %v7643_v11, 16  ;;  %v1605_v36 = vshrl.u32 %v7643_v11, 16 }
  0xed   : > { %v759_v59 = vpop.f32.mrf.mxu0 }
  0xee   : > { %v760_v61 = vadd.f32 %v7590_v23, %v759_v59  ;;  %v1603_v19 = vrot.slane %v1601_v14, 1 }
  0xf0   : > { %v832_v62 = vmax.f32 %v760_v61, 0.0  ;;  %v7655_v24 = vsel %vm1566_vm4, %v1600_v21, %v1603_v19  ;;  %v1607_v39 = vor.u32 %v1605_v36, %v1603_v19 }
  0xf1   : > { %10266 = vst [vmem:[#allocation26_spill] sm:$0xff] %v7655_v24 }
  0xf2   : > { %v864_v0 = vpack.c.bf16 %v832_v62, %v832_v62 }
  0xf3   : > { %v7660_v27 = vld [vmem:[#allocation2 + $0x30] sm:$0xff]  ;;  %v1337_v32 = vpop.f32.mrf.mxu1 }
  0xf4   : > { %897 = vst.msk [vmem:[#allocation2 + $0x38] sm:$0xf] %vm516_vm0, %v864_v0  ;;  %6447 = vmatmul.msk.bf16.gmra.mxu1 %vm1227_vm3, %v7626_v60  ;;  %v1608_v30 = vshll.u32 %v7660_v27, 16  ;;  %v1612_v56 = vshrl.u32 %v7660_v27, 16 }
  0xf5   : > { %v762_v2 = vpop.f32.mrf.mxu0  ;;  %1497 = vst.msk [vmem:[#allocation3] sm:$0xff] %vm1227_vm3, %v1337_v32 }
  0xf6   : > { %v763_v5 = vadd.f32 %v7590_v23, %v762_v2  ;;  %v1610_v37 = vrot.slane %v1608_v30, 1  ;;  %v2256_v2 = vld [vmem:[#allocation10 + $0x4] sm:$0x3] }
  0xf8   : > { %v833_v7 = vmax.f32 %v763_v5, 0.0  ;;  %6300 = vmatmul.msk.bf16.gmra.mxu0 %vm689_vm1, %v6792_v1  ;;  %v7673_v41 = vsel %vm1566_vm4, %v1607_v39, %v1610_v37  ;;  %v1614_v61 = vor.u32 %v1612_v56, %v1610_v37  ;;  %v2420_v5 = vsel %vm1324_vm2, %v2256_v2, 0 }
  0xf9   : > { %6478 = vmatmul.msk.bf16.gmra.mxu2 %vm1227_vm3, %v7638_v8  ;;  %10267 = vst [vmem:[#allocation27_spill] sm:$0xff] %v7673_v41  ;;  %2429 = vmatpush.bf16.msrb.mxu3 %v2420_v5 }
  0xfa   : > { %v865_v9 = vpack.c.bf16 %v833_v7, %v833_v7 }
  0xfb   : > { %v1339_v43 = vpop.f32.mrf.mxu1  ;;  %v7679_v46 = vld [vmem:[#allocation2 + $0x38] sm:$0xff] }
  0xfc   : > { %898 = vst.msk [vmem:[#allocation2 + $0x44] sm:$0xf] %vm516_vm0, %v865_v9  ;;  %v1615_v49 = vshll.u32 %v7679_v46, 16  ;;  %v2063_v14 = vld [vmem:[#allocation3] sm:$0xff] }
  0xfd   : > { %v764_v10 = vpop.f32.mrf.mxu0  ;;  %1498 = vst.msk [vmem:[#allocation3 + $0x8] sm:$0xff] %vm1227_vm3, %v1339_v43 }
  0xfe   : > { %v765_v12 = vadd.f32 %v7590_v23, %v764_v10  ;;  %v1617_v58 = vrot.slane %v1615_v49, 1 }
 0x100   : > { %v834_v13 = vmax.f32 %v765_v12, 0.0  ;;  %v7693_v63 = vsel %vm1566_vm4, %v1614_v61, %v1617_v58  ;;  %v1903_v12 = vpop.f32.mrf.mxu2 }
 0x101   : > { %10268 = vst [vmem:[#allocation28_spill] sm:$0xff] %v7693_v63  ;;  %v2127_v18 = vadd.f32 %v2063_v14, %v1903_v12 }
 0x102   : > { %v866_v15 = vpack.c.bf16 %v834_v13, %v834_v13  ;;  %v6796_v13 = vld [vmem:[%s7502_s30 + $0x78] sm:$0xff] }
 0x103   : > { %v1342_v51 = vpop.f32.mrf.mxu1  ;;  %v7699_v4 = vld [vmem:[#allocation2 + $0x40] sm:$0xff]  ;;  %2191 = vst.msk [vmem:[#allocation3] sm:$0xff] %vm1227_vm3, %v2127_v18 }
 0x104   : > { %899 = vst.msk [vmem:[#allocation2 + $0x48] sm:$0xf] %vm516_vm0, %v866_v15  ;;  %6448 = vmatmul.msk.bf16.gmra.mxu1 %vm1227_vm3, %v7643_v11  ;;  %v1622_v9 = vshll.u32 %v7699_v4, 16 }
 0x105   : > { %v767_v17 = vpop.f32.mrf.mxu0  ;;  %1499 = vst.msk [vmem:[#allocation3 + $0x10] sm:$0xff] %vm1227_vm3, %v1342_v51 }
 0x106   : > { %v768_v20 = vadd.f32 %v7590_v23, %v767_v17  ;;  %v1624_v17 = vrot.slane %v1622_v9, 1 }
 0x108   : > { %v835_v22 = vmax.f32 %v768_v20, 0.0  ;;  %6301 = vmatmul.msk.bf16.gmra.mxu0 %vm689_vm1, %v6793_v16  ;;  %v1619_v16 = vshrl.u32 %v7679_v46, 16 }
 0x109   : > { %6479 = vmatmul.msk.bf16.gmra.mxu2 %vm1227_vm3, %v7655_v24 }
 0x10a   : > { %v867_v25 = vpack.c.bf16 %v835_v22, %v835_v22  ;;  %v1621_v20 = vor.u32 %v1619_v16, %v1617_v58 }
 0x10b   : > { %v1344_v1 = vpop.f32.mrf.mxu1  ;;  %v7718_v30 = vld [vmem:[#allocation2 + $0x48] sm:$0xff] }
 0x10c   : > { %900 = vst.msk [vmem:[#allocation2 + $0x54] sm:$0xf] %vm516_vm0, %v867_v25  ;;  %v7713_v22 = vsel %vm1566_vm4, %v1621_v20, %v1624_v17  ;;  %v1633_v61 = vshrl.u32 %v7718_v30, 16 }
 0x10d   : > { %v769_v26 = vpop.f32.mrf.mxu0  ;;  %1500 = vst.msk [vmem:[#allocation3 + $0x18] sm:$0xff] %vm1227_vm3, %v1344_v1 }
 0x10e   : > { %v770_v28 = vadd.f32 %v7590_v23, %v769_v26  ;;  %10269 = vst [vmem:[#allocation29_spill] sm:$0xff] %v7713_v22  ;;  %v1905_v26 = vpop.f32.mrf.mxu2 }
 0x110   : > { %v836_v29 = vmax.f32 %v770_v28, 0.0  ;;  %v2064_v28 = vld [vmem:[#allocation3 + $0x8] sm:$0xff] }
 0x112   : > { %v868_v31 = vpack.c.bf16 %v836_v29, %v836_v29 }
 0x113   : > { %v7741_v52 = vld [vmem:[#allocation2 + $0x50] sm:$0xff] }
 0x114   : > { %901 = vst.msk [vmem:[#allocation2 + $0x58] sm:$0xf] %vm516_vm0, %v868_v31  ;;  %6449 = vmatmul.msk.bf16.gmra.mxu1 %vm1227_vm3, %v7660_v27  ;;  %v2128_v31 = vadd.f32 %v2064_v28, %v1905_v26 }
 0x115   : > { %v772_v35 = vpop.f32.mrf.mxu0 }
 0x116   : > { %v773_v38 = vadd.f32 %v7590_v23, %v772_v35  ;;  %2192 = vst.msk [vmem:[#allocation3 + $0x8] sm:$0xff] %vm1227_vm3, %v2128_v31  ;;  %v1629_v35 = vshll.u32 %v7718_v30, 16 }
 0x118   : > { %v837_v40 = vmax.f32 %v773_v38, 0.0  ;;  %6302 = vmatmul.msk.bf16.gmra.mxu0 %vm689_vm1, %v6794_v33  ;;  %v3164_v38 = vld [vmem:[#allocation10 + $0x8] sm:$0x3] }
 0x119   : > { %6480 = vmatmul.msk.bf16.gmra.mxu2 %vm1227_vm3, %v7673_v41  ;;  %v3197_v43 = vsel %vm1324_vm2, %v3164_v38, 0 }
 0x11a   : > { %v869_v42 = vpack.c.bf16 %v837_v40, %v837_v40  ;;  %v1626_v40 = vshrl.u32 %v7699_v4, 16  ;;  %3206 = vmatpush.bf16.msrb.mxu1 %v3197_v43 }
 0x11b   : > { %v7764_v12 = vld [vmem:[#allocation2 + $0x58] sm:$0xff] }
 0x11c   : > { %902 = vst.msk [vmem:[#allocation2 + $0x64] sm:$0xf] %vm516_vm0, %v869_v42  ;;  %v1631_v42 = vrot.slane %v1629_v35, 1 }
 0x11d   : > { %v774_v44 = vpop.f32.mrf.mxu0 }
 0x11e   : > { %v775_v47 = vadd.f32 %v7590_v23, %v774_v44  ;;  %v1635_v1 = vor.u32 %v1633_v61, %v1631_v42 }
 0x120   : > { %v838_v48 = vmax.f32 %v775_v47, 0.0  ;;  %v1628_v47 = vor.u32 %v1626_v40, %v1624_v17 }
 0x122   : > { %v870_v50 = vpack.c.bf16 %v838_v48, %v838_v48  ;;  %v7736_v49 = vsel %vm1566_vm4, %v1628_v47, %v1631_v42 }
 0x123   : > { %10270 = vst [vmem:[#allocation30_spill] sm:$0xff] %v7736_v49  ;;  %v7789_v42 = vld [vmem:[#allocation2 + $0x60] sm:$0xff] }
 0x124   : > { %903 = vst.msk [vmem:[#allocation2 + $0x68] sm:$0xf] %vm516_vm0, %v870_v50  ;;  %6450 = vmatmul.msk.bf16.gmra.mxu1 %vm1227_vm3, %v7679_v46  ;;  %v1650_v47 = vshll.u32 %v7789_v42, 16 }
 0x125   : > { %v777_v55 = vpop.f32.mrf.mxu0 }
 0x126   : > { %v778_v59 = vadd.f32 %v7590_v23, %v777_v55  ;;  %v1636_v55 = vshll.u32 %v7741_v52, 16 }
 0x128   : > { %v839_v62 = vmax.f32 %v778_v59, 0.0  ;;  %6303 = vmatmul.msk.bf16.gmra.mxu0 %vm689_vm1, %v6795_v53 }
 0x129   : > { %6481 = vmatmul.msk.bf16.gmra.mxu2 %vm1227_vm3, %v7693_v63 }
 0x12a   : > { %v871_v0 = vpack.c.bf16 %v839_v62, %v839_v62  ;;  %v1638_v62 = vrot.slane %v1636_v55, 1 }
 0x12c   : > { %904 = vst.msk [vmem:[#allocation2 + $0x74] sm:$0xf] %vm516_vm0, %v871_v0 }
 0x12d   : > { %v779_v3 = vpop.f32.mrf.mxu0 }
 0x12e   : > { %v780_v6 = vadd.f32 %v7590_v23, %v779_v3  ;;  %v7758_v3 = vsel %vm1566_vm4, %v1635_v1, %v1638_v62 }
 0x12f   : > { %10271 = vst [vmem:[#allocation31_spill] sm:$0xff] %v7758_v3 }
 0x130   : > { %v840_v7 = vmax.f32 %v780_v6, 0.0 }
 0x132   : > { %v872_v10 = vpack.c.bf16 %v840_v7, %v840_v7  ;;  %v2065_v7 = vld [vmem:[#allocation3 + $0x10] sm:$0xff] }
 0x134   : > { %905 = vst.msk [vmem:[#allocation2 + $0x78] sm:$0xf] %vm516_vm0, %v872_v10  ;;  %6451 = vmatmul.msk.bf16.gmra.mxu1 %vm1227_vm3, %v7699_v4 }
 0x135   : > { %v782_v15 = vpop.f32.mrf.mxu0 }
 0x136   : > { %v783_v19 = vadd.f32 %v7590_v23, %v782_v15  ;;  %v1643_v15 = vshll.u32 %v7764_v12, 16 }
 0x138   : > { %v841_v21 = vmax.f32 %v783_v19, 0.0  ;;  %6304 = vmatmul.msk.bf16.gmra.mxu0 %vm689_vm1, %v6796_v13  ;;  %v2066_v19 = vld [vmem:[#allocation3 + $0x18] sm:$0xff]  ;;  %v1645_v26 = vrot.slane %v1643_v15, 1 }
 0x139   : > { %6482 = vmatmul.msk.bf16.gmra.mxu2 %vm1227_vm3, %v7713_v22 }
 0x13a   : > { %v873_v25 = vpack.c.bf16 %v841_v21, %v841_v21 }
 0x13c   : > { %906 = vst.msk [vmem:[#allocation2 + $0x84] sm:$0xf] %vm516_vm0, %v873_v25  ;;  %v1640_v25 = vshrl.u32 %v7741_v52, 16 }
 0x13d   : > { %v784_v29 = vpop.f32.mrf.mxu0 }
 0x13e   : > { %v785_v32 = vadd.f32 %v7590_v23, %v784_v29  ;;  %v1642_v31 = vor.u32 %v1640_v25, %v1638_v62  ;;  %v1654_v25 = vshrl.u32 %v7789_v42, 16 }
 0x140   : > { %v842_v33 = vmax.f32 %v785_v32, 0.0 }
 0x142   : > { %v874_v36 = vpack.c.bf16 %v842_v33, %v842_v33  ;;  %v7783_v33 = vsel %vm1566_vm4, %v1642_v31, %v1645_v26 }
 0x143   : > { %v7723_v37 = vld [vmem:[#allocation2 + $0x80] sm:$0xff]  ;;  %10272 = vst [vmem:[#allocation32_spill] sm:$0xff] %v7783_v33 }
 0x144   : > { %907 = vst.msk [vmem:[#allocation2 + $0x88] sm:$0xf] %vm516_vm0, %v874_v36  ;;  %6452 = vmatmul.msk.bf16.gmra.mxu1 %vm1227_vm3, %v7718_v30  ;;  %6459 = vmatmul.msk.bf16.vlgmr.msra.gmra.mxu3 %vm1227_vm3, %v7723_v37 }
 0x145   : > { %v787_v39 = vpop.f32.mrf.mxu0 }
 0x146   : > { %v788_v44 = vadd.f32 %v7590_v23, %v787_v39 }
 0x148   : > { %v843_v48 = vmax.f32 %v788_v44, 0.0  ;;  %6543 = vmatmul.msk.bf16.vlgmr.msrb.gmra.mxu0 %vm1227_vm3, %v7597_v34 }
 0x149   : > { %6483 = vmatmul.msk.bf16.gmra.mxu2 %vm1227_vm3, %v7736_v49 }
 0x14a   : > { %v875_v50 = vpack.c.bf16 %v843_v48, %v843_v48 }
 0x14b   : > { %v7746_v34 = vld [vmem:[#allocation2 + $0x88] sm:$0xff] }
 0x14c   : > { %908 = vst.msk [vmem:[#allocation2 + $0x94] sm:$0xf] %vm516_vm0, %v875_v50 }
 0x14d   : > { %v789_v51 = vpop.f32.mrf.mxu0 }
 0x14e   : > { %v790_v53 = vadd.f32 %v7590_v23, %v789_v51 }
 0x150   : > { %v844_v54 = vmax.f32 %v790_v53, 0.0 }
 0x151   : > { %v1347_v58 = vpop.f32.mrf.mxu1 }
 0x152   : > { %v876_v56 = vpack.c.bf16 %v844_v54, %v844_v54  ;;  %1501 = vst.msk [vmem:[#allocation3 + $0x20] sm:$0xff] %vm1227_vm3, %v1347_v58  ;;  %v1652_v58 = vrot.slane %v1650_v47, 1 }
 0x153   : > { %v7770_v18 = vld [vmem:[#allocation2 + $0x90] sm:$0xff] }
 0x154   : > { %909 = vst.msk [vmem:[#allocation2 + $0x98] sm:$0xf] %vm516_vm0, %v876_v56  ;;  %6453 = vmatmul.msk.bf16.gmra.mxu1 %vm1227_vm3, %v7741_v52  ;;  %6460 = vmatmul.msk.bf16.gmra.mxu3 %vm1227_vm3, %v7746_v34  ;;  %v1647_v56 = vshrl.u32 %v7764_v12, 16  ;;  %v1656_v31 = vor.u32 %v1654_v25, %v1652_v58 }
 0x155   : > { %v792_v59 = vpop.f32.mrf.mxu0 }
 0x156   : > { %v793_v0 = vadd.f32 %v7590_v23, %v792_v59  ;;  %v1649_v62 = vor.u32 %v1647_v56, %v1645_v26 }
 0x158   : > { %v845_v2 = vmax.f32 %v793_v0, 0.0  ;;  %6544 = vmatmul.msk.bf16.gmra.mxu0 %vm1227_vm3, %v7609_v45  ;;  %v7808_v1 = vsel %vm1566_vm4, %v1649_v62, %v1652_v58 }
 0x159   : > { %v1349_v6 = vpop.f32.mrf.mxu1  ;;  %6484 = vmatmul.msk.bf16.gmra.mxu2 %vm1227_vm3, %v7758_v3  ;;  %v2067_v40 = vld [vmem:[#allocation3 + $0x20] sm:$0xff]  ;;  %10273 = vst [vmem:[#allocation33_spill] sm:$0xff] %v7808_v1 }
 0x15a   : > { %v877_v5 = vpack.c.bf16 %v845_v2, %v845_v2  ;;  %1502 = vst.msk [vmem:[#allocation3 + $0x28] sm:$0xff] %vm1227_vm3, %v1349_v6 }
 0x15b   : > { %v7795_v51 = vld [vmem:[#allocation2 + $0x98] sm:$0xff] }
 0x15c   : > { %910 = vst.msk [vmem:[#allocation2 + $0xa4] sm:$0xf] %vm516_vm0, %v877_v5  ;;  %v1908_v10 = vpop.f32.mrf.mxu2 }
 0x15d   : > { %v794_v9 = vpop.f32.mrf.mxu0  ;;  %v2129_v45 = vadd.f32 %v2065_v7, %v1908_v10  ;;  %v7814_v10 = vld [vmem:[#allocation2 + $0x68] sm:$0xff] }
 0x15e   : > { %v795_v13 = vadd.f32 %v7590_v23, %v794_v9 }
 0x15f   : > { %2193 = vst.msk [vmem:[#allocation3 + $0x10] sm:$0xff] %vm1227_vm3, %v2129_v45 }
 0x160   : > { %v846_v14 = vmax.f32 %v795_v13, 0.0 }
 0x161   : > { %v1352_v17 = vpop.f32.mrf.mxu1  ;;  %v2068_v55 = vld [vmem:[#allocation3 + $0x28] sm:$0xff] }
 0x162   : > { %v878_v16 = vpack.c.bf16 %v846_v14, %v846_v14  ;;  %1503 = vst.msk [vmem:[#allocation3 + $0x30] sm:$0xff] %vm1227_vm3, %v1352_v17  ;;  %v1657_v14 = vshll.u32 %v7814_v10, 16 }
 0x163   : > { %v7820_v17 = vld [vmem:[#allocation2 + $0xa0] sm:$0xff] }
 0x164   : > { %911 = vst.msk [vmem:[#allocation2 + $0xa8] sm:$0xf] %vm516_vm0, %v878_v16  ;;  %6454 = vmatmul.msk.bf16.gmra.mxu1 %vm1227_vm3, %v7764_v12  ;;  %6461 = vmatmul.msk.bf16.gmra.mxu3 %vm1227_vm3, %v7770_v18  ;;  %v1910_v21 = vpop.f32.mrf.mxu2  ;;  %v1659_v26 = vrot.slane %v1657_v14, 1  ;;  %v7864_v14 = vld [vmem:[#allocation2 + $0x78] sm:$0xff] }
 0x165   : > { %v797_v20 = vpop.f32.mrf.mxu0  ;;  %v2130_v29 = vadd.f32 %v2066_v19, %v1910_v21 }
 0x166   : > { %v798_v28 = vadd.f32 %v7590_v23, %v797_v20 }
 0x167   : > { %2194 = vst.msk [vmem:[#allocation3 + $0x18] sm:$0xff] %vm1227_vm3, %v2130_v29 }
 0x168   : > { %v847_v32 = vmax.f32 %v798_v28, 0.0  ;;  %6545 = vmatmul.msk.bf16.gmra.mxu0 %vm1227_vm3, %v7626_v60 }
 0x169   : > { %v1354_v36 = vpop.f32.mrf.mxu1  ;;  %6485 = vmatmul.msk.bf16.gmra.mxu2 %vm1227_vm3, %v7783_v33  ;;  %v2069_v9 = vld [vmem:[#allocation3 + $0x30] sm:$0xff] }
 0x16a   : > { %v879_v35 = vpack.c.bf16 %v847_v32, %v847_v32  ;;  %1504 = vst.msk [vmem:[#allocation3 + $0x38] sm:$0xff] %vm1227_vm3, %v1354_v36 }
 0x16c   : > { %912 = vst.msk [vmem:[#allocation2 + $0xb4] sm:$0xf] %vm516_vm0, %v879_v35  ;;  %v1913_v39 = vpop.f32.mrf.mxu2  ;;  %v7833_v35 = vsel %vm1566_vm4, %v1656_v31, %v1659_v26 }
 0x16d   : > { %v799_v38 = vpop.f32.mrf.mxu0  ;;  %v2131_v60 = vadd.f32 %v2067_v40, %v1913_v39  ;;  %10274 = vst [vmem:[#allocation34_spill] sm:$0xff] %v7833_v35 }
 0x16e   : > { %v800_v43 = vadd.f32 %v7590_v23, %v799_v38 }
 0x16f   : > { %2195 = vst.msk [vmem:[#allocation3 + $0x20] sm:$0xff] %vm1227_vm3, %v2131_v60  ;;  %v7839_v60 = vld [vmem:[#allocation2 + $0x70] sm:$0xff] }
 0x170   : > { %v848_v44 = vmax.f32 %v800_v43, 0.0  ;;  %v1668_v31 = vshrl.u32 %v7839_v60, 16 }
 0x171   : > { %v1357_v50 = vpop.f32.mrf.mxu1  ;;  %v2070_v21 = vld [vmem:[#allocation3 + $0x38] sm:$0xff] }
 0x172   : > { %v880_v48 = vpack.c.bf16 %v848_v44, %v848_v44  ;;  %1505 = vst.msk [vmem:[#allocation3 + $0x40] sm:$0xff] %vm1227_vm3, %v1357_v50 }
 0x173   : > { %v7870_v25 = vld [vmem:[#allocation2 + $0xb0] sm:$0xff] }
 0x174   : > { %913 = vst.msk [vmem:[#allocation2 + $0xb8] sm:$0xf] %vm516_vm0, %v880_v48  ;;  %6455 = vmatmul.msk.bf16.gmra.mxu1 %vm1227_vm3, %v7789_v42  ;;  %6462 = vmatmul.msk.bf16.gmra.mxu3 %vm1227_vm3, %v7795_v51  ;;  %v1915_v54 = vpop.f32.mrf.mxu2  ;;  %v1664_v48 = vshll.u32 %v7839_v60, 16 }
 0x175   : > { %v802_v53 = vpop.f32.mrf.mxu0  ;;  %v2132_v61 = vadd.f32 %v2068_v55, %v1915_v54  ;;  %v7845_v54 = vld [vmem:[#allocation2 + $0xa8] sm:$0xff] }
 0x176   : > { %v803_v59 = vadd.f32 %v7590_v23, %v802_v53 }
 0x177   : > { %2196 = vst.msk [vmem:[#allocation3 + $0x28] sm:$0xff] %vm1227_vm3, %v2132_v61  ;;  %v1666_v61 = vrot.slane %v1664_v48, 1 }
 0x178   : > { %v849_v0 = vmax.f32 %v803_v59, 0.0  ;;  %6546 = vmatmul.msk.bf16.gmra.mxu0 %vm1227_vm3, %v7643_v11  ;;  %v1661_v59 = vshrl.u32 %v7814_v10, 16 }
 0x179   : > { %v1359_v5 = vpop.f32.mrf.mxu1  ;;  %6486 = vmatmul.msk.bf16.gmra.mxu2 %vm1227_vm3, %v7808_v1  ;;  %v2071_v43 = vld [vmem:[#allocation3 + $0x40] sm:$0xff] }
 0x17a   : > { %v881_v2 = vpack.c.bf16 %v849_v0, %v849_v0  ;;  %1506 = vst.msk [vmem:[#allocation3 + $0x48] sm:$0xff] %vm1227_vm3, %v1359_v5 }
 0x17c   : > { %914 = vst.msk [vmem:[#allocation2 + $0xc4] sm:$0xf] %vm516_vm0, %v881_v2  ;;  %v1918_v7 = vpop.f32.mrf.mxu2  ;;  %v1663_v2 = vor.u32 %v1661_v59, %v1659_v26 }
 0x17d   : > { %v804_v6 = vpop.f32.mrf.mxu0  ;;  %v2133_v11 = vadd.f32 %v2069_v9, %v1918_v7 }
 0x17e   : > { %v805_v13 = vadd.f32 %v7590_v23, %v804_v6  ;;  %v7858_v6 = vsel %vm1566_vm4, %v1663_v2, %v1666_v61 }
 0x17f   : > { %2197 = vst.msk [vmem:[#allocation3 + $0x30] sm:$0xff] %vm1227_vm3, %v2133_v11 }
 0x180   : > { %v850_v45 = vmax.f32 %v805_v13, 0.0  ;;  %10275 = vst [vmem:[#allocation35_spill] sm:$0xff] %v7858_v6 }
 0x181   : > { %v1362_v16 = vpop.f32.mrf.mxu1  ;;  %v2072_v58 = vld [vmem:[#allocation3 + $0x48] sm:$0xff] }
 0x182   : > { %v882_v15 = vpack.c.bf16 %v850_v45, %v850_v45  ;;  %1507 = vst.msk [vmem:[#allocation3 + $0x50] sm:$0xff] %vm1227_vm3, %v1362_v16 }
 0x184   : > { %915 = vst.msk [vmem:[#allocation2 + $0xc8] sm:$0xf] %vm516_vm0, %v882_v15  ;;  %6456 = vmatmul.msk.bf16.gmra.mxu1 %vm1227_vm3, %v7814_v10  ;;  %6463 = vmatmul.msk.bf16.gmra.mxu3 %vm1227_vm3, %v7820_v17  ;;  %v1920_v20 = vpop.f32.mrf.mxu2 }
 0x185   : > { %v807_v19 = vpop.f32.mrf.mxu0  ;;  %v2134_v29 = vadd.f32 %v2070_v21, %v1920_v20 }
 0x186   : > { %v808_v28 = vadd.f32 %v7590_v23, %v807_v19  ;;  %v1671_v19 = vshll.u32 %v7864_v14, 16 }
 0x187   : > { %2198 = vst.msk [vmem:[#allocation3 + $0x38] sm:$0xff] %vm1227_vm3, %v2134_v29 }
 0x188   : > { %v851_v32 = vmax.f32 %v808_v28, 0.0  ;;  %6547 = vmatmul.msk.bf16.gmra.mxu0 %vm1227_vm3, %v7660_v27 }
 0x189   : > { %v1364_v38 = vpop.f32.mrf.mxu1  ;;  %6487 = vmatmul.msk.bf16.gmra.mxu2 %vm1227_vm3, %v7833_v35  ;;  %v2073_v45 = vld [vmem:[#allocation3 + $0x50] sm:$0xff] }
 0x18a   : > { %v883_v36 = vpack.c.bf16 %v851_v32, %v851_v32  ;;  %1508 = vst.msk [vmem:[#allocation3 + $0x58] sm:$0xff] %vm1227_vm3, %v1364_v38  ;;  %v1673_v32 = vrot.slane %v1671_v19, 1 }
 0x18c   : > { %916 = vst.msk [vmem:[#allocation2 + $0xd4] sm:$0xf] %vm516_vm0, %v883_v36  ;;  %v1923_v40 = vpop.f32.mrf.mxu2 }
 0x18d   : > { %v809_v39 = vpop.f32.mrf.mxu0  ;;  %v2135_v27 = vadd.f32 %v2071_v43, %v1923_v40 }
 0x18e   : > { %v810_v44 = vadd.f32 %v7590_v23, %v809_v39  ;;  %v1670_v39 = vor.u32 %v1668_v31, %v1666_v61  ;;  %v7893_v61 = vld [vmem:[#allocation2 + $0xb8] sm:$0xff] }
 0x18f   : > { %2199 = vst.msk [vmem:[#allocation3 + $0x40] sm:$0xff] %vm1227_vm3, %v2135_v27 }
 0x190   : > { %v852_v47 = vmax.f32 %v810_v44, 0.0  ;;  %v7883_v43 = vsel %vm1566_vm4, %v1670_v39, %v1673_v32  ;;  %v1682_v39 = vshrl.u32 %v7723_v37, 16 }
 0x191   : > { %v1367_v53 = vpop.f32.mrf.mxu1  ;;  %v2074_v29 = vld [vmem:[#allocation3 + $0x58] sm:$0xff]  ;;  %10276 = vst [vmem:[#allocation36_spill] sm:$0xff] %v7883_v43 }
 0x192   : > { %v884_v50 = vpack.c.bf16 %v852_v47, %v852_v47  ;;  %1509 = vst.msk [vmem:[#allocation3 + $0x60] sm:$0xff] %vm1227_vm3, %v1367_v53 }
 0x194   : > { %917 = vst.msk [vmem:[#allocation2 + $0xd8] sm:$0xf] %vm516_vm0, %v884_v50  ;;  %6457 = vmatmul.msk.bf16.gmra.mxu1 %vm1227_vm3, %v7839_v60  ;;  %6464 = vmatmul.msk.bf16.gmra.mxu3 %vm1227_vm3, %v7845_v54  ;;  %v1925_v56 = vpop.f32.mrf.mxu2 }
 0x195   : > { %v812_v55 = vpop.f32.mrf.mxu0  ;;  %v2136_v0 = vadd.f32 %v2072_v58, %v1925_v56 }
 0x196   : > { %v813_v62 = vadd.f32 %v7590_v23, %v812_v55 }
 0x197   : > { %2200 = vst.msk [vmem:[#allocation3 + $0x48] sm:$0xff] %vm1227_vm3, %v2136_v0 }
 0x198   : > { %v853_v5 = vmax.f32 %v813_v62, 0.0  ;;  %6548 = vmatmul.msk.bf16.gmra.mxu0 %vm1227_vm3, %v7679_v46 }
 0x199   : > { %v1369_v9 = vpop.f32.mrf.mxu1  ;;  %6488 = vmatmul.msk.bf16.gmra.mxu2 %vm1227_vm3, %v7858_v6  ;;  %v2075_v50 = vld [vmem:[#allocation3 + $0x60] sm:$0xff] }
 0x19a   : > { %v885_v7 = vpack.c.bf16 %v853_v5, %v853_v5  ;;  %1510 = vst.msk [vmem:[#allocation3 + $0x68] sm:$0xff] %vm1227_vm3, %v1369_v9  ;;  %v1675_v5 = vshrl.u32 %v7864_v14, 16 }
 0x19c   : > { %918 = vst.msk [vmem:[#allocation2 + $0xe4] sm:$0xf] %vm516_vm0, %v885_v7  ;;  %v1928_v11 = vpop.f32.mrf.mxu2 }
 0x19d   : > { %v814_v13 = vpop.f32.mrf.mxu0  ;;  %v2137_v46 = vadd.f32 %v2073_v45, %v1928_v11  ;;  %v1677_v11 = vor.u32 %v1675_v5, %v1673_v32  ;;  %v7916_v32 = vld [vmem:[#allocation2 + $0xc0] sm:$0xff]  ;;  %v1689_v5 = vshrl.u32 %v7746_v34, 16 }
 0x19e   : > { %v815_v15 = vadd.f32 %v7590_v23, %v814_v13 }
 0x19f   : > { %2201 = vst.msk [vmem:[#allocation3 + $0x50] sm:$0xff] %vm1227_vm3, %v2137_v46 }
 0x1a0   : > { %v854_v16 = vmax.f32 %v815_v15, 0.0 }
 0x1a1   : > { %v1372_v21 = vpop.f32.mrf.mxu1  ;;  %v2076_v2 = vld [vmem:[#allocation3 + $0x68] sm:$0xff] }
 0x1a2   : > { %v886_v20 = vpack.c.bf16 %v854_v16, %v854_v16  ;;  %1511 = vst.msk [vmem:[#allocation3 + $0x70] sm:$0xff] %vm1227_vm3, %v1372_v21 }
 0x1a4   : > { %919 = vst.msk [vmem:[#allocation2 + $0xe8] sm:$0xf] %vm516_vm0, %v886_v20  ;;  %6458 = vmatmul.msk.bf16.gmra.mxu1 %vm1227_vm3, %v7864_v14  ;;  %6465 = vmatmul.msk.bf16.gmra.mxu3 %vm1227_vm3, %v7870_v25  ;;  %v1930_v28 = vpop.f32.mrf.mxu2 }
 0x1a5   : > { %v817_v26 = vpop.f32.mrf.mxu0  ;;  %v2138_v38 = vadd.f32 %v2074_v29, %v1930_v28 }
 0x1a6   : > { %v818_v36 = vadd.f32 %v7590_v23, %v817_v26 }
 0x1a7   : > { %2202 = vst.msk [vmem:[#allocation3 + $0x58] sm:$0xff] %vm1227_vm3, %v2138_v38 }
 0x1a8   : > { %v855_v40 = vmax.f32 %v818_v36, 0.0  ;;  %6549 = vmatmul.msk.bf16.gmra.mxu0 %vm1227_vm3, %v7699_v4  ;;  %v1678_v4 = vshll.u32 %v7723_v37, 16 }
 0x1a9   : > { %v1374_v27 = vpop.f32.mrf.mxu1  ;;  %6489 = vmatmul.msk.bf16.gmra.mxu2 %vm1227_vm3, %v7883_v43  ;;  %v2077_v20 = vld [vmem:[#allocation3 + $0x70] sm:$0xff] }
 0x1aa   : > { %v887_v44 = vpack.c.bf16 %v855_v40, %v855_v40  ;;  %1512 = vst.msk [vmem:[#allocation3 + $0x78] sm:$0xff] %vm1227_vm3, %v1374_v27  ;;  %v1680_v7 = vrot.slane %v1678_v4, 1  ;;  %v1692_v4 = vshll.u32 %v7770_v18, 16 }
 0x1ac   : > { %920 = vst.msk [vmem:[#allocation2 + $0xf4] sm:$0xf] %vm516_vm0, %v887_v44  ;;  %v1933_v48 = vpop.f32.mrf.mxu2  ;;  %v7906_v15 = vsel %vm1566_vm4, %v1677_v11, %v1680_v7  ;;  %v1684_v27 = vor.u32 %v1682_v39, %v1680_v7  ;;  %v1694_v7 = vrot.slane %v1692_v4, 1 }
 0x1ad   : > { %v819_v47 = vpop.f32.mrf.mxu0  ;;  %v2139_v55 = vadd.f32 %v2075_v50, %v1933_v48  ;;  %10277 = vst [vmem:[#allocation37_spill] sm:$0xff] %v7906_v15 }
 0x1ae   : > { %v820_v53 = vadd.f32 %v7590_v23, %v819_v47 }
 0x1af   : > { %2203 = vst.msk [vmem:[#allocation3 + $0x60] sm:$0xff] %vm1227_vm3, %v2139_v55 }
 0x1b0   : > { %v856_v56 = vmax.f32 %v820_v53, 0.0 }
 0x1b1   : > { %v1377_v59 = vpop.f32.mrf.mxu1  ;;  %v2078_v38 = vld [vmem:[#allocation3 + $0x78] sm:$0xff] }
 0x1b2   : > { %v888_v58 = vpack.c.bf16 %v856_v56, %v856_v56  ;;  %1513 = vst.msk [vmem:[#allocation3 + $0x80] sm:$0xff] %vm1227_vm3, %v1377_v59  ;;  %v7942_v59 = vld [vmem:[#allocation2 + $0xc8] sm:$0xff] }
 0x1b4   : > { %921 = vst.msk [vmem:[#allocation2 + $0xf8] sm:$0xf] %vm516_vm0, %v888_v58  ;;  %6466 = vmatmul.msk.bf16.gmra.mxu3 %vm1227_vm3, %v7893_v61  ;;  %v1935_v0 = vpop.f32.mrf.mxu2  ;;  %6575 = vmatmul.msk.bf16.vlgmr.msrb.gmra.mxu1 %vm1227_vm3, %v7621_v57 }
 0x1b5   : > { %v822_v62 = vpop.f32.mrf.mxu0  ;;  %v2140_v13 = vadd.f32 %v2076_v2, %v1935_v0 }
 0x1b6   : > { %v823_v9 = vadd.f32 %v7590_v23, %v822_v62 }
 0x1b7   : > { %2204 = vst.msk [vmem:[#allocation3 + $0x68] sm:$0xff] %vm1227_vm3, %v2140_v13 }
 0x1b8   : > { %v857_v45 = vmax.f32 %v823_v9, 0.0  ;;  %6550 = vmatmul.msk.bf16.gmra.mxu0 %vm1227_vm3, %v7718_v30  ;;  %v1685_v30 = vshll.u32 %v7746_v34, 16 }
 0x1b9   : > { %v1379_v16 = vpop.f32.mrf.mxu1  ;;  %6490 = vmatmul.msk.bf16.gmra.mxu2 %vm1227_vm3, %v7906_v15  ;;  %v2079_v55 = vld [vmem:[#allocation3 + $0x80] sm:$0xff] }
 0x1ba   : > { %v889_v46 = vpack.c.bf16 %v857_v45, %v857_v45  ;;  %1514 = vst.msk [vmem:[#allocation3 + $0x88] sm:$0xff] %vm1227_vm3, %v1379_v16  ;;  %v1687_v40 = vrot.slane %v1685_v30, 1 }
 0x1bc   : > { %922 = vst.msk [vmem:[#allocation2 + $0x104] sm:$0xf] %vm516_vm0, %v889_v46  ;;  %v1938_v19 = vpop.f32.mrf.mxu2  ;;  %v7931_v48 = vsel %vm1566_vm4, %v1684_v27, %v1687_v40  ;;  %v1691_v13 = vor.u32 %v1689_v5, %v1687_v40  ;;  %v3561_v46 = vld [vmem:[#allocation10 + $0xa] sm:$0x3] }
 0x1bd   : > { %v824_v57 = vpop.f32.mrf.mxu0  ;;  %v2141_v26 = vadd.f32 %v2077_v20, %v1938_v19  ;;  %10278 = vst [vmem:[#allocation38_spill] sm:$0xff] %v7931_v48  ;;  %v7994_v5 = vld [vmem:[#allocation2 + $0xd8] sm:$0xff] }
 0x1be   : > { %v825_v21 = vadd.f32 %v7590_v23, %v824_v57  ;;  %v7956_v45 = vsel %vm1566_vm4, %v1691_v13, %v1694_v7  ;;  %v3578_v57 = vsel %vm1324_vm2, %v3561_v46, 0 }
 0x1bf   : > { %2205 = vst.msk [vmem:[#allocation3 + $0x70] sm:$0xff] %vm1227_vm3, %v2141_v26  ;;  %3587 = vmatpush.bf16.msrb.mxu2 %v3578_v57 }
 0x1c0   : > { %v858_v28 = vmax.f32 %v825_v21, 0.0  ;;  %10279 = vst [vmem:[#allocation39_spill] sm:$0xff] %v7956_v45 }
 0x1c1   : > { %v1382_v31 = vpop.f32.mrf.mxu1  ;;  %v2080_v2 = vld [vmem:[#allocation3 + $0x88] sm:$0xff] }
 0x1c2   : > { %v890_v29 = vpack.c.bf16 %v858_v28, %v858_v28  ;;  %1515 = vst.msk [vmem:[#allocation3 + $0x90] sm:$0xff] %vm1227_vm3, %v1382_v31  ;;  %v1696_v28 = vshrl.u32 %v7770_v18, 16  ;;  %v1699_v31 = vshll.u32 %v7795_v51, 16 }
 0x1c4   : > { %923 = vst.msk [vmem:[#allocation2 + $0x108] sm:$0xf] %vm516_vm0, %v890_v29  ;;  %6467 = vmatmul.msk.bf16.gmra.mxu3 %vm1227_vm3, %v7916_v32  ;;  %v1940_v23 = vpop.f32.mrf.mxu2  ;;  %6576 = vmatmul.msk.bf16.gmra.mxu1 %vm1227_vm3, %v7638_v8  ;;  %v7968_v29 = vld [vmem:[#allocation2 + $0xd0] sm:$0xff]  ;;  %v1698_v40 = vor.u32 %v1696_v28, %v1694_v7  ;;  %v1701_v27 = vrot.slane %v1699_v31, 1  ;;  %v1710_v31 = vshrl.u32 %v7820_v17, 16 }
 0x1c5   : > { %v7919_v36 = vpop.f32.mrf.mxu0  ;;  %v2142_v44 = vadd.f32 %v2078_v38, %v1940_v23 }
 0x1c7   : > { %2206 = vst.msk [vmem:[#allocation3 + $0x78] sm:$0xff] %vm1227_vm3, %v2142_v44  ;;  %v1417_v47 = vpop.f32.mrf.mxu3 }
 0x1c8   : > { %6551 = vmatmul.msk.bf16.gmra.mxu0 %vm1227_vm3, %v7741_v52  ;;  %1529 = vst.msk [vmem:[#allocation3 + $0x100] sm:$0xff] %vm1227_vm3, %v1417_v47 }
 0x1c9   : > { %v1384_v50 = vpop.f32.mrf.mxu1  ;;  %6491 = vmatmul.msk.bf16.gmra.mxu2 %vm1227_vm3, %v7931_v48 }
 0x1ca   : > { %1516 = vst.msk [vmem:[#allocation3 + $0x98] sm:$0xff] %vm1227_vm3, %v1384_v50  ;;  %v7982_v50 = vsel %vm1566_vm4, %v1698_v40, %v1701_v27  ;;  %v1713_v40 = vshll.u32 %v7845_v54, 16 }
 0x1cb   : > { %10280 = vst [vmem:[#allocation40_spill] sm:$0xff] %v7982_v50 }
 0x1cc   : > { %v1943_v53 = vpop.f32.mrf.mxu2 }
 0x1cd   : > { %v7936_v8 = vpop.f32.mrf.mxu0  ;;  %v2143_v56 = vadd.f32 %v2079_v55, %v1943_v53 }
 0x1cf   : > { %2207 = vst.msk [vmem:[#allocation3 + $0x80] sm:$0xff] %vm1227_vm3, %v2143_v56  ;;  %v1419_v52 = vpop.f32.mrf.mxu3 }
 0x1d0   : > { %1530 = vst.msk [vmem:[#allocation3 + $0x108] sm:$0xff] %vm1227_vm3, %v1419_v52 }
 0x1d1   : > { %v1387_v58 = vpop.f32.mrf.mxu1  ;;  %v2082_v39 = vld [vmem:[#allocation3 + $0x98] sm:$0xff] }
 0x1d2   : > { %1517 = vst.msk [vmem:[#allocation3 + $0xa0] sm:$0xff] %vm1227_vm3, %v1387_v58  ;;  %v1703_v58 = vshrl.u32 %v7795_v51, 16 }
 0x1d4   : > { %6468 = vmatmul.msk.bf16.gmra.mxu3 %vm1227_vm3, %v7942_v59  ;;  %v1945_v0 = vpop.f32.mrf.mxu2  ;;  %6577 = vmatmul.msk.bf16.gmra.mxu1 %vm1227_vm3, %v7655_v24 }
 0x1d5   : > { %v7944_v62 = vpop.f32.mrf.mxu0  ;;  %v2144_v9 = vadd.f32 %v2080_v2, %v1945_v0  ;;  %v1706_v0 = vshll.u32 %v7820_v17, 16 }
 0x1d7   : > { %2208 = vst.msk [vmem:[#allocation3 + $0x88] sm:$0xff] %vm1227_vm3, %v2144_v9  ;;  %v1422_v11 = vpop.f32.mrf.mxu3  ;;  %v1708_v46 = vrot.slane %v1706_v0, 1 }
 0x1d8   : > { %6552 = vmatmul.msk.bf16.gmra.mxu0 %vm1227_vm3, %v7764_v12  ;;  %1531 = vst.msk [vmem:[#allocation3 + $0x110] sm:$0xff] %vm1227_vm3, %v1422_v11  ;;  %v2081_v12 = vld [vmem:[#allocation3 + $0x90] sm:$0xff]  ;;  %v1705_v11 = vor.u32 %v1703_v58, %v1701_v27 }
 0x1d9   : > { %v1389_v16 = vpop.f32.mrf.mxu1  ;;  %6492 = vmatmul.msk.bf16.gmra.mxu2 %vm1227_vm3, %v7956_v45  ;;  %v2083_v52 = vld [vmem:[#allocation3 + $0xa0] sm:$0xff] }
 0x1da   : > { %1518 = vst.msk [vmem:[#allocation3 + $0xa8] sm:$0xff] %vm1227_vm3, %v1389_v16 }
 0x1dc   : > { %v1948_v20 = vpop.f32.mrf.mxu2 }
 0x1dd   : > { %v7962_v19 = vpop.f32.mrf.mxu0  ;;  %v2145_v21 = vadd.f32 %v2081_v12, %v1948_v20  ;;  %v8007_v20 = vsel %vm1566_vm4, %v1705_v11, %v1708_v46  ;;  %v1717_v11 = vshrl.u32 %v7845_v54, 16 }
 0x1de   : > { %10281 = vst [vmem:[#allocation41_spill] sm:$0xff] %v8007_v20 }
 0x1df   : > { %2209 = vst.msk [vmem:[#allocation3 + $0x90] sm:$0xff] %vm1227_vm3, %v2145_v21  ;;  %v1424_v26 = vpop.f32.mrf.mxu3 }
 0x1e0   : > { %1532 = vst.msk [vmem:[#allocation3 + $0x118] sm:$0xff] %vm1227_vm3, %v1424_v26 }
 0x1e1   : > { %v1392_v30 = vpop.f32.mrf.mxu1  ;;  %v2084_v13 = vld [vmem:[#allocation3 + $0xa8] sm:$0xff] }
 0x1e2   : > { %1519 = vst.msk [vmem:[#allocation3 + $0xb0] sm:$0xff] %vm1227_vm3, %v1392_v30 }
 0x1e4   : > { %6469 = vmatmul.msk.bf16.gmra.mxu3 %vm1227_vm3, %v7968_v29  ;;  %v1950_v38 = vpop.f32.mrf.mxu2  ;;  %6578 = vmatmul.msk.bf16.gmra.mxu1 %vm1227_vm3, %v7673_v41 }
 0x1e5   : > { %v7971_v23 = vpop.f32.mrf.mxu0  ;;  %v2146_v44 = vadd.f32 %v2082_v39, %v1950_v38  ;;  %v8018_v39 = vld [vmem:[#allocation2 + $0xe0] sm:$0xff] }
 0x1e7   : > { %2210 = vst.msk [vmem:[#allocation3 + $0x98] sm:$0xff] %vm1227_vm3, %v2146_v44  ;;  %v1427_v47 = vpop.f32.mrf.mxu3 }
 0x1e8   : > { %6553 = vmatmul.msk.bf16.gmra.mxu0 %vm1227_vm3, %v7789_v42  ;;  %1533 = vst.msk [vmem:[#allocation3 + $0x120] sm:$0xff] %vm1227_vm3, %v1427_v47 }
 0x1e9   : > { %v1394_v53 = vpop.f32.mrf.mxu1  ;;  %6493 = vmatmul.msk.bf16.gmra.mxu2 %vm1227_vm3, %v7982_v50  ;;  %v2085_v28 = vld [vmem:[#allocation3 + $0xb0] sm:$0xff] }
 0x1ea   : > { %1520 = vst.msk [vmem:[#allocation3 + $0xb8] sm:$0xff] %vm1227_vm3, %v1394_v53  ;;  %v1712_v53 = vor.u32 %v1710_v31, %v1708_v46  ;;  %v1720_v46 = vshll.u32 %v7870_v25, 16 }
 0x1ec   : > { %v1953_v56 = vpop.f32.mrf.mxu2 }
 0x1ed   : > { %v7987_v55 = vpop.f32.mrf.mxu0  ;;  %v2147_v4 = vadd.f32 %v2083_v52, %v1953_v56  ;;  %v1715_v52 = vrot.slane %v1713_v40, 1 }
 0x1ef   : > { %2211 = vst.msk [vmem:[#allocation3 + $0xa0] sm:$0xff] %vm1227_vm3, %v2147_v4  ;;  %v1429_v42 = vpop.f32.mrf.mxu3 }
 0x1f0   : > { %1534 = vst.msk [vmem:[#allocation3 + $0x128] sm:$0xff] %vm1227_vm3, %v1429_v42  ;;  %v8032_v42 = vsel %vm1566_vm4, %v1712_v53, %v1715_v52 }
 0x1f1   : > { %v1397_v2 = vpop.f32.mrf.mxu1  ;;  %v2086_v47 = vld [vmem:[#allocation3 + $0xb8] sm:$0xff]  ;;  %10282 = vst [vmem:[#allocation42_spill] sm:$0xff] %v8032_v42 }
 0x1f2   : > { %1521 = vst.msk [vmem:[#allocation3 + $0xc0] sm:$0xff] %vm1227_vm3, %v1397_v2 }
 0x1f4   : > { %6470 = vmatmul.msk.bf16.gmra.mxu3 %vm1227_vm3, %v7994_v5  ;;  %v1955_v9 = vpop.f32.mrf.mxu2  ;;  %6579 = vmatmul.msk.bf16.gmra.mxu1 %vm1227_vm3, %v7693_v63 }
 0x1f5   : > { %v7996_v7 = vpop.f32.mrf.mxu0  ;;  %v2148_v16 = vadd.f32 %v2084_v13, %v1955_v9 }
 0x1f7   : > { %2212 = vst.msk [vmem:[#allocation3 + $0xa8] sm:$0xff] %vm1227_vm3, %v2148_v16  ;;  %v1432_v57 = vpop.f32.mrf.mxu3 }
 0x1f8   : > { %6554 = vmatmul.msk.bf16.gmra.mxu0 %vm1227_vm3, %v7814_v10  ;;  %1535 = vst.msk [vmem:[#allocation3 + $0x130] sm:$0xff] %vm1227_vm3, %v1432_v57  ;;  %v8044_v57 = vld [vmem:[#allocation2 + $0xe8] sm:$0xff] }
 0x1f9   : > { %v1399_v12 = vpop.f32.mrf.mxu1  ;;  %6494 = vmatmul.msk.bf16.gmra.mxu2 %vm1227_vm3, %v8007_v20  ;;  %v2087_v9 = vld [vmem:[#allocation3 + $0xc0] sm:$0xff] }
 0x1fa   : > { %1522 = vst.msk [vmem:[#allocation3 + $0xc8] sm:$0xff] %vm1227_vm3, %v1399_v12 }
 0x1fc   : > { %v1958_v26 = vpop.f32.mrf.mxu2 }
 0x1fd   : > { %v8012_v21 = vpop.f32.mrf.mxu0  ;;  %v2149_v30 = vadd.f32 %v2085_v28, %v1958_v26 }
 0x1ff   : > { %2213 = vst.msk [vmem:[#allocation3 + $0xb0] sm:$0xff] %vm1227_vm3, %v2149_v30  ;;  %v1434_v10 = vpop.f32.mrf.mxu3  ;;  %v1719_v30 = vor.u32 %v1717_v11, %v1715_v52 }
 0x200   : > { %1536 = vst.msk [vmem:[#allocation3 + $0x138] sm:$0xff] %vm1227_vm3, %v1434_v10  ;;  %v1722_v10 = vrot.slane %v1720_v46, 1 }
 0x201   : > { %v1402_v38 = vpop.f32.mrf.mxu1  ;;  %v2088_v28 = vld [vmem:[#allocation3 + $0xc8] sm:$0xff] }
 0x202   : > { %1523 = vst.msk [vmem:[#allocation3 + $0xd0] sm:$0xff] %vm1227_vm3, %v1402_v38  ;;  %v8057_v40 = vsel %vm1566_vm4, %v1719_v30, %v1722_v10  ;;  %v3942_v30 = vld [vmem:[#allocation10 + $0xc] sm:$0x3] }
 0x203   : > { %10283 = vst [vmem:[#allocation43_spill] sm:$0xff] %v8057_v40 }
 0x204   : > { %6471 = vmatmul.msk.bf16.gmra.mxu3 %vm1227_vm3, %v8018_v39  ;;  %v1960_v27 = vpop.f32.mrf.mxu2  ;;  %6580 = vmatmul.msk.bf16.gmra.mxu1 %vm1227_vm3, %v7713_v22 }
 0x205   : > { %v8021_v44 = vpop.f32.mrf.mxu0  ;;  %v2150_v56 = vadd.f32 %v2086_v47, %v1960_v27 }
 0x207   : > { %2214 = vst.msk [vmem:[#allocation3 + $0xb8] sm:$0xff] %vm1227_vm3, %v2150_v56  ;;  %v1437_v4 = vpop.f32.mrf.mxu3 }
 0x208   : > { %6555 = vmatmul.msk.bf16.gmra.mxu0 %vm1227_vm3, %v7839_v60  ;;  %1537 = vst.msk [vmem:[#allocation3 + $0x140] sm:$0xff] %vm1227_vm3, %v1437_v4  ;;  %v1724_v4 = vshrl.u32 %v7870_v25, 16 }
 0x209   : > { %v1404_v58 = vpop.f32.mrf.mxu1  ;;  %6495 = vmatmul.msk.bf16.gmra.mxu2 %vm1227_vm3, %v8032_v42  ;;  %v2089_v56 = vld [vmem:[#allocation3 + $0xd0] sm:$0xff] }
 0x20a   : > { %1524 = vst.msk [vmem:[#allocation3 + $0xd8] sm:$0xff] %vm1227_vm3, %v1404_v58  ;;  %v1726_v46 = vor.u32 %v1724_v4, %v1722_v10  ;;  %v1734_v4 = vshll.u32 %v7916_v32, 16 }
 0x20c   : > { %v1963_v2 = vpop.f32.mrf.mxu2 }
 0x20d   : > { %v8037_v0 = vpop.f32.mrf.mxu0  ;;  %v2151_v13 = vadd.f32 %v2087_v9, %v1963_v2  ;;  %v8068_v2 = vld [vmem:[#allocation2 + $0xf0] sm:$0xff]  ;;  %v1727_v9 = vshll.u32 %v7893_v61, 16 }
 0x20f   : > { %2215 = vst.msk [vmem:[#allocation3 + $0xc0] sm:$0xff] %vm1227_vm3, %v2151_v13  ;;  %v1439_v60 = vpop.f32.mrf.mxu3 }
 0x210   : > { %1538 = vst.msk [vmem:[#allocation3 + $0x148] sm:$0xff] %vm1227_vm3, %v1439_v60 }
 0x211   : > { %v1407_v16 = vpop.f32.mrf.mxu1  ;;  %v2090_v11 = vld [vmem:[#allocation3 + $0xd8] sm:$0xff] }
 0x212   : > { %1525 = vst.msk [vmem:[#allocation3 + $0xe0] sm:$0xff] %vm1227_vm3, %v1407_v16 }
 0x214   : > { %6472 = vmatmul.msk.bf16.gmra.mxu3 %vm1227_vm3, %v8044_v57  ;;  %v1965_v26 = vpop.f32.mrf.mxu2  ;;  %6581 = vmatmul.msk.bf16.gmra.mxu1 %vm1227_vm3, %v7736_v49 }
 0x215   : > { %v8046_v12 = vpop.f32.mrf.mxu0  ;;  %v2152_v31 = vadd.f32 %v2088_v28, %v1965_v26  ;;  %v1729_v26 = vrot.slane %v1727_v9, 1  ;;  %v8096_v9 = vld [vmem:[#allocation2 + $0xf8] sm:$0xff] }
 0x217   : > { %2216 = vst.msk [vmem:[#allocation3 + $0xc8] sm:$0xff] %vm1227_vm3, %v2152_v31  ;;  %v1442_v38 = vpop.f32.mrf.mxu3  ;;  %v8082_v31 = vsel %vm1566_vm4, %v1726_v46, %v1729_v26 }
 0x218   : > { %6556 = vmatmul.msk.bf16.gmra.mxu0 %vm1227_vm3, %v7864_v14  ;;  %1539 = vst.msk [vmem:[#allocation3 + $0x150] sm:$0xff] %vm1227_vm3, %v1442_v38  ;;  %v3958_v38 = vsel %vm1324_vm2, %v3942_v30, 0 }
 0x219   : > { %v1409_v27 = vpop.f32.mrf.mxu1  ;;  %6496 = vmatmul.msk.bf16.gmra.mxu2 %vm1227_vm3, %v8057_v40  ;;  %10284 = vst [vmem:[#allocation44_spill] sm:$0xff] %v8082_v31  ;;  %3967 = vmatpush.bf16.msra.mxu3 %v3958_v38 }
 0x21a   : > { %1526 = vst.msk [vmem:[#allocation3 + $0xe8] sm:$0xff] %vm1227_vm3, %v1409_v27 }
 0x21c   : > { %v1968_v53 = vpop.f32.mrf.mxu2 }
 0x21d   : > { %v8062_v47 = vpop.f32.mrf.mxu0  ;;  %v2153_v52 = vadd.f32 %v2089_v56, %v1968_v53 }
 0x21f   : > { %2217 = vst.msk [vmem:[#allocation3 + $0xd0] sm:$0xff] %vm1227_vm3, %v2153_v52  ;;  %v1444_v14 = vpop.f32.mrf.mxu3 }
 0x220   : > { %1540 = vst.msk [vmem:[#allocation3 + $0x158] sm:$0xff] %vm1227_vm3, %v1444_v14  ;;  %v1731_v14 = vshrl.u32 %v7893_v61, 16 }
 0x221   : > { %v1412_v58 = vpop.f32.mrf.mxu1  ;;  %v2092_v46 = vld [vmem:[#allocation3 + $0xe8] sm:$0xff] }
 0x222   : > { %1527 = vst.msk [vmem:[#allocation3 + $0xf0] sm:$0xff] %vm1227_vm3, %v1412_v58 }
 0x224   : > { %6473 = vmatmul.msk.bf16.gmra.mxu3 %vm1227_vm3, %v8068_v2  ;;  %v1970_v60 = vpop.f32.mrf.mxu2  ;;  %6582 = vmatmul.msk.bf16.gmra.mxu1 %vm1227_vm3, %v7758_v3 }
 0x225   : > { %v8071_v13 = vpop.f32.mrf.mxu0  ;;  %v2154_v16 = vadd.f32 %v2090_v11, %v1970_v60 }
 0x227   : > { %2218 = vst.msk [vmem:[#allocation3 + $0xd8] sm:$0xff] %vm1227_vm3, %v2154_v16  ;;  %v1447_v28 = vpop.f32.mrf.mxu3  ;;  %v1733_v16 = vor.u32 %v1731_v14, %v1729_v26 }
 0x228   : > { %6557 = vmatmul.msk.bf16.gmra.mxu0 %vm1227_vm3, %v7723_v37  ;;  %1541 = vst.msk [vmem:[#allocation3 + $0x160] sm:$0xff] %vm1227_vm3, %v1447_v28  ;;  %v2091_v37 = vld [vmem:[#allocation3 + $0xe0] sm:$0xff]  ;;  %v1736_v28 = vrot.slane %v1734_v4, 1  ;;  %v7018_v4 = vld [vmem:[#allocation2] sm:$0xff] }
 0x229   : > { %v1414_v27 = vpop.f32.mrf.mxu1  ;;  %6497 = vmatmul.msk.bf16.gmra.mxu2 %vm1227_vm3, %v8082_v31  ;;  %v2093_v14 = vld [vmem:[#allocation3 + $0xf0] sm:$0xff] }
 0x22a   : > { %1528 = vst.msk [vmem:[#allocation3 + $0xf8] sm:$0xff] %vm1227_vm3, %v1414_v27  ;;  %v4322_v27 = vld [vmem:[#allocation10 + $0xe] sm:$0x3] }
 0x22c   : > { %v1973_v53 = vpop.f32.mrf.mxu2 }
 0x22d   : > { %v8088_v10 = vpop.f32.mrf.mxu0  ;;  %v2155_v56 = vadd.f32 %v2091_v37, %v1973_v53  ;;  %v8109_v53 = vsel %vm1566_vm4, %v1733_v16, %v1736_v28  ;;  %v4355_v37 = vsel %vm1324_vm2, %v4322_v27, 0  ;;  %v7019_v16 = vld [vmem:[#allocation2 + $0x8] sm:$0xff]  ;;  %v1738_v27 = vshrl.u32 %v7916_v32, 16 }
 0x22e   : > { %10286 = vst [vmem:[#allocation46_spill] sm:$0xff] %v8109_v53  ;;  %4364 = vmatpush.bf16.msra.mxu0 %v4355_v37 }
 0x22f   : > { %2219 = vst.msk [vmem:[#allocation3 + $0xe0] sm:$0xff] %vm1227_vm3, %v2155_v56  ;;  %v1449_v52 = vpop.f32.mrf.mxu3 }
 0x230   : > { %1542 = vst.msk [vmem:[#allocation3 + $0x168] sm:$0xff] %vm1227_vm3, %v1449_v52 }
 0x231   : > { %v8094_v58 = vpop.f32.mrf.mxu1 }
 0x234   : > { %6474 = vmatmul.msk.bf16.gmra.mxu3 %vm1227_vm3, %v8096_v9  ;;  %v1975_v11 = vpop.f32.mrf.mxu2  ;;  %6583 = vmatmul.msk.bf16.gmra.mxu1 %vm1227_vm3, %v7783_v33 }
 0x235   : > { %v8098_v60 = vpop.f32.mrf.mxu0  ;;  %v2156_v30 = vadd.f32 %v2092_v46, %v1975_v11  ;;  %v2258_v11 = vrot.slane %v7018_v4, 1  ;;  %v2094_v4 = vld [vmem:[#allocation3 + $0xf8] sm:$0xff] }
 0x236   : > { %10285 = vst [vmem:[#allocation45_spill] sm:$0xff] %v8098_v60 }
 0x237   : > { %2220 = vst.msk [vmem:[#allocation3 + $0xe8] sm:$0xff] %vm1227_vm3, %v2156_v30  ;;  %v1452_v38 = vpop.f32.mrf.mxu3  ;;  %v2259_v30 = vrot.slane %v7019_v16, 1 }
 0x238   : > { %6558 = vmatmul.msk.bf16.gmra.mxu0 %vm1227_vm3, %v7746_v34  ;;  %1543 = vst.msk [vmem:[#allocation3 + $0x170] sm:$0xff] %vm1227_vm3, %v1452_v38  ;;  %v4719_v38 = vld [vmem:[#allocation10 + $0x10] sm:$0x3] }
 0x239   : > { %6498 = vmatmul.msk.bf16.gmra.mxu2 %vm1227_vm3, %v8109_v53  ;;  %v8114_v26 = vpop.f32.mrf.mxu1  ;;  %v4736_v37 = vsel %vm1324_vm2, %v4719_v38, 0  ;;  %v2260_v3 = vsel %vm2257_vm5, %v2258_v11, %v2259_v30 }
 0x23a   : > { %4745 = vmatpush.bf16.msra.mxu1 %v4736_v37 }
 0x23c   : > { %v1978_v52 = vpop.f32.mrf.mxu2 }
 0x23d   : > { %v8116_v56 = vpop.f32.mrf.mxu0  ;;  %v2157_v34 = vadd.f32 %v2093_v14, %v1978_v52  ;;  %v1741_v52 = vshll.u32 %v7942_v59, 16 }
 0x23e   : > { %10287 = vst [vmem:[#allocation47_spill] sm:$0xff] %v8116_v56 }
 0x23f   : > { %2221 = vst.msk [vmem:[#allocation3 + $0xf0] sm:$0xff] %vm1227_vm3, %v2157_v34  ;;  %v1454_v46 = vpop.f32.mrf.mxu3  ;;  %v1743_v49 = vrot.slane %v1741_v52, 1 }
 0x240   : > { %1544 = vst.msk [vmem:[#allocation3 + $0x178] sm:$0xff] %vm1227_vm3, %v1454_v46  ;;  %v1740_v46 = vor.u32 %v1738_v27, %v1736_v28  ;;  %v2095_v27 = vld [vmem:[#allocation3 + $0x100] sm:$0xff] }
 0x241   : > { %v8122_v33 = vpop.f32.mrf.mxu1 }
 0x242   : > { %v8136_v38 = vsel %vm1566_vm4, %v1740_v46, %v1743_v49  ;;  %v1745_v46 = vshrl.u32 %v7942_v59, 16 }
 0x243   : > { %10289 = vst [vmem:[#allocation49_spill] sm:$0xff] %v8136_v38 }
 0x244   : > { %v1980_v34 = vpop.f32.mrf.mxu2  ;;  %6507 = vmatmul.msk.bf16.vlgmr.msrb.gmra.mxu3 %vm1227_vm3, %v2260_v3  ;;  %6584 = vmatmul.msk.bf16.gmra.mxu1 %vm1227_vm3, %v7808_v1 }
 0x245   : > { %v8126_v14 = vpop.f32.mrf.mxu0  ;;  %v2158_v16 = vadd.f32 %v2094_v4, %v1980_v34 }
 0x246   : > { %10288 = vst [vmem:[#allocation48_spill] sm:$0xff] %v8126_v14 }
 0x247   : > { %2222 = vst.msk [vmem:[#allocation3 + $0xf8] sm:$0xff] %vm1227_vm3, %v2158_v16  ;;  %v1457_v11 = vpop.f32.mrf.mxu3  ;;  %v1748_v16 = vshll.u32 %v7968_v29, 16 }
 0x248   : > { %6559 = vmatmul.msk.bf16.gmra.mxu0 %vm1227_vm3, %v7770_v18  ;;  %1545 = vst.msk [vmem:[#allocation3 + $0x180] sm:$0xff] %vm1227_vm3, %v1457_v11  ;;  %v7020_v18 = vld [vmem:[#allocation2 + $0x10] sm:$0xff] }
 0x249   : > { %6499 = vmatmul.msk.bf16.gmra.mxu2 %vm1227_vm3, %v8136_v38  ;;  %v8140_v3 = vpop.f32.mrf.mxu1  ;;  %v2261_v4 = vrot.slane %v7020_v18, 1 }
 0x24b   : > { %v2262_v1 = vsel %vm2257_vm5, %v2259_v30, %v2261_v4 }
 0x24c   : > { %v1983_v28 = vpop.f32.mrf.mxu2 }
 0x24d   : > { %v8142_v37 = vpop.f32.mrf.mxu0  ;;  %v2159_v52 = vadd.f32 %v2095_v27, %v1983_v28  ;;  %v1747_v28 = vor.u32 %v1745_v46, %v1743_v49  ;;  %v1750_v27 = vrot.slane %v1748_v16, 1 }
 0x24e   : > { %10290 = vst [vmem:[#allocation50_spill] sm:$0xff] %v8142_v37  ;;  %v2096_v37 = vld [vmem:[#allocation3 + $0x108] sm:$0xff] }
 0x24f   : > { %2223 = vst.msk [vmem:[#allocation3 + $0x100] sm:$0xff] %vm1227_vm3, %v2159_v52  ;;  %v1459_v34 = vpop.f32.mrf.mxu3  ;;  %v8161_v30 = vsel %vm1566_vm4, %v1747_v28, %v1750_v27  ;;  %v1752_v28 = vshrl.u32 %v7968_v29, 16 }
 0x250   : > { %1546 = vst.msk [vmem:[#allocation3 + $0x188] sm:$0xff] %vm1227_vm3, %v1459_v34 }
 0x251   : > { %v8148_v11 = vpop.f32.mrf.mxu1  ;;  %10292 = vst [vmem:[#allocation52_spill] sm:$0xff] %v8161_v30 }
 0x254   : > { %v1985_v63 = vpop.f32.mrf.mxu2  ;;  %6508 = vmatmul.msk.bf16.gmra.mxu3 %vm1227_vm3, %v2262_v1  ;;  %6585 = vmatmul.msk.bf16.gmra.mxu1 %vm1227_vm3, %v7833_v35 }
 0x255   : > { %v8151_v22 = vpop.f32.mrf.mxu0  ;;  %v2160_v52 = vadd.f32 %v2096_v37, %v1985_v63  ;;  %v2097_v63 = vld [vmem:[#allocation3 + $0x110] sm:$0xff] }
 0x256   : > { %10291 = vst [vmem:[#allocation51_spill] sm:$0xff] %v8151_v22 }
 0x257   : > { %2224 = vst.msk [vmem:[#allocation3 + $0x108] sm:$0xff] %vm1227_vm3, %v2160_v52  ;;  %v1462_v34 = vpop.f32.mrf.mxu3 }
 0x258   : > { %6560 = vmatmul.msk.bf16.gmra.mxu0 %vm1227_vm3, %v7795_v51  ;;  %1547 = vst.msk [vmem:[#allocation3 + $0x190] sm:$0xff] %vm1227_vm3, %v1462_v34  ;;  %v7021_v51 = vld [vmem:[#allocation2 + $0x18] sm:$0xff]  ;;  %v1755_v34 = vshll.u32 %v7994_v5, 16 }
 0x259   : > { %6500 = vmatmul.msk.bf16.gmra.mxu2 %vm1227_vm3, %v8161_v30  ;;  %v8165_v1 = vpop.f32.mrf.mxu1  ;;  %v2263_v16 = vrot.slane %v7021_v51, 1 }
 0x25b   : > { %v8176_v35 = vsel %vm2257_vm5, %v2261_v4, %v2263_v16 }
 0x25c   : > { %v1988_v49 = vpop.f32.mrf.mxu2 }
 0x25d   : > { %v8167_v18 = vpop.f32.mrf.mxu0  ;;  %v2161_v37 = vadd.f32 %v2097_v63, %v1988_v49  ;;  %v2098_v49 = vld [vmem:[#allocation3 + $0x118] sm:$0xff]  ;;  %v1754_v63 = vor.u32 %v1752_v28, %v1750_v27  ;;  %v2099_v27 = vld [vmem:[#allocation3 + $0x120] sm:$0xff] }
 0x25e   : > { %10293 = vst [vmem:[#allocation53_spill] sm:$0xff] %v8167_v18 }
 0x25f   : > { %2225 = vst.msk [vmem:[#allocation3 + $0x110] sm:$0xff] %vm1227_vm3, %v2161_v37  ;;  %v1464_v46 = vpop.f32.mrf.mxu3 }
 0x260   : > { %1548 = vst.msk [vmem:[#allocation3 + $0x198] sm:$0xff] %vm1227_vm3, %v1464_v46  ;;  %v1757_v46 = vrot.slane %v1755_v34, 1 }
 0x261   : > { %v8172_v52 = vpop.f32.mrf.mxu1 }
 0x262   : > { %v8189_v51 = vsel %vm1566_vm4, %v1754_v63, %v1757_v46  ;;  %v1759_v63 = vshrl.u32 %v7994_v5, 16 }
 0x263   : > { %10295 = vst [vmem:[#allocation55_spill] sm:$0xff] %v8189_v51 }
 0x264   : > { %v1990_v22 = vpop.f32.mrf.mxu2  ;;  %6509 = vmatmul.msk.bf16.gmra.mxu3 %vm1227_vm3, %v8176_v35  ;;  %6586 = vmatmul.msk.bf16.gmra.mxu1 %vm1227_vm3, %v7858_v6 }
 0x265   : > { %v8178_v18 = vpop.f32.mrf.mxu0  ;;  %v2162_v37 = vadd.f32 %v2098_v49, %v1990_v22 }
 0x266   : > { %10294 = vst [vmem:[#allocation54_spill] sm:$0xff] %v8178_v18 }
 0x267   : > { %2226 = vst.msk [vmem:[#allocation3 + $0x118] sm:$0xff] %vm1227_vm3, %v2162_v37  ;;  %v1467_v4 = vpop.f32.mrf.mxu3  ;;  %v1762_v37 = vshll.u32 %v8018_v39, 16 }
 0x268   : > { %6561 = vmatmul.msk.bf16.gmra.mxu0 %vm1227_vm3, %v7820_v17  ;;  %1549 = vst.msk [vmem:[#allocation3 + $0x1a0] sm:$0xff] %vm1227_vm3, %v1467_v4  ;;  %v7022_v17 = vld [vmem:[#allocation2 + $0x20] sm:$0xff] }
 0x269   : > { %6501 = vmatmul.msk.bf16.gmra.mxu2 %vm1227_vm3, %v8189_v51  ;;  %v8193_v18 = vpop.f32.mrf.mxu1  ;;  %v2265_v49 = vrot.slane %v7022_v17, 1 }
 0x26b   : > { %v8204_v41 = vsel %vm2257_vm5, %v2263_v16, %v2265_v49 }
 0x26c   : > { %v1993_v22 = vpop.f32.mrf.mxu2 }
 0x26d   : > { %v8195_v6 = vpop.f32.mrf.mxu0  ;;  %v2163_v28 = vadd.f32 %v2099_v27, %v1993_v22  ;;  %v2100_v22 = vld [vmem:[#allocation3 + $0x128] sm:$0xff]  ;;  %v1761_v27 = vor.u32 %v1759_v63, %v1757_v46 }
 0x26e   : > { %10296 = vst [vmem:[#allocation56_spill] sm:$0xff] %v8195_v6 }
 0x26f   : > { %2227 = vst.msk [vmem:[#allocation3 + $0x120] sm:$0xff] %vm1227_vm3, %v2163_v28  ;;  %v1469_v34 = vpop.f32.mrf.mxu3  ;;  %v1764_v28 = vrot.slane %v1762_v37, 1 }
 0x270   : > { %1550 = vst.msk [vmem:[#allocation3 + $0x1a8] sm:$0xff] %vm1227_vm3, %v1469_v34 }
 0x271   : > { %v8201_v4 = vpop.f32.mrf.mxu1  ;;  %v8217_v17 = vsel %vm1566_vm4, %v1761_v27, %v1764_v28  ;;  %v1766_v27 = vshrl.u32 %v8018_v39, 16 }
 0x272   : > { %10298 = vst [vmem:[#allocation58_spill] sm:$0xff] %v8217_v17 }
 0x274   : > { %v1995_v14 = vpop.f32.mrf.mxu2  ;;  %6510 = vmatmul.msk.bf16.gmra.mxu3 %vm1227_vm3, %v8204_v41  ;;  %6587 = vmatmul.msk.bf16.gmra.mxu1 %vm1227_vm3, %v7883_v43 }
 0x275   : > { %v8206_v6 = vpop.f32.mrf.mxu0  ;;  %v2164_v34 = vadd.f32 %v2100_v22, %v1995_v14  ;;  %v2101_v14 = vld [vmem:[#allocation3 + $0x130] sm:$0xff] }
 0x276   : > { %10297 = vst [vmem:[#allocation57_spill] sm:$0xff] %v8206_v6 }
 0x277   : > { %2228 = vst.msk [vmem:[#allocation3 + $0x128] sm:$0xff] %vm1227_vm3, %v2164_v34  ;;  %v1472_v16 = vpop.f32.mrf.mxu3 }
 0x278   : > { %6562 = vmatmul.msk.bf16.gmra.mxu0 %vm1227_vm3, %v7845_v54  ;;  %1551 = vst.msk [vmem:[#allocation3 + $0x1b0] sm:$0xff] %vm1227_vm3, %v1472_v16  ;;  %v7023_v54 = vld [vmem:[#allocation2 + $0x28] sm:$0xff]  ;;  %v1769_v16 = vshll.u32 %v8044_v57, 16 }
 0x279   : > { %6502 = vmatmul.msk.bf16.gmra.mxu2 %vm1227_vm3, %v8217_v17  ;;  %v8221_v6 = vpop.f32.mrf.mxu1  ;;  %v2267_v22 = vrot.slane %v7023_v54, 1 }
 0x27b   : > { %v8232_v56 = vsel %vm2257_vm5, %v2265_v49, %v2267_v22 }
 0x27c   : > { %v1998_v46 = vpop.f32.mrf.mxu2 }
 0x27d   : > { %v8223_v43 = vpop.f32.mrf.mxu0  ;;  %v2165_v63 = vadd.f32 %v2101_v14, %v1998_v46  ;;  %v2102_v46 = vld [vmem:[#allocation3 + $0x138] sm:$0xff]  ;;  %v1768_v14 = vor.u32 %v1766_v27, %v1764_v28  ;;  %v2103_v28 = vld [vmem:[#allocation3 + $0x140] sm:$0xff] }
 0x27e   : > { %10299 = vst [vmem:[#allocation59_spill] sm:$0xff] %v8223_v43 }
 0x27f   : > { %2229 = vst.msk [vmem:[#allocation3 + $0x130] sm:$0xff] %vm1227_vm3, %v2165_v63  ;;  %v1474_v37 = vpop.f32.mrf.mxu3 }
 0x280   : > { %1552 = vst.msk [vmem:[#allocation3 + $0x1b8] sm:$0xff] %vm1227_vm3, %v1474_v37  ;;  %v1771_v37 = vrot.slane %v1769_v16, 1 }
 0x281   : > { %v8228_v34 = vpop.f32.mrf.mxu1 }
 0x282   : > { %v8245_v54 = vsel %vm1566_vm4, %v1768_v14, %v1771_v37  ;;  %v1773_v14 = vshrl.u32 %v8044_v57, 16 }
 0x283   : > { %10301 = vst [vmem:[#allocation61_spill] sm:$0xff] %v8245_v54 }
 0x284   : > { %v2000_v24 = vpop.f32.mrf.mxu2  ;;  %6511 = vmatmul.msk.bf16.gmra.mxu3 %vm1227_vm3, %v8232_v56  ;;  %6588 = vmatmul.msk.bf16.gmra.mxu1 %vm1227_vm3, %v7906_v15 }
 0x285   : > { %v8234_v43 = vpop.f32.mrf.mxu0  ;;  %v2166_v63 = vadd.f32 %v2102_v46, %v2000_v24 }
 0x286   : > { %10300 = vst [vmem:[#allocation60_spill] sm:$0xff] %v8234_v43 }
 0x287   : > { %2230 = vst.msk [vmem:[#allocation3 + $0x138] sm:$0xff] %vm1227_vm3, %v2166_v63  ;;  %v1477_v49 = vpop.f32.mrf.mxu3  ;;  %v1776_v63 = vshll.u32 %v8068_v2, 16 }
 0x288   : > { %6563 = vmatmul.msk.bf16.gmra.mxu0 %vm1227_vm3, %v7870_v25  ;;  %1553 = vst.msk [vmem:[#allocation3 + $0x1c0] sm:$0xff] %vm1227_vm3, %v1477_v49  ;;  %v7024_v25 = vld [vmem:[#allocation2 + $0x30] sm:$0xff] }
 0x289   : > { %6503 = vmatmul.msk.bf16.gmra.mxu2 %vm1227_vm3, %v8245_v54  ;;  %v8249_v43 = vpop.f32.mrf.mxu1  ;;  %v2269_v46 = vrot.slane %v7024_v25, 1 }
 0x28b   : > { %v8260_v54 = vsel %vm2257_vm5, %v2267_v22, %v2269_v46 }
 0x28c   : > { %v2003_v24 = vpop.f32.mrf.mxu2 }
 0x28d   : > { %v8251_v15 = vpop.f32.mrf.mxu0  ;;  %v2167_v27 = vadd.f32 %v2103_v28, %v2003_v24  ;;  %v2104_v24 = vld [vmem:[#allocation3 + $0x148] sm:$0xff]  ;;  %v1775_v28 = vor.u32 %v1773_v14, %v1771_v37 }
 0x28e   : > { %10302 = vst [vmem:[#allocation62_spill] sm:$0xff] %v8251_v15 }
 0x28f   : > { %2231 = vst.msk [vmem:[#allocation3 + $0x140] sm:$0xff] %vm1227_vm3, %v2167_v27  ;;  %v1479_v16 = vpop.f32.mrf.mxu3  ;;  %v1778_v27 = vrot.slane %v1776_v63, 1 }
 0x290   : > { %1554 = vst.msk [vmem:[#allocation3 + $0x1c8] sm:$0xff] %vm1227_vm3, %v1479_v16 }
 0x291   : > { %v8257_v49 = vpop.f32.mrf.mxu1  ;;  %v8273_v25 = vsel %vm1566_vm4, %v1775_v28, %v1778_v27  ;;  %v1780_v28 = vshrl.u32 %v8068_v2, 16 }
 0x292   : > { %10304 = vst [vmem:[#allocation64_spill] sm:$0xff] %v8273_v25 }
 0x294   : > { %v2005_v17 = vpop.f32.mrf.mxu2  ;;  %6512 = vmatmul.msk.bf16.gmra.mxu3 %vm1227_vm3, %v8260_v54  ;;  %6589 = vmatmul.msk.bf16.gmra.mxu1 %vm1227_vm3, %v7931_v48 }
 0x295   : > { %v8262_v15 = vpop.f32.mrf.mxu0  ;;  %v2168_v16 = vadd.f32 %v2104_v24, %v2005_v17  ;;  %v2105_v17 = vld [vmem:[#allocation3 + $0x150] sm:$0xff] }
 0x296   : > { %10303 = vst [vmem:[#allocation63_spill] sm:$0xff] %v8262_v15 }
 0x297   : > { %2232 = vst.msk [vmem:[#allocation3 + $0x148] sm:$0xff] %vm1227_vm3, %v2168_v16  ;;  %v1482_v22 = vpop.f32.mrf.mxu3 }
 0x298   : > { %6564 = vmatmul.msk.bf16.gmra.mxu0 %vm1227_vm3, %v7893_v61  ;;  %1555 = vst.msk [vmem:[#allocation3 + $0x1d0] sm:$0xff] %vm1227_vm3, %v1482_v22  ;;  %v7025_v61 = vld [vmem:[#allocation2 + $0x38] sm:$0xff]  ;;  %v1783_v22 = vshll.u32 %v8096_v9, 16 }
 0x299   : > { %6504 = vmatmul.msk.bf16.gmra.mxu2 %vm1227_vm3, %v8273_v25  ;;  %v8277_v15 = vpop.f32.mrf.mxu1  ;;  %v2271_v24 = vrot.slane %v7025_v61, 1 }
 0x29a   : > { %10305 = vst [vmem:[#allocation65_spill] sm:$0xff] %v8277_v15  ;;  %v1785_v61 = vrot.slane %v1783_v22, 1  ;;  %v2107_v22 = vld [vmem:[#allocation3 + $0x160] sm:$0xff] }
 0x29b   : > { %v8288_v25 = vsel %vm2257_vm5, %v2269_v46, %v2271_v24 }
 0x29c   : > { %v2008_v37 = vpop.f32.mrf.mxu2 }
 0x29d   : > { %v8279_v48 = vpop.f32.mrf.mxu0  ;;  %v2169_v14 = vadd.f32 %v2105_v17, %v2008_v37  ;;  %v2106_v37 = vld [vmem:[#allocation3 + $0x158] sm:$0xff]  ;;  %v1782_v17 = vor.u32 %v1780_v28, %v1778_v27 }
 0x29e   : > { %10306 = vst [vmem:[#allocation66_spill] sm:$0xff] %v8279_v48 }
 0x29f   : > { %2233 = vst.msk [vmem:[#allocation3 + $0x150] sm:$0xff] %vm1227_vm3, %v2169_v14  ;;  %v1484_v63 = vpop.f32.mrf.mxu3 }
 0x2a0   : > { %1556 = vst.msk [vmem:[#allocation3 + $0x1d8] sm:$0xff] %vm1227_vm3, %v1484_v63  ;;  %v8296_v63 = vld [vmem:[#allocation2 + $0x100] sm:$0xff]  }
 0x2a1   : > { %v8284_v16 = vpop.f32.mrf.mxu1 }
 0x2a2   : > { %10307 = vst [vmem:[#allocation67_spill] sm:$0xff] %v8284_v16  ;;  %v6836_v16 = vunpack.c.l.b16 %v8296_v63 }
 0x2a4   : > { %v2010_v15 = vpop.f32.mrf.mxu2  ;;  %6513 = vmatmul.msk.bf16.gmra.mxu3 %vm1227_vm3, %v8288_v25  ;;  %6590 = vmatmul.msk.bf16.gmra.mxu1 %vm1227_vm3, %v7956_v45  ;;  %v1787_v45 = vshrl.u32 %v8096_v9, 16 }
 0x2a5   : > { %v8290_v48 = vpop.f32.mrf.mxu0  ;;  %v2170_v14 = vadd.f32 %v2106_v37, %v2010_v15  ;;  %v8312_v37 = vpack.c.b16 %v6836_v16, %v6836_v16 }
 0x2a6   : > { %10308 = vst [vmem:[#allocation68_spill] sm:$0xff] %v8290_v48  ;;  %v8303_v48 = vsel %vm1566_vm4, %v1782_v17, %v1785_v61 }
 0x2a7   : > { %2234 = vst.msk [vmem:[#allocation3 + $0x158] sm:$0xff] %vm1227_vm3, %v2170_v14  ;;  %v1487_v46 = vpop.f32.mrf.mxu3 }
 0x2a8   : > { %6565 = vmatmul.msk.bf16.gmra.mxu0 %vm1227_vm3, %v7916_v32  ;;  %1557 = vst.msk [vmem:[#allocation3 + $0x1e0] sm:$0xff] %vm1227_vm3, %v1487_v46  ;;  %v7026_v46 = vld [vmem:[#allocation2 + $0x40] sm:$0xff] }
 0x2a9   : > { %10309 = vst [vmem:[#allocation69_spill] sm:$0xff] %v8303_v48  ;;  %6505 = vmatmul.msk.bf16.gmra.mxu2 %vm1227_vm3, %v8303_v48  ;;  %v8308_v15 = vpop.f32.mrf.mxu1  ;;  %v2273_v17 = vrot.slane %v7026_v46, 1  ;;  %v1791_v48 = vshll.u32 %v8312_v37, 16 }
 0x2aa   : > { %10310 = vst [vmem:[#allocation70_spill] sm:$0xff] %v8308_v15 }
 0x2ab   : > { %10312 = vst [vmem:[#allocation72_spill] sm:$0xff] %v8312_v37 }
 0x2ac   : > { %v2013_v28 = vpop.f32.mrf.mxu2 }
 0x2ad   : > { %v8310_v27 = vpop.f32.mrf.mxu0  ;;  %v2171_v32 = vadd.f32 %v2107_v22, %v2013_v28  ;;  %v2108_v28 = vld [vmem:[#allocation3 + $0x168] sm:$0xff]  ;;  %v8329_v22 = vor.u32 %v1787_v45, %v1785_v61 }
 0x2ae   : > { %10311 = vst [vmem:[#allocation71_spill] sm:$0xff] %v8310_v27  ;;  %v8321_v27 = vsel %vm2257_vm5, %v2271_v24, %v2273_v17 }
 0x2af   : > { %2235 = vst.msk [vmem:[#allocation3 + $0x160] sm:$0xff] %vm1227_vm3, %v2171_v32  ;;  %v1489_v14 = vpop.f32.mrf.mxu3  ;;  %v1793_v32 = vrot.slane %v1791_v48, 1  ;;  %v2109_v48 = vld [vmem:[#allocation3 + $0x170] sm:$0xff] }
 0x2b0   : > { %1558 = vst.msk [vmem:[#allocation3 + $0x1e8] sm:$0xff] %vm1227_vm3, %v1489_v14 }
 0x2b1   : > { %v8318_v60 = vpop.f32.mrf.mxu1  ;;  %10314 = vst [vmem:[#allocation74_spill] sm:$0xff] %v8329_v22  ;;  %v1794_v46 = vsel %vm1566_vm4, %v8329_v22, %v1793_v32 }
 0x2b4   : > { %v2015_v16 = vpop.f32.mrf.mxu2  ;;  %6514 = vmatmul.msk.bf16.gmra.mxu3 %vm1227_vm3, %v8321_v27  ;;  %6591 = vmatmul.msk.bf16.gmra.mxu1 %vm1227_vm3, %v7982_v50 }
 0x2b5   : > { %v8323_v15 = vpop.f32.mrf.mxu0  ;;  %v2172_v14 = vadd.f32 %v2108_v28, %v2015_v16  ;;  %v7027_v28 = vld [vmem:[#allocation2 + $0x48] sm:$0xff] }
 0x2b6   : > { %10313 = vst [vmem:[#allocation73_spill] sm:$0xff] %v8323_v15  ;;  %v2110_v15 = vld [vmem:[#allocation3 + $0x178] sm:$0xff] }
 0x2b7   : > { %2236 = vst.msk [vmem:[#allocation3 + $0x168] sm:$0xff] %vm1227_vm3, %v2172_v14  ;;  %v1492_v24 = vpop.f32.mrf.mxu3 }
 0x2b8   : > { %6566 = vmatmul.msk.bf16.gmra.mxu0 %vm1227_vm3, %v7942_v59  ;;  %1559 = vst.msk [vmem:[#allocation3 + $0x1f0] sm:$0xff] %vm1227_vm3, %v1492_v24  ;;  %v2275_v59 = vrot.slane %v7027_v28, 1 }
 0x2b9   : > { %6506 = vmatmul.msk.bf16.gmra.mxu2 %vm1227_vm3, %v1794_v46  ;;  %v8338_v37 = vpop.f32.mrf.mxu1 }
 0x2ba   : > { %v8347_v32 = vsel %vm2257_vm5, %v2273_v17, %v2275_v59 }
 0x2bc   : > { %v2018_v45 = vpop.f32.mrf.mxu2 }
 0x2bd   : > { %v8340_v50 = vpop.f32.mrf.mxu0  ;;  %v2173_v61 = vadd.f32 %v2109_v48, %v2018_v45 }
 0x2be   : > { %10315 = vst [vmem:[#allocation75_spill] sm:$0xff] %v8340_v50 }
 0x2bf   : > { %2237 = vst.msk [vmem:[#allocation3 + $0x170] sm:$0xff] %vm1227_vm3, %v2173_v61  ;;  %v1494_v16 = vpop.f32.mrf.mxu3  ;;  %v2591_v61 = vld [vmem:[#allocation3] sm:$0xff] }
 0x2c0   : > { %1560 = vst.msk [vmem:[#allocation3 + $0x1f8] sm:$0xff] %vm1227_vm3, %v1494_v16 }
 0x2c1   : > { %v8344_v14 = vpop.f32.mrf.mxu1 }
 0x2c4   : > { %v2020_v46 = vpop.f32.mrf.mxu2  ;;  %6515 = vmatmul.msk.bf16.gmra.mxu3 %vm1227_vm3, %v8347_v32  ;;  %6592 = vmatmul.msk.bf16.gmra.mxu1 %vm1227_vm3, %v8007_v20  ;;  %v2111_v20 = vld [vmem:[#allocation3 + $0x180] sm:$0xff] }
 0x2c5   : > { %v8349_v24 = vpop.f32.mrf.mxu0  ;;  %v2174_v45 = vadd.f32 %v2110_v15, %v2020_v46 }
 0x2c6   : > { %10316 = vst [vmem:[#allocation76_spill] sm:$0xff] %v8349_v24 }
 0x2c7   : > { %2238 = vst.msk [vmem:[#allocation3 + $0x178] sm:$0xff] %vm1227_vm3, %v2174_v45  ;;  %v2431_v48 = vpop.f32.mrf.mxu3  ;;  %v2592_v45 = vld [vmem:[#allocation3 + $0x8] sm:$0xff] }
 0x2c8   : > { %6567 = vmatmul.msk.bf16.gmra.mxu0 %vm1227_vm3, %v7968_v29  ;;  %v2655_v17 = vadd.f32 %v2591_v61, %v2431_v48  ;;  %v7028_v29 = vld [vmem:[#allocation2 + $0x50] sm:$0xff] }
 0x2c9   : > { %v8358_v16 = vpop.f32.mrf.mxu1  ;;  %6607 = vmatmul.msk.bf16.vlgmr.msrb.gmra.mxu2 %vm1227_vm3, %v8176_v35  ;;  %v2277_v50 = vrot.slane %v7028_v29, 1 }
 0x2ca   : > { %10317 = vst [vmem:[#allocation77_spill] sm:$0xff] %v8358_v16 }
 0x2cb   : > { %2719 = vst.msk [vmem:[#allocation3] sm:$0xff] %vm1227_vm3, %v2655_v17  ;;  %v8371_v35 = vsel %vm2257_vm5, %v2275_v59, %v2277_v50  ;;  %v2112_v17 = vld [vmem:[#allocation3 + $0x188] sm:$0xff] }
 0x2cc   : > { %v2023_v24 = vpop.f32.mrf.mxu2 }
 0x2cd   : > { %v8363_v28 = vpop.f32.mrf.mxu0  ;;  %v2175_v15 = vadd.f32 %v2111_v20, %v2023_v24 }
 0x2cf   : > { %2239 = vst.msk [vmem:[#allocation3 + $0x180] sm:$0xff] %vm1227_vm3, %v2175_v15  ;;  %v2433_v46 = vpop.f32.mrf.mxu3 }
 0x2d0   : > { %v2656_v22 = vadd.f32 %v2592_v45, %v2433_v46 }
 0x2d1   : > { %v8366_v61 = vpop.f32.mrf.mxu1 }
 0x2d2   : > { %v2971_v48 = vld [vmem:[#allocation3] sm:$0xff]  ;;  %2720 = vst.msk [vmem:[#allocation3 + $0x8] sm:$0xff] %vm1227_vm3, %v2656_v22  ;;  %v2593_v22 = vld [vmem:[#allocation3 + $0x10] sm:$0xff] }
 0x2d3   : > { %v3035_v16 = vadd.f32 %v2971_v48, %v7919_v36 }
 0x2d4   : > { %v2025_v24 = vpop.f32.mrf.mxu2  ;;  %6516 = vmatmul.msk.bf16.gmra.mxu3 %vm1227_vm3, %v8371_v35  ;;  %6593 = vmatmul.msk.bf16.gmra.mxu1 %vm1227_vm3, %v8032_v42 }
 0x2d5   : > { %3099 = vst.msk [vmem:[#allocation3] sm:$0xff] %vm1227_vm3, %v3035_v16  ;;  %v8374_v20 = vpop.f32.mrf.mxu0  ;;  %v2176_v15 = vadd.f32 %v2112_v17, %v2025_v24 }
 0x2d7   : > { %2240 = vst.msk [vmem:[#allocation3 + $0x188] sm:$0xff] %vm1227_vm3, %v2176_v15  ;;  %v2436_v36 = vpop.f32.mrf.mxu3 }
 0x2d8   : > { %6568 = vmatmul.msk.bf16.gmra.mxu0 %vm1227_vm3, %v7994_v5  ;;  %v2657_v59 = vadd.f32 %v2593_v22, %v2436_v36  ;;  %v2113_v5 = vld [vmem:[#allocation3 + $0x190] sm:$0xff]  ;;  %v7029_v22 = vld [vmem:[#allocation2 + $0x58] sm:$0xff] }
 0x2d9   : > { %v2972_v16 = vld [vmem:[#allocation3 + $0x8] sm:$0xff]  ;;  %v8383_v46 = vpop.f32.mrf.mxu1  ;;  %6608 = vmatmul.msk.bf16.gmra.mxu2 %vm1227_vm3, %v8204_v41  ;;  %v2594_v41 = vld [vmem:[#allocation3 + $0x18] sm:$0xff] }
 0x2da   : > { %v3036_v45 = vadd.f32 %v2972_v16, %v7936_v8  ;;  %2721 = vst.msk [vmem:[#allocation3 + $0x10] sm:$0xff] %vm1227_vm3, %v2657_v59  ;;  %v2279_v8 = vrot.slane %v7029_v22, 1 }
 0x2dc   : > { %v3368_v29 = vld [vmem:[#allocation3] sm:$0xff]  ;;  %3100 = vst.msk [vmem:[#allocation3 + $0x8] sm:$0xff] %vm1227_vm3, %v3036_v45  ;;  %v2028_v24 = vpop.f32.mrf.mxu2 }
 0x2dd   : > { %v8390_v48 = vpop.f32.mrf.mxu0  ;;  %v3432_v17 = vadd.f32 %v3368_v29, %v8094_v58  ;;  %v2177_v15 = vadd.f32 %v2113_v5, %v2028_v24  ;;  %v2114_v5 = vld [vmem:[#allocation3 + $0x198] sm:$0xff] }
 0x2de   : > { %10318 = vst [vmem:[#allocation78_spill] sm:$0xff] %v8390_v48  ;;  %v8400_v48 = vsel %vm2257_vm5, %v2277_v50, %v2279_v8 }
 0x2df   : > { %3496 = vst.msk [vmem:[#allocation3] sm:$0xff] %vm1227_vm3, %v3432_v17  ;;  %v2438_v36 = vpop.f32.mrf.mxu3 }
 0x2e0   : > { %2241 = vst.msk [vmem:[#allocation3 + $0x190] sm:$0xff] %vm1227_vm3, %v2177_v15  ;;  %v2658_v16 = vadd.f32 %v2594_v41, %v2438_v36  ;;  %v2595_v15 = vld [vmem:[#allocation3 + $0x20] sm:$0xff] }
 0x2e1   : > { %v2973_v59 = vld [vmem:[#allocation3 + $0x10] sm:$0xff]  ;;  %v8395_v42 = vpop.f32.mrf.mxu1 }
 0x2e2   : > { %v3037_v45 = vadd.f32 %v2973_v59, %v7944_v62  ;;  %2722 = vst.msk [vmem:[#allocation3 + $0x18] sm:$0xff] %vm1227_vm3, %v2658_v16 }
 0x2e3   : > { %v3369_v58 = vld [vmem:[#allocation3 + $0x8] sm:$0xff] }
 0x2e4   : > { %3101 = vst.msk [vmem:[#allocation3 + $0x10] sm:$0xff] %vm1227_vm3, %v3037_v45  ;;  %v2030_v24 = vpop.f32.mrf.mxu2  ;;  %6517 = vmatmul.msk.bf16.gmra.mxu3 %vm1227_vm3, %v8400_v48  ;;  %6594 = vmatmul.msk.bf16.gmra.mxu1 %vm1227_vm3, %v8057_v40  ;;  %v3433_v62 = vadd.f32 %v3369_v58, %v8114_v26  ;;  %v7036_v40 = vld [vmem:[#allocation2 + $0x90] sm:$0xff] }
 0x2e5   : > { %v8403_v29 = vpop.f32.mrf.mxu0  ;;  %v2178_v17 = vadd.f32 %v2114_v5, %v2030_v24 }
 0x2e6   : > { %3497 = vst.msk [vmem:[#allocation3 + $0x8] sm:$0xff] %vm1227_vm3, %v3433_v62  ;;  %v2596_v62 = vld [vmem:[#allocation3 + $0x28] sm:$0xff] }
 0x2e7   : > { %2242 = vst.msk [vmem:[#allocation3 + $0x198] sm:$0xff] %vm1227_vm3, %v2178_v17  ;;  %v2441_v50 = vpop.f32.mrf.mxu3  ;;  %v7030_v17 = vld [vmem:[#allocation2 + $0x60] sm:$0xff] }
 0x2e8   : > { %6569 = vmatmul.msk.bf16.gmra.mxu0 %vm1227_vm3, %v8018_v39  ;;  %v2659_v36 = vadd.f32 %v2595_v15, %v2441_v50  ;;  %v2115_v39 = vld [vmem:[#allocation3 + $0x1a0] sm:$0xff] }
 0x2e9   : > { %v2974_v41 = vld [vmem:[#allocation3 + $0x18] sm:$0xff]  ;;  %v8414_v22 = vpop.f32.mrf.mxu1  ;;  %6609 = vmatmul.msk.bf16.gmra.mxu2 %vm1227_vm3, %v8232_v56 }
 0x2ea   : > { %v3038_v16 = vadd.f32 %v2974_v41, %v7962_v19  ;;  %2723 = vst.msk [vmem:[#allocation3 + $0x20] sm:$0xff] %vm1227_vm3, %v2659_v36  ;;  %v2281_v19 = vrot.slane %v7030_v17, 1 }
 0x2eb   : > { %v3370_v26 = vld [vmem:[#allocation3 + $0x10] sm:$0xff] }
 0x2ec   : > { %3102 = vst.msk [vmem:[#allocation3 + $0x18] sm:$0xff] %vm1227_vm3, %v3038_v16  ;;  %v2033_v45 = vpop.f32.mrf.mxu2  ;;  %v3434_v58 = vadd.f32 %v3370_v26, %v8122_v33  ;;  %v8431_v16 = vsel %vm2257_vm5, %v2279_v8, %v2281_v19 }
 0x2ed   : > { %v8421_v59 = vpop.f32.mrf.mxu0  ;;  %v2179_v24 = vadd.f32 %v2115_v39, %v2033_v45  ;;  %v2116_v39 = vld [vmem:[#allocation3 + $0x1a8] sm:$0xff] }
 0x2ee   : > { %3498 = vst.msk [vmem:[#allocation3 + $0x10] sm:$0xff] %vm1227_vm3, %v3434_v58 }
 0x2ef   : > { %2243 = vst.msk [vmem:[#allocation3 + $0x1a0] sm:$0xff] %vm1227_vm3, %v2179_v24  ;;  %v2443_v5 = vpop.f32.mrf.mxu3  ;;  %v2597_v24 = vld [vmem:[#allocation3 + $0x30] sm:$0xff] }
 0x2f0   : > { %v2660_v50 = vadd.f32 %v2596_v62, %v2443_v5 }
 0x2f1   : > { %v2975_v15 = vld [vmem:[#allocation3 + $0x20] sm:$0xff]  ;;  %v8426_v36 = vpop.f32.mrf.mxu1 }
 0x2f2   : > { %v3039_v41 = vadd.f32 %v2975_v15, %v7971_v23  ;;  %2724 = vst.msk [vmem:[#allocation3 + $0x28] sm:$0xff] %vm1227_vm3, %v2660_v50 }
 0x2f3   : > { %v3371_v33 = vld [vmem:[#allocation3 + $0x18] sm:$0xff] }
 0x2f4   : > { %3103 = vst.msk [vmem:[#allocation3 + $0x20] sm:$0xff] %vm1227_vm3, %v3039_v41  ;;  %v2035_v45 = vpop.f32.mrf.mxu2  ;;  %6518 = vmatmul.msk.bf16.gmra.mxu3 %vm1227_vm3, %v8431_v16  ;;  %6595 = vmatmul.msk.bf16.gmra.mxu1 %vm1227_vm3, %v8082_v31  ;;  %v3435_v23 = vadd.f32 %v3371_v33, %v8140_v3 }
 0x2f5   : > { %v8434_v26 = vpop.f32.mrf.mxu0  ;;  %v2180_v58 = vadd.f32 %v2116_v39, %v2035_v45 }
 0x2f6   : > { %3499 = vst.msk [vmem:[#allocation3 + $0x18] sm:$0xff] %vm1227_vm3, %v3435_v23  ;;  %v2598_v23 = vld [vmem:[#allocation3 + $0x38] sm:$0xff] }
 0x2f7   : > { %2244 = vst.msk [vmem:[#allocation3 + $0x1a8] sm:$0xff] %vm1227_vm3, %v2180_v58  ;;  %v2446_v8 = vpop.f32.mrf.mxu3  ;;  %v7031_v58 = vld [vmem:[#allocation2 + $0x68] sm:$0xff] }
 0x2f8   : > { %6570 = vmatmul.msk.bf16.gmra.mxu0 %vm1227_vm3, %v8044_v57  ;;  %v2661_v5 = vadd.f32 %v2597_v24, %v2446_v8  ;;  %v2117_v57 = vld [vmem:[#allocation3 + $0x1b0] sm:$0xff] }
 0x2f9   : > { %v2976_v62 = vld [vmem:[#allocation3 + $0x28] sm:$0xff]  ;;  %v8445_v17 = vpop.f32.mrf.mxu1  ;;  %6610 = vmatmul.msk.bf16.gmra.mxu2 %vm1227_vm3, %v8260_v54 }
 0x2fa   : > { %v3040_v50 = vadd.f32 %v2976_v62, %v7987_v55  ;;  %2725 = vst.msk [vmem:[#allocation3 + $0x30] sm:$0xff] %vm1227_vm3, %v2661_v5  ;;  %v2283_v55 = vrot.slane %v7031_v58, 1 }
 0x2fb   : > { %v3372_v3 = vld [vmem:[#allocation3 + $0x20] sm:$0xff] }
 0x2fc   : > { %3104 = vst.msk [vmem:[#allocation3 + $0x28] sm:$0xff] %vm1227_vm3, %v3040_v50  ;;  %v2038_v41 = vpop.f32.mrf.mxu2  ;;  %v3436_v33 = vadd.f32 %v3372_v3, %v8148_v11  ;;  %v8462_v50 = vsel %vm2257_vm5, %v2281_v19, %v2283_v55 }
 0x2fd   : > { %v8452_v15 = vpop.f32.mrf.mxu0  ;;  %v2181_v45 = vadd.f32 %v2117_v57, %v2038_v41  ;;  %10319 = vst [vmem:[#allocation79_spill] sm:$0xff] %v8462_v50  ;;  %v2118_v57 = vld [vmem:[#allocation3 + $0x1b8] sm:$0xff] }
 0x2fe   : > { %3500 = vst.msk [vmem:[#allocation3 + $0x20] sm:$0xff] %vm1227_vm3, %v3436_v33 }
 0x2ff   : > { %2245 = vst.msk [vmem:[#allocation3 + $0x1b0] sm:$0xff] %vm1227_vm3, %v2181_v45  ;;  %v2448_v39 = vpop.f32.mrf.mxu3  ;;  %v2599_v45 = vld [vmem:[#allocation3 + $0x40] sm:$0xff] }
 0x300   : > { %v2662_v8 = vadd.f32 %v2598_v23, %v2448_v39 }
 0x301   : > { %v2977_v24 = vld [vmem:[#allocation3 + $0x30] sm:$0xff]  ;;  %v8457_v5 = vpop.f32.mrf.mxu1 }
 0x302   : > { %v3041_v62 = vadd.f32 %v2977_v24, %v7996_v7  ;;  %2726 = vst.msk [vmem:[#allocation3 + $0x38] sm:$0xff] %vm1227_vm3, %v2662_v8 }
 0x303   : > { %v3373_v11 = vld [vmem:[#allocation3 + $0x28] sm:$0xff] }
 0x304   : > { %3105 = vst.msk [vmem:[#allocation3 + $0x30] sm:$0xff] %vm1227_vm3, %v3041_v62  ;;  %v2040_v41 = vpop.f32.mrf.mxu2  ;;  %6519 = vmatmul.msk.bf16.gmra.mxu3 %vm1227_vm3, %v8462_v50  ;;  %6596 = vmatmul.msk.bf16.gmra.mxu1 %vm1227_vm3, %v8109_v53  ;;  %v3437_v7 = vadd.f32 %v3373_v11, %v8165_v1 }
 0x305   : > { %v8465_v3 = vpop.f32.mrf.mxu0  ;;  %v2182_v33 = vadd.f32 %v2118_v57, %v2040_v41 }
 0x306   : > { %3501 = vst.msk [vmem:[#allocation3 + $0x28] sm:$0xff] %vm1227_vm3, %v3437_v7  ;;  %v2600_v7 = vld [vmem:[#allocation3 + $0x48] sm:$0xff] }
 0x307   : > { %2246 = vst.msk [vmem:[#allocation3 + $0x1b8] sm:$0xff] %vm1227_vm3, %v2182_v33  ;;  %v2451_v19 = vpop.f32.mrf.mxu3  ;;  %v7032_v33 = vld [vmem:[#allocation2 + $0x70] sm:$0xff] }
 0x308   : > { %6571 = vmatmul.msk.bf16.gmra.mxu0 %vm1227_vm3, %v8068_v2  ;;  %v2663_v39 = vadd.f32 %v2599_v45, %v2451_v19  ;;  %v2119_v2 = vld [vmem:[#allocation3 + $0x1c0] sm:$0xff] }
 0x309   : > { %v2978_v23 = vld [vmem:[#allocation3 + $0x38] sm:$0xff]  ;;  %v8476_v58 = vpop.f32.mrf.mxu1  ;;  %6611 = vmatmul.msk.bf16.gmra.mxu2 %vm1227_vm3, %v8288_v25 }
 0x30a   : > { %v3042_v8 = vadd.f32 %v2978_v23, %v8012_v21  ;;  %2727 = vst.msk [vmem:[#allocation3 + $0x40] sm:$0xff] %vm1227_vm3, %v2663_v39  ;;  %v2285_v21 = vrot.slane %v7032_v33, 1 }
 0x30b   : > { %v3374_v1 = vld [vmem:[#allocation3 + $0x30] sm:$0xff] }
 0x30c   : > { %3106 = vst.msk [vmem:[#allocation3 + $0x38] sm:$0xff] %vm1227_vm3, %v3042_v8  ;;  %v2043_v62 = vpop.f32.mrf.mxu2  ;;  %v3438_v11 = vadd.f32 %v3374_v1, %v8172_v52  ;;  %v8493_v8 = vsel %vm2257_vm5, %v2283_v55, %v2285_v21 }
 0x30d   : > { %v8483_v24 = vpop.f32.mrf.mxu0  ;;  %v2183_v41 = vadd.f32 %v2119_v2, %v2043_v62  ;;  %10320 = vst [vmem:[#allocation80_spill] sm:$0xff] %v8493_v8  ;;  %v2120_v2 = vld [vmem:[#allocation3 + $0x1c8] sm:$0xff] }
 0x30e   : > { %3502 = vst.msk [vmem:[#allocation3 + $0x30] sm:$0xff] %vm1227_vm3, %v3438_v11 }
 0x30f   : > { %2247 = vst.msk [vmem:[#allocation3 + $0x1c0] sm:$0xff] %vm1227_vm3, %v2183_v41  ;;  %v2453_v57 = vpop.f32.mrf.mxu3  ;;  %v2601_v41 = vld [vmem:[#allocation3 + $0x50] sm:$0xff] }
 0x310   : > { %v2664_v19 = vadd.f32 %v2600_v7, %v2453_v57 }
 0x311   : > { %v2979_v45 = vld [vmem:[#allocation3 + $0x40] sm:$0xff]  ;;  %v8488_v39 = vpop.f32.mrf.mxu1 }
 0x312   : > { %v3043_v23 = vadd.f32 %v2979_v45, %v8021_v44  ;;  %2728 = vst.msk [vmem:[#allocation3 + $0x48] sm:$0xff] %vm1227_vm3, %v2664_v19 }
 0x313   : > { %v3375_v52 = vld [vmem:[#allocation3 + $0x38] sm:$0xff] }
 0x314   : > { %3107 = vst.msk [vmem:[#allocation3 + $0x40] sm:$0xff] %vm1227_vm3, %v3043_v23  ;;  %v2045_v62 = vpop.f32.mrf.mxu2  ;;  %6520 = vmatmul.msk.bf16.gmra.mxu3 %vm1227_vm3, %v8493_v8  ;;  %6597 = vmatmul.msk.bf16.gmra.mxu1 %vm1227_vm3, %v8136_v38  ;;  %v3439_v44 = vadd.f32 %v3375_v52, %v8193_v18 }
 0x315   : > { %v8496_v1 = vpop.f32.mrf.mxu0  ;;  %v2184_v11 = vadd.f32 %v2120_v2, %v2045_v62 }
 0x316   : > { %3503 = vst.msk [vmem:[#allocation3 + $0x38] sm:$0xff] %vm1227_vm3, %v3439_v44  ;;  %v2602_v44 = vld [vmem:[#allocation3 + $0x58] sm:$0xff] }
 0x317   : > { %2248 = vst.msk [vmem:[#allocation3 + $0x1c8] sm:$0xff] %vm1227_vm3, %v2184_v11  ;;  %v2456_v55 = vpop.f32.mrf.mxu3  ;;  %v7033_v11 = vld [vmem:[#allocation2 + $0x78] sm:$0xff] }
 0x318   : > { %6572 = vmatmul.msk.bf16.gmra.mxu0 %vm1227_vm3, %v8096_v9  ;;  %v2665_v57 = vadd.f32 %v2601_v41, %v2456_v55  ;;  %v2121_v9 = vld [vmem:[#allocation3 + $0x1d0] sm:$0xff] }
 0x319   : > { %v2980_v7 = vld [vmem:[#allocation3 + $0x48] sm:$0xff]  ;;  %v8507_v33 = vpop.f32.mrf.mxu1  ;;  %6612 = vmatmul.msk.bf16.gmra.mxu2 %vm1227_vm3, %v8321_v27 }
 0x31a   : > { %v3044_v19 = vadd.f32 %v2980_v7, %v8037_v0  ;;  %2729 = vst.msk [vmem:[#allocation3 + $0x50] sm:$0xff] %vm1227_vm3, %v2665_v57  ;;  %v2287_v0 = vrot.slane %v7033_v11, 1 }
 0x31b   : > { %v3376_v18 = vld [vmem:[#allocation3 + $0x40] sm:$0xff] }
 0x31c   : > { %3108 = vst.msk [vmem:[#allocation3 + $0x48] sm:$0xff] %vm1227_vm3, %v3044_v19  ;;  %v2048_v23 = vpop.f32.mrf.mxu2  ;;  %v3440_v52 = vadd.f32 %v3376_v18, %v8201_v4  ;;  %v8524_v19 = vsel %vm2257_vm5, %v2285_v21, %v2287_v0 }
 0x31d   : > { %v8514_v45 = vpop.f32.mrf.mxu0  ;;  %v2185_v62 = vadd.f32 %v2121_v9, %v2048_v23  ;;  %10322 = vst [vmem:[#allocation82_spill] sm:$0xff] %v8524_v19  ;;  %v2122_v9 = vld [vmem:[#allocation3 + $0x1d8] sm:$0xff] }
 0x31e   : > { %10321 = vst [vmem:[#allocation81_spill] sm:$0xff] %v8514_v45 }
 0x31f   : > { %3504 = vst.msk [vmem:[#allocation3 + $0x40] sm:$0xff] %vm1227_vm3, %v3440_v52  ;;  %v2458_v2 = vpop.f32.mrf.mxu3 }
 0x320   : > { %2249 = vst.msk [vmem:[#allocation3 + $0x1d0] sm:$0xff] %vm1227_vm3, %v2185_v62  ;;  %v2666_v55 = vadd.f32 %v2602_v44, %v2458_v2  ;;  %v2603_v62 = vld [vmem:[#allocation3 + $0x60] sm:$0xff] }
 0x321   : > { %v2981_v41 = vld [vmem:[#allocation3 + $0x50] sm:$0xff]  ;;  %v8519_v57 = vpop.f32.mrf.mxu1 }
 0x322   : > { %v3045_v7 = vadd.f32 %v2981_v41, %v8046_v12  ;;  %2730 = vst.msk [vmem:[#allocation3 + $0x58] sm:$0xff] %vm1227_vm3, %v2666_v55 }
 0x323   : > { %v3377_v4 = vld [vmem:[#allocation3 + $0x48] sm:$0xff] }
 0x324   : > { %3109 = vst.msk [vmem:[#allocation3 + $0x50] sm:$0xff] %vm1227_vm3, %v3045_v7  ;;  %v2050_v23 = vpop.f32.mrf.mxu2  ;;  %6521 = vmatmul.msk.bf16.gmra.mxu3 %vm1227_vm3, %v8524_v19  ;;  %6598 = vmatmul.msk.bf16.gmra.mxu1 %vm1227_vm3, %v8161_v30  ;;  %v3441_v12 = vadd.f32 %v3377_v4, %v8221_v6  ;;  %v2123_v4 = vld [vmem:[#allocation3 + $0x1e0] sm:$0xff] }
 0x325   : > { %v8527_v18 = vpop.f32.mrf.mxu0  ;;  %v2186_v52 = vadd.f32 %v2122_v9, %v2050_v23 }
 0x326   : > { %10323 = vst [vmem:[#allocation83_spill] sm:$0xff] %v8527_v18 }
 0x327   : > { %3505 = vst.msk [vmem:[#allocation3 + $0x48] sm:$0xff] %vm1227_vm3, %v3441_v12  ;;  %v2461_v21 = vpop.f32.mrf.mxu3 }
 0x328   : > { %2250 = vst.msk [vmem:[#allocation3 + $0x1d8] sm:$0xff] %vm1227_vm3, %v2186_v52  ;;  %6573 = vmatmul.msk.bf16.gmra.mxu0 %vm1227_vm3, %v8296_v63  ;;  %v2667_v2 = vadd.f32 %v2603_v62, %v2461_v21  ;;  %v2604_v52 = vld [vmem:[#allocation3 + $0x68] sm:$0xff]  ;;  %v7034_v21 = vld [vmem:[#allocation2 + $0x80] sm:$0xff] }
 0x329   : > { %v2982_v44 = vld [vmem:[#allocation3 + $0x58] sm:$0xff]  ;;  %v8538_v11 = vpop.f32.mrf.mxu1  ;;  %6613 = vmatmul.msk.bf16.gmra.mxu2 %vm1227_vm3, %v8347_v32 }
 0x32a   : > { %v3046_v55 = vadd.f32 %v2982_v44, %v8062_v47  ;;  %2731 = vst.msk [vmem:[#allocation3 + $0x60] sm:$0xff] %vm1227_vm3, %v2667_v2  ;;  %v2289_v47 = vrot.slane %v7034_v21, 1 }
 0x32b   : > { %v3378_v6 = vld [vmem:[#allocation3 + $0x50] sm:$0xff] }
 0x32c   : > { %3110 = vst.msk [vmem:[#allocation3 + $0x58] sm:$0xff] %vm1227_vm3, %v3046_v55  ;;  %v2053_v7 = vpop.f32.mrf.mxu2  ;;  %v3442_v23 = vadd.f32 %v3378_v6, %v8228_v34  ;;  %v8555_v30 = vsel %vm2257_vm5, %v2287_v0, %v2289_v47 }
 0x32d   : > { %v8545_v41 = vpop.f32.mrf.mxu0  ;;  %v2187_v9 = vadd.f32 %v2123_v4, %v2053_v7  ;;  %v2124_v4 = vld [vmem:[#allocation3 + $0x1e8] sm:$0xff] }
 0x32e   : > { %10324 = vst [vmem:[#allocation84_spill] sm:$0xff] %v8545_v41 }
 0x32f   : > { %3506 = vst.msk [vmem:[#allocation3 + $0x50] sm:$0xff] %vm1227_vm3, %v3442_v23  ;;  %v2463_v12 = vpop.f32.mrf.mxu3 }
 0x330   : > { %2251 = vst.msk [vmem:[#allocation3 + $0x1e0] sm:$0xff] %vm1227_vm3, %v2187_v9  ;;  %v2668_v62 = vadd.f32 %v2604_v52, %v2463_v12  ;;  %v8565_v9 = vld [vmem:[#allocation2 + $0x108] sm:$0xff]  ;;  %v2605_v12 = vld [vmem:[#allocation3 + $0x70] sm:$0xff] }
 0x331   : > { %v2983_v2 = vld [vmem:[#allocation3 + $0x60] sm:$0xff]  ;;  %v8550_v44 = vpop.f32.mrf.mxu1 }
 0x332   : > { %v3047_v55 = vadd.f32 %v2983_v2, %v8071_v13  ;;  %2732 = vst.msk [vmem:[#allocation3 + $0x68] sm:$0xff] %vm1227_vm3, %v2668_v62 }
 0x333   : > { %v3379_v34 = vld [vmem:[#allocation3 + $0x58] sm:$0xff] }
 0x334   : > { %3111 = vst.msk [vmem:[#allocation3 + $0x60] sm:$0xff] %vm1227_vm3, %v3047_v55  ;;  %v2055_v7 = vpop.f32.mrf.mxu2  ;;  %6522 = vmatmul.msk.bf16.gmra.mxu3 %vm1227_vm3, %v8555_v30  ;;  %6599 = vmatmul.msk.bf16.gmra.mxu1 %vm1227_vm3, %v8189_v51  ;;  %v3443_v13 = vadd.f32 %v3379_v34, %v8249_v43 }
 0x335   : > { %v8558_v6 = vpop.f32.mrf.mxu0  ;;  %v2188_v23 = vadd.f32 %v2124_v4, %v2055_v7  ;;  %v2125_v7 = vld [vmem:[#allocation3 + $0x1f0] sm:$0xff] }
 0x336   : > { %10325 = vst [vmem:[#allocation85_spill] sm:$0xff] %v8558_v6 }
 0x337   : > { %3507 = vst.msk [vmem:[#allocation3 + $0x58] sm:$0xff] %vm1227_vm3, %v3443_v13  ;;  %v2466_v0 = vpop.f32.mrf.mxu3 }
 0x338   : > { %2252 = vst.msk [vmem:[#allocation3 + $0x1e8] sm:$0xff] %vm1227_vm3, %v2188_v23  ;;  %6574 = vmatmul.msk.bf16.gmra.mxu0 %vm1227_vm3, %v8565_v9  ;;  %v2669_v52 = vadd.f32 %v2605_v12, %v2466_v0  ;;  %v2606_v0 = vld [vmem:[#allocation3 + $0x78] sm:$0xff] }
 0x339   : > { %v2984_v21 = vld [vmem:[#allocation3 + $0x68] sm:$0xff]  ;;  %v8571_v62 = vpop.f32.mrf.mxu1  ;;  %6614 = vmatmul.msk.bf16.gmra.mxu2 %vm1227_vm3, %v8371_v35  ;;  %v7035_v12 = vld [vmem:[#allocation2 + $0x88] sm:$0xff] }
 0x33a   : > { %v3048_v43 = vadd.f32 %v2984_v21, %v8088_v10  ;;  %2733 = vst.msk [vmem:[#allocation3 + $0x70] sm:$0xff] %vm1227_vm3, %v2669_v52  ;;  %v2291_v10 = vrot.slane %v7035_v12, 1  ;;  %v2607_v12 = vld [vmem:[#allocation3 + $0x80] sm:$0xff] }
 0x33b   : > { %v3380_v2 = vld [vmem:[#allocation3 + $0x60] sm:$0xff] }
 0x33c   : > { %3112 = vst.msk [vmem:[#allocation3 + $0x68] sm:$0xff] %vm1227_vm3, %v3048_v43  ;;  %v2058_v34 = vpop.f32.mrf.mxu2  ;;  %v3444_v4 = vadd.f32 %v3380_v2, %v8257_v49  ;;  %v10327_v43 = vld [vmem:[#allocation45_spill] sm:$0xff]  ;;  %v8588_v53 = vsel %vm2257_vm5, %v2289_v47, %v2291_v10  ;;  %v10331_v47 = vld [vmem:[#allocation26_spill] sm:$0xff] }
 0x33d   : > { %v8578_v55 = vpop.f32.mrf.mxu0  ;;  %v2189_v13 = vadd.f32 %v2125_v7, %v2058_v34  ;;  %v2126_v7 = vld [vmem:[#allocation3 + $0x1f8] sm:$0xff] }
 0x33e   : > { %10326 = vst [vmem:[#allocation86_spill] sm:$0xff] %v8578_v55 }
 0x33f   : > { %3508 = vst.msk [vmem:[#allocation3 + $0x60] sm:$0xff] %vm1227_vm3, %v3444_v4  ;;  %v2468_v23 = vpop.f32.mrf.mxu3  ;;  %v10329_v4 = vld [vmem:[#allocation58_spill] sm:$0xff] }
 0x340   : > { %2253 = vst.msk [vmem:[#allocation3 + $0x1f0] sm:$0xff] %vm1227_vm3, %v2189_v13  ;;  %v2670_v21 = vadd.f32 %v2606_v0, %v2468_v23  ;;  %v10330_v13 = vld [vmem:[#allocation65_spill] sm:$0xff] }
 0x341   : > { %v2985_v52 = vld [vmem:[#allocation3 + $0x70] sm:$0xff]  ;;  %v8583_v51 = vpop.f32.mrf.mxu1 }
 0x342   : > { %v3049_v38 = vadd.f32 %v2985_v52, %v10327_v43  ;;  %2734 = vst.msk [vmem:[#allocation3 + $0x78] sm:$0xff] %vm1227_vm3, %v2670_v21 }
 0x343   : > { %v3381_v49 = vld [vmem:[#allocation3 + $0x68] sm:$0xff] }
 0x344   : > { %3113 = vst.msk [vmem:[#allocation3 + $0x70] sm:$0xff] %vm1227_vm3, %v3049_v38  ;;  %v2060_v34 = vpop.f32.mrf.mxu2  ;;  %6523 = vmatmul.msk.bf16.gmra.mxu3 %vm1227_vm3, %v8588_v53  ;;  %6600 = vmatmul.msk.bf16.gmra.mxu1 %vm1227_vm3, %v10329_v4  ;;  %v3445_v23 = vadd.f32 %v3381_v49, %v10330_v13  ;;  %v10332_v4 = vld [vmem:[#allocation47_spill] sm:$0xff] }
 0x345   : > { %v8591_v2 = vpop.f32.mrf.mxu0  ;;  %v2190_v0 = vadd.f32 %v2126_v7, %v2060_v34  ;;  %v3749_v13 = vld [vmem:[#allocation3] sm:$0xff] }
 0x346   : > { %10328 = vst [vmem:[#allocation45_spill] sm:$0xff] %v8591_v2 }
 0x347   : > { %3509 = vst.msk [vmem:[#allocation3 + $0x68] sm:$0xff] %vm1227_vm3, %v3445_v23  ;;  %v2471_v38 = vpop.f32.mrf.mxu3  ;;  %v10334_v23 = vld [vmem:[#allocation67_spill] sm:$0xff] }
 0x348   : > { %2254 = vst.msk [vmem:[#allocation3 + $0x1f8] sm:$0xff] %vm1227_vm3, %v2190_v0  ;;  %6675 = vmatmul.msk.bf16.vlgmr.msra.gmra.mxu0 %vm1227_vm3, %v10331_v47  ;;  %v2671_v21 = vadd.f32 %v2607_v12, %v2471_v38  ;;  %v2608_v12 = vld [vmem:[#allocation3 + $0x88] sm:$0xff] }
 0x349   : > { %v2986_v52 = vld [vmem:[#allocation3 + $0x78] sm:$0xff]  ;;  %v8602_v43 = vpop.f32.mrf.mxu1  ;;  %6615 = vmatmul.msk.bf16.gmra.mxu2 %vm1227_vm3, %v8400_v48 }
 0x34a   : > { %v3050_v31 = vadd.f32 %v2986_v52, %v10332_v4  ;;  %2735 = vst.msk [vmem:[#allocation3 + $0x80] sm:$0xff] %vm1227_vm3, %v2671_v21  ;;  %v2293_v4 = vrot.slane %v7036_v40, 1  ;;  %v10337_v40 = vld [vmem:[#allocation61_spill] sm:$0xff] }
 0x34b   : > { %v3382_v49 = vld [vmem:[#allocation3 + $0x70] sm:$0xff] }
 0x34c   : > { %3114 = vst.msk [vmem:[#allocation3 + $0x78] sm:$0xff] %vm1227_vm3, %v3050_v31  ;;  %v3589_v7 = vpop.f32.mrf.mxu2  ;;  %v3446_v0 = vadd.f32 %v3382_v49, %v10334_v23  ;;  %v10335_v31 = vld [vmem:[#allocation48_spill] sm:$0xff] }
 0x34d   : > { %v8609_v34 = vpop.f32.mrf.mxu0  ;;  %v3813_v47 = vadd.f32 %v3749_v13, %v3589_v7  ;;  %v3750_v23 = vld [vmem:[#allocation3 + $0x8] sm:$0xff] }
 0x34e   : > { %10333 = vst [vmem:[#allocation65_spill] sm:$0xff] %v8609_v34  ;;  %v8619_v34 = vsel %vm2257_vm5, %v2291_v10, %v2293_v4  ;;  %v10339_v10 = vld [vmem:[#allocation27_spill] sm:$0xff] }
 0x34f   : > { %3510 = vst.msk [vmem:[#allocation3 + $0x70] sm:$0xff] %vm1227_vm3, %v3446_v0  ;;  %v2473_v38 = vpop.f32.mrf.mxu3  ;;  %v10338_v0 = vld [vmem:[#allocation70_spill] sm:$0xff] }
 0x350   : > { %3877 = vst.msk [vmem:[#allocation3] sm:$0xff] %vm1227_vm3, %v3813_v47  ;;  %v2672_v52 = vadd.f32 %v2608_v12, %v2473_v38  ;;  %v2609_v12 = vld [vmem:[#allocation3 + $0x90] sm:$0xff] }
 0x351   : > { %v2987_v21 = vld [vmem:[#allocation3 + $0x80] sm:$0xff]  ;;  %v8614_v2 = vpop.f32.mrf.mxu1 }
 0x352   : > { %v3051_v55 = vadd.f32 %v2987_v21, %v10335_v31  ;;  %2736 = vst.msk [vmem:[#allocation3 + $0x88] sm:$0xff] %vm1227_vm3, %v2672_v52 }
 0x353   : > { %v3383_v49 = vld [vmem:[#allocation3 + $0x78] sm:$0xff] }
 0x354   : > { %3115 = vst.msk [vmem:[#allocation3 + $0x80] sm:$0xff] %vm1227_vm3, %v3051_v55  ;;  %6524 = vmatmul.msk.bf16.gmra.mxu3 %vm1227_vm3, %v8619_v34  ;;  %6601 = vmatmul.msk.bf16.gmra.mxu1 %vm1227_vm3, %v10337_v40  ;;  %v3591_v13 = vpop.f32.mrf.mxu2  ;;  %v3447_v47 = vadd.f32 %v3383_v49, %v10338_v0  ;;  %v10340_v40 = vld [vmem:[#allocation50_spill] sm:$0xff] }
 0x355   : > { %v8622_v7 = vpop.f32.mrf.mxu0  ;;  %v3814_v38 = vadd.f32 %v3750_v23, %v3591_v13  ;;  %v3751_v0 = vld [vmem:[#allocation3 + $0x10] sm:$0xff] }
 0x356   : > { %10336 = vst [vmem:[#allocation26_spill] sm:$0xff] %v8622_v7 }
 0x357   : > { %3511 = vst.msk [vmem:[#allocation3 + $0x78] sm:$0xff] %vm1227_vm3, %v3447_v47  ;;  %v2476_v55 = vpop.f32.mrf.mxu3 }
 0x358   : > { %3878 = vst.msk [vmem:[#allocation3 + $0x8] sm:$0xff] %vm1227_vm3, %v3814_v38  ;;  %6676 = vmatmul.msk.bf16.gmra.mxu0 %vm1227_vm3, %v10339_v10  ;;  %v2673_v52 = vadd.f32 %v2609_v12, %v2476_v55  ;;  %v2610_v55 = vld [vmem:[#allocation3 + $0x98] sm:$0xff]  ;;  %v7037_v12 = vld [vmem:[#allocation2 + $0x98] sm:$0xff] }
 0x359   : > { %v2988_v21 = vld [vmem:[#allocation3 + $0x88] sm:$0xff]  ;;  %v8633_v31 = vpop.f32.mrf.mxu1  ;;  %6616 = vmatmul.msk.bf16.gmra.mxu2 %vm1227_vm3, %v8431_v16 }
 0x35a   : > { %v3052_v7 = vadd.f32 %v2988_v21, %v10340_v40  ;;  %2737 = vst.msk [vmem:[#allocation3 + $0x90] sm:$0xff] %vm1227_vm3, %v2673_v52  ;;  %v2295_v40 = vrot.slane %v7037_v12, 1 }
 0x35b   : > { %v3384_v49 = vld [vmem:[#allocation3 + $0x80] sm:$0xff] }
 0x35c   : > { %3116 = vst.msk [vmem:[#allocation3 + $0x88] sm:$0xff] %vm1227_vm3, %v3052_v7  ;;  %v3594_v23 = vpop.f32.mrf.mxu2  ;;  %v3448_v47 = vadd.f32 %v3384_v49, %v8318_v60  ;;  %v10342_v7 = vld [vmem:[#allocation51_spill] sm:$0xff] }
 0x35d   : > { %v8640_v13 = vpop.f32.mrf.mxu0  ;;  %v3815_v38 = vadd.f32 %v3751_v0, %v3594_v23  ;;  %v10344_v23 = vld [vmem:[#allocation64_spill] sm:$0xff] }
 0x35e   : > { %10341 = vst [vmem:[#allocation47_spill] sm:$0xff] %v8640_v13  ;;  %v8650_v13 = vsel %vm2257_vm5, %v2293_v4, %v2295_v40  ;;  %v10345_v4 = vld [vmem:[#allocation28_spill] sm:$0xff] }
 0x35f   : > { %3512 = vst.msk [vmem:[#allocation3 + $0x80] sm:$0xff] %vm1227_vm3, %v3448_v47  ;;  %v2478_v10 = vpop.f32.mrf.mxu3  ;;  %v3752_v47 = vld [vmem:[#allocation3 + $0x18] sm:$0xff] }
 0x360   : > { %3879 = vst.msk [vmem:[#allocation3 + $0x10] sm:$0xff] %vm1227_vm3, %v3815_v38  ;;  %v2674_v21 = vadd.f32 %v2610_v55, %v2478_v10  ;;  %v2611_v55 = vld [vmem:[#allocation3 + $0xa0] sm:$0xff] }
 0x361   : > { %v2989_v52 = vld [vmem:[#allocation3 + $0x90] sm:$0xff]  ;;  %v8645_v6 = vpop.f32.mrf.mxu1 }
 0x362   : > { %v3053_v41 = vadd.f32 %v2989_v52, %v10342_v7  ;;  %2738 = vst.msk [vmem:[#allocation3 + $0x98] sm:$0xff] %vm1227_vm3, %v2674_v21  ;;  %v10346_v7 = vld [vmem:[#allocation53_spill] sm:$0xff] }
 0x363   : > { %v3385_v60 = vld [vmem:[#allocation3 + $0x88] sm:$0xff] }
 0x364   : > { %3117 = vst.msk [vmem:[#allocation3 + $0x90] sm:$0xff] %vm1227_vm3, %v3053_v41  ;;  %6525 = vmatmul.msk.bf16.gmra.mxu3 %vm1227_vm3, %v8650_v13  ;;  %6602 = vmatmul.msk.bf16.gmra.mxu1 %vm1227_vm3, %v10344_v23  ;;  %v3596_v0 = vpop.f32.mrf.mxu2  ;;  %v3449_v38 = vadd.f32 %v3385_v60, %v8338_v37 }
 0x365   : > { %v8653_v49 = vpop.f32.mrf.mxu0  ;;  %v3816_v10 = vadd.f32 %v3752_v47, %v3596_v0  ;;  %v3753_v47 = vld [vmem:[#allocation3 + $0x20] sm:$0xff] }
 0x366   : > { %10343 = vst [vmem:[#allocation67_spill] sm:$0xff] %v8653_v49 }
 0x367   : > { %3513 = vst.msk [vmem:[#allocation3 + $0x88] sm:$0xff] %vm1227_vm3, %v3449_v38  ;;  %v2481_v41 = vpop.f32.mrf.mxu3 }
 0x368   : > { %3880 = vst.msk [vmem:[#allocation3 + $0x18] sm:$0xff] %vm1227_vm3, %v3816_v10  ;;  %6677 = vmatmul.msk.bf16.gmra.mxu0 %vm1227_vm3, %v10345_v4  ;;  %v2675_v12 = vadd.f32 %v2611_v55, %v2481_v41  ;;  %v2612_v41 = vld [vmem:[#allocation3 + $0xa8] sm:$0xff]  ;;  %v7038_v55 = vld [vmem:[#allocation2 + $0xa0] sm:$0xff] }
 0x369   : > { %v2990_v21 = vld [vmem:[#allocation3 + $0x98] sm:$0xff]  ;;  %v8664_v52 = vpop.f32.mrf.mxu1  ;;  %6617 = vmatmul.msk.bf16.gmra.mxu2 %vm1227_vm3, %v8462_v50 }
 0x36a   : > { %v3054_v23 = vadd.f32 %v2990_v21, %v10346_v7  ;;  %2739 = vst.msk [vmem:[#allocation3 + $0xa0] sm:$0xff] %vm1227_vm3, %v2675_v12  ;;  %v2297_v21 = vrot.slane %v7038_v55, 1  ;;  %v2613_v55 = vld [vmem:[#allocation3 + $0xb0] sm:$0xff] }
 0x36b   : > { %v3386_v37 = vld [vmem:[#allocation3 + $0x90] sm:$0xff] }
 0x36c   : > { %3118 = vst.msk [vmem:[#allocation3 + $0x98] sm:$0xff] %vm1227_vm3, %v3054_v23  ;;  %v3599_v0 = vpop.f32.mrf.mxu2  ;;  %v3450_v38 = vadd.f32 %v3386_v37, %v8344_v14  ;;  %v10348_v23 = vld [vmem:[#allocation54_spill] sm:$0xff] }
 0x36d   : > { %v8671_v60 = vpop.f32.mrf.mxu0  ;;  %v3817_v10 = vadd.f32 %v3753_v47, %v3599_v0  ;;  %v10350_v0 = vld [vmem:[#allocation69_spill] sm:$0xff] }
 0x36e   : > { %10347 = vst [vmem:[#allocation48_spill] sm:$0xff] %v8671_v60  ;;  %v8681_v60 = vsel %vm2257_vm5, %v2295_v40, %v2297_v21  ;;  %v10352_v40 = vld [vmem:[#allocation29_spill] sm:$0xff] }
 0x36f   : > { %3514 = vst.msk [vmem:[#allocation3 + $0x90] sm:$0xff] %vm1227_vm3, %v3450_v38  ;;  %v2483_v4 = vpop.f32.mrf.mxu3  ;;  %v3754_v38 = vld [vmem:[#allocation3 + $0x28] sm:$0xff] }
 0x370   : > { %3881 = vst.msk [vmem:[#allocation3 + $0x20] sm:$0xff] %vm1227_vm3, %v3817_v10  ;;  %v2676_v7 = vadd.f32 %v2612_v41, %v2483_v4  ;;  %v10351_v10 = vld [vmem:[#allocation77_spill] sm:$0xff] }
 0x371   : > { %v2991_v12 = vld [vmem:[#allocation3 + $0xa0] sm:$0xff]  ;;  %v8676_v49 = vpop.f32.mrf.mxu1 }
 0x372   : > { %v3055_v50 = vadd.f32 %v2991_v12, %v10348_v23  ;;  %2740 = vst.msk [vmem:[#allocation3 + $0xa8] sm:$0xff] %vm1227_vm3, %v2676_v7 }
 0x373   : > { %v3387_v14 = vld [vmem:[#allocation3 + $0x98] sm:$0xff] }
 0x374   : > { %3119 = vst.msk [vmem:[#allocation3 + $0xa0] sm:$0xff] %vm1227_vm3, %v3055_v50  ;;  %6526 = vmatmul.msk.bf16.gmra.mxu3 %vm1227_vm3, %v8681_v60  ;;  %6603 = vmatmul.msk.bf16.gmra.mxu1 %vm1227_vm3, %v10350_v0  ;;  %v3601_v47 = vpop.f32.mrf.mxu2  ;;  %v3451_v4 = vadd.f32 %v3387_v14, %v10351_v10  ;;  %v10354_v0 = vld [vmem:[#allocation56_spill] sm:$0xff]  ;;  %v3168_v14 = vshll.u32 %v8296_v63, 16 }
 0x375   : > { %v8684_v37 = vpop.f32.mrf.mxu0  ;;  %v3818_v41 = vadd.f32 %v3754_v38, %v3601_v47 }
 0x376   : > { %10349 = vst [vmem:[#allocation70_spill] sm:$0xff] %v8684_v37 }
 0x377   : > { %3515 = vst.msk [vmem:[#allocation3 + $0x98] sm:$0xff] %vm1227_vm3, %v3451_v4  ;;  %v2486_v50 = vpop.f32.mrf.mxu3  ;;  %v3755_v4 = vld [vmem:[#allocation3 + $0x30] sm:$0xff] }
 0x378   : > { %3882 = vst.msk [vmem:[#allocation3 + $0x28] sm:$0xff] %vm1227_vm3, %v3818_v41  ;;  %6678 = vmatmul.msk.bf16.gmra.mxu0 %vm1227_vm3, %v10352_v40  ;;  %v2677_v7 = vadd.f32 %v2613_v55, %v2486_v50  ;;  %v7039_v55 = vld [vmem:[#allocation2 + $0xa8] sm:$0xff] }
 0x379   : > { %v2992_v12 = vld [vmem:[#allocation3 + $0xa8] sm:$0xff]  ;;  %v8695_v23 = vpop.f32.mrf.mxu1  ;;  %6618 = vmatmul.msk.bf16.gmra.mxu2 %vm1227_vm3, %v8493_v8 }
 0x37a   : > { %10353 = vst [vmem:[#allocation27_spill] sm:$0xff] %v8695_v23  ;;  %v3056_v37 = vadd.f32 %v2992_v12, %v10354_v0  ;;  %v2614_v0 = vld [vmem:[#allocation3 + $0xb8] sm:$0xff]  ;;  %v3170_v12 = vrot.slane %v3168_v14, 1 }
 0x37b   : > { %2741 = vst.msk [vmem:[#allocation3 + $0xb0] sm:$0xff] %vm1227_vm3, %v2677_v7  ;;  %v3388_v47 = vld [vmem:[#allocation3 + $0xa0] sm:$0xff]  ;;  %v2299_v7 = vrot.slane %v7039_v55, 1  ;;  %v3756_v14 = vld [vmem:[#allocation3 + $0x38] sm:$0xff] }
 0x37c   : > { %3120 = vst.msk [vmem:[#allocation3 + $0xa8] sm:$0xff] %vm1227_vm3, %v3056_v37  ;;  %v3604_v10 = vpop.f32.mrf.mxu2  ;;  %v3452_v41 = vadd.f32 %v3388_v47, %v8366_v61  ;;  %v10357_v37 = vld [vmem:[#allocation57_spill] sm:$0xff]  ;;  %v10358_v47 = vld [vmem:[#allocation74_spill] sm:$0xff] }
 0x37d   : > { %v8703_v38 = vpop.f32.mrf.mxu0  ;;  %v3819_v40 = vadd.f32 %v3755_v4, %v3604_v10  ;;  %v8713_v61 = vsel %vm2257_vm5, %v2297_v21, %v2299_v7  ;;  %v8717_v10 = vsel %vm1566_vm4, %v10358_v47, %v3170_v12  ;;  %v10363_v47 = vld [vmem:[#allocation59_spill] sm:$0xff] }
 0x37e   : > { %10355 = vst [vmem:[#allocation50_spill] sm:$0xff] %v8703_v38 }
 0x37f   : > { %3516 = vst.msk [vmem:[#allocation3 + $0xa0] sm:$0xff] %vm1227_vm3, %v3452_v41  ;;  %v2488_v50 = vpop.f32.mrf.mxu3 }
 0x380   : > { %3883 = vst.msk [vmem:[#allocation3 + $0x30] sm:$0xff] %vm1227_vm3, %v3819_v40  ;;  %v2678_v63 = vadd.f32 %v2614_v0, %v2488_v50  ;;  %v10361_v50 = vld [vmem:[#allocation30_spill] sm:$0xff]  ;;  %v2615_v0 = vld [vmem:[#allocation3 + $0xc0] sm:$0xff] }
 0x381   : > { %v8708_v18 = vpop.f32.mrf.mxu1  ;;  %10359 = vst [vmem:[#allocation28_spill] sm:$0xff] %v8717_v10 }
 0x382   : > { %v2993_v8 = vld [vmem:[#allocation3 + $0xb0] sm:$0xff]  ;;  %10356 = vst [vmem:[#allocation51_spill] sm:$0xff] %v8708_v18  ;;  %v6908_v18 = vld [vmem:[#allocation2 + $0x110] sm:$0xff]  }
 0x383   : > { %v3057_v38 = vadd.f32 %v2993_v8, %v10357_v37  ;;  %2742 = vst.msk [vmem:[#allocation3 + $0xb8] sm:$0xff] %vm1227_vm3, %v2678_v63  ;;  %v3389_v4 = vld [vmem:[#allocation3 + $0xa8] sm:$0xff] }
 0x384   : > { %6527 = vmatmul.msk.bf16.gmra.mxu3 %vm1227_vm3, %v8713_v61  ;;  %6604 = vmatmul.msk.bf16.gmra.mxu1 %vm1227_vm3, %v8717_v10  ;;  %v3606_v8 = vpop.f32.mrf.mxu2  ;;  %v3453_v21 = vadd.f32 %v3389_v4, %v8383_v46  ;;  %v7040_v46 = vld [vmem:[#allocation2 + $0x100] sm:$0xff]  }
 0x385   : > { %3121 = vst.msk [vmem:[#allocation3 + $0xb0] sm:$0xff] %vm1227_vm3, %v3057_v38  ;;  %v8720_v41 = vpop.f32.mrf.mxu0  ;;  %v3820_v40 = vadd.f32 %v3756_v14, %v3606_v8  ;;  %v3172_v4 = vshrl.u32 %v7040_v46, 16  ;;  %v3175_v8 = vshll.u32 %v8565_v9, 16 }
 0x386   : > { %10360 = vst [vmem:[#allocation53_spill] sm:$0xff] %v8720_v41 }
 0x387   : > { %3517 = vst.msk [vmem:[#allocation3 + $0xa8] sm:$0xff] %vm1227_vm3, %v3453_v21  ;;  %v2491_v38 = vpop.f32.mrf.mxu3  ;;  %v3174_v41 = vor.u32 %v3172_v4, %v3170_v12 }
 0x388   : > { %3884 = vst.msk [vmem:[#allocation3 + $0x38] sm:$0xff] %vm1227_vm3, %v3820_v40  ;;  %6679 = vmatmul.msk.bf16.gmra.mxu0 %vm1227_vm3, %v10361_v50  ;;  %v2679_v55 = vadd.f32 %v2615_v0, %v2491_v38  ;;  %v3757_v50 = vld [vmem:[#allocation3 + $0x40] sm:$0xff] }
 0x389   : > { %v8731_v37 = vpop.f32.mrf.mxu1  ;;  %6619 = vmatmul.msk.bf16.gmra.mxu2 %vm1227_vm3, %v8524_v19  ;;  %v3177_v19 = vrot.slane %v3175_v8, 1 }
 0x38a   : > { %v2994_v63 = vld [vmem:[#allocation3 + $0xb8] sm:$0xff]  ;;  %10362 = vst [vmem:[#allocation54_spill] sm:$0xff] %v8731_v37 }
 0x38b   : > { %v3058_v10 = vadd.f32 %v2994_v63, %v10363_v47  ;;  %2743 = vst.msk [vmem:[#allocation3 + $0xc0] sm:$0xff] %vm1227_vm3, %v2679_v55  ;;  %v2616_v55 = vld [vmem:[#allocation3 + $0xc8] sm:$0xff]  ;;  %v7041_v47 = vld [vmem:[#allocation2 + $0xb0] sm:$0xff] }
 0x38c   : > { %v3390_v14 = vld [vmem:[#allocation3 + $0xb0] sm:$0xff]  ;;  %v3609_v40 = vpop.f32.mrf.mxu2  ;;  %v2301_v46 = vrot.slane %v7041_v47, 1  ;;  %v3179_v47 = vshrl.u32 %v8565_v9, 16 }
 0x38d   : > { %3122 = vst.msk [vmem:[#allocation3 + $0xb8] sm:$0xff] %vm1227_vm3, %v3058_v10  ;;  %v8739_v21 = vpop.f32.mrf.mxu0  ;;  %v3454_v38 = vadd.f32 %v3390_v14, %v8395_v42  ;;  %v3821_v0 = vadd.f32 %v3757_v50, %v3609_v40  ;;  %v8752_v14 = vsel %vm1566_vm4, %v3174_v41, %v3177_v19  ;;  %v6840_v40 = vunpack.c.l.b16 %v6908_v18  ;;  %v10367_v18 = vld [vmem:[#allocation31_spill] sm:$0xff]  ;;  %v2617_v41 = vld [vmem:[#allocation3 + $0xd0] sm:$0xff] }
 0x38e   : > { %10364 = vst [vmem:[#allocation77_spill] sm:$0xff] %v8739_v21  ;;  %v10365_v21 = vld [vmem:[#allocation60_spill] sm:$0xff]  ;;  %v8749_v42 = vsel %vm2257_vm5, %v2299_v7, %v2301_v46 }
 0x38f   : > { %3518 = vst.msk [vmem:[#allocation3 + $0xb0] sm:$0xff] %vm1227_vm3, %v3454_v38  ;;  %v2493_v63 = vpop.f32.mrf.mxu3 }
 0x390   : > { %3885 = vst.msk [vmem:[#allocation3 + $0x40] sm:$0xff] %vm1227_vm3, %v3821_v0  ;;  %v2680_v37 = vadd.f32 %v2616_v55, %v2493_v63 }
 0x391   : > { %v8744_v45 = vpop.f32.mrf.mxu1  ;;  %10366 = vst [vmem:[#allocation29_spill] sm:$0xff] %v8752_v14 }
 0x392   : > { %v2995_v10 = vld [vmem:[#allocation3 + $0xc0] sm:$0xff]  ;;  %2744 = vst.msk [vmem:[#allocation3 + $0xc8] sm:$0xff] %vm1227_vm3, %v2680_v37  ;;  %v3758_v37 = vld [vmem:[#allocation3 + $0x48] sm:$0xff] }
 0x393   : > { %v3059_v23 = vadd.f32 %v2995_v10, %v10365_v21  ;;  %v8766_v21 = vpack.c.b16 %v6840_v40, %v6840_v40 }
 0x394   : > { %v3391_v50 = vld [vmem:[#allocation3 + $0xb8] sm:$0xff]  ;;  %6528 = vmatmul.msk.bf16.gmra.mxu3 %vm1227_vm3, %v8749_v42  ;;  %6605 = vmatmul.msk.bf16.gmra.mxu1 %vm1227_vm3, %v8752_v14  ;;  %v3611_v4 = vpop.f32.mrf.mxu2 }
 0x395   : > { %3123 = vst.msk [vmem:[#allocation3 + $0xc0] sm:$0xff] %vm1227_vm3, %v3059_v23  ;;  %v8755_v12 = vpop.f32.mrf.mxu0  ;;  %v3455_v7 = vadd.f32 %v3391_v50, %v8414_v22  ;;  %v3822_v8 = vadd.f32 %v3758_v37, %v3611_v4  ;;  %v10369_v22 = vld [vmem:[#allocation62_spill] sm:$0xff]  ;;  %v3183_v10 = vshll.u32 %v8766_v21, 16 }
 0x396   : > { %10368 = vst [vmem:[#allocation56_spill] sm:$0xff] %v8766_v21  ;;  %v3759_v37 = vld [vmem:[#allocation3 + $0x50] sm:$0xff]  ;;  %v10372_v21 = vld [vmem:[#allocation63_spill] sm:$0xff] }
 0x397   : > { %3519 = vst.msk [vmem:[#allocation3 + $0xb8] sm:$0xff] %vm1227_vm3, %v3455_v7  ;;  %v2496_v23 = vpop.f32.mrf.mxu3 }
 0x398   : > { %3886 = vst.msk [vmem:[#allocation3 + $0x48] sm:$0xff] %vm1227_vm3, %v3822_v8  ;;  %6680 = vmatmul.msk.bf16.gmra.mxu0 %vm1227_vm3, %v10367_v18  ;;  %v2681_v38 = vadd.f32 %v2617_v41, %v2496_v23  ;;  %v2618_v23 = vld [vmem:[#allocation3 + $0xd8] sm:$0xff]  ;;  %v7042_v41 = vld [vmem:[#allocation2 + $0xb8] sm:$0xff] }
 0x399   : > { %v2996_v0 = vld [vmem:[#allocation3 + $0xc8] sm:$0xff]  ;;  %v8768_v63 = vpop.f32.mrf.mxu1  ;;  %6620 = vmatmul.msk.bf16.gmra.mxu2 %vm1227_vm3, %v8555_v30  ;;  %v2303_v9 = vrot.slane %v7042_v41, 1  ;;  %v10374_v41 = vld [vmem:[#allocation66_spill] sm:$0xff] }
 0x39a   : > { %v3060_v55 = vadd.f32 %v2996_v0, %v10369_v22  ;;  %2745 = vst.msk [vmem:[#allocation3 + $0xd0] sm:$0xff] %vm1227_vm3, %v2681_v38  ;;  %v8782_v38 = vor.u32 %v3179_v47, %v3177_v19  ;;  %v3185_v0 = vrot.slane %v3183_v10, 1 }
 0x39c   : > { %v3392_v50 = vld [vmem:[#allocation3 + $0xc0] sm:$0xff]  ;;  %3124 = vst.msk [vmem:[#allocation3 + $0xc8] sm:$0xff] %vm1227_vm3, %v3060_v55  ;;  %v3614_v4 = vpop.f32.mrf.mxu2 }
 0x39d   : > { %v8777_v40 = vpop.f32.mrf.mxu0  ;;  %v3456_v7 = vadd.f32 %v3392_v50, %v8426_v36  ;;  %v3823_v8 = vadd.f32 %v3759_v37, %v3614_v4  ;;  %10371 = vst [vmem:[#allocation74_spill] sm:$0xff] %v8782_v38  ;;  %v8789_v36 = vsel %vm2257_vm5, %v2301_v46, %v2303_v9  ;;  %v3186_v50 = vsel %vm1566_vm4, %v8782_v38, %v3185_v0  ;;  %v10373_v46 = vld [vmem:[#allocation32_spill] sm:$0xff] }
 0x39e   : > { %10370 = vst [vmem:[#allocation57_spill] sm:$0xff] %v8777_v40 }
 0x39f   : > { %3520 = vst.msk [vmem:[#allocation3 + $0xc0] sm:$0xff] %vm1227_vm3, %v3456_v7  ;;  %v2498_v18 = vpop.f32.mrf.mxu3  ;;  %v2619_v7 = vld [vmem:[#allocation3 + $0xe0] sm:$0xff] }
 0x3a0   : > { %3887 = vst.msk [vmem:[#allocation3 + $0x50] sm:$0xff] %vm1227_vm3, %v3823_v8  ;;  %v2682_v22 = vadd.f32 %v2618_v23, %v2498_v18 }
 0x3a1   : > { %v2997_v55 = vld [vmem:[#allocation3 + $0xd0] sm:$0xff]  ;;  %v8784_v14 = vpop.f32.mrf.mxu1 }
 0x3a2   : > { %v3061_v40 = vadd.f32 %v2997_v55, %v10372_v21  ;;  %2746 = vst.msk [vmem:[#allocation3 + $0xd8] sm:$0xff] %vm1227_vm3, %v2682_v22  ;;  %v3760_v21 = vld [vmem:[#allocation3 + $0x58] sm:$0xff] }
 0x3a3   : > { %v3393_v4 = vld [vmem:[#allocation3 + $0xc8] sm:$0xff] }
 0x3a4   : > { %3125 = vst.msk [vmem:[#allocation3 + $0xd0] sm:$0xff] %vm1227_vm3, %v3061_v40  ;;  %6529 = vmatmul.msk.bf16.gmra.mxu3 %vm1227_vm3, %v8789_v36  ;;  %6606 = vmatmul.msk.bf16.gmra.mxu1 %vm1227_vm3, %v3186_v50  ;;  %v3616_v47 = vpop.f32.mrf.mxu2  ;;  %v3457_v10 = vadd.f32 %v3393_v4, %v8445_v17  ;;  %v3761_v50 = vld [vmem:[#allocation3 + $0x60] sm:$0xff] }
 0x3a5   : > { %v8794_v19 = vpop.f32.mrf.mxu0  ;;  %v3824_v37 = vadd.f32 %v3760_v21, %v3616_v47 }
 0x3a6   : > { %3521 = vst.msk [vmem:[#allocation3 + $0xc8] sm:$0xff] %vm1227_vm3, %v3457_v10  ;;  %v2620_v10 = vld [vmem:[#allocation3 + $0xe8] sm:$0xff] }
 0x3a7   : > { %3888 = vst.msk [vmem:[#allocation3 + $0x58] sm:$0xff] %vm1227_vm3, %v3824_v37  ;;  %v2501_v40 = vpop.f32.mrf.mxu3  ;;  %v7043_v37 = vld [vmem:[#allocation2 + $0xc0] sm:$0xff] }
 0x3a8   : > { %6681 = vmatmul.msk.bf16.gmra.mxu0 %vm1227_vm3, %v10373_v46  ;;  %v2683_v8 = vadd.f32 %v2619_v7, %v2501_v40  ;;  %v2305_v46 = vrot.slane %v7043_v37, 1 }
 0x3a9   : > { %v2998_v18 = vld [vmem:[#allocation3 + $0xd8] sm:$0xff]  ;;  %v8804_v23 = vpop.f32.mrf.mxu1  ;;  %6621 = vmatmul.msk.bf16.gmra.mxu2 %vm1227_vm3, %v8588_v53 }
 0x3aa   : > { %v3062_v0 = vadd.f32 %v2998_v18, %v10374_v41  ;;  %2747 = vst.msk [vmem:[#allocation3 + $0xe0] sm:$0xff] %vm1227_vm3, %v2683_v8  ;;  %v10375_v18 = vld [vmem:[#allocation68_spill] sm:$0xff] }
 0x3ab   : > { %v3394_v17 = vld [vmem:[#allocation3 + $0xd0] sm:$0xff] }
 0x3ac   : > { %3126 = vst.msk [vmem:[#allocation3 + $0xd8] sm:$0xff] %vm1227_vm3, %v3062_v0  ;;  %v3619_v55 = vpop.f32.mrf.mxu2  ;;  %v3458_v4 = vadd.f32 %v3394_v17, %v8457_v5  ;;  %v8821_v0 = vsel %vm2257_vm5, %v2303_v9, %v2305_v46  ;;  %v10376_v9 = vld [vmem:[#allocation33_spill] sm:$0xff] }
 0x3ad   : > { %v8811_v22 = vpop.f32.mrf.mxu0  ;;  %v3825_v47 = vadd.f32 %v3761_v50, %v3619_v55  ;;  %v3762_v50 = vld [vmem:[#allocation3 + $0x68] sm:$0xff] }
 0x3ae   : > { %3522 = vst.msk [vmem:[#allocation3 + $0xd0] sm:$0xff] %vm1227_vm3, %v3458_v4 }
 0x3af   : > { %3889 = vst.msk [vmem:[#allocation3 + $0x60] sm:$0xff] %vm1227_vm3, %v3825_v47  ;;  %v2503_v21 = vpop.f32.mrf.mxu3 }
 0x3b0   : > { %v2684_v40 = vadd.f32 %v2620_v10, %v2503_v21  ;;  %v2621_v10 = vld [vmem:[#allocation3 + $0xf0] sm:$0xff] }
 0x3b1   : > { %v2999_v7 = vld [vmem:[#allocation3 + $0xe0] sm:$0xff]  ;;  %v8816_v8 = vpop.f32.mrf.mxu1 }
 0x3b2   : > { %v3063_v41 = vadd.f32 %v2999_v7, %v10375_v18  ;;  %2748 = vst.msk [vmem:[#allocation3 + $0xe8] sm:$0xff] %vm1227_vm3, %v2684_v40 }
 0x3b3   : > { %v3395_v5 = vld [vmem:[#allocation3 + $0xd8] sm:$0xff] }
 0x3b4   : > { %3127 = vst.msk [vmem:[#allocation3 + $0xe0] sm:$0xff] %vm1227_vm3, %v3063_v41  ;;  %6530 = vmatmul.msk.bf16.gmra.mxu3 %vm1227_vm3, %v8821_v0  ;;  %v3621_v55 = vpop.f32.mrf.mxu2  ;;  %6707 = vmatmul.msk.bf16.vlgmr.msra.gmra.mxu1 %vm1227_vm3, %v8232_v56  ;;  %v3459_v4 = vadd.f32 %v3395_v5, %v8476_v58  ;;  %v10377_v56 = vld [vmem:[#allocation71_spill] sm:$0xff] }
 0x3b5   : > { %v8824_v17 = vpop.f32.mrf.mxu0  ;;  %v3826_v47 = vadd.f32 %v3762_v50, %v3621_v55  ;;  %v3763_v55 = vld [vmem:[#allocation3 + $0x70] sm:$0xff] }
 0x3b6   : > { %3523 = vst.msk [vmem:[#allocation3 + $0xd8] sm:$0xff] %vm1227_vm3, %v3459_v4 }
 0x3b7   : > { %3890 = vst.msk [vmem:[#allocation3 + $0x68] sm:$0xff] %vm1227_vm3, %v3826_v47  ;;  %v2506_v21 = vpop.f32.mrf.mxu3 }
 0x3b8   : > { %6682 = vmatmul.msk.bf16.gmra.mxu0 %vm1227_vm3, %v10376_v9  ;;  %v2685_v37 = vadd.f32 %v2621_v10, %v2506_v21  ;;  %v2622_v9 = vld [vmem:[#allocation3 + $0xf8] sm:$0xff] }
 0x3b9   : > { %v3000_v40 = vld [vmem:[#allocation3 + $0xe8] sm:$0xff]  ;;  %v8835_v7 = vpop.f32.mrf.mxu1  ;;  %6622 = vmatmul.msk.bf16.gmra.mxu2 %vm1227_vm3, %v8619_v34  ;;  %v7044_v21 = vld [vmem:[#allocation2 + $0xc8] sm:$0xff] }
 0x3ba   : > { %v3064_v18 = vadd.f32 %v3000_v40, %v10377_v56  ;;  %2749 = vst.msk [vmem:[#allocation3 + $0xf0] sm:$0xff] %vm1227_vm3, %v2685_v37  ;;  %v2307_v10 = vrot.slane %v7044_v21, 1 }
 0x3bb   : > { %v3396_v58 = vld [vmem:[#allocation3 + $0xe0] sm:$0xff] }
 0x3bc   : > { %3128 = vst.msk [vmem:[#allocation3 + $0xe8] sm:$0xff] %vm1227_vm3, %v3064_v18  ;;  %v3624_v5 = vpop.f32.mrf.mxu2  ;;  %v3460_v50 = vadd.f32 %v3396_v58, %v8488_v39  ;;  %v10379_v18 = vld [vmem:[#allocation73_spill] sm:$0xff] }
 0x3bd   : > { %v8842_v41 = vpop.f32.mrf.mxu0  ;;  %v3827_v4 = vadd.f32 %v3763_v55, %v3624_v5  ;;  %v3764_v55 = vld [vmem:[#allocation3 + $0x78] sm:$0xff] }
 0x3be   : > { %10378 = vst [vmem:[#allocation30_spill] sm:$0xff] %v8842_v41  ;;  %v8852_v41 = vsel %vm2257_vm5, %v2305_v46, %v2307_v10  ;;  %v10381_v46 = vld [vmem:[#allocation34_spill] sm:$0xff] }
 0x3bf   : > { %3524 = vst.msk [vmem:[#allocation3 + $0xe0] sm:$0xff] %vm1227_vm3, %v3460_v50  ;;  %v2508_v47 = vpop.f32.mrf.mxu3 }
 0x3c0   : > { %3891 = vst.msk [vmem:[#allocation3 + $0x70] sm:$0xff] %vm1227_vm3, %v3827_v4  ;;  %v2686_v40 = vadd.f32 %v2622_v9, %v2508_v47  ;;  %v2623_v47 = vld [vmem:[#allocation3 + $0x100] sm:$0xff] }
 0x3c1   : > { %v3001_v37 = vld [vmem:[#allocation3 + $0xf0] sm:$0xff]  ;;  %v8847_v56 = vpop.f32.mrf.mxu1 }
 0x3c2   : > { %v3065_v38 = vadd.f32 %v3001_v37, %v10379_v18  ;;  %2750 = vst.msk [vmem:[#allocation3 + $0xf8] sm:$0xff] %vm1227_vm3, %v2686_v40 }
 0x3c3   : > { %v3397_v39 = vld [vmem:[#allocation3 + $0xe8] sm:$0xff] }
 0x3c4   : > { %3129 = vst.msk [vmem:[#allocation3 + $0xf0] sm:$0xff] %vm1227_vm3, %v3065_v38  ;;  %6531 = vmatmul.msk.bf16.gmra.mxu3 %vm1227_vm3, %v8852_v41  ;;  %v3626_v5 = vpop.f32.mrf.mxu2  ;;  %6708 = vmatmul.msk.bf16.gmra.mxu1 %vm1227_vm3, %v8260_v54  ;;  %v3461_v50 = vadd.f32 %v3397_v39, %v8507_v33  ;;  %v10382_v54 = vld [vmem:[#allocation75_spill] sm:$0xff] }
 0x3c5   : > { %v8855_v58 = vpop.f32.mrf.mxu0  ;;  %v3828_v4 = vadd.f32 %v3764_v55, %v3626_v5  ;;  %v3765_v5 = vld [vmem:[#allocation3 + $0x80] sm:$0xff] }
 0x3c6   : > { %10380 = vst [vmem:[#allocation59_spill] sm:$0xff] %v8855_v58 }
 0x3c7   : > { %3525 = vst.msk [vmem:[#allocation3 + $0xe8] sm:$0xff] %vm1227_vm3, %v3461_v50  ;;  %v2511_v38 = vpop.f32.mrf.mxu3 }
 0x3c8   : > { %3892 = vst.msk [vmem:[#allocation3 + $0x78] sm:$0xff] %vm1227_vm3, %v3828_v4  ;;  %6683 = vmatmul.msk.bf16.gmra.mxu0 %vm1227_vm3, %v10381_v46  ;;  %v2687_v9 = vadd.f32 %v2623_v47, %v2511_v38  ;;  %v2624_v46 = vld [vmem:[#allocation3 + $0x108] sm:$0xff]  ;;  %v7045_v38 = vld [vmem:[#allocation2 + $0xd0] sm:$0xff] }
 0x3c9   : > { %v3002_v21 = vld [vmem:[#allocation3 + $0xf8] sm:$0xff]  ;;  %v8866_v40 = vpop.f32.mrf.mxu1  ;;  %6623 = vmatmul.msk.bf16.gmra.mxu2 %vm1227_vm3, %v8650_v13  ;;  %v2309_v47 = vrot.slane %v7045_v38, 1 }
 0x3ca   : > { %v3066_v37 = vadd.f32 %v3002_v21, %v10382_v54  ;;  %2751 = vst.msk [vmem:[#allocation3 + $0x100] sm:$0xff] %vm1227_vm3, %v2687_v9 }
 0x3cb   : > { %v3398_v33 = vld [vmem:[#allocation3 + $0xf0] sm:$0xff] }
 0x3cc   : > { %3130 = vst.msk [vmem:[#allocation3 + $0xf8] sm:$0xff] %vm1227_vm3, %v3066_v37  ;;  %v3629_v39 = vpop.f32.mrf.mxu2  ;;  %v3462_v55 = vadd.f32 %v3398_v33, %v8519_v57  ;;  %v10384_v37 = vld [vmem:[#allocation76_spill] sm:$0xff] }
 0x3cd   : > { %v8873_v18 = vpop.f32.mrf.mxu0  ;;  %v3829_v50 = vadd.f32 %v3765_v5, %v3629_v39  ;;  %v3766_v5 = vld [vmem:[#allocation3 + $0x88] sm:$0xff] }
 0x3ce   : > { %10383 = vst [vmem:[#allocation60_spill] sm:$0xff] %v8873_v18  ;;  %v8883_v18 = vsel %vm2257_vm5, %v2307_v10, %v2309_v47  ;;  %v10385_v10 = vld [vmem:[#allocation35_spill] sm:$0xff] }
 0x3cf   : > { %3526 = vst.msk [vmem:[#allocation3 + $0xf0] sm:$0xff] %vm1227_vm3, %v3462_v55  ;;  %v2513_v4 = vpop.f32.mrf.mxu3 }
 0x3d0   : > { %3893 = vst.msk [vmem:[#allocation3 + $0x80] sm:$0xff] %vm1227_vm3, %v3829_v50  ;;  %v2688_v21 = vadd.f32 %v2624_v46, %v2513_v4  ;;  %v2625_v4 = vld [vmem:[#allocation3 + $0x110] sm:$0xff] }
 0x3d1   : > { %v3003_v9 = vld [vmem:[#allocation3 + $0x100] sm:$0xff]  ;;  %v8878_v54 = vpop.f32.mrf.mxu1 }
 0x3d2   : > { %v3067_v58 = vadd.f32 %v3003_v9, %v10384_v37  ;;  %2752 = vst.msk [vmem:[#allocation3 + $0x108] sm:$0xff] %vm1227_vm3, %v2688_v21 }
 0x3d3   : > { %v3399_v57 = vld [vmem:[#allocation3 + $0xf8] sm:$0xff] }
 0x3d4   : > { %3131 = vst.msk [vmem:[#allocation3 + $0x100] sm:$0xff] %vm1227_vm3, %v3067_v58  ;;  %6532 = vmatmul.msk.bf16.gmra.mxu3 %vm1227_vm3, %v8883_v18  ;;  %v3631_v39 = vpop.f32.mrf.mxu2  ;;  %6709 = vmatmul.msk.bf16.gmra.mxu1 %vm1227_vm3, %v8288_v25  ;;  %v3463_v55 = vadd.f32 %v3399_v57, %v8538_v11  ;;  %v3767_v57 = vld [vmem:[#allocation3 + $0x90] sm:$0xff] }
 0x3d5   : > { %v8886_v33 = vpop.f32.mrf.mxu0  ;;  %v3830_v50 = vadd.f32 %v3766_v5, %v3631_v39 }
 0x3d6   : > { %3527 = vst.msk [vmem:[#allocation3 + $0xf8] sm:$0xff] %vm1227_vm3, %v3463_v55 }
 0x3d7   : > { %3894 = vst.msk [vmem:[#allocation3 + $0x88] sm:$0xff] %vm1227_vm3, %v3830_v50  ;;  %v2516_v58 = vpop.f32.mrf.mxu3  ;;  %v2626_v50 = vld [vmem:[#allocation3 + $0x118] sm:$0xff] }
 0x3d8   : > { %6684 = vmatmul.msk.bf16.gmra.mxu0 %vm1227_vm3, %v10385_v10  ;;  %v2689_v46 = vadd.f32 %v2625_v4, %v2516_v58  ;;  %v7046_v10 = vld [vmem:[#allocation2 + $0xd8] sm:$0xff] }
 0x3d9   : > { %v3004_v38 = vld [vmem:[#allocation3 + $0x108] sm:$0xff]  ;;  %v8897_v21 = vpop.f32.mrf.mxu1  ;;  %6624 = vmatmul.msk.bf16.gmra.mxu2 %vm1227_vm3, %v8681_v60 }
 0x3da   : > { %v3068_v25 = vadd.f32 %v3004_v38, %v8363_v28  ;;  %2753 = vst.msk [vmem:[#allocation3 + $0x110] sm:$0xff] %vm1227_vm3, %v2689_v46  ;;  %v2311_v28 = vrot.slane %v7046_v10, 1  ;;  %v2627_v10 = vld [vmem:[#allocation3 + $0x120] sm:$0xff] }
 0x3db   : > { %v3400_v11 = vld [vmem:[#allocation3 + $0x100] sm:$0xff] }
 0x3dc   : > { %3132 = vst.msk [vmem:[#allocation3 + $0x108] sm:$0xff] %vm1227_vm3, %v3068_v25  ;;  %v3634_v37 = vpop.f32.mrf.mxu2  ;;  %v3464_v39 = vadd.f32 %v3400_v11, %v8550_v44  ;;  %v8914_v25 = vsel %vm2257_vm5, %v2309_v47, %v2311_v28 }
 0x3dd   : > { %v8904_v9 = vpop.f32.mrf.mxu0  ;;  %v3831_v5 = vadd.f32 %v3767_v57, %v3634_v37  ;;  %v3768_v57 = vld [vmem:[#allocation3 + $0x98] sm:$0xff] }
 0x3de   : > { %3528 = vst.msk [vmem:[#allocation3 + $0x100] sm:$0xff] %vm1227_vm3, %v3464_v39 }
 0x3df   : > { %3895 = vst.msk [vmem:[#allocation3 + $0x90] sm:$0xff] %vm1227_vm3, %v3831_v5  ;;  %v2518_v55 = vpop.f32.mrf.mxu3 }
 0x3e0   : > { %v2690_v58 = vadd.f32 %v2626_v50, %v2518_v55  ;;  %v10386_v55 = vld [vmem:[#allocation36_spill] sm:$0xff] }
 0x3e1   : > { %v3005_v4 = vld [vmem:[#allocation3 + $0x110] sm:$0xff]  ;;  %v8909_v46 = vpop.f32.mrf.mxu1 }
 0x3e2   : > { %v3069_v38 = vadd.f32 %v3005_v4, %v8374_v20  ;;  %2754 = vst.msk [vmem:[#allocation3 + $0x118] sm:$0xff] %vm1227_vm3, %v2690_v58  ;;  %v5650_v20 = vld [vmem:[%s10180_s5] sm:$0x3] }
 0x3e3   : > { %v3401_v44 = vld [vmem:[#allocation3 + $0x108] sm:$0xff]  ;;  %v5752_v5 = vsel %vm1324_vm2, %v5650_v20, 0  ;;  %v3769_v20 = vld [vmem:[#allocation3 + $0xa0] sm:$0xff] }
 0x3e4   : > { %3133 = vst.msk [vmem:[#allocation3 + $0x110] sm:$0xff] %vm1227_vm3, %v3069_v38  ;;  %6533 = vmatmul.msk.bf16.gmra.mxu3 %vm1227_vm3, %v8914_v25  ;;  %v3636_v37 = vpop.f32.mrf.mxu2  ;;  %6710 = vmatmul.msk.bf16.gmra.mxu1 %vm1227_vm3, %v8321_v27  ;;  %v3465_v47 = vadd.f32 %v3401_v44, %v8571_v62  ;;  %v10387_v62 = vld [vmem:[#allocation78_spill] sm:$0xff] }
 0x3e5   : > { %v8917_v11 = vpop.f32.mrf.mxu0  ;;  %v3832_v39 = vadd.f32 %v3768_v57, %v3636_v37  ;;  %5761 = vmatpush.bf16.msra.mxu2 %v5752_v5 }
 0x3e6   : > { %3529 = vst.msk [vmem:[#allocation3 + $0x108] sm:$0xff] %vm1227_vm3, %v3465_v47 }
 0x3e7   : > { %3896 = vst.msk [vmem:[#allocation3 + $0x98] sm:$0xff] %vm1227_vm3, %v3832_v39  ;;  %v2521_v50 = vpop.f32.mrf.mxu3 }
 0x3e8   : > { %6685 = vmatmul.msk.bf16.gmra.mxu0 %vm1227_vm3, %v10386_v55  ;;  %v2691_v27 = vadd.f32 %v2627_v10, %v2521_v50  ;;  %v2628_v55 = vld [vmem:[#allocation3 + $0x128] sm:$0xff]  ;;  %v7047_v50 = vld [vmem:[#allocation2 + $0xe0] sm:$0xff] }
 0x3e9   : > { %v3006_v58 = vld [vmem:[#allocation3 + $0x118] sm:$0xff]  ;;  %v8932_v4 = vpop.f32.mrf.mxu1  ;;  %6625 = vmatmul.msk.bf16.gmra.mxu2 %vm1227_vm3, %v8713_v61  ;;  %v2313_v10 = vrot.slane %v7047_v50, 1 }
 0x3ea   : > { %v3070_v38 = vadd.f32 %v3006_v58, %v10387_v62  ;;  %2755 = vst.msk [vmem:[#allocation3 + $0x120] sm:$0xff] %vm1227_vm3, %v2691_v27 }
 0x3eb   : > { %v3402_v44 = vld [vmem:[#allocation3 + $0x110] sm:$0xff] }
 0x3ec   : > { %3134 = vst.msk [vmem:[#allocation3 + $0x118] sm:$0xff] %vm1227_vm3, %v3070_v38  ;;  %v3639_v57 = vpop.f32.mrf.mxu2  ;;  %v3466_v47 = vadd.f32 %v3402_v44, %v8583_v51 }
 0x3ed   : > { %v8939_v37 = vpop.f32.mrf.mxu0  ;;  %v3833_v39 = vadd.f32 %v3769_v20, %v3639_v57  ;;  %v3770_v57 = vld [vmem:[#allocation3 + $0xa8] sm:$0xff] }
 0x3ee   : > { %10388 = vst [vmem:[#allocation31_spill] sm:$0xff] %v8939_v37  ;;  %v8949_v37 = vsel %vm2257_vm5, %v2311_v28, %v2313_v10  ;;  %v10389_v28 = vld [vmem:[#allocation37_spill] sm:$0xff] }
 0x3ef   : > { %3530 = vst.msk [vmem:[#allocation3 + $0x110] sm:$0xff] %vm1227_vm3, %v3466_v47  ;;  %v2523_v5 = vpop.f32.mrf.mxu3 }
 0x3f0   : > { %3897 = vst.msk [vmem:[#allocation3 + $0xa0] sm:$0xff] %vm1227_vm3, %v3833_v39  ;;  %v2692_v58 = vadd.f32 %v2628_v55, %v2523_v5  ;;  %v2629_v5 = vld [vmem:[#allocation3 + $0x130] sm:$0xff] }
 0x3f1   : > { %v3007_v27 = vld [vmem:[#allocation3 + $0x120] sm:$0xff]  ;;  %v8944_v62 = vpop.f32.mrf.mxu1 }
 0x3f2   : > { %v3071_v38 = vadd.f32 %v3007_v27, %v8403_v29  ;;  %2756 = vst.msk [vmem:[#allocation3 + $0x128] sm:$0xff] %vm1227_vm3, %v2692_v58 }
 0x3f3   : > { %v3403_v51 = vld [vmem:[#allocation3 + $0x118] sm:$0xff] }
 0x3f4   : > { %3135 = vst.msk [vmem:[#allocation3 + $0x120] sm:$0xff] %vm1227_vm3, %v3071_v38  ;;  %6534 = vmatmul.msk.bf16.gmra.mxu3 %vm1227_vm3, %v8949_v37  ;;  %v3641_v44 = vpop.f32.mrf.mxu2  ;;  %6711 = vmatmul.msk.bf16.gmra.mxu1 %vm1227_vm3, %v8347_v32  ;;  %v3467_v20 = vadd.f32 %v3403_v51, %v8602_v43  ;;  %v3771_v38 = vld [vmem:[#allocation3 + $0xb0] sm:$0xff] }
 0x3f5   : > { %v8957_v47 = vpop.f32.mrf.mxu0  ;;  %v3834_v29 = vadd.f32 %v3770_v57, %v3641_v44 }
 0x3f6   : > { %3531 = vst.msk [vmem:[#allocation3 + $0x118] sm:$0xff] %vm1227_vm3, %v3467_v20 }
 0x3f7   : > { %3898 = vst.msk [vmem:[#allocation3 + $0xa8] sm:$0xff] %vm1227_vm3, %v3834_v29  ;;  %v2526_v39 = vpop.f32.mrf.mxu3  ;;  %v2630_v29 = vld [vmem:[#allocation3 + $0x138] sm:$0xff] }
 0x3f8   : > { %6686 = vmatmul.msk.bf16.gmra.mxu0 %vm1227_vm3, %v10389_v28  ;;  %v2693_v55 = vadd.f32 %v2629_v5, %v2526_v39  ;;  %v7048_v28 = vld [vmem:[#allocation2 + $0xe8] sm:$0xff] }
 0x3f9   : > { %v3008_v50 = vld [vmem:[#allocation3 + $0x128] sm:$0xff]  ;;  %v8963_v58 = vpop.f32.mrf.mxu1  ;;  %6626 = vmatmul.msk.bf16.gmra.mxu2 %vm1227_vm3, %v8749_v42 }
 0x3fa   : > { %v3072_v32 = vadd.f32 %v3008_v50, %v8421_v59  ;;  %2757 = vst.msk [vmem:[#allocation3 + $0x130] sm:$0xff] %vm1227_vm3, %v2693_v55  ;;  %v2315_v59 = vrot.slane %v7048_v28, 1 }
 0x3fb   : > { %v3404_v43 = vld [vmem:[#allocation3 + $0x120] sm:$0xff] }
 0x3fc   : > { %3136 = vst.msk [vmem:[#allocation3 + $0x128] sm:$0xff] %vm1227_vm3, %v3072_v32  ;;  %v3644_v27 = vpop.f32.mrf.mxu2  ;;  %v3468_v51 = vadd.f32 %v3404_v43, %v8614_v2  ;;  %v8980_v2 = vsel %vm2257_vm5, %v2313_v10, %v2315_v59 }
 0x3fd   : > { %v3835_v44 = vadd.f32 %v3771_v38, %v3644_v27  ;;  %v8972_v57 = vpop.f32.mrf.mxu0  ;;  %v3772_v27 = vld [vmem:[#allocation3 + $0xb8] sm:$0xff] }
 0x3fe   : > { %3532 = vst.msk [vmem:[#allocation3 + $0x120] sm:$0xff] %vm1227_vm3, %v3468_v51 }
 0x3ff   : > { %3899 = vst.msk [vmem:[#allocation3 + $0xb0] sm:$0xff] %vm1227_vm3, %v3835_v44  ;;  %v2528_v20 = vpop.f32.mrf.mxu3  ;;  %v2631_v44 = vld [vmem:[#allocation3 + $0x140] sm:$0xff] }
 0x400   : > { %v2694_v39 = vadd.f32 %v2630_v29, %v2528_v20 }
 0x401   : > { %v3009_v5 = vld [vmem:[#allocation3 + $0x130] sm:$0xff]  ;;  %v8975_v55 = vpop.f32.mrf.mxu1 }
 0x402   : > { %v3073_v50 = vadd.f32 %v3009_v5, %v8434_v26  ;;  %2758 = vst.msk [vmem:[#allocation3 + $0x138] sm:$0xff] %vm1227_vm3, %v2694_v39  ;;  %v10390_v26 = vld [vmem:[#allocation38_spill] sm:$0xff] }
 0x403   : > { %v3405_v32 = vld [vmem:[#allocation3 + $0x128] sm:$0xff] }
 0x404   : > { %3137 = vst.msk [vmem:[#allocation3 + $0x130] sm:$0xff] %vm1227_vm3, %v3073_v50  ;;  %6535 = vmatmul.msk.bf16.gmra.mxu3 %vm1227_vm3, %v8980_v2  ;;  %v3646_v43 = vpop.f32.mrf.mxu2  ;;  %6712 = vmatmul.msk.bf16.gmra.mxu1 %vm1227_vm3, %v8371_v35  ;;  %v3469_v38 = vadd.f32 %v3405_v32, %v8633_v31  ;;  %v3773_v50 = vld [vmem:[#allocation3 + $0xc0] sm:$0xff] }
 0x405   : > { %v3836_v51 = vadd.f32 %v3772_v27, %v3646_v43  ;;  %v8992_v28 = vpop.f32.mrf.mxu0 }
 0x406   : > { %3533 = vst.msk [vmem:[#allocation3 + $0x128] sm:$0xff] %vm1227_vm3, %v3469_v38  ;;  %v2632_v38 = vld [vmem:[#allocation3 + $0x148] sm:$0xff] }
 0x407   : > { %3900 = vst.msk [vmem:[#allocation3 + $0xb8] sm:$0xff] %vm1227_vm3, %v3836_v51  ;;  %v2531_v10 = vpop.f32.mrf.mxu3  ;;  %v7049_v51 = vld [vmem:[#allocation2 + $0xf0] sm:$0xff] }
 0x408   : > { %6687 = vmatmul.msk.bf16.gmra.mxu0 %vm1227_vm3, %v10390_v26  ;;  %v2695_v20 = vadd.f32 %v2631_v44, %v2531_v10  ;;  %v2317_v26 = vrot.slane %v7049_v51, 1 }
 0x409   : > { %v3010_v29 = vld [vmem:[#allocation3 + $0x138] sm:$0xff]  ;;  %v8994_v39 = vpop.f32.mrf.mxu1  ;;  %6627 = vmatmul.msk.bf16.gmra.mxu2 %vm1227_vm3, %v8789_v36 }
 0x40a   : > { %v3074_v35 = vadd.f32 %v3010_v29, %v8452_v15  ;;  %2759 = vst.msk [vmem:[#allocation3 + $0x140] sm:$0xff] %vm1227_vm3, %v2695_v20 }
 0x40b   : > { %v3406_v31 = vld [vmem:[#allocation3 + $0x130] sm:$0xff] }
 0x40c   : > { %3138 = vst.msk [vmem:[#allocation3 + $0x138] sm:$0xff] %vm1227_vm3, %v3074_v35  ;;  %v3649_v5 = vpop.f32.mrf.mxu2  ;;  %v3470_v32 = vadd.f32 %v3406_v31, %v8645_v6  ;;  %v9011_v6 = vsel %vm2257_vm5, %v2315_v59, %v2317_v26  ;;  %v10391_v59 = vld [vmem:[#allocation39_spill] sm:$0xff] }
 0x40d   : > { %v3837_v43 = vadd.f32 %v3773_v50, %v3649_v5  ;;  %v9008_v29 = vpop.f32.mrf.mxu0  ;;  %v3774_v5 = vld [vmem:[#allocation3 + $0xc8] sm:$0xff] }
 0x40e   : > { %3534 = vst.msk [vmem:[#allocation3 + $0x130] sm:$0xff] %vm1227_vm3, %v3470_v32 }
 0x40f   : > { %3901 = vst.msk [vmem:[#allocation3 + $0xc0] sm:$0xff] %vm1227_vm3, %v3837_v43  ;;  %v2533_v27 = vpop.f32.mrf.mxu3  ;;  %v2633_v43 = vld [vmem:[#allocation3 + $0x150] sm:$0xff] }
 0x410   : > { %v2696_v10 = vadd.f32 %v2632_v38, %v2533_v27 }
 0x411   : > { %v3011_v15 = vld [vmem:[#allocation3 + $0x140] sm:$0xff]  ;;  %v9004_v44 = vpop.f32.mrf.mxu1 }
 0x412   : > { %v3075_v20 = vadd.f32 %v3011_v15, %v8465_v3  ;;  %2760 = vst.msk [vmem:[#allocation3 + $0x148] sm:$0xff] %vm1227_vm3, %v2696_v10  ;;  %v3775_v15 = vld [vmem:[#allocation3 + $0xd0] sm:$0xff] }
 0x413   : > { %v3407_v35 = vld [vmem:[#allocation3 + $0x138] sm:$0xff] }
 0x414   : > { %3139 = vst.msk [vmem:[#allocation3 + $0x140] sm:$0xff] %vm1227_vm3, %v3075_v20  ;;  %6536 = vmatmul.msk.bf16.gmra.mxu3 %vm1227_vm3, %v9011_v6  ;;  %v3651_v31 = vpop.f32.mrf.mxu2  ;;  %6713 = vmatmul.msk.bf16.gmra.mxu1 %vm1227_vm3, %v8400_v48  ;;  %v3471_v3 = vadd.f32 %v3407_v35, %v8664_v52 }
 0x415   : > { %v3838_v50 = vadd.f32 %v3774_v5, %v3651_v31  ;;  %v9031_v35 = vpop.f32.mrf.mxu0 }
 0x416   : > { %3535 = vst.msk [vmem:[#allocation3 + $0x138] sm:$0xff] %vm1227_vm3, %v3471_v3  ;;  %v2634_v3 = vld [vmem:[#allocation3 + $0x158] sm:$0xff] }
 0x417   : > { %3902 = vst.msk [vmem:[#allocation3 + $0xc8] sm:$0xff] %vm1227_vm3, %v3838_v50  ;;  %v2536_v32 = vpop.f32.mrf.mxu3  ;;  %v7050_v50 = vld [vmem:[#allocation2 + $0xf8] sm:$0xff] }
 0x418   : > { %6688 = vmatmul.msk.bf16.gmra.mxu0 %vm1227_vm3, %v10391_v59  ;;  %v2697_v27 = vadd.f32 %v2633_v43, %v2536_v32  ;;  %10392 = vst [vmem:[#allocation62_spill] sm:$0xff] %v9031_v35 }
 0x419   : > { %v3012_v38 = vld [vmem:[#allocation3 + $0x148] sm:$0xff]  ;;  %v9023_v51 = vpop.f32.mrf.mxu1  ;;  %6628 = vmatmul.msk.bf16.gmra.mxu2 %vm1227_vm3, %v8821_v0 }
 0x41a   : > { %v3076_v48 = vadd.f32 %v3012_v38, %v8483_v24  ;;  %2761 = vst.msk [vmem:[#allocation3 + $0x150] sm:$0xff] %vm1227_vm3, %v2697_v27  ;;  %v9035_v24 = vrot.slane %v7050_v50, 1 }
 0x41b   : > { %v3408_v52 = vld [vmem:[#allocation3 + $0x140] sm:$0xff] }
 0x41c   : > { %3140 = vst.msk [vmem:[#allocation3 + $0x148] sm:$0xff] %vm1227_vm3, %v3076_v48  ;;  %v3654_v10 = vpop.f32.mrf.mxu2  ;;  %v3472_v20 = vadd.f32 %v3408_v52, %v8676_v49  ;;  %v9043_v49 = vsel %vm2257_vm5, %v2317_v26, %v9035_v24  ;;  %v3776_v52 = vld [vmem:[#allocation3 + $0xd8] sm:$0xff]  ;;  %v10395_v26 = vld [vmem:[#allocation40_spill] sm:$0xff] }
 0x41d   : > { %v3839_v31 = vadd.f32 %v3775_v15, %v3654_v10  ;;  %v10393_v10 = vld [vmem:[#allocation27_spill] sm:$0xff] }
 0x41e   : > { %3536 = vst.msk [vmem:[#allocation3 + $0x140] sm:$0xff] %vm1227_vm3, %v3472_v20  ;;  %v9052_v20 = vpop.f32.mrf.mxu0 }
 0x41f   : > { %3903 = vst.msk [vmem:[#allocation3 + $0xd0] sm:$0xff] %vm1227_vm3, %v3839_v31  ;;  %v2538_v5 = vpop.f32.mrf.mxu3 }
 0x420   : > { %v2698_v59 = vadd.f32 %v2634_v3, %v2538_v5  ;;  %10394 = vst [vmem:[#allocation63_spill] sm:$0xff] %v9052_v20  ;;  %v2635_v5 = vld [vmem:[#allocation3 + $0x160] sm:$0xff] }
 0x421   : > { %v3013_v32 = vld [vmem:[#allocation3 + $0x150] sm:$0xff]  ;;  %v9037_v43 = vpop.f32.mrf.mxu1 }
 0x422   : > { %v3077_v27 = vadd.f32 %v3013_v32, %v8496_v1  ;;  %2762 = vst.msk [vmem:[#allocation3 + $0x158] sm:$0xff] %vm1227_vm3, %v2698_v59 }
 0x423   : > { %v3409_v38 = vld [vmem:[#allocation3 + $0x148] sm:$0xff] }
 0x424   : > { %3141 = vst.msk [vmem:[#allocation3 + $0x150] sm:$0xff] %vm1227_vm3, %v3077_v27  ;;  %6537 = vmatmul.msk.bf16.gmra.mxu3 %vm1227_vm3, %v9043_v49  ;;  %v3656_v48 = vpop.f32.mrf.mxu2  ;;  %6714 = vmatmul.msk.bf16.gmra.mxu1 %vm1227_vm3, %v8431_v16  ;;  %v3473_v15 = vadd.f32 %v3409_v38, %v10393_v10  ;;  %v10396_v16 = vld [vmem:[#allocation81_spill] sm:$0xff] }
 0x425   : > { %v3840_v1 = vadd.f32 %v3776_v52, %v3656_v48  ;;  %v3777_v48 = vld [vmem:[#allocation3 + $0xe0] sm:$0xff] }
 0x426   : > { %3537 = vst.msk [vmem:[#allocation3 + $0x148] sm:$0xff] %vm1227_vm3, %v3473_v15  ;;  %v10397_v52 = vld [vmem:[#allocation51_spill] sm:$0xff] }
 0x427   : > { %3904 = vst.msk [vmem:[#allocation3 + $0xd8] sm:$0xff] %vm1227_vm3, %v3840_v1  ;;  %v2541_v31 = vpop.f32.mrf.mxu3 }
 0x428   : > { %6689 = vmatmul.msk.bf16.gmra.mxu0 %vm1227_vm3, %v10395_v26  ;;  %v2699_v3 = vadd.f32 %v2635_v5, %v2541_v31  ;;  %v2636_v26 = vld [vmem:[#allocation3 + $0x168] sm:$0xff] }
 0x429   : > { %v3014_v50 = vld [vmem:[#allocation3 + $0x158] sm:$0xff]  ;;  %v9057_v59 = vpop.f32.mrf.mxu1  ;;  %6629 = vmatmul.msk.bf16.gmra.mxu2 %vm1227_vm3, %v8852_v41  ;;  %v10398_v31 = vld [vmem:[#allocation72_spill] sm:$0xff] }
 0x42a   : > { %v3078_v32 = vadd.f32 %v3014_v50, %v10396_v16  ;;  %2763 = vst.msk [vmem:[#allocation3 + $0x160] sm:$0xff] %vm1227_vm3, %v2699_v3  ;;  %v2321_v5 = vrot.slane %v10398_v31, 1  ;;  %v9068_v50 = vpop.f32.mrf.mxu0 }
 0x42b   : > { %v3410_v27 = vld [vmem:[#allocation3 + $0x150] sm:$0xff]  ;;  %10399 = vst [vmem:[#allocation32_spill] sm:$0xff] %v9068_v50 }
 0x42c   : > { %3142 = vst.msk [vmem:[#allocation3 + $0x158] sm:$0xff] %vm1227_vm3, %v3078_v32  ;;  %v3659_v38 = vpop.f32.mrf.mxu2  ;;  %v3474_v10 = vadd.f32 %v3410_v27, %v10397_v52  ;;  %v10400_v32 = vld [vmem:[#allocation83_spill] sm:$0xff]  ;;  %v2322_v27 = vsel %vm2257_vm5, %v9035_v24, %v2321_v5  ;;  %v3778_v52 = vld [vmem:[#allocation3 + $0xe8] sm:$0xff]  ;;  %v2637_v5 = vld [vmem:[#allocation3 + $0x170] sm:$0xff] }
 0x42d   : > { %v3841_v15 = vadd.f32 %v3777_v48, %v3659_v38 }
 0x42e   : > { %3538 = vst.msk [vmem:[#allocation3 + $0x150] sm:$0xff] %vm1227_vm3, %v3474_v10  ;;  %v10401_v10 = vld [vmem:[#allocation79_spill] sm:$0xff] }
 0x42f   : > { %3905 = vst.msk [vmem:[#allocation3 + $0xe0] sm:$0xff] %vm1227_vm3, %v3841_v15  ;;  %v2543_v1 = vpop.f32.mrf.mxu3  ;;  %v10402_v15 = vld [vmem:[#allocation54_spill] sm:$0xff] }
 0x430   : > { %v2700_v20 = vadd.f32 %v2636_v26, %v2543_v1 }
 0x431   : > { %v3015_v3 = vld [vmem:[#allocation3 + $0x160] sm:$0xff]  ;;  %v9070_v16 = vpop.f32.mrf.mxu1 }
 0x432   : > { %v3079_v35 = vadd.f32 %v3015_v3, %v10400_v32  ;;  %2764 = vst.msk [vmem:[#allocation3 + $0x168] sm:$0xff] %vm1227_vm3, %v2700_v20  ;;  %v10403_v20 = vld [vmem:[#allocation41_spill] sm:$0xff] }
 0x433   : > { %v3411_v38 = vld [vmem:[#allocation3 + $0x158] sm:$0xff] }
 0x434   : > { %3143 = vst.msk [vmem:[#allocation3 + $0x160] sm:$0xff] %vm1227_vm3, %v3079_v35  ;;  %6538 = vmatmul.msk.bf16.gmra.mxu3 %vm1227_vm3, %v2322_v27  ;;  %v3661_v48 = vpop.f32.mrf.mxu2  ;;  %6715 = vmatmul.msk.bf16.gmra.mxu1 %vm1227_vm3, %v10401_v10  ;;  %v3475_v1 = vadd.f32 %v3411_v38, %v10402_v15  ;;  %v10404_v27 = vld [vmem:[#allocation84_spill] sm:$0xff]  ;;  %v9091_v38 = vpop.f32.mrf.mxu0  ;;  %v3779_v15 = vld [vmem:[#allocation3 + $0xf0] sm:$0xff] }
 0x435   : > { %v3842_v26 = vadd.f32 %v3778_v52, %v3661_v48  ;;  %10405 = vst [vmem:[#allocation66_spill] sm:$0xff] %v9091_v38 }
 0x436   : > { %3539 = vst.msk [vmem:[#allocation3 + $0x158] sm:$0xff] %vm1227_vm3, %v3475_v1 }
 0x437   : > { %3906 = vst.msk [vmem:[#allocation3 + $0xe8] sm:$0xff] %vm1227_vm3, %v3842_v26  ;;  %v2546_v31 = vpop.f32.mrf.mxu3 }
 0x438   : > { %6690 = vmatmul.msk.bf16.gmra.mxu0 %vm1227_vm3, %v10403_v20  ;;  %v2701_v35 = vadd.f32 %v2637_v5, %v2546_v31  ;;  %v2638_v31 = vld [vmem:[#allocation3 + $0x178] sm:$0xff] }
 0x439   : > { %v3016_v3 = vld [vmem:[#allocation3 + $0x168] sm:$0xff]  ;;  %6630 = vmatmul.msk.bf16.gmra.mxu2 %vm1227_vm3, %v8883_v18  ;;  %v9087_v32 = vpop.f32.mrf.mxu1 }
 0x43a   : > { %v3080_v10 = vadd.f32 %v3016_v3, %v10404_v27  ;;  %2765 = vst.msk [vmem:[#allocation3 + $0x170] sm:$0xff] %vm1227_vm3, %v2701_v35  ;;  %v10406_v35 = vld [vmem:[#allocation85_spill] sm:$0xff] }
 0x43b   : > { %v3412_v48 = vld [vmem:[#allocation3 + $0x160] sm:$0xff] }
 0x43c   : > { %3144 = vst.msk [vmem:[#allocation3 + $0x168] sm:$0xff] %vm1227_vm3, %v3080_v10  ;;  %v3664_v52 = vpop.f32.mrf.mxu2  ;;  %v3476_v1 = vadd.f32 %v3412_v48, %v8744_v45  ;;  %v3780_v45 = vld [vmem:[#allocation3 + $0xf8] sm:$0xff]  ;;  %v7051_v48 = vld [vmem:[#allocation2 + $0x20] sm:$0xff] }
 0x43d   : > { %v3843_v26 = vadd.f32 %v3779_v15, %v3664_v52  ;;  %v10407_v52 = vld [vmem:[#allocation80_spill] sm:$0xff] }
 0x43e   : > { %3540 = vst.msk [vmem:[#allocation3 + $0x160] sm:$0xff] %vm1227_vm3, %v3476_v1  ;;  %v9106_v1 = vpop.f32.mrf.mxu0 }
 0x43f   : > { %3907 = vst.msk [vmem:[#allocation3 + $0xf0] sm:$0xff] %vm1227_vm3, %v3843_v26  ;;  %v2548_v20 = vpop.f32.mrf.mxu3 }
 0x440   : > { %v2702_v5 = vadd.f32 %v2638_v31, %v2548_v20  ;;  %10408 = vst [vmem:[#allocation68_spill] sm:$0xff] %v9106_v1  ;;  %v10409_v20 = vld [vmem:[#allocation42_spill] sm:$0xff]  ;;  %v2639_v31 = vld [vmem:[#allocation3 + $0x180] sm:$0xff] }
 0x441   : > { %v3017_v3 = vld [vmem:[#allocation3 + $0x170] sm:$0xff]  ;;  %v9097_v27 = vpop.f32.mrf.mxu1 }
 0x442   : > { %v3081_v38 = vadd.f32 %v3017_v3, %v10406_v35  ;;  %2766 = vst.msk [vmem:[#allocation3 + $0x178] sm:$0xff] %vm1227_vm3, %v2702_v5 }
 0x443   : > { %v3413_v10 = vld [vmem:[#allocation3 + $0x168] sm:$0xff] }
 0x444   : > { %3145 = vst.msk [vmem:[#allocation3 + $0x170] sm:$0xff] %vm1227_vm3, %v3081_v38  ;;  %v3666_v50 = vpop.f32.mrf.mxu2  ;;  %6643 = vmatmul.msk.bf16.vlgmr.msra.gmra.mxu3 %vm1227_vm3, %v7051_v48  ;;  %6716 = vmatmul.msk.bf16.gmra.mxu1 %vm1227_vm3, %v10407_v52  ;;  %v3477_v15 = vadd.f32 %v3413_v10, %v8768_v63  ;;  %v10410_v63 = vld [vmem:[#allocation86_spill] sm:$0xff]  ;;  %v3781_v48 = vld [vmem:[#allocation3 + $0x100] sm:$0xff] }
 0x445   : > { %v3844_v26 = vadd.f32 %v3780_v45, %v3666_v50 }
 0x446   : > { %3541 = vst.msk [vmem:[#allocation3 + $0x168] sm:$0xff] %vm1227_vm3, %v3477_v15 }
 0x447   : > { %3908 = vst.msk [vmem:[#allocation3 + $0xf8] sm:$0xff] %vm1227_vm3, %v3844_v26  ;;  %v2551_v38 = vpop.f32.mrf.mxu3  ;;  %v9121_v26 = vpop.f32.mrf.mxu0 }
 0x448   : > { %6691 = vmatmul.msk.bf16.gmra.mxu0 %vm1227_vm3, %v10409_v20  ;;  %v2703_v5 = vadd.f32 %v2639_v31, %v2551_v38  ;;  %10411 = vst [vmem:[#allocation33_spill] sm:$0xff] %v9121_v26  ;;  %v2640_v38 = vld [vmem:[#allocation3 + $0x188] sm:$0xff]  ;;  %v10417_v26 = vld [vmem:[#allocation26_spill] sm:$0xff] }
 0x449   : > { %v3018_v3 = vld [vmem:[#allocation3 + $0x178] sm:$0xff]  ;;  %6631 = vmatmul.msk.bf16.gmra.mxu2 %vm1227_vm3, %v8914_v25  ;;  %v9114_v35 = vpop.f32.mrf.mxu1 }
 0x44a   : > { %v3082_v10 = vadd.f32 %v3018_v3, %v10410_v63  ;;  %2767 = vst.msk [vmem:[#allocation3 + $0x180] sm:$0xff] %vm1227_vm3, %v2703_v5  ;;  %v10412_v5 = vld [vmem:[#allocation45_spill] sm:$0xff] }
 0x44b   : > { %v3414_v50 = vld [vmem:[#allocation3 + $0x170] sm:$0xff] }
 0x44c   : > { %3146 = vst.msk [vmem:[#allocation3 + $0x178] sm:$0xff] %vm1227_vm3, %v3082_v10  ;;  %v3669_v45 = vpop.f32.mrf.mxu2  ;;  %v3478_v52 = vadd.f32 %v3414_v50, %v8784_v14  ;;  %v3782_v50 = vld [vmem:[#allocation3 + $0x108] sm:$0xff] }
 0x44d   : > { %v3845_v15 = vadd.f32 %v3781_v48, %v3669_v45  ;;  %v7052_v45 = vld [vmem:[#allocation2 + $0x28] sm:$0xff] }
 0x44e   : > { %3542 = vst.msk [vmem:[#allocation3 + $0x170] sm:$0xff] %vm1227_vm3, %v3478_v52  ;;  %v10413_v48 = vld [vmem:[#allocation82_spill] sm:$0xff] }
 0x44f   : > { %3909 = vst.msk [vmem:[#allocation3 + $0x100] sm:$0xff] %vm1227_vm3, %v3845_v15  ;;  %v2553_v20 = vpop.f32.mrf.mxu3 }
 0x450   : > { %v2704_v31 = vadd.f32 %v2640_v38, %v2553_v20  ;;  %v10414_v20 = vld [vmem:[#allocation43_spill] sm:$0xff] }
 0x451   : > { %v3019_v3 = vld [vmem:[#allocation3 + $0x180] sm:$0xff]  ;;  %v9124_v63 = vpop.f32.mrf.mxu1 }
 0x452   : > { %v3083_v1 = vadd.f32 %v3019_v3, %v10412_v5  ;;  %2768 = vst.msk [vmem:[#allocation3 + $0x188] sm:$0xff] %vm1227_vm3, %v2704_v31  ;;  %v9137_v3 = vpop.f32.mrf.mxu0 }
 0x453   : > { %v3415_v10 = vld [vmem:[#allocation3 + $0x178] sm:$0xff]  ;;  %10415 = vst [vmem:[#allocation71_spill] sm:$0xff] %v9137_v3 }
 0x454   : > { %3147 = vst.msk [vmem:[#allocation3 + $0x180] sm:$0xff] %vm1227_vm3, %v3083_v1  ;;  %v3671_v14 = vpop.f32.mrf.mxu2  ;;  %6644 = vmatmul.msk.bf16.gmra.mxu3 %vm1227_vm3, %v7052_v45  ;;  %6717 = vmatmul.msk.bf16.gmra.mxu1 %vm1227_vm3, %v10413_v48  ;;  %v3479_v52 = vadd.f32 %v3415_v10, %v8804_v23  ;;  %v2641_v1 = vld [vmem:[#allocation3 + $0x190] sm:$0xff] }
 0x455   : > { %v3846_v15 = vadd.f32 %v3782_v50, %v3671_v14  ;;  %v10416_v23 = vld [vmem:[#allocation65_spill] sm:$0xff] }
 0x456   : > { %3543 = vst.msk [vmem:[#allocation3 + $0x178] sm:$0xff] %vm1227_vm3, %v3479_v52  ;;  %v3783_v48 = vld [vmem:[#allocation3 + $0x110] sm:$0xff] }
 0x457   : > { %3910 = vst.msk [vmem:[#allocation3 + $0x108] sm:$0xff] %vm1227_vm3, %v3846_v15  ;;  %v2556_v38 = vpop.f32.mrf.mxu3 }
 0x458   : > { %6692 = vmatmul.msk.bf16.gmra.mxu0 %vm1227_vm3, %v10414_v20  ;;  %v2705_v31 = vadd.f32 %v2641_v1, %v2556_v38  ;;  %v2642_v38 = vld [vmem:[#allocation3 + $0x198] sm:$0xff] }
 0x459   : > { %v3020_v5 = vld [vmem:[#allocation3 + $0x188] sm:$0xff]  ;;  %6632 = vmatmul.msk.bf16.gmra.mxu2 %vm1227_vm3, %v8949_v37  ;;  %v9141_v45 = vpop.f32.mrf.mxu1 }
 0x45a   : > { %v3084_v10 = vadd.f32 %v3020_v5, %v10416_v23  ;;  %2769 = vst.msk [vmem:[#allocation3 + $0x190] sm:$0xff] %vm1227_vm3, %v2705_v31  ;;  %v9153_v23 = vpop.f32.mrf.mxu0 }
 0x45b   : > { %v3416_v14 = vld [vmem:[#allocation3 + $0x180] sm:$0xff] }
 0x45c   : > { %3148 = vst.msk [vmem:[#allocation3 + $0x188] sm:$0xff] %vm1227_vm3, %v3084_v10  ;;  %v3674_v50 = vpop.f32.mrf.mxu2  ;;  %v3480_v52 = vadd.f32 %v3416_v14, %v8816_v8  ;;  %v3784_v14 = vld [vmem:[#allocation3 + $0x118] sm:$0xff] }
 0x45d   : > { %v3847_v15 = vadd.f32 %v3783_v48, %v3674_v50  ;;  %v7053_v50 = vld [vmem:[#allocation2 + $0x30] sm:$0xff] }
 0x45e   : > { %3544 = vst.msk [vmem:[#allocation3 + $0x180] sm:$0xff] %vm1227_vm3, %v3480_v52 }
 0x45f   : > { %3911 = vst.msk [vmem:[#allocation3 + $0x110] sm:$0xff] %vm1227_vm3, %v3847_v15  ;;  %v2558_v20 = vpop.f32.mrf.mxu3  ;;  %v2643_v15 = vld [vmem:[#allocation3 + $0x1a0] sm:$0xff] }
 0x460   : > { %v2706_v1 = vadd.f32 %v2642_v38, %v2558_v20 }
 0x461   : > { %v3021_v3 = vld [vmem:[#allocation3 + $0x190] sm:$0xff]  ;;  %v9151_v31 = vpop.f32.mrf.mxu1 }
 0x462   : > { %v3085_v5 = vadd.f32 %v3021_v3, %v10417_v26  ;;  %2770 = vst.msk [vmem:[#allocation3 + $0x198] sm:$0xff] %vm1227_vm3, %v2706_v1  ;;  %v10418_v3 = vld [vmem:[#allocation44_spill] sm:$0xff]  ;;  %v10419_v1 = vld [vmem:[#allocation47_spill] sm:$0xff] }
 0x463   : > { %v3417_v10 = vld [vmem:[#allocation3 + $0x188] sm:$0xff] }
 0x464   : > { %3149 = vst.msk [vmem:[#allocation3 + $0x190] sm:$0xff] %vm1227_vm3, %v3085_v5  ;;  %v3676_v8 = vpop.f32.mrf.mxu2  ;;  %6645 = vmatmul.msk.bf16.gmra.mxu3 %vm1227_vm3, %v7053_v50  ;;  %6718 = vmatmul.msk.bf16.gmra.mxu1 %vm1227_vm3, %v8555_v30  ;;  %v3481_v48 = vadd.f32 %v3417_v10, %v8835_v7  ;;  %v9172_v50 = vpop.f32.mrf.mxu0 }
 0x465   : > { %v3848_v26 = vadd.f32 %v3784_v14, %v3676_v8  ;;  %v3785_v8 = vld [vmem:[#allocation3 + $0x120] sm:$0xff] }
 0x466   : > { %3545 = vst.msk [vmem:[#allocation3 + $0x188] sm:$0xff] %vm1227_vm3, %v3481_v48 }
 0x467   : > { %3912 = vst.msk [vmem:[#allocation3 + $0x118] sm:$0xff] %vm1227_vm3, %v3848_v26  ;;  %v2561_v52 = vpop.f32.mrf.mxu3 }
 0x468   : > { %6693 = vmatmul.msk.bf16.gmra.mxu0 %vm1227_vm3, %v10418_v3  ;;  %v2707_v20 = vadd.f32 %v2643_v15, %v2561_v52  ;;  %v2644_v3 = vld [vmem:[#allocation3 + $0x1a8] sm:$0xff] }
 0x469   : > { %v3022_v38 = vld [vmem:[#allocation3 + $0x198] sm:$0xff]  ;;  %6633 = vmatmul.msk.bf16.gmra.mxu2 %vm1227_vm3, %v8980_v2  ;;  %v9169_v7 = vpop.f32.mrf.mxu1 }
 0x46a   : > { %v3086_v5 = vadd.f32 %v3022_v38, %v10419_v1  ;;  %2771 = vst.msk [vmem:[#allocation3 + $0x1a0] sm:$0xff] %vm1227_vm3, %v2707_v20  ;;  %v10420_v20 = vld [vmem:[#allocation67_spill] sm:$0xff] }
 0x46b   : > { %v3418_v30 = vld [vmem:[#allocation3 + $0x190] sm:$0xff] }
 0x46c   : > { %3150 = vst.msk [vmem:[#allocation3 + $0x198] sm:$0xff] %vm1227_vm3, %v3086_v5  ;;  %v3679_v10 = vpop.f32.mrf.mxu2  ;;  %v3482_v14 = vadd.f32 %v3418_v30, %v8847_v56  ;;  %v3786_v56 = vld [vmem:[#allocation3 + $0x128] sm:$0xff] }
 0x46d   : > { %v3849_v48 = vadd.f32 %v3785_v8, %v3679_v10  ;;  %v7054_v30 = vld [vmem:[#allocation2 + $0x38] sm:$0xff] }
 0x46e   : > { %3546 = vst.msk [vmem:[#allocation3 + $0x190] sm:$0xff] %vm1227_vm3, %v3482_v14 }
 0x46f   : > { %3913 = vst.msk [vmem:[#allocation3 + $0x120] sm:$0xff] %vm1227_vm3, %v3849_v48  ;;  %v2563_v26 = vpop.f32.mrf.mxu3  ;;  %v9186_v48 = vpop.f32.mrf.mxu0 }
 0x470   : > { %v2708_v52 = vadd.f32 %v2644_v3, %v2563_v26  ;;  %v10421_v26 = vld [vmem:[#allocation46_spill] sm:$0xff] }
 0x471   : > { %v3023_v15 = vld [vmem:[#allocation3 + $0x1a0] sm:$0xff]  ;;  %v9183_v14 = vpop.f32.mrf.mxu1 }
 0x472   : > { %v3087_v38 = vadd.f32 %v3023_v15, %v10420_v20  ;;  %2772 = vst.msk [vmem:[#allocation3 + $0x1a8] sm:$0xff] %vm1227_vm3, %v2708_v52  ;;  %v2645_v52 = vld [vmem:[#allocation3 + $0x1b0] sm:$0xff] }
 0x473   : > { %v3419_v1 = vld [vmem:[#allocation3 + $0x198] sm:$0xff] }
 0x474   : > { %3151 = vst.msk [vmem:[#allocation3 + $0x1a0] sm:$0xff] %vm1227_vm3, %v3087_v38  ;;  %v3681_v5 = vpop.f32.mrf.mxu2  ;;  %6646 = vmatmul.msk.bf16.gmra.mxu3 %vm1227_vm3, %v7054_v30  ;;  %6719 = vmatmul.msk.bf16.gmra.mxu1 %vm1227_vm3, %v8588_v53  ;;  %v3483_v10 = vadd.f32 %v3419_v1, %v8866_v40  ;;  %v10422_v53 = vld [vmem:[#allocation48_spill] sm:$0xff] }
 0x475   : > { %v3850_v8 = vadd.f32 %v3786_v56, %v3681_v5  ;;  %v3787_v5 = vld [vmem:[#allocation3 + $0x130] sm:$0xff] }
 0x476   : > { %3547 = vst.msk [vmem:[#allocation3 + $0x198] sm:$0xff] %vm1227_vm3, %v3483_v10 }
 0x477   : > { %3914 = vst.msk [vmem:[#allocation3 + $0x128] sm:$0xff] %vm1227_vm3, %v3850_v8  ;;  %v2566_v3 = vpop.f32.mrf.mxu3  ;;  %v2646_v8 = vld [vmem:[#allocation3 + $0x1b8] sm:$0xff] }
 0x478   : > { %6694 = vmatmul.msk.bf16.gmra.mxu0 %vm1227_vm3, %v10421_v26  ;;  %v2709_v15 = vadd.f32 %v2645_v52, %v2566_v3  ;;  %v9201_v52 = vpop.f32.mrf.mxu0 }
 0x479   : > { %v3024_v20 = vld [vmem:[#allocation3 + $0x1a8] sm:$0xff]  ;;  %6634 = vmatmul.msk.bf16.gmra.mxu2 %vm1227_vm3, %v9011_v6  ;;  %v9199_v26 = vpop.f32.mrf.mxu1 }
 0x47a   : > { %v3088_v40 = vadd.f32 %v3024_v20, %v10422_v53  ;;  %2773 = vst.msk [vmem:[#allocation3 + $0x1b0] sm:$0xff] %vm1227_vm3, %v2709_v15  ;;  %v10423_v20 = vld [vmem:[#allocation70_spill] sm:$0xff] }
 0x47b   : > { %v3420_v38 = vld [vmem:[#allocation3 + $0x1a0] sm:$0xff] }
 0x47c   : > { %3152 = vst.msk [vmem:[#allocation3 + $0x1a8] sm:$0xff] %vm1227_vm3, %v3088_v40  ;;  %v3684_v1 = vpop.f32.mrf.mxu2  ;;  %v3484_v56 = vadd.f32 %v3420_v38, %v8878_v54  ;;  %v3788_v38 = vld [vmem:[#allocation3 + $0x138] sm:$0xff] }
 0x47d   : > { %v3851_v30 = vadd.f32 %v3787_v5, %v3684_v1  ;;  %v7055_v1 = vld [vmem:[#allocation2 + $0x40] sm:$0xff] }
 0x47e   : > { %3548 = vst.msk [vmem:[#allocation3 + $0x1a0] sm:$0xff] %vm1227_vm3, %v3484_v56 }
 0x47f   : > { %3915 = vst.msk [vmem:[#allocation3 + $0x130] sm:$0xff] %vm1227_vm3, %v3851_v30  ;;  %v2568_v10 = vpop.f32.mrf.mxu3  ;;  %v10424_v30 = vld [vmem:[#allocation49_spill] sm:$0xff] }
 0x480   : > { %v2710_v3 = vadd.f32 %v2646_v8, %v2568_v10  ;;  %v2647_v8 = vld [vmem:[#allocation3 + $0x1c0] sm:$0xff] }
 0x481   : > { %v3025_v15 = vld [vmem:[#allocation3 + $0x1b0] sm:$0xff] }
 0x482   : > { %v3089_v53 = vadd.f32 %v3025_v15, %v10423_v20  ;;  %2774 = vst.msk [vmem:[#allocation3 + $0x1b8] sm:$0xff] %vm1227_vm3, %v2710_v3  ;;  %v10425_v20 = vld [vmem:[#allocation50_spill] sm:$0xff] }
 0x483   : > { %v3421_v40 = vld [vmem:[#allocation3 + $0x1a8] sm:$0xff] }
 0x484   : > { %3153 = vst.msk [vmem:[#allocation3 + $0x1b0] sm:$0xff] %vm1227_vm3, %v3089_v53  ;;  %v3686_v54 = vpop.f32.mrf.mxu2  ;;  %6647 = vmatmul.msk.bf16.gmra.mxu3 %vm1227_vm3, %v7055_v1  ;;  %6720 = vmatmul.msk.bf16.gmra.mxu1 %vm1227_vm3, %v8619_v34  ;;  %v3485_v5 = vadd.f32 %v3421_v40, %v8897_v21  ;;  %v9217_v34 = vpop.f32.mrf.mxu1 }
 0x485   : > { %v3852_v56 = vadd.f32 %v3788_v38, %v3686_v54  ;;  %v9220_v21 = vpop.f32.mrf.mxu0  ;;  %v3789_v38 = vld [vmem:[#allocation3 + $0x140] sm:$0xff] }
 0x486   : > { %3549 = vst.msk [vmem:[#allocation3 + $0x1a8] sm:$0xff] %vm1227_vm3, %v3485_v5 }
 0x487   : > { %3916 = vst.msk [vmem:[#allocation3 + $0x138] sm:$0xff] %vm1227_vm3, %v3852_v56  ;;  %v2571_v10 = vpop.f32.mrf.mxu3 }
 0x488   : > { %6695 = vmatmul.msk.bf16.gmra.mxu0 %vm1227_vm3, %v10424_v30  ;;  %v2711_v3 = vadd.f32 %v2647_v8, %v2571_v10  ;;  %10426 = vst [vmem:[#allocation73_spill] sm:$0xff] %v9220_v21  ;;  %v2648_v30 = vld [vmem:[#allocation3 + $0x1c8] sm:$0xff] }
 0x489   : > { %v3026_v15 = vld [vmem:[#allocation3 + $0x1b8] sm:$0xff]  ;;  %6635 = vmatmul.msk.bf16.gmra.mxu2 %vm1227_vm3, %v9043_v49 }
 0x48a   : > { %v3090_v53 = vadd.f32 %v3026_v15, %v10425_v20  ;;  %2775 = vst.msk [vmem:[#allocation3 + $0x1c0] sm:$0xff] %vm1227_vm3, %v2711_v3  ;;  %v10427_v15 = vld [vmem:[#allocation53_spill] sm:$0xff] }
 0x48b   : > { %v3422_v40 = vld [vmem:[#allocation3 + $0x1b0] sm:$0xff] }
 0x48c   : > { %3154 = vst.msk [vmem:[#allocation3 + $0x1b8] sm:$0xff] %vm1227_vm3, %v3090_v53  ;;  %v3689_v54 = vpop.f32.mrf.mxu2  ;;  %v3486_v1 = vadd.f32 %v3422_v40, %v8909_v46  ;;  %v9229_v53 = vpop.f32.mrf.mxu1  ;;  %v3790_v46 = vld [vmem:[#allocation3 + $0x148] sm:$0xff]  ;;  %v7056_v40 = vld [vmem:[#allocation2 + $0x48] sm:$0xff] }
 0x48d   : > { %v3853_v5 = vadd.f32 %v3789_v38, %v3689_v54  ;;  %v7057_v54 = vld [vmem:[#allocation2 + $0x100] sm:$0xff]  }
 0x48e   : > { %3550 = vst.msk [vmem:[#allocation3 + $0x1b0] sm:$0xff] %vm1227_vm3, %v3486_v1  ;;  %v3562_v38 = vrot.slane %v7057_v54, 1 }
 0x48f   : > { %3917 = vst.msk [vmem:[#allocation3 + $0x140] sm:$0xff] %vm1227_vm3, %v3853_v5  ;;  %v2573_v56 = vpop.f32.mrf.mxu3  ;;  %v9235_v5 = vpop.f32.mrf.mxu0 }
 0x490   : > { %v2712_v10 = vadd.f32 %v2648_v30, %v2573_v56  ;;  %v10428_v30 = vld [vmem:[#allocation52_spill] sm:$0xff] }
 0x491   : > { %v3027_v8 = vld [vmem:[#allocation3 + $0x1c0] sm:$0xff] }
 0x492   : > { %v3091_v3 = vadd.f32 %v3027_v8, %v10427_v15  ;;  %2776 = vst.msk [vmem:[#allocation3 + $0x1c8] sm:$0xff] %vm1227_vm3, %v2712_v10  ;;  %v2649_v8 = vld [vmem:[#allocation3 + $0x1d0] sm:$0xff] }
 0x493   : > { %v3423_v20 = vld [vmem:[#allocation3 + $0x1b8] sm:$0xff] }
 0x494   : > { %3155 = vst.msk [vmem:[#allocation3 + $0x1c0] sm:$0xff] %vm1227_vm3, %v3091_v3  ;;  %v3691_v21 = vpop.f32.mrf.mxu2  ;;  %6648 = vmatmul.msk.bf16.gmra.mxu3 %vm1227_vm3, %v7056_v40  ;;  %6721 = vmatmul.msk.bf16.gmra.mxu1 %vm1227_vm3, %v8650_v13  ;;  %v3487_v1 = vadd.f32 %v3423_v20, %v8932_v4  ;;  %v9243_v13 = vsel %vm2257_vm5, %v9035_v24, %v3562_v38  ;;  %v10429_v4 = vld [vmem:[#allocation77_spill] sm:$0xff] }
 0x495   : > { %v3854_v56 = vadd.f32 %v3790_v46, %v3691_v21  ;;  %v3791_v40 = vld [vmem:[#allocation3 + $0x150] sm:$0xff] }
 0x496   : > { %3551 = vst.msk [vmem:[#allocation3 + $0x1b8] sm:$0xff] %vm1227_vm3, %v3487_v1 }
 0x497   : > { %3918 = vst.msk [vmem:[#allocation3 + $0x148] sm:$0xff] %vm1227_vm3, %v3854_v56  ;;  %v2576_v10 = vpop.f32.mrf.mxu3  ;;  %v9251_v56 = vpop.f32.mrf.mxu1 }
 0x498   : > { %6696 = vmatmul.msk.bf16.gmra.mxu0 %vm1227_vm3, %v10428_v30  ;;  %v2713_v15 = vadd.f32 %v2649_v8, %v2576_v10  ;;  %v9254_v24 = vpop.f32.mrf.mxu0  ;;  %v2650_v10 = vld [vmem:[#allocation3 + $0x1d8] sm:$0xff] }
 0x499   : > { %v3028_v3 = vld [vmem:[#allocation3 + $0x1c8] sm:$0xff]  ;;  %6636 = vmatmul.msk.bf16.gmra.mxu2 %vm1227_vm3, %v9243_v13 }
 0x49a   : > { %v3092_v21 = vadd.f32 %v3028_v3, %v10429_v4  ;;  %2777 = vst.msk [vmem:[#allocation3 + $0x1d0] sm:$0xff] %vm1227_vm3, %v2713_v15 }
 0x49b   : > { %v3424_v20 = vld [vmem:[#allocation3 + $0x1c0] sm:$0xff] }
 0x49c   : > { %3156 = vst.msk [vmem:[#allocation3 + $0x1c8] sm:$0xff] %vm1227_vm3, %v3092_v21  ;;  %v3694_v46 = vpop.f32.mrf.mxu2  ;;  %v3488_v54 = vadd.f32 %v3424_v20, %v8944_v62  ;;  %v3792_v21 = vld [vmem:[#allocation3 + $0x158] sm:$0xff]  ;;  %v7058_v20 = vld [vmem:[#allocation2 + $0x50] sm:$0xff] }
 0x49d   : > { %v3855_v1 = vadd.f32 %v3791_v40, %v3694_v46  ;;  %v7059_v46 = vld [vmem:[#allocation2 + $0x108] sm:$0xff] }
 0x49e   : > { %3552 = vst.msk [vmem:[#allocation3 + $0x1c0] sm:$0xff] %vm1227_vm3, %v3488_v54  ;;  %v9263_v40 = vrot.slane %v7059_v46, 1  ;;  %v3793_v46 = vld [vmem:[#allocation3 + $0x160] sm:$0xff] }
 0x49f   : > { %3919 = vst.msk [vmem:[#allocation3 + $0x150] sm:$0xff] %vm1227_vm3, %v3855_v1  ;;  %v2578_v30 = vpop.f32.mrf.mxu3 }
 0x4a0   : > { %v2714_v8 = vadd.f32 %v2650_v10, %v2578_v30  ;;  %v2651_v10 = vld [vmem:[#allocation3 + $0x1e0] sm:$0xff] }
 0x4a1   : > { %v3029_v15 = vld [vmem:[#allocation3 + $0x1d0] sm:$0xff] }
 0x4a2   : > { %v3093_v3 = vadd.f32 %v3029_v15, %v8755_v12  ;;  %2778 = vst.msk [vmem:[#allocation3 + $0x1d8] sm:$0xff] %vm1227_vm3, %v2714_v8  ;;  %v10430_v12 = vld [vmem:[#allocation55_spill] sm:$0xff]  ;;  %v9270_v8 = vpop.f32.mrf.mxu1 }
 0x4a3   : > { %v3425_v4 = vld [vmem:[#allocation3 + $0x1c8] sm:$0xff] }
 0x4a4   : > { %3157 = vst.msk [vmem:[#allocation3 + $0x1d0] sm:$0xff] %vm1227_vm3, %v3093_v3  ;;  %v3696_v62 = vpop.f32.mrf.mxu2  ;;  %6649 = vmatmul.msk.bf16.gmra.mxu3 %vm1227_vm3, %v7058_v20  ;;  %6722 = vmatmul.msk.bf16.gmra.mxu1 %vm1227_vm3, %v8681_v60  ;;  %v3489_v54 = vadd.f32 %v3425_v4, %v8963_v58  ;;  %v9274_v60 = vsel %vm2257_vm5, %v3562_v38, %v9263_v40  ;;  %v9276_v3 = vpop.f32.mrf.mxu0  ;;  %v10432_v4 = vld [vmem:[#allocation57_spill] sm:$0xff] }
 0x4a5   : > { %v3856_v1 = vadd.f32 %v3792_v21, %v3696_v62  ;;  %10431 = vst [vmem:[#allocation34_spill] sm:$0xff] %v9276_v3 }
 0x4a6   : > { %3553 = vst.msk [vmem:[#allocation3 + $0x1c8] sm:$0xff] %vm1227_vm3, %v3489_v54 }
 0x4a7   : > { %3920 = vst.msk [vmem:[#allocation3 + $0x158] sm:$0xff] %vm1227_vm3, %v3856_v1  ;;  %v2581_v30 = vpop.f32.mrf.mxu3 }
 0x4a8   : > { %6697 = vmatmul.msk.bf16.gmra.mxu0 %vm1227_vm3, %v10430_v12  ;;  %v2715_v15 = vadd.f32 %v2651_v10, %v2581_v30  ;;  %v2652_v12 = vld [vmem:[#allocation3 + $0x1e8] sm:$0xff] }
 0x4a9   : > { %v3030_v58 = vld [vmem:[#allocation3 + $0x1d8] sm:$0xff]  ;;  %6637 = vmatmul.msk.bf16.gmra.mxu2 %vm1227_vm3, %v9274_v60 }
 0x4aa   : > { %v3094_v62 = vadd.f32 %v3030_v58, %v10432_v4  ;;  %2779 = vst.msk [vmem:[#allocation3 + $0x1e0] sm:$0xff] %vm1227_vm3, %v2715_v15  ;;  %v9286_v3 = vpop.f32.mrf.mxu1 }
 0x4ab   : > { %v3426_v21 = vld [vmem:[#allocation3 + $0x1d0] sm:$0xff] }
 0x4ac   : > { %3158 = vst.msk [vmem:[#allocation3 + $0x1d8] sm:$0xff] %vm1227_vm3, %v3094_v62  ;;  %v3699_v20 = vpop.f32.mrf.mxu2  ;;  %v3490_v54 = vadd.f32 %v3426_v21, %v8975_v55  ;;  %v9290_v58 = vpop.f32.mrf.mxu0  ;;  %v3794_v62 = vld [vmem:[#allocation3 + $0x168] sm:$0xff] }
 0x4ad   : > { %v3857_v1 = vadd.f32 %v3793_v46, %v3699_v20  ;;  %v7060_v21 = vld [vmem:[#allocation2 + $0x58] sm:$0xff] }
 0x4ae   : > { %3554 = vst.msk [vmem:[#allocation3 + $0x1d0] sm:$0xff] %vm1227_vm3, %v3490_v54  ;;  %v10433_v20 = vld [vmem:[#allocation56_spill] sm:$0xff] }
 0x4af   : > { %3921 = vst.msk [vmem:[#allocation3 + $0x160] sm:$0xff] %vm1227_vm3, %v3857_v1  ;;  %v2583_v38 = vpop.f32.mrf.mxu3  ;;  %v3566_v46 = vrot.slane %v10433_v20, 1  ;;  %v10434_v1 = vld [vmem:[#allocation58_spill] sm:$0xff] }
 0x4b0   : > { %v2716_v30 = vadd.f32 %v2652_v12, %v2583_v38  ;;  %v2653_v12 = vld [vmem:[#allocation3 + $0x1f0] sm:$0xff] }
 0x4b1   : > { %v3031_v10 = vld [vmem:[#allocation3 + $0x1e0] sm:$0xff] }
 0x4b2   : > { %v3095_v15 = vadd.f32 %v3031_v10, %v8794_v19  ;;  %2780 = vst.msk [vmem:[#allocation3 + $0x1e8] sm:$0xff] %vm1227_vm3, %v2716_v30  ;;  %v3567_v10 = vsel %vm2257_vm5, %v9263_v40, %v3566_v46 }
 0x4b3   : > { %v3427_v4 = vld [vmem:[#allocation3 + $0x1d8] sm:$0xff] }
 0x4b4   : > { %3159 = vst.msk [vmem:[#allocation3 + $0x1e0] sm:$0xff] %vm1227_vm3, %v3095_v15  ;;  %v3701_v55 = vpop.f32.mrf.mxu2  ;;  %6650 = vmatmul.msk.bf16.gmra.mxu3 %vm1227_vm3, %v7060_v21  ;;  %6723 = vmatmul.msk.bf16.gmra.mxu1 %vm1227_vm3, %v8713_v61  ;;  %v3491_v54 = vadd.f32 %v3427_v4, %v8994_v39  ;;  %v9307_v4 = vpop.f32.mrf.mxu1 }
 0x4b5   : > { %v3858_v19 = vadd.f32 %v3794_v62, %v3701_v55  ;;  %v3795_v62 = vld [vmem:[#allocation3 + $0x170] sm:$0xff]  ;;  %v9311_v20 = vpop.f32.mrf.mxu0 }
 0x4b6   : > { %3555 = vst.msk [vmem:[#allocation3 + $0x1d8] sm:$0xff] %vm1227_vm3, %v3491_v54 }
 0x4b7   : > { %3922 = vst.msk [vmem:[#allocation3 + $0x168] sm:$0xff] %vm1227_vm3, %v3858_v19  ;;  %v2586_v38 = vpop.f32.mrf.mxu3 }
 0x4b8   : > { %6698 = vmatmul.msk.bf16.gmra.mxu0 %vm1227_vm3, %v10434_v1  ;;  %v2717_v30 = vadd.f32 %v2653_v12, %v2586_v38 }
 0x4b9   : > { %v3032_v15 = vld [vmem:[#allocation3 + $0x1e8] sm:$0xff]  ;;  %6638 = vmatmul.msk.bf16.gmra.mxu2 %vm1227_vm3, %v3567_v10  ;;  %v7061_v10 = vld [vmem:[#allocation2 + $0x60] sm:$0xff] }
 0x4ba   : > { %v3096_v61 = vadd.f32 %v3032_v15, %v8811_v22  ;;  %2781 = vst.msk [vmem:[#allocation3 + $0x1f0] sm:$0xff] %vm1227_vm3, %v2717_v30  ;;  %v2654_v22 = vld [vmem:[#allocation3 + $0x1f8] sm:$0xff] }
 0x4bb   : > { %v3428_v39 = vld [vmem:[#allocation3 + $0x1e0] sm:$0xff] }
 0x4bc   : > { %3160 = vst.msk [vmem:[#allocation3 + $0x1e8] sm:$0xff] %vm1227_vm3, %v3096_v61  ;;  %v3704_v55 = vpop.f32.mrf.mxu2  ;;  %v3492_v21 = vadd.f32 %v3428_v39, %v9004_v44  ;;  %v3796_v44 = vld [vmem:[#allocation3 + $0x178] sm:$0xff]  ;;  %v9322_v39 = vpop.f32.mrf.mxu1 }
 0x4bd   : > { %v3859_v54 = vadd.f32 %v3795_v62, %v3704_v55  ;;  %v10435_v55 = vld [vmem:[#allocation61_spill] sm:$0xff] }
 0x4be   : > { %3556 = vst.msk [vmem:[#allocation3 + $0x1e0] sm:$0xff] %vm1227_vm3, %v3492_v21  ;;  %v4129_v21 = vld [vmem:[#allocation3] sm:$0xff] }
 0x4bf   : > { %3923 = vst.msk [vmem:[#allocation3 + $0x170] sm:$0xff] %vm1227_vm3, %v3859_v54  ;;  %v2588_v46 = vpop.f32.mrf.mxu3 }
 0x4c0   : > { %v2718_v19 = vadd.f32 %v2654_v22, %v2588_v46  ;;  %v10436_v22 = vld [vmem:[#allocation30_spill] sm:$0xff] }
 0x4c1   : > { %v3033_v1 = vld [vmem:[#allocation3 + $0x1f0] sm:$0xff] }
 0x4c2   : > { %v3097_v38 = vadd.f32 %v3033_v1, %v8824_v17  ;;  %2782 = vst.msk [vmem:[#allocation3 + $0x1f8] sm:$0xff] %vm1227_vm3, %v2718_v19  ;;  %v9325_v17 = vpop.f32.mrf.mxu0  ;;  %v3797_v1 = vld [vmem:[#allocation3 + $0x180] sm:$0xff] }
 0x4c3   : > { %v3429_v12 = vld [vmem:[#allocation3 + $0x1e8] sm:$0xff] }
 0x4c4   : > { %3161 = vst.msk [vmem:[#allocation3 + $0x1f0] sm:$0xff] %vm1227_vm3, %v3097_v38  ;;  %v3706_v30 = vpop.f32.mrf.mxu2  ;;  %6651 = vmatmul.msk.bf16.gmra.mxu3 %vm1227_vm3, %v7061_v10  ;;  %6724 = vmatmul.msk.bf16.gmra.mxu1 %vm1227_vm3, %v8749_v42  ;;  %v3493_v15 = vadd.f32 %v3429_v12, %v9023_v51  ;;  %v9336_v10 = vpop.f32.mrf.mxu1 }
 0x4c5   : > { %v3860_v61 = vadd.f32 %v3796_v44, %v3706_v30  ;;  %v4130_v44 = vld [vmem:[#allocation3 + $0x8] sm:$0xff] }
 0x4c6   : > { %3557 = vst.msk [vmem:[#allocation3 + $0x1e8] sm:$0xff] %vm1227_vm3, %v3493_v15 }
 0x4c7   : > { %3924 = vst.msk [vmem:[#allocation3 + $0x178] sm:$0xff] %vm1227_vm3, %v3860_v61  ;;  %v3969_v62 = vpop.f32.mrf.mxu3 }
 0x4c8   : > { %6699 = vmatmul.msk.bf16.gmra.mxu0 %vm1227_vm3, %v10435_v55  ;;  %v4193_v54 = vadd.f32 %v4129_v21, %v3969_v62  ;;  %v10437_v62 = vld [vmem:[#allocation59_spill] sm:$0xff] }
 0x4c9   : > { %v3034_v46 = vld [vmem:[#allocation3 + $0x1f8] sm:$0xff] }
 0x4ca   : > { %v3098_v42 = vadd.f32 %v3034_v46, %v10436_v22  ;;  %4257 = vst.msk [vmem:[#allocation3] sm:$0xff] %vm1227_vm3, %v4193_v54  ;;  %v9338_v61 = vpop.f32.mrf.mxu0  ;;  %v3798_v46 = vld [vmem:[#allocation3 + $0x188] sm:$0xff]  ;;  %v7062_v22 = vld [vmem:[#allocation2 + $0x68] sm:$0xff] }
 0x4cb   : > { %v3430_v51 = vld [vmem:[#allocation3 + $0x1f0] sm:$0xff] }
 0x4cc   : > { %3162 = vst.msk [vmem:[#allocation3 + $0x1f8] sm:$0xff] %vm1227_vm3, %v3098_v42  ;;  %v3709_v19 = vpop.f32.mrf.mxu2  ;;  %v3494_v38 = vadd.f32 %v3430_v51, %v9037_v43 }
 0x4cd   : > { %v3861_v12 = vadd.f32 %v3797_v1, %v3709_v19  ;;  %v10438_v19 = vld [vmem:[#allocation64_spill] sm:$0xff] }
 0x4ce   : > { %3558 = vst.msk [vmem:[#allocation3 + $0x1f0] sm:$0xff] %vm1227_vm3, %v3494_v38  ;;  %v4131_v38 = vld [vmem:[#allocation3 + $0x10] sm:$0xff] }
 0x4cf   : > { %3925 = vst.msk [vmem:[#allocation3 + $0x180] sm:$0xff] %vm1227_vm3, %v3861_v12  ;;  %v3971_v30 = vpop.f32.mrf.mxu3 }
 0x4d0   : > { %v4194_v15 = vadd.f32 %v4130_v44, %v3971_v30  ;;  %v9351_v44 = vpop.f32.mrf.mxu1 }
 0x4d1   : > { %v4526_v55 = vld [vmem:[#allocation3] sm:$0xff] }
 0x4d2   : > { %v4590_v21 = vadd.f32 %v4526_v55, %v10437_v62  ;;  %4258 = vst.msk [vmem:[#allocation3 + $0x8] sm:$0xff] %vm1227_vm3, %v4194_v15  ;;  %v10439_v15 = vld [vmem:[#allocation60_spill] sm:$0xff] }
 0x4d3   : > { %v3431_v54 = vld [vmem:[#allocation3 + $0x1f8] sm:$0xff] }
 0x4d4   : > { %4654 = vst.msk [vmem:[#allocation3] sm:$0xff] %vm1227_vm3, %v4590_v21  ;;  %v3711_v43 = vpop.f32.mrf.mxu2  ;;  %6652 = vmatmul.msk.bf16.gmra.mxu3 %vm1227_vm3, %v7062_v22  ;;  %6725 = vmatmul.msk.bf16.gmra.mxu1 %vm1227_vm3, %v8789_v36  ;;  %v3495_v42 = vadd.f32 %v3431_v54, %v9057_v59  ;;  %v9355_v36 = vpop.f32.mrf.mxu0  ;;  %v3799_v54 = vld [vmem:[#allocation3 + $0x190] sm:$0xff]  ;;  %v4132_v22 = vld [vmem:[#allocation3 + $0x18] sm:$0xff] }
 0x4d5   : > { %v3862_v51 = vadd.f32 %v3798_v46, %v3711_v43 }
 0x4d6   : > { %3559 = vst.msk [vmem:[#allocation3 + $0x1f8] sm:$0xff] %vm1227_vm3, %v3495_v42 }
 0x4d7   : > { %3926 = vst.msk [vmem:[#allocation3 + $0x188] sm:$0xff] %vm1227_vm3, %v3862_v51  ;;  %v3974_v1 = vpop.f32.mrf.mxu3 }
 0x4d8   : > { %6700 = vmatmul.msk.bf16.gmra.mxu0 %vm1227_vm3, %v10438_v19  ;;  %v4195_v12 = vadd.f32 %v4131_v38, %v3974_v1  ;;  %v9363_v38 = vpop.f32.mrf.mxu1 }
 0x4d9   : > { %v4527_v30 = vld [vmem:[#allocation3 + $0x8] sm:$0xff] }
 0x4da   : > { %v4591_v55 = vadd.f32 %v4527_v30, %v10439_v15  ;;  %4259 = vst.msk [vmem:[#allocation3 + $0x10] sm:$0xff] %vm1227_vm3, %v4195_v12  ;;  %v3800_v30 = vld [vmem:[#allocation3 + $0x198] sm:$0xff]  ;;  %v7063_v15 = vld [vmem:[#allocation2 + $0x70] sm:$0xff] }
 0x4db   : > { %v4907_v59 = vld [vmem:[#allocation3] sm:$0xff] }
 0x4dc   : > { %v4971_v62 = vadd.f32 %v4907_v59, %v9070_v16  ;;  %4655 = vst.msk [vmem:[#allocation3 + $0x8] sm:$0xff] %vm1227_vm3, %v4591_v55  ;;  %v3714_v21 = vpop.f32.mrf.mxu2  ;;  %v9370_v55 = vpop.f32.mrf.mxu0  ;;  %v10440_v59 = vld [vmem:[#allocation69_spill] sm:$0xff] }
 0x4dd   : > { %v3863_v43 = vadd.f32 %v3799_v54, %v3714_v21 }
 0x4de   : > { %5035 = vst.msk [vmem:[#allocation3] sm:$0xff] %vm1227_vm3, %v4971_v62  ;;  %v4133_v62 = vld [vmem:[#allocation3 + $0x20] sm:$0xff] }
 0x4df   : > { %3927 = vst.msk [vmem:[#allocation3 + $0x190] sm:$0xff] %vm1227_vm3, %v3863_v43  ;;  %v3976_v46 = vpop.f32.mrf.mxu3 }
 0x4e0   : > { %v4196_v42 = vadd.f32 %v4132_v22, %v3976_v46 }
 0x4e1   : > { %v4528_v51 = vld [vmem:[#allocation3 + $0x10] sm:$0xff] }
 0x4e2   : > { %v4592_v19 = vadd.f32 %v4528_v51, %v8886_v33  ;;  %4260 = vst.msk [vmem:[#allocation3 + $0x18] sm:$0xff] %vm1227_vm3, %v4196_v42 }
 0x4e3   : > { %v4908_v1 = vld [vmem:[#allocation3 + $0x8] sm:$0xff] }
 0x4e4   : > { %v4972_v16 = vadd.f32 %v4908_v1, %v9087_v32  ;;  %4656 = vst.msk [vmem:[#allocation3 + $0x10] sm:$0xff] %vm1227_vm3, %v4592_v19  ;;  %v3716_v12 = vpop.f32.mrf.mxu2  ;;  %6653 = vmatmul.msk.bf16.gmra.mxu3 %vm1227_vm3, %v7063_v15  ;;  %6726 = vmatmul.msk.bf16.gmra.mxu1 %vm1227_vm3, %v8821_v0  ;;  %v9381_v0 = vld [vmem:[%s10182_s7] ss:$0 sm:$0xff]  ;;  %v3801_v19 = vld [vmem:[#allocation3 + $0x1a0] sm:$0xff]  ;;  %v9390_v15 = vpop.f32.mrf.mxu0 }
 0x4e5   : > { %v3864_v33 = vadd.f32 %v3800_v30, %v3716_v12  ;;  %v5099_v22 = vld [vmem:[#allocation3] sm:$0xff]  ;;  %v9385_v12 = vpop.f32.mrf.mxu1 }
 0x4e6   : > { %5036 = vst.msk [vmem:[#allocation3 + $0x8] sm:$0xff] %vm1227_vm3, %v4972_v16 }
 0x4e7   : > { %3928 = vst.msk [vmem:[#allocation3 + $0x198] sm:$0xff] %vm1227_vm3, %v3864_v33  ;;  %v3979_v32 = vpop.f32.mrf.mxu3 }
 0x4e8   : > { %6701 = vmatmul.msk.bf16.gmra.mxu0 %vm1227_vm3, %v10440_v59  ;;  %v4197_v21 = vadd.f32 %v4133_v62, %v3979_v32 }
 0x4e9   : > { %v4529_v54 = vld [vmem:[#allocation3 + $0x18] sm:$0xff] }
 0x4ea   : > { %v4593_v43 = vadd.f32 %v4529_v54, %v8904_v9  ;;  %4261 = vst.msk [vmem:[#allocation3 + $0x20] sm:$0xff] %vm1227_vm3, %v4197_v21  ;;  %v5151_v9 = vadd.f32 %v9381_v0, %v5099_v22 }
 0x4eb   : > { %v4909_v46 = vld [vmem:[#allocation3 + $0x10] sm:$0xff] }
 0x4ec   : > { %v4973_v42 = vadd.f32 %v4909_v46, %v9097_v27  ;;  %4657 = vst.msk [vmem:[#allocation3 + $0x18] sm:$0xff] %vm1227_vm3, %v4593_v43  ;;  %v3719_v51 = vpop.f32.mrf.mxu2  ;;  %v4134_v27 = vld [vmem:[#allocation3 + $0x28] sm:$0xff]  ;;  %v5199_v54 = vmax.f32 %v5151_v9, 0.0 }
 0x4ed   : > { %v3865_v1 = vadd.f32 %v3801_v19, %v3719_v51  ;;  %v5100_v16 = vld [vmem:[#allocation3 + $0x8] sm:$0xff] }
 0x4ee   : > { %5037 = vst.msk [vmem:[#allocation3 + $0x10] sm:$0xff] %vm1227_vm3, %v4973_v42  ;;  %v5152_v30 = vadd.f32 %v9381_v0, %v5100_v16  ;;  %v3802_v51 = vld [vmem:[#allocation3 + $0x1a8] sm:$0xff] }
 0x4ef   : > { %3929 = vst.msk [vmem:[#allocation3 + $0x1a0] sm:$0xff] %vm1227_vm3, %v3865_v1  ;;  %v3981_v33 = vpop.f32.mrf.mxu3  ;;  %v7064_v19 = vld [vmem:[#allocation2 + $0x78] sm:$0xff] }
 0x4f0   : > { %v4198_v59 = vadd.f32 %v4134_v27, %v3981_v33  ;;  %v5200_v32 = vmax.f32 %v5152_v30, 0.0  ;;  %v5247_v30 = vpack.c.bf16 %v5199_v54, %v5199_v54  ;;  %v4135_v27 = vld [vmem:[#allocation3 + $0x30] sm:$0xff] }
 0x4f1   : > { %v4530_v62 = vld [vmem:[#allocation3 + $0x20] sm:$0xff] }
 0x4f2   : > { %v4594_v21 = vadd.f32 %v4530_v62, %v8917_v11  ;;  %4262 = vst.msk [vmem:[#allocation3 + $0x28] sm:$0xff] %vm1227_vm3, %v4198_v59  ;;  %v5248_v43 = vpack.c.bf16 %v5200_v32, %v5200_v32  ;;  %v9405_v59 = vpop.f32.mrf.mxu1 }
 0x4f3   : > { %v4910_v46 = vld [vmem:[#allocation3 + $0x18] sm:$0xff] }
 0x4f4   : > { %v4974_v22 = vadd.f32 %v4910_v46, %v9114_v35  ;;  %4658 = vst.msk [vmem:[#allocation3 + $0x20] sm:$0xff] %vm1227_vm3, %v4594_v21  ;;  %v3721_v42 = vpop.f32.mrf.mxu2  ;;  %6654 = vmatmul.msk.bf16.gmra.mxu3 %vm1227_vm3, %v7064_v19  ;;  %6727 = vmatmul.msk.bf16.gmra.mxu1 %vm1227_vm3, %v8852_v41  ;;  %v5304_v1 = vshrl.u32 %v5248_v43, 16  ;;  %v10441_v35 = vld [vmem:[#allocation28_spill] sm:$0xff]  ;;  %v9407_v21 = vpop.f32.mrf.mxu0  ;;  %v5307_v19 = vshll.u32 %v5248_v43, 16 }
 0x4f5   : > { %v3866_v16 = vadd.f32 %v3802_v51, %v3721_v42  ;;  %v5101_v11 = vld [vmem:[#allocation3 + $0x10] sm:$0xff]  ;;  %10442 = vst [vmem:[#allocation75_spill] sm:$0xff] %v9407_v21  ;;  %v5299_v51 = vshrl.u32 %v5247_v30, 16 }
 0x4f6   : > { %5038 = vst.msk [vmem:[#allocation3 + $0x18] sm:$0xff] %vm1227_vm3, %v4974_v22  ;;  %v5153_v9 = vadd.f32 %v9381_v0, %v5101_v11  ;;  %v5306_v41 = vrot.slane %v5304_v1, 7  ;;  %v10443_v22 = vld [vmem:[#allocation31_spill] sm:$0xff] }
 0x4f7   : > { %3930 = vst.msk [vmem:[#allocation3 + $0x1a8] sm:$0xff] %vm1227_vm3, %v3866_v16  ;;  %v3984_v33 = vpop.f32.mrf.mxu3 }
 0x4f8   : > { %6702 = vmatmul.msk.bf16.gmra.mxu0 %vm1227_vm3, %v10441_v35  ;;  %v4199_v32 = vadd.f32 %v4135_v27, %v3984_v33  ;;  %v5201_v62 = vmax.f32 %v5153_v9, 0.0  ;;  %v3803_v9 = vld [vmem:[#allocation3 + $0x1b0] sm:$0xff]  ;;  %v5309_v1 = vor.u32 %v5307_v19, %v5306_v41 }
 0x4f9   : > { %v4531_v46 = vld [vmem:[#allocation3 + $0x28] sm:$0xff] }
 0x4fa   : > { %v4595_v42 = vadd.f32 %v4531_v46, %v10443_v22  ;;  %4263 = vst.msk [vmem:[#allocation3 + $0x30] sm:$0xff] %vm1227_vm3, %v4199_v32  ;;  %v5249_v54 = vpack.c.bf16 %v5201_v62, %v5201_v62  ;;  %v6739_v32 = vrot.slane %v5299_v51, 11  ;;  %v4136_v62 = vld [vmem:[#allocation3 + $0x38] sm:$0xff] }
 0x4fb   : > { %v4911_v16 = vld [vmem:[#allocation3 + $0x20] sm:$0xff] }
 0x4fc   : > { %v4975_v11 = vadd.f32 %v4911_v16, %v9124_v63  ;;  %4659 = vst.msk [vmem:[#allocation3 + $0x28] sm:$0xff] %vm1227_vm3, %v4595_v42  ;;  %v3724_v35 = vpop.f32.mrf.mxu2  ;;  %v5313_v33 = vshrl.u32 %v5249_v54, 16  ;;  %v5316_v43 = vshll.u32 %v5249_v54, 16  ;;  %v5310_v22 = vsel %vm9414_vm8, %v6739_v32, %v5309_v1  ;;  %v9428_v51 = vpop.f32.mrf.mxu0  ;;  %v3804_v1 = vld [vmem:[#allocation3 + $0x1b8] sm:$0xff]  ;;  %v7065_v32 = vld [vmem:[#allocation2 + $0x80] sm:$0xff] }
 0x4fd   : > { %v3867_v27 = vadd.f32 %v3803_v9, %v3724_v35  ;;  %v5311_v42 = vrot.slane %v5306_v41, 4  ;;  %v9422_v35 = vpop.f32.mrf.mxu1 }
 0x4fe   : > { %5039 = vst.msk [vmem:[#allocation3 + $0x20] sm:$0xff] %vm1227_vm3, %v4975_v11  ;;  %v5315_v30 = vrot.slane %v5313_v33, 7  ;;  %v5655_v33 = vunpack.c.l.b16 %v5310_v22 }
 0x4ff   : > { %3931 = vst.msk [vmem:[#allocation3 + $0x1b0] sm:$0xff] %vm1227_vm3, %v3867_v27  ;;  %v3986_v63 = vpop.f32.mrf.mxu3 }
 0x500   : > { %v4200_v46 = vadd.f32 %v4136_v62, %v3986_v63  ;;  %v5318_v19 = vor.u32 %v5316_v43, %v5315_v30  ;;  %v10446_v43 = vld [vmem:[#allocation29_spill] sm:$0xff]  ;;  %v4137_v62 = vld [vmem:[#allocation3 + $0x40] sm:$0xff] }
 0x501   : > { %v4532_v16 = vld [vmem:[#allocation3 + $0x30] sm:$0xff] }
 0x502   : > { %v4596_v9 = vadd.f32 %v4532_v16, %v8957_v47  ;;  %4264 = vst.msk [vmem:[#allocation3 + $0x38] sm:$0xff] %vm1227_vm3, %v4200_v46  ;;  %v5319_v54 = vsel %vm9414_vm8, %v5311_v42, %v5318_v19 }
 0x503   : > { %v4912_v11 = vld [vmem:[#allocation3 + $0x28] sm:$0xff]  ;;  %v5656_v27 = vunpack.c.l.b16 %v5319_v54 }
 0x504   : > { %v4976_v63 = vadd.f32 %v4912_v11, %v9141_v45  ;;  %4660 = vst.msk [vmem:[#allocation3 + $0x30] sm:$0xff] %vm1227_vm3, %v4596_v9  ;;  %v3726_v41 = vpop.f32.mrf.mxu2  ;;  %6655 = vmatmul.msk.bf16.gmra.mxu3 %vm1227_vm3, %v7065_v32  ;;  %6728 = vmatmul.msk.bf16.gmra.mxu1 %vm1227_vm3, %v8883_v18  ;;  %v3805_v11 = vld [vmem:[#allocation3 + $0x1c0] sm:$0xff] }
 0x505   : > { %v3868_v47 = vadd.f32 %v3804_v1, %v3726_v41  ;;  %v5687_v30 = vpack.c.b16 %v5656_v27, %v5655_v33  ;;  %v5102_v19 = vld [vmem:[#allocation3 + $0x20] sm:$0xff]  ;;  %v9442_v16 = vpop.f32.mrf.mxu1  ;;  %v9446_v33 = vpop.f32.mrf.mxu0 }
 0x506   : > { %5040 = vst.msk [vmem:[#allocation3 + $0x28] sm:$0xff] %vm1227_vm3, %v4976_v63  ;;  %v9449_v41 = vld [vmem:[#allocation2 + $0x110] sm:$0xff]   ;;  %v5154_v1 = vadd.f32 %v9381_v0, %v5102_v19 }
 0x507   : > { %3932 = vst.msk [vmem:[#allocation3 + $0x1b8] sm:$0xff] %vm1227_vm3, %v3868_v47  ;;  %v3989_v45 = vpop.f32.mrf.mxu3  ;;  %6755 = vmatmul.msk.bf16.vlgmr.msra.gmra.mxu2 %vm1227_vm3, %v5687_v30  ;;  %v4138_v47 = vld [vmem:[#allocation3 + $0x48] sm:$0xff] }
 0x508   : > { %6703 = vmatmul.msk.bf16.gmra.mxu0 %vm1227_vm3, %v10446_v43  ;;  %v4201_v46 = vadd.f32 %v4137_v62, %v3989_v45 }
 0x509   : > { %v4533_v22 = vld [vmem:[#allocation3 + $0x38] sm:$0xff] }
 0x50a   : > { %v4597_v42 = vadd.f32 %v4533_v22, %v8972_v57  ;;  %4265 = vst.msk [vmem:[#allocation3 + $0x40] sm:$0xff] %vm1227_vm3, %v4201_v46  ;;  %v4326_v57 = vshll.u32 %v9449_v41, 16  ;;  %v5202_v22 = vmax.f32 %v5154_v1, 0.0  ;;  %v10448_v1 = vld [vmem:[#allocation74_spill] sm:$0xff] }
 0x50b   : > { %v4913_v18 = vld [vmem:[#allocation3 + $0x30] sm:$0xff] }
 0x50c   : > { %v4977_v9 = vadd.f32 %v4913_v18, %v9151_v31  ;;  %4661 = vst.msk [vmem:[#allocation3 + $0x38] sm:$0xff] %vm1227_vm3, %v4597_v42  ;;  %v3729_v54 = vpop.f32.mrf.mxu2  ;;  %v9457_v46 = vrot.slane %v4326_v57, 1 }
 0x50d   : > { %v3869_v27 = vadd.f32 %v3805_v11, %v3729_v54  ;;  %v5103_v63 = vld [vmem:[#allocation3 + $0x28] sm:$0xff]  ;;  %v7067_v11 = vld [vmem:[#allocation2 + $0x88] sm:$0xff]  ;;  %v9464_v57 = vpop.f32.mrf.mxu1 }
 0x50e   : > { %5041 = vst.msk [vmem:[#allocation3 + $0x30] sm:$0xff] %vm1227_vm3, %v4977_v9  ;;  %v5155_v32 = vadd.f32 %v9381_v0, %v5103_v63  ;;  %v3806_v54 = vld [vmem:[#allocation3 + $0x1c8] sm:$0xff] }
 0x50f   : > { %3933 = vst.msk [vmem:[#allocation3 + $0x1c0] sm:$0xff] %vm1227_vm3, %v3869_v27  ;;  %v3991_v31 = vpop.f32.mrf.mxu3 }
 0x510   : > { %v4202_v30 = vadd.f32 %v4138_v47, %v3991_v31  ;;  %v5203_v43 = vmax.f32 %v5155_v32, 0.0  ;;  %10447 = vst [vmem:[#allocation76_spill] sm:$0xff] %v9457_v46  ;;  %v5250_v31 = vpack.c.bf16 %v5202_v22, %v5202_v22  ;;  %v9471_v47 = vpop.f32.mrf.mxu0 }
 0x511   : > { %v4534_v45 = vld [vmem:[#allocation3 + $0x40] sm:$0xff] }
 0x512   : > { %v4598_v62 = vadd.f32 %v4534_v45, %v8992_v28  ;;  %4266 = vst.msk [vmem:[#allocation3 + $0x48] sm:$0xff] %vm1227_vm3, %v4202_v30  ;;  %v5251_v42 = vpack.c.bf16 %v5203_v43, %v5203_v43  ;;  %v4139_v30 = vld [vmem:[#allocation3 + $0x50] sm:$0xff] }
 0x513   : > { %v4914_v18 = vld [vmem:[#allocation3 + $0x38] sm:$0xff] }
 0x514   : > { %v4978_v19 = vadd.f32 %v4914_v18, %v9169_v7  ;;  %4662 = vst.msk [vmem:[#allocation3 + $0x40] sm:$0xff] %vm1227_vm3, %v4598_v62  ;;  %v3731_v9 = vpop.f32.mrf.mxu2  ;;  %6656 = vmatmul.msk.bf16.gmra.mxu3 %vm1227_vm3, %v7067_v11  ;;  %6729 = vmatmul.msk.bf16.gmra.mxu1 %vm1227_vm3, %v8914_v25  ;;  %v5326_v28 = vshrl.u32 %v5251_v42, 16  ;;  %v4329_v7 = vsel %vm1566_vm4, %v10448_v1, %v9457_v46  ;;  %v5329_v11 = vshll.u32 %v5251_v42, 16  ;;  %v3807_v1 = vld [vmem:[#allocation3 + $0x1d0] sm:$0xff] }
 0x515   : > { %v3870_v27 = vadd.f32 %v3806_v54, %v3731_v9  ;;  %v5104_v63 = vld [vmem:[#allocation3 + $0x30] sm:$0xff]  ;;  %v5321_v54 = vshrl.u32 %v5250_v31, 16  ;;  %v4140_v31 = vld [vmem:[#allocation3 + $0x58] sm:$0xff]  ;;  %v9481_v42 = vpop.f32.mrf.mxu1 }
 0x516   : > { %5042 = vst.msk [vmem:[#allocation3 + $0x38] sm:$0xff] %vm1227_vm3, %v4978_v19  ;;  %v5156_v32 = vadd.f32 %v9381_v0, %v5104_v63  ;;  %v5328_v62 = vrot.slane %v5326_v28, 7 }
 0x517   : > { %3934 = vst.msk [vmem:[#allocation3 + $0x1c8] sm:$0xff] %vm1227_vm3, %v3870_v27  ;;  %v3994_v25 = vpop.f32.mrf.mxu3  ;;  %v6740_v28 = vrot.slane %v5321_v54, 11 }
 0x518   : > { %6704 = vmatmul.msk.bf16.gmra.mxu0 %vm1227_vm3, %v4329_v7  ;;  %v4203_v43 = vadd.f32 %v4139_v30, %v3994_v25  ;;  %v5204_v45 = vmax.f32 %v5156_v32, 0.0  ;;  %v5331_v7 = vor.u32 %v5329_v11, %v5328_v62  ;;  %v10449_v11 = vld [vmem:[#allocation62_spill] sm:$0xff] }
 0x519   : > { %v4535_v18 = vld [vmem:[#allocation3 + $0x48] sm:$0xff] }
 0x51a   : > { %v4599_v19 = vadd.f32 %v4535_v18, %v9008_v29  ;;  %4267 = vst.msk [vmem:[#allocation3 + $0x50] sm:$0xff] %vm1227_vm3, %v4203_v43  ;;  %v5252_v9 = vpack.c.bf16 %v5204_v45, %v5204_v45  ;;  %v5333_v45 = vrot.slane %v5328_v62, 4 }
 0x51b   : > { %v4915_v22 = vld [vmem:[#allocation3 + $0x40] sm:$0xff] }
 0x51c   : > { %v4979_v63 = vadd.f32 %v4915_v22, %v9183_v14  ;;  %4663 = vst.msk [vmem:[#allocation3 + $0x48] sm:$0xff] %vm1227_vm3, %v4599_v19  ;;  %v3734_v27 = vpop.f32.mrf.mxu2  ;;  %v5335_v46 = vshrl.u32 %v5252_v9, 16  ;;  %v5338_v29 = vshll.u32 %v5252_v9, 16  ;;  %v5332_v14 = vsel %vm9414_vm8, %v6740_v28, %v5331_v7  ;;  %v7068_v7 = vld [vmem:[#allocation2 + $0x90] sm:$0xff] }
 0x51d   : > { %v3871_v25 = vadd.f32 %v3807_v1, %v3734_v27  ;;  %v5657_v54 = vunpack.c.l.b16 %v5332_v14 }
 0x51e   : > { %5043 = vst.msk [vmem:[#allocation3 + $0x40] sm:$0xff] %vm1227_vm3, %v4979_v63  ;;  %v5337_v32 = vrot.slane %v5335_v46, 7 }
 0x51f   : > { %3935 = vst.msk [vmem:[#allocation3 + $0x1d0] sm:$0xff] %vm1227_vm3, %v3871_v25  ;;  %v3996_v30 = vpop.f32.mrf.mxu3  ;;  %v3808_v25 = vld [vmem:[#allocation3 + $0x1d8] sm:$0xff] }
 0x520   : > { %v4204_v43 = vadd.f32 %v4140_v31, %v3996_v30  ;;  %v5340_v18 = vor.u32 %v5338_v29, %v5337_v32  ;;  %v4141_v29 = vld [vmem:[#allocation3 + $0x60] sm:$0xff]  ;;  %v9497_v31 = vpop.f32.mrf.mxu1 }
 0x521   : > { %v4536_v19 = vld [vmem:[#allocation3 + $0x50] sm:$0xff] }
 0x522   : > { %v4600_v22 = vadd.f32 %v4536_v19, %v10449_v11  ;;  %4268 = vst.msk [vmem:[#allocation3 + $0x58] sm:$0xff] %vm1227_vm3, %v4204_v43  ;;  %v5341_v46 = vsel %vm9414_vm8, %v5333_v45, %v5340_v18  ;;  %v10450_v43 = vld [vmem:[#allocation63_spill] sm:$0xff] }
 0x523   : > { %v4916_v9 = vld [vmem:[#allocation3 + $0x48] sm:$0xff]  ;;  %v5658_v63 = vunpack.c.l.b16 %v5341_v46  ;;  %v3809_v11 = vld [vmem:[#allocation3 + $0x1e0] sm:$0xff] }
 0x524   : > { %v4980_v27 = vadd.f32 %v4916_v9, %v9199_v26  ;;  %4664 = vst.msk [vmem:[#allocation3 + $0x50] sm:$0xff] %vm1227_vm3, %v4600_v22  ;;  %v3736_v1 = vpop.f32.mrf.mxu2  ;;  %6657 = vmatmul.msk.bf16.gmra.mxu3 %vm1227_vm3, %v7068_v7  ;;  %6730 = vmatmul.msk.bf16.gmra.mxu1 %vm1227_vm3, %v8949_v37 }
 0x525   : > { %v3872_v62 = vadd.f32 %v3808_v25, %v3736_v1  ;;  %v5688_v28 = vpack.c.b16 %v5658_v63, %v5657_v54  ;;  %v5105_v37 = vld [vmem:[#allocation3 + $0x40] sm:$0xff] }
 0x526   : > { %5044 = vst.msk [vmem:[#allocation3 + $0x48] sm:$0xff] %vm1227_vm3, %v4980_v27  ;;  %v5157_v9 = vadd.f32 %v9381_v0, %v5105_v37  ;;  %v4142_v27 = vld [vmem:[#allocation3 + $0x68] sm:$0xff] }
 0x527   : > { %3936 = vst.msk [vmem:[#allocation3 + $0x1d8] sm:$0xff] %vm1227_vm3, %v3872_v62  ;;  %v3999_v32 = vpop.f32.mrf.mxu3  ;;  %6756 = vmatmul.msk.bf16.gmra.mxu2 %vm1227_vm3, %v5688_v28 }
 0x528   : > { %v4205_v26 = vadd.f32 %v4141_v29, %v3999_v32  ;;  %v5205_v28 = vmax.f32 %v5157_v9, 0.0 }
 0x529   : > { %v4537_v30 = vld [vmem:[#allocation3 + $0x58] sm:$0xff] }
 0x52a   : > { %v4601_v14 = vadd.f32 %v4537_v30, %v10450_v43  ;;  %4269 = vst.msk [vmem:[#allocation3 + $0x60] sm:$0xff] %vm1227_vm3, %v4205_v26  ;;  %v9509_v26 = vpop.f32.mrf.mxu1 }
 0x52b   : > { %v4917_v45 = vld [vmem:[#allocation3 + $0x50] sm:$0xff] }
 0x52c   : > { %v4981_v18 = vadd.f32 %v4917_v45, %v9217_v34  ;;  %4665 = vst.msk [vmem:[#allocation3 + $0x58] sm:$0xff] %vm1227_vm3, %v4601_v14  ;;  %v3739_v19 = vpop.f32.mrf.mxu2  ;;  %v10451_v34 = vld [vmem:[#allocation32_spill] sm:$0xff] }
 0x52d   : > { %v3873_v22 = vadd.f32 %v3809_v11, %v3739_v19  ;;  %v5106_v46 = vld [vmem:[#allocation3 + $0x48] sm:$0xff] }
 0x52e   : > { %5045 = vst.msk [vmem:[#allocation3 + $0x50] sm:$0xff] %vm1227_vm3, %v4981_v18  ;;  %v5158_v54 = vadd.f32 %v9381_v0, %v5106_v46  ;;  %v3810_v14 = vld [vmem:[#allocation3 + $0x1e8] sm:$0xff]  ;;  %v4143_v46 = vld [vmem:[#allocation3 + $0x70] sm:$0xff] }
 0x52f   : > { %3937 = vst.msk [vmem:[#allocation3 + $0x1e0] sm:$0xff] %vm1227_vm3, %v3873_v22  ;;  %v4001_v63 = vpop.f32.mrf.mxu3  ;;  %v7069_v45 = vld [vmem:[#allocation2 + $0x98] sm:$0xff]  ;;  %v5253_v22 = vpack.c.bf16 %v5205_v28, %v5205_v28 }
 0x530   : > { %v4206_v1 = vadd.f32 %v4142_v27, %v4001_v63  ;;  %v5206_v25 = vmax.f32 %v5158_v54, 0.0 }
 0x531   : > { %v4538_v7 = vld [vmem:[#allocation3 + $0x60] sm:$0xff] }
 0x532   : > { %v4602_v62 = vadd.f32 %v4538_v7, %v10451_v34  ;;  %4270 = vst.msk [vmem:[#allocation3 + $0x68] sm:$0xff] %vm1227_vm3, %v4206_v1  ;;  %v5254_v32 = vpack.c.bf16 %v5206_v25, %v5206_v25  ;;  %v10452_v1 = vld [vmem:[#allocation66_spill] sm:$0xff]  ;;  %v5343_v7 = vshrl.u32 %v5253_v22, 16 }
 0x533   : > { %v4918_v29 = vld [vmem:[#allocation3 + $0x58] sm:$0xff] }
 0x534   : > { %v4982_v30 = vadd.f32 %v4918_v29, %v9229_v53  ;;  %4666 = vst.msk [vmem:[#allocation3 + $0x60] sm:$0xff] %vm1227_vm3, %v4602_v62  ;;  %v3741_v43 = vpop.f32.mrf.mxu2  ;;  %6658 = vmatmul.msk.bf16.gmra.mxu3 %vm1227_vm3, %v7069_v45  ;;  %6731 = vmatmul.msk.bf16.gmra.mxu1 %vm1227_vm3, %v8980_v2  ;;  %v5348_v37 = vshrl.u32 %v5254_v32, 16  ;;  %v5351_v34 = vshll.u32 %v5254_v32, 16  ;;  %v4144_v22 = vld [vmem:[#allocation3 + $0x78] sm:$0xff] }
 0x535   : > { %v3874_v18 = vadd.f32 %v3810_v14, %v3741_v43  ;;  %v5107_v19 = vld [vmem:[#allocation3 + $0x50] sm:$0xff] }
 0x536   : > { %5046 = vst.msk [vmem:[#allocation3 + $0x58] sm:$0xff] %vm1227_vm3, %v4982_v30  ;;  %v5159_v11 = vadd.f32 %v9381_v0, %v5107_v19  ;;  %v5350_v63 = vrot.slane %v5348_v37, 7  ;;  %v3811_v30 = vld [vmem:[#allocation3 + $0x1f0] sm:$0xff]  ;;  %v6741_v37 = vrot.slane %v5343_v7, 11 }
 0x537   : > { %3938 = vst.msk [vmem:[#allocation3 + $0x1e8] sm:$0xff] %vm1227_vm3, %v3874_v18  ;;  %v4004_v53 = vpop.f32.mrf.mxu3  ;;  %v9523_v18 = vpop.f32.mrf.mxu1 }
 0x538   : > { %v4207_v9 = vadd.f32 %v4143_v46, %v4004_v53  ;;  %v5207_v54 = vmax.f32 %v5159_v11, 0.0  ;;  %v5353_v43 = vor.u32 %v5351_v34, %v5350_v63  ;;  %v5355_v46 = vrot.slane %v5350_v63, 4 }
 0x539   : > { %v4539_v27 = vld [vmem:[#allocation3 + $0x68] sm:$0xff] }
 0x53a   : > { %v4603_v25 = vadd.f32 %v4539_v27, %v10452_v1  ;;  %4271 = vst.msk [vmem:[#allocation3 + $0x70] sm:$0xff] %vm1227_vm3, %v4207_v9  ;;  %v5255_v2 = vpack.c.bf16 %v5207_v54, %v5207_v54  ;;  %v10453_v27 = vld [vmem:[#allocation68_spill] sm:$0xff] }
 0x53b   : > { %v4919_v62 = vld [vmem:[#allocation3 + $0x60] sm:$0xff] }
 0x53c   : > { %v4983_v29 = vadd.f32 %v4919_v62, %v9251_v56  ;;  %4667 = vst.msk [vmem:[#allocation3 + $0x68] sm:$0xff] %vm1227_vm3, %v4603_v25  ;;  %v3744_v28 = vpop.f32.mrf.mxu2  ;;  %v5357_v14 = vshrl.u32 %v5255_v2, 16  ;;  %v5360_v11 = vshll.u32 %v5255_v2, 16  ;;  %v5354_v56 = vsel %vm9414_vm8, %v6741_v37, %v5353_v43 }
 0x53d   : > { %v3875_v45 = vadd.f32 %v3811_v30, %v3744_v28  ;;  %v5659_v2 = vunpack.c.l.b16 %v5354_v56  ;;  %v3812_v28 = vld [vmem:[#allocation3 + $0x1f8] sm:$0xff]  ;;  %v7070_v30 = vld [vmem:[#allocation2 + $0xa0] sm:$0xff] }
 0x53e   : > { %5047 = vst.msk [vmem:[#allocation3 + $0x60] sm:$0xff] %vm1227_vm3, %v4983_v29  ;;  %v5359_v19 = vrot.slane %v5357_v14, 7 }
 0x53f   : > { %3939 = vst.msk [vmem:[#allocation3 + $0x1f0] sm:$0xff] %vm1227_vm3, %v3875_v45  ;;  %v4006_v32 = vpop.f32.mrf.mxu3  ;;  %v4145_v45 = vld [vmem:[#allocation3 + $0x80] sm:$0xff] }
 0x540   : > { %v4208_v53 = vadd.f32 %v4144_v22, %v4006_v32  ;;  %v5362_v9 = vor.u32 %v5360_v11, %v5359_v19  ;;  %v10454_v11 = vld [vmem:[#allocation33_spill] sm:$0xff] }
 0x541   : > { %v4540_v54 = vld [vmem:[#allocation3 + $0x70] sm:$0xff] }
 0x542   : > { %v4604_v1 = vadd.f32 %v4540_v54, %v10453_v27  ;;  %4272 = vst.msk [vmem:[#allocation3 + $0x78] sm:$0xff] %vm1227_vm3, %v4208_v53  ;;  %v5363_v25 = vsel %vm9414_vm8, %v5355_v46, %v5362_v9  ;;  %v4146_v27 = vld [vmem:[#allocation3 + $0x88] sm:$0xff] }
 0x543   : > { %v4920_v7 = vld [vmem:[#allocation3 + $0x68] sm:$0xff]  ;;  %v5660_v34 = vunpack.c.l.b16 %v5363_v25 }
 0x544   : > { %v4984_v62 = vadd.f32 %v4920_v7, %v9270_v8  ;;  %4668 = vst.msk [vmem:[#allocation3 + $0x70] sm:$0xff] %vm1227_vm3, %v4604_v1  ;;  %v3746_v29 = vpop.f32.mrf.mxu2  ;;  %6659 = vmatmul.msk.bf16.gmra.mxu3 %vm1227_vm3, %v7070_v30  ;;  %6732 = vmatmul.msk.bf16.gmra.mxu1 %vm1227_vm3, %v9011_v6  ;;  %v9541_v8 = vpop.f32.mrf.mxu1 }
 0x545   : > { %v3876_v63 = vadd.f32 %v3812_v28, %v3746_v29  ;;  %v5689_v43 = vpack.c.b16 %v5660_v34, %v5659_v2  ;;  %v5108_v6 = vld [vmem:[#allocation3 + $0x60] sm:$0xff] }
 0x546   : > { %5048 = vst.msk [vmem:[#allocation3 + $0x68] sm:$0xff] %vm1227_vm3, %v4984_v62  ;;  %v5160_v46 = vadd.f32 %v9381_v0, %v5108_v6  ;;  %v10455_v34 = vld [vmem:[#allocation71_spill] sm:$0xff] }
 0x547   : > { %3940 = vst.msk [vmem:[#allocation3 + $0x1f8] sm:$0xff] %vm1227_vm3, %v3876_v63  ;;  %v4009_v14 = vpop.f32.mrf.mxu3  ;;  %6757 = vmatmul.msk.bf16.gmra.mxu2 %vm1227_vm3, %v5689_v43  ;;  %v7071_v63 = vld [vmem:[#allocation2 + $0xa8] sm:$0xff] }
 0x548   : > { %v4209_v37 = vadd.f32 %v4145_v45, %v4009_v14 }
 0x549   : > { %v4541_v19 = vld [vmem:[#allocation3 + $0x78] sm:$0xff] }
 0x54a   : > { %v4605_v32 = vadd.f32 %v4541_v19, %v10454_v11  ;;  %4273 = vst.msk [vmem:[#allocation3 + $0x80] sm:$0xff] %vm1227_vm3, %v4209_v37  ;;  %v4147_v11 = vld [vmem:[#allocation3 + $0x90] sm:$0xff] }
 0x54b   : > { %v4921_v22 = vld [vmem:[#allocation3 + $0x70] sm:$0xff] }
 0x54c   : > { %v4985_v53 = vadd.f32 %v4921_v22, %v9286_v3  ;;  %4669 = vst.msk [vmem:[#allocation3 + $0x78] sm:$0xff] %vm1227_vm3, %v4605_v32  ;;  %v9550_v2 = vpop.f32.mrf.mxu1  ;;  %v5208_v3 = vmax.f32 %v5160_v46, 0.0 }
 0x54d   : > { %v5109_v56 = vld [vmem:[#allocation3 + $0x68] sm:$0xff] }
 0x54e   : > { %5049 = vst.msk [vmem:[#allocation3 + $0x70] sm:$0xff] %vm1227_vm3, %v4985_v53  ;;  %v5161_v9 = vadd.f32 %v9381_v0, %v5109_v56  ;;  %v5256_v37 = vpack.c.bf16 %v5208_v3, %v5208_v3  ;;  %v4148_v3 = vld [vmem:[#allocation3 + $0x98] sm:$0xff] }
 0x54f   : > { %v4011_v54 = vpop.f32.mrf.mxu3 }
 0x550   : > { %v4210_v1 = vadd.f32 %v4146_v27, %v4011_v54  ;;  %v5209_v25 = vmax.f32 %v5161_v9, 0.0  ;;  %v5365_v46 = vshrl.u32 %v5256_v37, 16 }
 0x551   : > { %v4542_v7 = vld [vmem:[#allocation3 + $0x80] sm:$0xff] }
 0x552   : > { %v4606_v62 = vadd.f32 %v4542_v7, %v10455_v34  ;;  %4274 = vst.msk [vmem:[#allocation3 + $0x88] sm:$0xff] %vm1227_vm3, %v4210_v1  ;;  %v5257_v29 = vpack.c.bf16 %v5209_v25, %v5209_v25  ;;  %v6742_v7 = vrot.slane %v5365_v46, 11 }
 0x553   : > { %v4922_v28 = vld [vmem:[#allocation3 + $0x78] sm:$0xff] }
 0x554   : > { %v4986_v30 = vadd.f32 %v4922_v28, %v9307_v4  ;;  %4670 = vst.msk [vmem:[#allocation3 + $0x80] sm:$0xff] %vm1227_vm3, %v4606_v62  ;;  %6660 = vmatmul.msk.bf16.gmra.mxu3 %vm1227_vm3, %v7071_v63  ;;  %6733 = vmatmul.msk.bf16.gmra.mxu1 %vm1227_vm3, %v9043_v49  ;;  %v5370_v43 = vshrl.u32 %v5257_v29, 16  ;;  %v5373_v49 = vshll.u32 %v5257_v29, 16  ;;  %v9563_v54 = vpop.f32.mrf.mxu1 }
 0x555   : > { %v5110_v14 = vld [vmem:[#allocation3 + $0x70] sm:$0xff] }
 0x556   : > { %5050 = vst.msk [vmem:[#allocation3 + $0x78] sm:$0xff] %vm1227_vm3, %v4986_v30  ;;  %v5162_v45 = vadd.f32 %v9381_v0, %v5110_v14  ;;  %v5372_v4 = vrot.slane %v5370_v43, 7 }
 0x557   : > { %v4014_v19 = vpop.f32.mrf.mxu3 }
 0x558   : > { %v4211_v32 = vadd.f32 %v4147_v11, %v4014_v19  ;;  %v5210_v22 = vmax.f32 %v5162_v45, 0.0  ;;  %v5375_v1 = vor.u32 %v5373_v49, %v5372_v4  ;;  %v5377_v30 = vrot.slane %v5372_v4, 4 }
 0x559   : > { %v4543_v6 = vld [vmem:[#allocation3 + $0x88] sm:$0xff] }
 0x55a   : > { %v4607_v53 = vadd.f32 %v4543_v6, %v9153_v23  ;;  %4275 = vst.msk [vmem:[#allocation3 + $0x90] sm:$0xff] %vm1227_vm3, %v4211_v32  ;;  %v5258_v56 = vpack.c.bf16 %v5210_v22, %v5210_v22  ;;  %v5376_v29 = vsel %vm9414_vm8, %v6742_v7, %v5375_v1  ;;  %v7072_v32 = vld [vmem:[#allocation2 + $0xb0] sm:$0xff]  ;;  %v4150_v7 = vld [vmem:[#allocation3 + $0xa8] sm:$0xff] }
 0x55b   : > { %v4923_v9 = vld [vmem:[#allocation3 + $0x80] sm:$0xff]  ;;  %v5661_v37 = vunpack.c.l.b16 %v5376_v29 }
 0x55c   : > { %v4987_v27 = vadd.f32 %v4923_v9, %v9322_v39  ;;  %4671 = vst.msk [vmem:[#allocation3 + $0x88] sm:$0xff] %vm1227_vm3, %v4607_v53  ;;  %v5379_v25 = vshrl.u32 %v5258_v56, 16  ;;  %v5382_v62 = vshll.u32 %v5258_v56, 16  ;;  %v4149_v6 = vld [vmem:[#allocation3 + $0xa0] sm:$0xff] }
 0x55e   : > { %5051 = vst.msk [vmem:[#allocation3 + $0x80] sm:$0xff] %vm1227_vm3, %v4987_v27  ;;  %v5381_v34 = vrot.slane %v5379_v25, 7 }
 0x55f   : > { %v4016_v23 = vpop.f32.mrf.mxu3 }
 0x560   : > { %v4212_v28 = vadd.f32 %v4148_v3, %v4016_v23  ;;  %v5384_v63 = vor.u32 %v5382_v62, %v5381_v34 }
 0x561   : > { %v4544_v43 = vld [vmem:[#allocation3 + $0x90] sm:$0xff] }
 0x562   : > { %v4608_v39 = vadd.f32 %v4544_v43, %v9172_v50  ;;  %4276 = vst.msk [vmem:[#allocation3 + $0x98] sm:$0xff] %vm1227_vm3, %v4212_v28  ;;  %v5385_v14 = vsel %vm9414_vm8, %v5377_v30, %v5384_v63  ;;  %v9579_v50 = vpop.f32.mrf.mxu1  ;;  %v7073_v63 = vld [vmem:[#allocation2 + $0xb8] sm:$0xff] }
 0x563   : > { %v4924_v45 = vld [vmem:[#allocation3 + $0x88] sm:$0xff]  ;;  %v5662_v19 = vunpack.c.l.b16 %v5385_v14 }
 0x564   : > { %v4988_v11 = vadd.f32 %v4924_v45, %v9336_v10  ;;  %4672 = vst.msk [vmem:[#allocation3 + $0x90] sm:$0xff] %vm1227_vm3, %v4608_v39  ;;  %6661 = vmatmul.msk.bf16.gmra.mxu3 %vm1227_vm3, %v7072_v32  ;;  %6734 = vmatmul.msk.bf16.gmra.mxu1 %vm1227_vm3, %v9243_v13 }
 0x565   : > { %v5690_v22 = vpack.c.b16 %v5662_v19, %v5661_v37  ;;  %v5111_v49 = vld [vmem:[#allocation3 + $0x80] sm:$0xff]  ;;  %v4151_v37 = vld [vmem:[#allocation3 + $0xb0] sm:$0xff] }
 0x566   : > { %5052 = vst.msk [vmem:[#allocation3 + $0x88] sm:$0xff] %vm1227_vm3, %v4988_v11  ;;  %v5163_v27 = vadd.f32 %v9381_v0, %v5111_v49 }
 0x567   : > { %v4019_v4 = vpop.f32.mrf.mxu3  ;;  %6758 = vmatmul.msk.bf16.gmra.mxu2 %vm1227_vm3, %v5690_v22 }
 0x568   : > { %v4213_v53 = vadd.f32 %v4149_v6, %v4019_v4  ;;  %v10456_v4 = vld [vmem:[#allocation73_spill] sm:$0xff] }
 0x569   : > { %v4545_v56 = vld [vmem:[#allocation3 + $0x98] sm:$0xff] }
 0x56a   : > { %v4609_v10 = vadd.f32 %v4545_v56, %v9186_v48  ;;  %4277 = vst.msk [vmem:[#allocation3 + $0xa0] sm:$0xff] %vm1227_vm3, %v4213_v53  ;;  %v9590_v34 = vpop.f32.mrf.mxu1 }
 0x56b   : > { %v4925_v46 = vld [vmem:[#allocation3 + $0x90] sm:$0xff] }
 0x56c   : > { %v4989_v9 = vadd.f32 %v4925_v46, %v9351_v44  ;;  %4673 = vst.msk [vmem:[#allocation3 + $0x98] sm:$0xff] %vm1227_vm3, %v4609_v10  ;;  %v5211_v44 = vmax.f32 %v5163_v27, 0.0 }
 0x56d   : > { %v5112_v13 = vld [vmem:[#allocation3 + $0x88] sm:$0xff] }
 0x56e   : > { %5053 = vst.msk [vmem:[#allocation3 + $0x90] sm:$0xff] %vm1227_vm3, %v4989_v9  ;;  %v5164_v1 = vadd.f32 %v9381_v0, %v5112_v13  ;;  %v5259_v14 = vpack.c.bf16 %v5211_v44, %v5211_v44 }
 0x56f   : > { %v4021_v25 = vpop.f32.mrf.mxu3 }
 0x570   : > { %v4214_v48 = vadd.f32 %v4150_v7, %v4021_v25  ;;  %v5212_v62 = vmax.f32 %v5164_v1, 0.0  ;;  %v5387_v53 = vshrl.u32 %v5259_v14, 16  ;;  %v4152_v7 = vld [vmem:[#allocation3 + $0xb8] sm:$0xff] }
 0x571   : > { %v4546_v23 = vld [vmem:[#allocation3 + $0xa0] sm:$0xff] }
 0x572   : > { %v4610_v3 = vadd.f32 %v4546_v23, %v9201_v52  ;;  %4278 = vst.msk [vmem:[#allocation3 + $0xa8] sm:$0xff] %vm1227_vm3, %v4214_v48  ;;  %v5260_v28 = vpack.c.bf16 %v5212_v62, %v5212_v62  ;;  %v9601_v22 = vpop.f32.mrf.mxu1  ;;  %v6743_v13 = vrot.slane %v5387_v53, 11  ;;  %v4720_v48 = vrot.slane %v9449_v41, 1 }
 0x573   : > { %v4926_v29 = vld [vmem:[#allocation3 + $0x98] sm:$0xff] }
 0x574   : > { %v4990_v30 = vadd.f32 %v4926_v29, %v9363_v38  ;;  %4674 = vst.msk [vmem:[#allocation3 + $0xa0] sm:$0xff] %vm1227_vm3, %v4610_v3  ;;  %6662 = vmatmul.msk.bf16.gmra.mxu3 %vm1227_vm3, %v7073_v63  ;;  %6735 = vmatmul.msk.bf16.gmra.mxu1 %vm1227_vm3, %v9274_v60  ;;  %v5392_v43 = vshrl.u32 %v5260_v28, 16  ;;  %v5395_v56 = vshll.u32 %v5260_v28, 16  ;;  %v4721_v63 = vsel %vm2257_vm5, %v9263_v40, %v4720_v48  ;;  %v9631_v40 = vld [vmem:[%s10457_s26] ss:$0 sm:$0xff] }
 0x575   : > { %v5113_v39 = vld [vmem:[#allocation3 + $0x90] sm:$0xff] }
 0x576   : > { %5054 = vst.msk [vmem:[#allocation3 + $0x98] sm:$0xff] %vm1227_vm3, %v4990_v30  ;;  %v5165_v52 = vadd.f32 %v9381_v0, %v5113_v39  ;;  %v5394_v38 = vrot.slane %v5392_v43, 7 }
 0x577   : > { %v4024_v45 = vpop.f32.mrf.mxu3 }
 0x578   : > { %v4215_v19 = vadd.f32 %v4151_v37, %v4024_v45  ;;  %v5213_v11 = vmax.f32 %v5165_v52, 0.0  ;;  %v5397_v49 = vor.u32 %v5395_v56, %v5394_v38  ;;  %v5399_v3 = vrot.slane %v5394_v38, 4  ;;  %v6843_v37 = vld [vmem:[%s7502_s30] sm:$0xff]  }
 0x579   : > { %v4547_v32 = vld [vmem:[#allocation3 + $0xa8] sm:$0xff] }
 0x57a   : > { %v4611_v6 = vadd.f32 %v4547_v32, %v10456_v4  ;;  %4279 = vst.msk [vmem:[#allocation3 + $0xb0] sm:$0xff] %vm1227_vm3, %v4215_v19  ;;  %v5261_v60 = vpack.c.bf16 %v5213_v11, %v5213_v11  ;;  %v5398_v23 = vsel %vm9414_vm8, %v6743_v13, %v5397_v49  ;;  %v9619_v52 = vpop.f32.mrf.mxu1  ;;  %v4153_v11 = vld [vmem:[#allocation3 + $0xc0] sm:$0xff]  ;;  %v6844_v32 = vunpack.c.l.bf16 %v6843_v37 }
 0x57b   : > { %v4927_v10 = vld [vmem:[#allocation3 + $0xa0] sm:$0xff]  ;;  %v5663_v43 = vunpack.c.l.b16 %v5398_v23 }
 0x57c   : > { %v4991_v46 = vadd.f32 %v4927_v10, %v9385_v12  ;;  %4675 = vst.msk [vmem:[#allocation3 + $0xa8] sm:$0xff] %vm1227_vm3, %v4611_v6  ;;  %v5401_v9 = vshrl.u32 %v5261_v60, 16  ;;  %v5404_v1 = vshll.u32 %v5261_v60, 16 }
 0x57e   : > { %5055 = vst.msk [vmem:[#allocation3 + $0xa0] sm:$0xff] %vm1227_vm3, %v4991_v46  ;;  %v5403_v27 = vrot.slane %v5401_v9, 7 }
 0x57f   : > { %v4026_v25 = vpop.f32.mrf.mxu3 }
 0x580   : > { %v4216_v62 = vadd.f32 %v4152_v7, %v4026_v25  ;;  %v5406_v44 = vor.u32 %v5404_v1, %v5403_v27  ;;  %v4154_v1 = vld [vmem:[#allocation3 + $0xc8] sm:$0xff] }
 0x581   : > { %v4548_v12 = vld [vmem:[#allocation3 + $0xb0] sm:$0xff] }
 0x582   : > { %v4612_v28 = vadd.f32 %v4548_v12, %v9235_v5  ;;  %4280 = vst.msk [vmem:[#allocation3 + $0xb8] sm:$0xff] %vm1227_vm3, %v4216_v62  ;;  %v5407_v29 = vsel %vm9414_vm8, %v5399_v3, %v5406_v44  ;;  %v7074_v5 = vld [vmem:[#allocation2 + $0xc0] sm:$0xff] }
 0x583   : > { %v4928_v30 = vld [vmem:[#allocation3 + $0xa8] sm:$0xff]  ;;  %v5664_v39 = vunpack.c.l.b16 %v5407_v29  ;;  %v10458_v3 = vld [vmem:[#allocation34_spill] sm:$0xff] }
 0x584   : > { %v4992_v14 = vadd.f32 %v4928_v30, %v9405_v59  ;;  %4676 = vst.msk [vmem:[#allocation3 + $0xb0] sm:$0xff] %vm1227_vm3, %v4612_v28  ;;  %6663 = vmatmul.msk.bf16.gmra.mxu3 %vm1227_vm3, %v7074_v5  ;;  %6736 = vmatmul.msk.bf16.gmra.mxu1 %vm1227_vm3, %v4721_v63 }
 0x585   : > { %v5691_v45 = vpack.c.b16 %v5664_v39, %v5663_v43  ;;  %v5114_v56 = vld [vmem:[#allocation3 + $0xa0] sm:$0xff]  ;;  %v7075_v39 = vld [vmem:[#allocation2 + $0xc8] sm:$0xff] }
 0x586   : > { %5056 = vst.msk [vmem:[#allocation3 + $0xa8] sm:$0xff] %vm1227_vm3, %v4992_v14  ;;  %v5166_v9 = vadd.f32 %v9381_v0, %v5114_v56 }
 0x587   : > { %v4029_v19 = vpop.f32.mrf.mxu3  ;;  %6759 = vmatmul.msk.bf16.gmra.mxu2 %vm1227_vm3, %v5691_v45 }
 0x588   : > { %v4217_v59 = vadd.f32 %v4153_v11, %v4029_v19  ;;  %v5214_v28 = vmax.f32 %v5166_v9, 0.0 }
 0x589   : > { %v4549_v38 = vld [vmem:[#allocation3 + $0xb8] sm:$0xff] }
 0x58a   : > { %v4613_v4 = vadd.f32 %v4549_v38, %v9254_v24  ;;  %4281 = vst.msk [vmem:[#allocation3 + $0xc0] sm:$0xff] %vm1227_vm3, %v4217_v59  ;;  %v5763_v6 = vpop.f32.mrf.mxu2  ;;  %v5262_v19 = vpack.c.bf16 %v5214_v28, %v5214_v28  ;;  %v4155_v38 = vld [vmem:[#allocation3 + $0xd0] sm:$0xff] }
 0x58b   : > { %v4929_v60 = vld [vmem:[#allocation3 + $0xb0] sm:$0xff]  ;;  %v5764_v53 = vadd.f32 %v9631_v40, %v5763_v6 }
 0x58c   : > { %v4993_v10 = vadd.f32 %v4929_v60, %v9422_v35  ;;  %4677 = vst.msk [vmem:[#allocation3 + $0xb8] sm:$0xff] %vm1227_vm3, %v4613_v4  ;;  %v6845_v35 = vunpack.c.h.bf16 %v6843_v37 }
 0x58d   : > { %v5907_v46 = vadd.f32 %v6844_v32, %v5764_v53  ;;  %v5115_v49 = vld [vmem:[#allocation3 + $0xa8] sm:$0xff] }
 0x58e   : > { %5057 = vst.msk [vmem:[#allocation3 + $0xb0] sm:$0xff] %vm1227_vm3, %v4993_v10  ;;  %v5167_v13 = vadd.f32 %v9381_v0, %v5115_v49  ;;  %v5409_v10 = vshrl.u32 %v5262_v19, 16 }
 0x58f   : > { %v5939_v24 = vmax.f32 %v5907_v46, 0.0  ;;  %v4031_v27 = vpop.f32.mrf.mxu3 }
 0x590   : > { %v4218_v25 = vadd.f32 %v4154_v1, %v4031_v27  ;;  %v5215_v7 = vmax.f32 %v5167_v13, 0.0 }
 0x591   : > { %v4550_v62 = vld [vmem:[#allocation3 + $0xc0] sm:$0xff]  ;;  %v5971_v23 = vpack.c.bf16 %v5939_v24, %v5939_v24  ;;  %v6744_v24 = vrot.slane %v5409_v10, 11  ;;  %v4158_v10 = vld [vmem:[#allocation3 + $0xe8] sm:$0xff] }
 0x592   : > { %v4614_v44 = vadd.f32 %v4550_v62, %v10458_v3  ;;  %4282 = vst.msk [vmem:[#allocation3 + $0xc8] sm:$0xff] %vm1227_vm3, %v4218_v25  ;;  %v5765_v12 = vpop.f32.mrf.mxu2  ;;  %v5263_v29 = vpack.c.bf16 %v5215_v7, %v5215_v7  ;;  %v4156_v25 = vld [vmem:[#allocation3 + $0xd8] sm:$0xff] }
 0x593   : > { %v4930_v30 = vld [vmem:[#allocation3 + $0xb8] sm:$0xff]  ;;  %6004 = vst.msk [vmem:[%s9645_s27] sm:$0xf] %vm6003_vm9, %v5971_v23  ;;  %v5766_v63 = vadd.f32 %v9631_v40, %v5765_v12 }
 0x594   : > { %v4994_v43 = vadd.f32 %v4930_v30, %v9442_v16  ;;  %4678 = vst.msk [vmem:[#allocation3 + $0xc0] sm:$0xff] %vm1227_vm3, %v4614_v44  ;;  %6664 = vmatmul.msk.bf16.gmra.mxu3 %vm1227_vm3, %v7075_v39  ;;  %v5414_v14 = vshrl.u32 %v5263_v29, 16  ;;  %v5417_v46 = vshll.u32 %v5263_v29, 16  ;;  %v6909_v39 = vld [vmem:[%s7502_s30 + $0x8] sm:$0xff]  }
 0x595   : > { %v5908_v5 = vadd.f32 %v6845_v35, %v5766_v63  ;;  %v5116_v45 = vld [vmem:[#allocation3 + $0xb0] sm:$0xff]  ;;  %v7076_v63 = vld [vmem:[#allocation2 + $0xd0] sm:$0xff] }
 0x596   : > { %5058 = vst.msk [vmem:[#allocation3 + $0xb8] sm:$0xff] %vm1227_vm3, %v4994_v43  ;;  %v5168_v37 = vadd.f32 %v9381_v0, %v5116_v45  ;;  %v5416_v16 = vrot.slane %v5414_v14, 7  ;;  %v4157_v14 = vld [vmem:[#allocation3 + $0xe0] sm:$0xff] }
 0x597   : > { %v5940_v11 = vmax.f32 %v5908_v5, 0.0  ;;  %v4034_v59 = vpop.f32.mrf.mxu3 }
 0x598   : > { %v4219_v32 = vadd.f32 %v4155_v38, %v4034_v59  ;;  %v5216_v4 = vmax.f32 %v5168_v37, 0.0  ;;  %v5419_v9 = vor.u32 %v5417_v46, %v5416_v16  ;;  %v5421_v23 = vrot.slane %v5416_v16, 4 }
 0x599   : > { %v4551_v6 = vld [vmem:[#allocation3 + $0xc8] sm:$0xff]  ;;  %v5972_v60 = vpack.c.bf16 %v5940_v11, %v5940_v11  ;;  %v6848_v37 = vunpack.c.l.bf16 %v6909_v39 }
 0x59a   : > { %v4615_v53 = vadd.f32 %v4551_v6, %v9290_v58  ;;  %4283 = vst.msk [vmem:[#allocation3 + $0xd0] sm:$0xff] %vm1227_vm3, %v4219_v32  ;;  %v5264_v56 = vpack.c.bf16 %v5216_v4, %v5216_v4  ;;  %v5420_v62 = vsel %vm9414_vm8, %v6744_v24, %v5419_v9  ;;  %v9683_v6 = vld [vmem:[%s10182_s7] ss:$0 sm:$0xff]  ;;  %v6849_v9 = vunpack.c.h.bf16 %v6909_v39 }
 0x59b   : > { %v4931_v49 = vld [vmem:[#allocation3 + $0xc0] sm:$0xff]  ;;  %6005 = vst.msk [vmem:[%s9645_s27 + $0x4] sm:$0xf] %vm6003_vm9, %v5972_v60  ;;  %v5665_v28 = vunpack.c.l.b16 %v5420_v62  ;;  %v7078_v62 = vld [vmem:[#allocation2 + $0xd8] sm:$0xff] }
 0x59c   : > { %v4995_v0 = vadd.f32 %v4931_v49, %v9464_v57  ;;  %4679 = vst.msk [vmem:[#allocation3 + $0xc8] sm:$0xff] %vm1227_vm3, %v4615_v53  ;;  %v5423_v13 = vshrl.u32 %v5264_v56, 16  ;;  %v5426_v1 = vshll.u32 %v5264_v56, 16 }
 0x59e   : > { %5059 = vst.msk [vmem:[#allocation3 + $0xc0] sm:$0xff] %vm1227_vm3, %v4995_v0  ;;  %v5425_v27 = vrot.slane %v5423_v13, 7 }
 0x59f   : > { %v4036_v58 = vpop.f32.mrf.mxu3 }
 0x5a0   : > { %v4220_v7 = vadd.f32 %v4156_v25, %v4036_v58  ;;  %v5428_v35 = vor.u32 %v5426_v1, %v5425_v27 }
 0x5a1   : > { %v4552_v3 = vld [vmem:[#allocation3 + $0xd0] sm:$0xff] }
 0x5a2   : > { %v4616_v57 = vadd.f32 %v4552_v3, %v9311_v20  ;;  %4284 = vst.msk [vmem:[#allocation3 + $0xd8] sm:$0xff] %vm1227_vm3, %v4220_v7  ;;  %v5429_v44 = vsel %vm9414_vm8, %v5421_v23, %v5428_v35 }
 0x5a3   : > { %v4932_v12 = vld [vmem:[#allocation3 + $0xc8] sm:$0xff]  ;;  %v5666_v29 = vunpack.c.l.b16 %v5429_v44 }
 0x5a4   : > { %v4996_v30 = vadd.f32 %v4932_v12, %v9481_v42  ;;  %4680 = vst.msk [vmem:[#allocation3 + $0xd0] sm:$0xff] %vm1227_vm3, %v4616_v57  ;;  %6665 = vmatmul.msk.bf16.gmra.mxu3 %vm1227_vm3, %v7076_v63 }
 0x5a5   : > { %v5692_v43 = vpack.c.b16 %v5666_v29, %v5665_v28  ;;  %v5117_v38 = vld [vmem:[#allocation3 + $0xc0] sm:$0xff]  ;;  %v4159_v28 = vld [vmem:[#allocation3 + $0xf0] sm:$0xff] }
 0x5a6   : > { %5060 = vst.msk [vmem:[#allocation3 + $0xc8] sm:$0xff] %vm1227_vm3, %v4996_v30 }
 0x5a7   : > { %v4039_v20 = vpop.f32.mrf.mxu3  ;;  %6760 = vmatmul.msk.bf16.gmra.mxu2 %vm1227_vm3, %v5692_v43 }
 0x5a8   : > { %v4221_v5 = vadd.f32 %v4157_v14, %v4039_v20 }
 0x5a9   : > { %v4553_v45 = vld [vmem:[#allocation3 + $0xd8] sm:$0xff] }
 0x5aa   : > { %v4617_v19 = vadd.f32 %v4553_v45, %v9325_v17  ;;  %4285 = vst.msk [vmem:[#allocation3 + $0xe0] sm:$0xff] %vm1227_vm3, %v4221_v5  ;;  %v5768_v42 = vpop.f32.mrf.mxu2  ;;  %v5169_v17 = vadd.f32 %v9683_v6, %v5117_v38 }
 0x5ab   : > { %v4933_v11 = vld [vmem:[#allocation3 + $0xd0] sm:$0xff]  ;;  %v5769_v59 = vadd.f32 %v9631_v40, %v5768_v42 }
 0x5ac   : > { %v4997_v32 = vadd.f32 %v4933_v11, %v9497_v31  ;;  %4681 = vst.msk [vmem:[#allocation3 + $0xd8] sm:$0xff] %vm1227_vm3, %v4617_v19  ;;  %v5217_v27 = vmax.f32 %v5169_v17, 0.0 }
 0x5ad   : > { %v5909_v4 = vadd.f32 %v6848_v37, %v5769_v59  ;;  %v5118_v16 = vld [vmem:[#allocation3 + $0xc8] sm:$0xff]  ;;  %v9701_v37 = vpop.f32.mrf.mxu0 }
 0x5ae   : > { %5061 = vst.msk [vmem:[#allocation3 + $0xd0] sm:$0xff] %vm1227_vm3, %v4997_v32  ;;  %v5170_v60 = vadd.f32 %v9683_v6, %v5118_v16  ;;  %v5265_v57 = vpack.c.bf16 %v5217_v27, %v5217_v27  ;;  %v9719_v27 = vpop.f32.mrf.mxu1 }
 0x5af   : > { %v5941_v53 = vmax.f32 %v5909_v4, 0.0  ;;  %v4041_v56 = vpop.f32.mrf.mxu3  ;;  %v4160_v4 = vld [vmem:[#allocation3 + $0xf8] sm:$0xff] }
 0x5b0   : > { %v4222_v31 = vadd.f32 %v4158_v10, %v4041_v56  ;;  %v5218_v46 = vmax.f32 %v5170_v60, 0.0  ;;  %v5431_v14 = vshrl.u32 %v5265_v57, 16 }
 0x5b1   : > { %v4554_v49 = vld [vmem:[#allocation3 + $0xe0] sm:$0xff]  ;;  %v5973_v0 = vpack.c.bf16 %v5941_v53, %v5941_v53 }
 0x5b2   : > { %v4618_v13 = vadd.f32 %v4554_v49, %v9338_v61  ;;  %4286 = vst.msk [vmem:[#allocation3 + $0xe8] sm:$0xff] %vm1227_vm3, %v4222_v31  ;;  %v5770_v24 = vpop.f32.mrf.mxu2  ;;  %v5266_v1 = vpack.c.bf16 %v5218_v46, %v5218_v46  ;;  %v6745_v59 = vrot.slane %v5431_v14, 11 }
 0x5b3   : > { %v4934_v58 = vld [vmem:[#allocation3 + $0xd8] sm:$0xff]  ;;  %6006 = vst.msk [vmem:[%s9645_s27 + $0x8] sm:$0xf] %vm6003_vm9, %v5973_v0  ;;  %v5771_v25 = vadd.f32 %v9631_v40, %v5770_v24 }
 0x5b4   : > { %v4998_v7 = vadd.f32 %v4934_v58, %v9509_v26  ;;  %4682 = vst.msk [vmem:[#allocation3 + $0xe0] sm:$0xff] %vm1227_vm3, %v4618_v13  ;;  %6666 = vmatmul.msk.bf16.gmra.mxu3 %vm1227_vm3, %v7078_v62  ;;  %v5436_v23 = vshrl.u32 %v5266_v1, 16  ;;  %v5439_v5 = vshll.u32 %v5266_v1, 16  ;;  %v4161_v58 = vld [vmem:[#allocation3 + $0x100] sm:$0xff] }
 0x5b5   : > { %v5910_v35 = vadd.f32 %v6849_v9, %v5771_v25  ;;  %v5119_v61 = vld [vmem:[#allocation3 + $0xd0] sm:$0xff]  ;;  %v9715_v24 = vpop.f32.mrf.mxu0 }
 0x5b6   : > { %5062 = vst.msk [vmem:[#allocation3 + $0xd8] sm:$0xff] %vm1227_vm3, %v4998_v7  ;;  %v5171_v3 = vadd.f32 %v9683_v6, %v5119_v61  ;;  %v5438_v26 = vrot.slane %v5436_v23, 7  ;;  %v7079_v9 = vld [vmem:[#allocation2 + $0xe0] sm:$0xff] }
 0x5b7   : > { %v5942_v44 = vmax.f32 %v5910_v35, 0.0  ;;  %v4044_v12 = vpop.f32.mrf.mxu3 }
 0x5b8   : > { %v4223_v29 = vadd.f32 %v4159_v28, %v4044_v12  ;;  %v5219_v30 = vmax.f32 %v5171_v3, 0.0  ;;  %v5441_v42 = vor.u32 %v5439_v5, %v5438_v26  ;;  %v5443_v60 = vrot.slane %v5438_v26, 4  ;;  %v4162_v26 = vld [vmem:[#allocation3 + $0x108] sm:$0xff] }
 0x5b9   : > { %v4555_v63 = vld [vmem:[#allocation3 + $0xe8] sm:$0xff]  ;;  %v5974_v43 = vpack.c.bf16 %v5942_v44, %v5942_v44 }
 0x5ba   : > { %v4619_v39 = vadd.f32 %v4555_v63, %v9355_v36  ;;  %4287 = vst.msk [vmem:[#allocation3 + $0xf0] sm:$0xff] %vm1227_vm3, %v4223_v29  ;;  %v5267_v20 = vpack.c.bf16 %v5219_v30, %v5219_v30  ;;  %v5442_v17 = vsel %vm9414_vm8, %v6745_v59, %v5441_v42 }
 0x5bb   : > { %v4935_v45 = vld [vmem:[#allocation3 + $0xe0] sm:$0xff]  ;;  %6007 = vst.msk [vmem:[%s9645_s27 + $0xc] sm:$0xf] %vm6003_vm9, %v5974_v43  ;;  %v5667_v46 = vunpack.c.l.b16 %v5442_v17 }
 0x5bc   : > { %v4999_v19 = vadd.f32 %v4935_v45, %v9523_v18  ;;  %4683 = vst.msk [vmem:[#allocation3 + $0xe8] sm:$0xff] %vm1227_vm3, %v4619_v39  ;;  %v5445_v11 = vshrl.u32 %v5267_v20, 16  ;;  %v5448_v38 = vshll.u32 %v5267_v20, 16  ;;  %v9732_v20 = vpop.f32.mrf.mxu1  ;;  %v10459_v45 = vld [vmem:[#allocation75_spill] sm:$0xff] }
 0x5bd   : > { %v9730_v63 = vpop.f32.mrf.mxu0 }
 0x5be   : > { %5063 = vst.msk [vmem:[#allocation3 + $0xe0] sm:$0xff] %vm1227_vm3, %v4999_v19  ;;  %v5447_v36 = vrot.slane %v5445_v11, 7 }
 0x5bf   : > { %v4046_v32 = vpop.f32.mrf.mxu3 }
 0x5c0   : > { %v4224_v16 = vadd.f32 %v4160_v4, %v4046_v32  ;;  %v5450_v53 = vor.u32 %v5448_v38, %v5447_v36  ;;  %v7080_v4 = vld [vmem:[#allocation2 + $0xe8] sm:$0xff] }
 0x5c1   : > { %v4556_v56 = vld [vmem:[#allocation3 + $0xf0] sm:$0xff] }
 0x5c2   : > { %v4620_v18 = vadd.f32 %v4556_v56, %v9370_v55  ;;  %4288 = vst.msk [vmem:[#allocation3 + $0xf8] sm:$0xff] %vm1227_vm3, %v4224_v16  ;;  %v5451_v10 = vsel %vm9414_vm8, %v5443_v60, %v5450_v53  ;;  %v6910_v55 = vld [vmem:[%s7502_s30 + $0x10] sm:$0xff]  }
 0x5c3   : > { %v4936_v31 = vld [vmem:[#allocation3 + $0xe8] sm:$0xff]  ;;  %v5668_v49 = vunpack.c.l.b16 %v5451_v10  ;;  %v6853_v5 = vunpack.c.h.bf16 %v6910_v55 }
 0x5c4   : > { %v5000_v0 = vadd.f32 %v4936_v31, %v9541_v8  ;;  %4684 = vst.msk [vmem:[#allocation3 + $0xf0] sm:$0xff] %vm1227_vm3, %v4620_v18  ;;  %6667 = vmatmul.msk.bf16.gmra.mxu3 %vm1227_vm3, %v7079_v9  ;;  %v6852_v8 = vunpack.c.l.bf16 %v6910_v55  ;;  %v4163_v31 = vld [vmem:[#allocation3 + $0x110] sm:$0xff] }
 0x5c5   : > { %v5693_v13 = vpack.c.b16 %v5668_v49, %v5667_v46  ;;  %v5120_v3 = vld [vmem:[#allocation3 + $0xe0] sm:$0xff] }
 0x5c6   : > { %5064 = vst.msk [vmem:[#allocation3 + $0xe8] sm:$0xff] %vm1227_vm3, %v5000_v0  ;;  %v5172_v28 = vadd.f32 %v9683_v6, %v5120_v3 }
 0x5c7   : > { %v4049_v1 = vpop.f32.mrf.mxu3  ;;  %6761 = vmatmul.msk.bf16.gmra.mxu2 %vm1227_vm3, %v5693_v13  ;;  %v9744_v13 = vpop.f32.mrf.mxu0 }
 0x5c8   : > { %v4225_v25 = vadd.f32 %v4161_v58, %v4049_v1  ;;  %v5220_v11 = vmax.f32 %v5172_v28, 0.0 }
 0x5c9   : > { %v4557_v7 = vld [vmem:[#allocation3 + $0xf8] sm:$0xff] }
 0x5ca   : > { %v4621_v62 = vadd.f32 %v4557_v7, %v9390_v15  ;;  %4289 = vst.msk [vmem:[#allocation3 + $0x100] sm:$0xff] %vm1227_vm3, %v4225_v25  ;;  %v5773_v23 = vpop.f32.mrf.mxu2  ;;  %v5268_v56 = vpack.c.bf16 %v5220_v11, %v5220_v11  ;;  %v9748_v7 = vpop.f32.mrf.mxu1 }
 0x5cb   : > { %v4937_v35 = vld [vmem:[#allocation3 + $0xf0] sm:$0xff]  ;;  %v5774_v61 = vadd.f32 %v9631_v40, %v5773_v23 }
 0x5cc   : > { %v5001_v57 = vadd.f32 %v4937_v35, %v9550_v2  ;;  %4685 = vst.msk [vmem:[#allocation3 + $0xf8] sm:$0xff] %vm1227_vm3, %v4621_v62  ;;  %v5453_v58 = vshrl.u32 %v5268_v56, 16 }
 0x5cd   : > { %v5911_v44 = vadd.f32 %v6852_v8, %v5774_v61  ;;  %v5121_v12 = vld [vmem:[#allocation3 + $0xe8] sm:$0xff] }
 0x5ce   : > { %5065 = vst.msk [vmem:[#allocation3 + $0xf0] sm:$0xff] %vm1227_vm3, %v5001_v57  ;;  %v5173_v29 = vadd.f32 %v9683_v6, %v5121_v12  ;;  %v6746_v61 = vrot.slane %v5453_v58, 11 }
 0x5cf   : > { %v5943_v15 = vmax.f32 %v5911_v44, 0.0  ;;  %v4051_v30 = vpop.f32.mrf.mxu3  ;;  %v4164_v44 = vld [vmem:[#allocation3 + $0x118] sm:$0xff] }
 0x5d0   : > { %v4226_v43 = vadd.f32 %v4162_v26, %v4051_v30  ;;  %v5221_v39 = vmax.f32 %v5173_v29, 0.0 }
 0x5d1   : > { %v4558_v2 = vld [vmem:[#allocation3 + $0x100] sm:$0xff]  ;;  %v5975_v14 = vpack.c.bf16 %v5943_v15, %v5943_v15 }
 0x5d2   : > { %v4622_v19 = vadd.f32 %v4558_v2, %v10459_v45  ;;  %4290 = vst.msk [vmem:[#allocation3 + $0x108] sm:$0xff] %vm1227_vm3, %v4226_v43  ;;  %v5775_v42 = vpop.f32.mrf.mxu2  ;;  %v5269_v59 = vpack.c.bf16 %v5221_v39, %v5221_v39  ;;  %v7081_v45 = vld [vmem:[#allocation2 + $0xf0] sm:$0xff] }
 0x5d3   : > { %v4938_v36 = vld [vmem:[#allocation3 + $0xf8] sm:$0xff]  ;;  %6008 = vst.msk [vmem:[%s9645_s27 + $0x10] sm:$0xf] %vm6003_vm9, %v5975_v14  ;;  %v5776_v38 = vadd.f32 %v9631_v40, %v5775_v42  ;;  %v9761_v14 = vpop.f32.mrf.mxu0 }
 0x5d4   : > { %v5002_v32 = vadd.f32 %v4938_v36, %v9563_v54  ;;  %4686 = vst.msk [vmem:[#allocation3 + $0x100] sm:$0xff] %vm1227_vm3, %v4622_v19  ;;  %6668 = vmatmul.msk.bf16.gmra.mxu3 %vm1227_vm3, %v7080_v4  ;;  %v5458_v16 = vshrl.u32 %v5269_v59, 16  ;;  %v5461_v25 = vshll.u32 %v5269_v59, 16  ;;  %v9766_v19 = vpop.f32.mrf.mxu1  ;;  %v6911_v42 = vld [vmem:[%s7502_s30 + $0x18] sm:$0xff]   ;;  %v4165_v59 = vld [vmem:[#allocation3 + $0x120] sm:$0xff] }
 0x5d5   : > { %v5912_v17 = vadd.f32 %v6853_v5, %v5776_v38  ;;  %v5122_v60 = vld [vmem:[#allocation3 + $0xf0] sm:$0xff]  ;;  %v6857_v58 = vunpack.c.h.bf16 %v6911_v42 }
 0x5d6   : > { %5066 = vst.msk [vmem:[#allocation3 + $0xf8] sm:$0xff] %vm1227_vm3, %v5002_v32  ;;  %v5174_v53 = vadd.f32 %v9683_v6, %v5122_v60  ;;  %v5460_v54 = vrot.slane %v5458_v16, 7  ;;  %v6856_v32 = vunpack.c.l.bf16 %v6911_v42 }
 0x5d7   : > { %v5944_v18 = vmax.f32 %v5912_v17, 0.0  ;;  %v4054_v10 = vpop.f32.mrf.mxu3 }
 0x5d8   : > { %v4227_v46 = vadd.f32 %v4163_v31, %v4054_v10  ;;  %v5222_v49 = vmax.f32 %v5174_v53, 0.0  ;;  %v5463_v23 = vor.u32 %v5461_v25, %v5460_v54  ;;  %v5465_v29 = vrot.slane %v5460_v54, 4 }
 0x5d9   : > { %v4559_v0 = vld [vmem:[#allocation3 + $0x108] sm:$0xff]  ;;  %v5976_v9 = vpack.c.bf16 %v5944_v18, %v5944_v18 }
 0x5da   : > { %v4623_v55 = vadd.f32 %v4559_v0, %v9428_v51  ;;  %4291 = vst.msk [vmem:[#allocation3 + $0x110] sm:$0xff] %vm1227_vm3, %v4227_v46  ;;  %v5270_v1 = vpack.c.bf16 %v5222_v49, %v5222_v49  ;;  %v5464_v28 = vsel %vm9414_vm8, %v6746_v61, %v5463_v23  ;;  %v4166_v0 = vld [vmem:[#allocation3 + $0x128] sm:$0xff] }
 0x5db   : > { %v4939_v8 = vld [vmem:[#allocation3 + $0x100] sm:$0xff]  ;;  %6009 = vst.msk [vmem:[%s9645_s27 + $0x14] sm:$0xf] %vm6003_vm9, %v5976_v9  ;;  %v5669_v39 = vunpack.c.l.b16 %v5464_v28  ;;  %v9776_v10 = vpop.f32.mrf.mxu0 }
 0x5dc   : > { %v5003_v62 = vadd.f32 %v4939_v8, %v9579_v50  ;;  %4687 = vst.msk [vmem:[#allocation3 + $0x108] sm:$0xff] %vm1227_vm3, %v4623_v55  ;;  %v5467_v35 = vshrl.u32 %v5270_v1, 16  ;;  %v5470_v3 = vshll.u32 %v5270_v1, 16  ;;  %v9781_v46 = vpop.f32.mrf.mxu1 }
 0x5de   : > { %5067 = vst.msk [vmem:[#allocation3 + $0x100] sm:$0xff] %vm1227_vm3, %v5003_v62  ;;  %v5469_v51 = vrot.slane %v5467_v35, 7 }
 0x5df   : > { %v4056_v57 = vpop.f32.mrf.mxu3 }
 0x5e0   : > { %v4228_v12 = vadd.f32 %v4164_v44, %v4056_v57  ;;  %v5472_v15 = vor.u32 %v5470_v3, %v5469_v51  ;;  %v7082_v3 = vld [vmem:[#allocation2 + $0xf8] sm:$0xff] }
 0x5e1   : > { %v4560_v30 = vld [vmem:[#allocation3 + $0x110] sm:$0xff] }
 0x5e2   : > { %v4624_v50 = vadd.f32 %v4560_v30, %v9446_v33  ;;  %4292 = vst.msk [vmem:[#allocation3 + $0x118] sm:$0xff] %vm1227_vm3, %v4228_v12  ;;  %v5473_v26 = vsel %vm9414_vm8, %v5465_v29, %v5472_v15  ;;  %v4167_v30 = vld [vmem:[#allocation3 + $0x130] sm:$0xff] }
 0x5e3   : > { %v4940_v43 = vld [vmem:[#allocation3 + $0x108] sm:$0xff]  ;;  %v5670_v2 = vunpack.c.l.b16 %v5473_v26 }
 0x5e4   : > { %v5004_v5 = vadd.f32 %v4940_v43, %v9590_v34  ;;  %4688 = vst.msk [vmem:[#allocation3 + $0x110] sm:$0xff] %vm1227_vm3, %v4624_v50  ;;  %6669 = vmatmul.msk.bf16.gmra.mxu3 %vm1227_vm3, %v7081_v45  ;;  %v9793_v50 = vpop.f32.mrf.mxu0 }
 0x5e5   : > { %v5694_v33 = vpack.c.b16 %v5670_v2, %v5669_v39  ;;  %v5123_v60 = vld [vmem:[#allocation3 + $0x100] sm:$0xff]  ;;  %v9795_v39 = vpop.f32.mrf.mxu1 }
 0x5e6   : > { %5068 = vst.msk [vmem:[#allocation3 + $0x108] sm:$0xff] %vm1227_vm3, %v5004_v5  ;;  %v5175_v31 = vadd.f32 %v9683_v6, %v5123_v60 }
 0x5e7   : > { %v4059_v11 = vpop.f32.mrf.mxu3  ;;  %6762 = vmatmul.msk.bf16.gmra.mxu2 %vm1227_vm3, %v5694_v33 }
 0x5e8   : > { %v4229_v36 = vadd.f32 %v4165_v59, %v4059_v11  ;;  %v5223_v62 = vmax.f32 %v5175_v31, 0.0 }
 0x5e9   : > { %v4561_v38 = vld [vmem:[#allocation3 + $0x118] sm:$0xff] }
 0x5ea   : > { %v4625_v34 = vadd.f32 %v4561_v38, %v9471_v47  ;;  %4293 = vst.msk [vmem:[#allocation3 + $0x120] sm:$0xff] %vm1227_vm3, %v4229_v36  ;;  %v5778_v4 = vpop.f32.mrf.mxu2  ;;  %v5271_v28 = vpack.c.bf16 %v5223_v62, %v5223_v62  ;;  %v4169_v62 = vld [vmem:[#allocation3 + $0x140] sm:$0xff] }
 0x5eb   : > { %v4941_v16 = vld [vmem:[#allocation3 + $0x110] sm:$0xff]  ;;  %v5779_v17 = vadd.f32 %v9631_v40, %v5778_v4 }
 0x5ec   : > { %v5005_v53 = vadd.f32 %v4941_v16, %v9601_v22  ;;  %4689 = vst.msk [vmem:[#allocation3 + $0x118] sm:$0xff] %vm1227_vm3, %v4625_v34  ;;  %v5475_v42 = vshrl.u32 %v5271_v28, 16 }
 0x5ed   : > { %v5913_v56 = vadd.f32 %v6856_v32, %v5779_v17  ;;  %v5124_v18 = vld [vmem:[#allocation3 + $0x108] sm:$0xff]  ;;  %v4168_v17 = vld [vmem:[#allocation3 + $0x138] sm:$0xff] }
 0x5ee   : > { %5069 = vst.msk [vmem:[#allocation3 + $0x110] sm:$0xff] %vm1227_vm3, %v5005_v53  ;;  %v5176_v47 = vadd.f32 %v9683_v6, %v5124_v18  ;;  %v6747_v34 = vrot.slane %v5475_v42, 11 }
 0x5ef   : > { %v5945_v49 = vmax.f32 %v5913_v56, 0.0  ;;  %v4061_v54 = vpop.f32.mrf.mxu3 }
 0x5f0   : > { %v4230_v9 = vadd.f32 %v4166_v0, %v4061_v54  ;;  %v5224_v22 = vmax.f32 %v5176_v47, 0.0  ;;  %v9812_v54 = vpop.f32.mrf.mxu1 }
 0x5f1   : > { %v4562_v55 = vld [vmem:[#allocation3 + $0x120] sm:$0xff]  ;;  %v5977_v1 = vpack.c.bf16 %v5945_v49, %v5945_v49 }
 0x5f2   : > { %v4626_v25 = vadd.f32 %v4562_v55, %v9701_v37  ;;  %4294 = vst.msk [vmem:[#allocation3 + $0x128] sm:$0xff] %vm1227_vm3, %v4230_v9  ;;  %v5780_v8 = vpop.f32.mrf.mxu2  ;;  %v5272_v23 = vpack.c.bf16 %v5224_v22, %v5224_v22 }
 0x5f3   : > { %v4942_v35 = vld [vmem:[#allocation3 + $0x118] sm:$0xff]  ;;  %6010 = vst.msk [vmem:[%s9645_s27 + $0x18] sm:$0xf] %vm6003_vm9, %v5977_v1  ;;  %v5781_v61 = vadd.f32 %v9631_v40, %v5780_v8  ;;  %v7083_v1 = vld [vmem:[#allocation2 + $0x100] sm:$0xff]  }
 0x5f4   : > { %v5006_v51 = vadd.f32 %v4942_v35, %v9619_v52  ;;  %4690 = vst.msk [vmem:[#allocation3 + $0x120] sm:$0xff] %vm1227_vm3, %v4626_v25  ;;  %6670 = vmatmul.msk.bf16.gmra.mxu3 %vm1227_vm3, %v7082_v3  ;;  %v5480_v57 = vshrl.u32 %v5272_v23, 16  ;;  %v5483_v11 = vshll.u32 %v5272_v23, 16  ;;  %v9817_v25 = vld [vmem:[#allocation2 + $0x118] sm:$0xff]  ;;  %v9822_v23 = vld [vmem:[#allocation2 + $0x110] sm:$0xff]  }
 0x5f5   : > { %v5914_v44 = vadd.f32 %v6857_v58, %v5781_v61  ;;  %v5125_v37 = vld [vmem:[#allocation3 + $0x110] sm:$0xff]  ;;  %v4330_v35 = vshrl.u32 %v9822_v23, 16  ;;  %v4337_v41 = vshrl.u32 %v9817_v25, 16 }
 0x5f6   : > { %5070 = vst.msk [vmem:[#allocation3 + $0x118] sm:$0xff] %vm1227_vm3, %v5006_v51  ;;  %v5177_v12 = vadd.f32 %v9683_v6, %v5125_v37  ;;  %v5482_v43 = vrot.slane %v5480_v57, 7  ;;  %v10460_v57 = vld [vmem:[#allocation76_spill] sm:$0xff] }
 0x5f7   : > { %v5946_v29 = vmax.f32 %v5914_v44, 0.0  ;;  %v4064_v15 = vpop.f32.mrf.mxu3  ;;  %v4332_v44 = vor.u32 %v4330_v35, %v10460_v57  ;;  %v4171_v35 = vld [vmem:[#allocation3 + $0x150] sm:$0xff] }
 0x5f8   : > { %v4231_v52 = vadd.f32 %v4167_v30, %v4064_v15  ;;  %v5225_v26 = vmax.f32 %v5177_v12, 0.0  ;;  %v5485_v38 = vor.u32 %v5483_v11, %v5482_v43  ;;  %v5487_v56 = vrot.slane %v5482_v43, 4 }
 0x5f9   : > { %v4563_v2 = vld [vmem:[#allocation3 + $0x128] sm:$0xff]  ;;  %v5978_v5 = vpack.c.bf16 %v5946_v29, %v5946_v29 }
 0x5fa   : > { %v4627_v45 = vadd.f32 %v4563_v2, %v9715_v24  ;;  %4295 = vst.msk [vmem:[#allocation3 + $0x130] sm:$0xff] %vm1227_vm3, %v4231_v52  ;;  %v5273_v33 = vpack.c.bf16 %v5225_v26, %v5225_v26  ;;  %v5486_v53 = vsel %vm9414_vm8, %v6747_v34, %v5485_v38  ;;  %v9836_v2 = vpop.f32.mrf.mxu1 }
 0x5fb   : > { %v4943_v59 = vld [vmem:[#allocation3 + $0x120] sm:$0xff]  ;;  %6011 = vst.msk [vmem:[%s9645_s27 + $0x1c] sm:$0xf] %vm6003_vm9, %v5978_v5  ;;  %v5671_v9 = vunpack.c.l.b16 %v5486_v53 }
 0x5fc   : > { %v5007_v36 = vadd.f32 %v4943_v59, %v9719_v27  ;;  %4691 = vst.msk [vmem:[#allocation3 + $0x128] sm:$0xff] %vm1227_vm3, %v4627_v45  ;;  %v5489_v32 = vshrl.u32 %v5273_v33, 16  ;;  %v5492_v16 = vshll.u32 %v5273_v33, 16  ;;  %v9806_v27 = vpop.f32.mrf.mxu0  ;;  %v4170_v59 = vld [vmem:[#allocation3 + $0x148] sm:$0xff] }
 0x5fe   : > { %5071 = vst.msk [vmem:[#allocation3 + $0x120] sm:$0xff] %vm1227_vm3, %v5007_v36  ;;  %v5491_v4 = vrot.slane %v5489_v32, 7 }
 0x5ff   : > { %v4066_v24 = vpop.f32.mrf.mxu3 }
 0x600   : > { %v4232_v60 = vadd.f32 %v4168_v17, %v4066_v24  ;;  %v5494_v18 = vor.u32 %v5492_v16, %v5491_v4 }
 0x601   : > { %v4564_v31 = vld [vmem:[#allocation3 + $0x130] sm:$0xff] }
 0x602   : > { %v4628_v47 = vadd.f32 %v4564_v31, %v9730_v63  ;;  %4296 = vst.msk [vmem:[#allocation3 + $0x138] sm:$0xff] %vm1227_vm3, %v4232_v60  ;;  %v5495_v49 = vsel %vm9414_vm8, %v5487_v56, %v5494_v18  ;;  %v6912_v63 = vld [vmem:[%s7502_s30 + $0x20] sm:$0xff]   ;;  %v1065_v60 = vld [vmem:[#allocation2 + $0x120] sm:$0xf]  ;;  %v4722_v18 = vrot.slane %v9817_v25, 1 }
 0x603   : > { %v4944_v0 = vld [vmem:[#allocation3 + $0x128] sm:$0xff]  ;;  %v5672_v22 = vunpack.c.l.b16 %v5495_v49  ;;  %v6860_v3 = vunpack.c.l.bf16 %v6912_v63  ;;  %v6861_v34 = vunpack.c.h.bf16 %v6912_v63  ;;  %v4324_v31 = vunpack.c.l.b16 %v1065_v60  ;;  %v7085_v49 = vld [vmem:[#allocation2 + $0x108] sm:$0xff]  ;;  %v9860_v63 = vpop.f32.mrf.mxu1 }
 0x604   : > { %v5008_v55 = vadd.f32 %v4944_v0, %v9732_v20  ;;  %4692 = vst.msk [vmem:[#allocation3 + $0x130] sm:$0xff] %vm1227_vm3, %v4628_v47  ;;  %6671 = vmatmul.msk.bf16.gmra.mxu3 %vm1227_vm3, %v7083_v1  ;;  %v4333_v20 = vshll.u32 %v9817_v25, 16  ;;  %v9831_v26 = vpop.f32.mrf.mxu0 }
 0x605   : > { %v5695_v58 = vpack.c.b16 %v5672_v22, %v5671_v9  ;;  %v5126_v30 = vld [vmem:[#allocation3 + $0x120] sm:$0xff]  ;;  %v4723_v22 = vsel %vm2257_vm5, %v4720_v48, %v4722_v18 }
 0x606   : > { %5072 = vst.msk [vmem:[#allocation3 + $0x128] sm:$0xff] %vm1227_vm3, %v5008_v55  ;;  %v4335_v37 = vrot.slane %v4333_v20, 1  ;;  %v5178_v45 = vadd.f32 %v9683_v6, %v5126_v30  ;;  %v4325_v55 = vpack.c.b16 %v4324_v31, %v4324_v31  ;;  %6737 = vmatmul.msk.bf16.gmra.mxu1 %vm1227_vm3, %v4723_v22 }
 0x607   : > { %v4069_v8 = vpop.f32.mrf.mxu3  ;;  %6763 = vmatmul.msk.bf16.gmra.mxu2 %vm1227_vm3, %v5695_v58 }
 0x608   : > { %v4233_v61 = vadd.f32 %v4169_v62, %v4069_v8  ;;  %v4336_v52 = vsel %vm1566_vm4, %v4332_v44, %v4335_v37  ;;  %v5226_v24 = vmax.f32 %v5178_v45, 0.0  ;;  %v4341_v20 = vshll.u32 %v4325_v55, 16 }
 0x609   : > { %v4565_v51 = vld [vmem:[#allocation3 + $0x138] sm:$0xff]  ;;  %6705 = vmatmul.msk.bf16.gmra.mxu0 %vm1227_vm3, %v4336_v52  ;;  %v4339_v44 = vor.u32 %v4337_v41, %v4335_v37 }
 0x60a   : > { %v4629_v12 = vadd.f32 %v4565_v51, %v9744_v13  ;;  %4297 = vst.msk [vmem:[#allocation3 + $0x140] sm:$0xff] %vm1227_vm3, %v4233_v61  ;;  %v5783_v28 = vpop.f32.mrf.mxu2  ;;  %v5274_v58 = vpack.c.bf16 %v5226_v24, %v5226_v24 }
 0x60b   : > { %v4945_v29 = vld [vmem:[#allocation3 + $0x130] sm:$0xff]  ;;  %v5784_v15 = vadd.f32 %v9631_v40, %v5783_v28 }
 0x60c   : > { %v5009_v43 = vadd.f32 %v4945_v29, %v9748_v7  ;;  %4693 = vst.msk [vmem:[#allocation3 + $0x138] sm:$0xff] %vm1227_vm3, %v4629_v12  ;;  %v9855_v1 = vpop.f32.mrf.mxu0  ;;  %v4343_v12 = vrot.slane %v4341_v20, 1 }
 0x60d   : > { %v5915_v13 = vadd.f32 %v6860_v3, %v5784_v15  ;;  %v5127_v5 = vld [vmem:[#allocation3 + $0x128] sm:$0xff]  ;;  %v5497_v15 = vshrl.u32 %v5274_v58, 16 }
 0x60e   : > { %5073 = vst.msk [vmem:[#allocation3 + $0x130] sm:$0xff] %vm1227_vm3, %v5009_v43  ;;  %v5179_v33 = vadd.f32 %v9683_v6, %v5127_v5  ;;  %v4344_v43 = vsel %vm1566_vm4, %v4339_v44, %v4343_v12 }
 0x60f   : > { %v5947_v42 = vmax.f32 %v5915_v13, 0.0  ;;  %v4071_v11 = vpop.f32.mrf.mxu3 }
 0x610   : > { %v4234_v36 = vadd.f32 %v4170_v59, %v4071_v11  ;;  %v5227_v7 = vmax.f32 %v5179_v33, 0.0  ;;  %v4172_v11 = vld [vmem:[#allocation3 + $0x158] sm:$0xff] }
 0x611   : > { %v4566_v38 = vld [vmem:[#allocation3 + $0x140] sm:$0xff]  ;;  %v5979_v32 = vpack.c.bf16 %v5947_v42, %v5947_v42 }
 0x612   : > { %v4630_v4 = vadd.f32 %v4566_v38, %v9761_v14  ;;  %4298 = vst.msk [vmem:[#allocation3 + $0x148] sm:$0xff] %vm1227_vm3, %v4234_v36  ;;  %v5785_v16 = vpop.f32.mrf.mxu2  ;;  %v5275_v17 = vpack.c.bf16 %v5227_v7, %v5227_v7 }
 0x613   : > { %v4946_v53 = vld [vmem:[#allocation3 + $0x138] sm:$0xff]  ;;  %6012 = vst.msk [vmem:[%s9645_s27 + $0x20] sm:$0xf] %vm6003_vm9, %v5979_v32  ;;  %v5786_v56 = vadd.f32 %v9631_v40, %v5785_v16  ;;  %v9876_v32 = vpop.f32.mrf.mxu1 }
 0x614   : > { %v5010_v47 = vadd.f32 %v4946_v53, %v9766_v19  ;;  %4694 = vst.msk [vmem:[#allocation3 + $0x140] sm:$0xff] %vm1227_vm3, %v4630_v4  ;;  %6672 = vmatmul.msk.bf16.gmra.mxu3 %vm1227_vm3, %v7085_v49  ;;  %v5502_v14 = vshrl.u32 %v5275_v17, 16  ;;  %v5505_v30 = vshll.u32 %v5275_v17, 16  ;;  %v9872_v59 = vpop.f32.mrf.mxu0  ;;  %v4724_v53 = vrot.slane %v4325_v55, 1 }
 0x615   : > { %v5916_v0 = vadd.f32 %v6861_v34, %v5786_v56  ;;  %v5128_v9 = vld [vmem:[#allocation3 + $0x130] sm:$0xff] }
 0x616   : > { %5074 = vst.msk [vmem:[#allocation3 + $0x138] sm:$0xff] %vm1227_vm3, %v5010_v47  ;;  %v5180_v19 = vadd.f32 %v9683_v6, %v5128_v9  ;;  %v5504_v51 = vrot.slane %v5502_v14, 7  ;;  %v6913_v47 = vld [vmem:[%s7502_s30 + $0x28] sm:$0xff]   ;;  %v4173_v14 = vld [vmem:[#allocation3 + $0x160] sm:$0xff] }
 0x617   : > { %v5948_v8 = vmax.f32 %v5916_v0, 0.0  ;;  %v4074_v62 = vpop.f32.mrf.mxu3  ;;  %v6864_v9 = vunpack.c.l.bf16 %v6913_v47 }
 0x618   : > { %v4235_v48 = vadd.f32 %v4171_v35, %v4074_v62  ;;  %v5228_v61 = vmax.f32 %v5180_v19, 0.0  ;;  %v5507_v5 = vor.u32 %v5505_v30, %v5504_v51 }
 0x619   : > { %v4567_v3 = vld [vmem:[#allocation3 + $0x148] sm:$0xff]  ;;  %v5980_v57 = vpack.c.bf16 %v5948_v8, %v5948_v8  ;;  %6706 = vmatmul.msk.bf16.gmra.mxu0 %vm1227_vm3, %v4344_v43 }
 0x61a   : > { %v4631_v28 = vadd.f32 %v4567_v3, %v9776_v10  ;;  %4299 = vst.msk [vmem:[#allocation3 + $0x150] sm:$0xff] %vm1227_vm3, %v4235_v48  ;;  %v5276_v29 = vpack.c.bf16 %v5228_v61, %v5228_v61  ;;  %v6748_v10 = vrot.slane %v5497_v15, 11 }
 0x61b   : > { %v4947_v52 = vld [vmem:[#allocation3 + $0x140] sm:$0xff]  ;;  %6013 = vst.msk [vmem:[%s9645_s27 + $0x24] sm:$0xf] %vm6003_vm9, %v5980_v57 }
 0x61c   : > { %v5011_v13 = vadd.f32 %v4947_v52, %v9781_v46  ;;  %4695 = vst.msk [vmem:[#allocation3 + $0x148] sm:$0xff] %vm1227_vm3, %v4631_v28  ;;  %v5511_v45 = vshrl.u32 %v5276_v29, 16  ;;  %v5514_v33 = vshll.u32 %v5276_v29, 16  ;;  %v5508_v7 = vsel %vm9414_vm8, %v6748_v10, %v5507_v5  ;;  %v9893_v22 = vpop.f32.mrf.mxu0 }
 0x61d   : > { %v5509_v46 = vrot.slane %v5504_v51, 4  ;;  %v5673_v17 = vunpack.c.l.b16 %v5508_v7  ;;  %v4174_v51 = vld [vmem:[#allocation3 + $0x168] sm:$0xff]  ;;  %v6865_v28 = vunpack.c.h.bf16 %v6913_v47 }
 0x61e   : > { %5075 = vst.msk [vmem:[#allocation3 + $0x140] sm:$0xff] %vm1227_vm3, %v5011_v13  ;;  %v5513_v37 = vrot.slane %v5511_v45, 7 }
 0x61f   : > { %v4076_v42 = vpop.f32.mrf.mxu3 }
 0x620   : > { %v4236_v36 = vadd.f32 %v4172_v11, %v4076_v42  ;;  %v5516_v38 = vor.u32 %v5514_v33, %v5513_v37 }
 0x621   : > { %v4568_v34 = vld [vmem:[#allocation3 + $0x150] sm:$0xff] }
 0x622   : > { %v4632_v4 = vadd.f32 %v4568_v34, %v9793_v50  ;;  %4300 = vst.msk [vmem:[#allocation3 + $0x158] sm:$0xff] %vm1227_vm3, %v4236_v36  ;;  %v5517_v16 = vsel %vm9414_vm8, %v5509_v46, %v5516_v38  ;;  %v4725_v50 = vsel %vm2257_vm5, %v4722_v18, %v4724_v53  ;;  %v9897_v18 = vpop.f32.mrf.mxu1  ;;  %v4175_v36 = vld [vmem:[#allocation3 + $0x170] sm:$0xff] }
 0x623   : > { %v4948_v24 = vld [vmem:[#allocation3 + $0x148] sm:$0xff]  ;;  %v5674_v60 = vunpack.c.l.b16 %v5517_v16  ;;  %6738 = vmatmul.msk.bf16.gmra.mxu1 %vm1227_vm3, %v4725_v50 }
 0x624   : > { %v5012_v56 = vadd.f32 %v4948_v24, %v9795_v39  ;;  %4696 = vst.msk [vmem:[#allocation3 + $0x150] sm:$0xff] %vm1227_vm3, %v4632_v4  ;;  %6673 = vmatmul.msk.bf16.gmra.mxu3 %vm1227_vm3, %v9822_v23  ;;  %v9910_v13 = vpop.f32.mrf.mxu0 }
 0x625   : > { %v5696_v31 = vpack.c.b16 %v5674_v60, %v5673_v17  ;;  %v5129_v8 = vld [vmem:[#allocation3 + $0x140] sm:$0xff] }
 0x626   : > { %5076 = vst.msk [vmem:[#allocation3 + $0x148] sm:$0xff] %vm1227_vm3, %v5012_v56  ;;  %v5181_v20 = vadd.f32 %v9683_v6, %v5129_v8 }
 0x627   : > { %v4079_v49 = vpop.f32.mrf.mxu3  ;;  %6764 = vmatmul.msk.bf16.gmra.mxu2 %vm1227_vm3, %v5696_v31 }
 0x628   : > { %v4237_v39 = vadd.f32 %v4173_v14, %v4079_v49  ;;  %v5229_v15 = vmax.f32 %v5181_v20, 0.0 }
 0x629   : > { %v4569_v0 = vld [vmem:[#allocation3 + $0x158] sm:$0xff] }
 0x62a   : > { %v4633_v23 = vadd.f32 %v4569_v0, %v9806_v27  ;;  %4301 = vst.msk [vmem:[#allocation3 + $0x160] sm:$0xff] %vm1227_vm3, %v4237_v39  ;;  %v5788_v55 = vpop.f32.mrf.mxu2  ;;  %v9916_v45 = vpop.f32.mrf.mxu1  ;;  %v4176_v39 = vld [vmem:[#allocation3 + $0x178] sm:$0xff] }
 0x62b   : > { %v4949_v19 = vld [vmem:[#allocation3 + $0x150] sm:$0xff]  ;;  %v5789_v58 = vadd.f32 %v9631_v40, %v5788_v55 }
 0x62c   : > { %v5013_v62 = vadd.f32 %v4949_v19, %v9812_v54  ;;  %4697 = vst.msk [vmem:[#allocation3 + $0x158] sm:$0xff] %vm1227_vm3, %v4633_v23  ;;  %v9926_v31 = vpop.f32.mrf.mxu0 }
 0x62d   : > { %v5917_v35 = vadd.f32 %v6864_v9, %v5789_v58  ;;  %v5130_v41 = vld [vmem:[#allocation3 + $0x148] sm:$0xff] }
 0x62e   : > { %5077 = vst.msk [vmem:[#allocation3 + $0x150] sm:$0xff] %vm1227_vm3, %v5013_v62  ;;  %v5182_v27 = vadd.f32 %v9683_v6, %v5130_v41 }
 0x62f   : > { %v5949_v48 = vmax.f32 %v5917_v35, 0.0  ;;  %v4081_v61 = vpop.f32.mrf.mxu3 }
 0x630   : > { %v4238_v3 = vadd.f32 %v4174_v51, %v4081_v61  ;;  %v5230_v57 = vmax.f32 %v5182_v27, 0.0  ;;  %v6914_v27 = vld [vmem:[%s7502_s30 + $0x30] sm:$0xff]   ;;  %v4177_v61 = vld [vmem:[#allocation3 + $0x180] sm:$0xff] }
 0x631   : > { %v4570_v44 = vld [vmem:[#allocation3 + $0x160] sm:$0xff]  ;;  %v5981_v12 = vpack.c.bf16 %v5949_v48, %v5949_v48 }
 0x632   : > { %v4634_v54 = vadd.f32 %v4570_v44, %v9831_v26  ;;  %4302 = vst.msk [vmem:[#allocation3 + $0x168] sm:$0xff] %vm1227_vm3, %v4238_v3  ;;  %v5790_v29 = vpop.f32.mrf.mxu2  ;;  %v5278_v30 = vpack.c.bf16 %v5230_v57, %v5230_v57  ;;  %v9929_v49 = vpop.f32.mrf.mxu1  ;;  %v6868_v44 = vunpack.c.l.bf16 %v6914_v27 }
 0x633   : > { %v4950_v52 = vld [vmem:[#allocation3 + $0x158] sm:$0xff]  ;;  %6014 = vst.msk [vmem:[%s9645_s27 + $0x28] sm:$0xf] %vm6003_vm9, %v5981_v12  ;;  %v5791_v43 = vadd.f32 %v9631_v40, %v5790_v29  ;;  %v5277_v40 = vpack.c.bf16 %v5229_v15, %v5229_v15 }
 0x634   : > { %v5014_v5 = vadd.f32 %v4950_v52, %v9836_v2  ;;  %4698 = vst.msk [vmem:[#allocation3 + $0x160] sm:$0xff] %vm1227_vm3, %v4634_v54  ;;  %6674 = vmatmul.msk.bf16.gmra.mxu3 %vm1227_vm3, %v9817_v25  ;;  %v5524_v26 = vshrl.u32 %v5278_v30, 16  ;;  %v5527_v24 = vshll.u32 %v5278_v30, 16  ;;  %v9951_v54 = vld [vmem:[%s10457_s26] ss:$0 sm:$0xff] }
 0x635   : > { %v5918_v10 = vadd.f32 %v6865_v28, %v5791_v43  ;;  %v5131_v37 = vld [vmem:[#allocation3 + $0x150] sm:$0xff]  ;;  %v5519_v16 = vshrl.u32 %v5277_v40, 16 }
 0x636   : > { %5078 = vst.msk [vmem:[#allocation3 + $0x158] sm:$0xff] %vm1227_vm3, %v5014_v5  ;;  %v5183_v33 = vadd.f32 %v9683_v6, %v5131_v37  ;;  %v5526_v46 = vrot.slane %v5524_v26, 7  ;;  %v4178_v37 = vld [vmem:[#allocation3 + $0x188] sm:$0xff] }
 0x637   : > { %v5950_v42 = vmax.f32 %v5918_v10, 0.0  ;;  %v4084_v11 = vpop.f32.mrf.mxu3  ;;  %v6749_v50 = vrot.slane %v5519_v16, 11 }
 0x638   : > { %v4239_v2 = vadd.f32 %v4175_v36, %v4084_v11  ;;  %v5231_v7 = vmax.f32 %v5183_v33, 0.0  ;;  %v5529_v53 = vor.u32 %v5527_v24, %v5526_v46  ;;  %v5531_v9 = vrot.slane %v5526_v46, 4 }
 0x639   : > { %v4571_v38 = vld [vmem:[#allocation3 + $0x168] sm:$0xff]  ;;  %v5982_v34 = vpack.c.bf16 %v5950_v42, %v5950_v42  ;;  %v6869_v36 = vunpack.c.h.bf16 %v6914_v27 }
 0x63a   : > { %v4635_v25 = vadd.f32 %v4571_v38, %v9855_v1  ;;  %4303 = vst.msk [vmem:[#allocation3 + $0x170] sm:$0xff] %vm1227_vm3, %v4239_v2  ;;  %v5279_v4 = vpack.c.bf16 %v5231_v7, %v5231_v7  ;;  %v9944_v3 = vpop.f32.mrf.mxu1 }
 0x63b   : > { %v4951_v17 = vld [vmem:[#allocation3 + $0x160] sm:$0xff]  ;;  %6015 = vst.msk [vmem:[%s9645_s27 + $0x2c] sm:$0xf] %vm6003_vm9, %v5982_v34 }
 0x63c   : > { %v5015_v60 = vadd.f32 %v4951_v17, %v9860_v63  ;;  %4699 = vst.msk [vmem:[#allocation3 + $0x168] sm:$0xff] %vm1227_vm3, %v4635_v25  ;;  %v5533_v56 = vshrl.u32 %v5279_v4, 16  ;;  %v5536_v47 = vshll.u32 %v5279_v4, 16  ;;  %v5530_v63 = vsel %vm9414_vm8, %v6749_v50, %v5529_v53 }
 0x63d   : > { %v5675_v62 = vunpack.c.l.b16 %v5530_v63 }
 0x63e   : > { %5079 = vst.msk [vmem:[#allocation3 + $0x160] sm:$0xff] %vm1227_vm3, %v5015_v60  ;;  %v5535_v1 = vrot.slane %v5533_v56, 7 }
 0x63f   : > { %v4086_v14 = vpop.f32.mrf.mxu3 }
 0x640   : > { %v4240_v0 = vadd.f32 %v4176_v39, %v4086_v14  ;;  %v5538_v23 = vor.u32 %v5536_v47, %v5535_v1  ;;  %v4179_v1 = vld [vmem:[#allocation3 + $0x190] sm:$0xff] }
 0x641   : > { %v4572_v55 = vld [vmem:[#allocation3 + $0x170] sm:$0xff] }
 0x642   : > { %v4636_v19 = vadd.f32 %v4572_v55, %v9872_v59  ;;  %4304 = vst.msk [vmem:[#allocation3 + $0x178] sm:$0xff] %vm1227_vm3, %v4240_v0  ;;  %v5539_v58 = vsel %vm9414_vm8, %v5531_v9, %v5538_v23  ;;  %v9942_v59 = vpop.f32.mrf.mxu0  ;;  %v9963_v34 = vpop.f32.mrf.mxu1 }
 0x643   : > { %v4952_v8 = vld [vmem:[#allocation3 + $0x168] sm:$0xff]  ;;  %v5676_v35 = vunpack.c.l.b16 %v5539_v58 }
 0x644   : > { %v5016_v41 = vadd.f32 %v4952_v8, %v9876_v32  ;;  %4700 = vst.msk [vmem:[#allocation3 + $0x170] sm:$0xff] %vm1227_vm3, %v4636_v19 }
 0x645   : > { %v5697_v20 = vpack.c.b16 %v5676_v35, %v5675_v62  ;;  %v5132_v15 = vld [vmem:[#allocation3 + $0x160] sm:$0xff] }
 0x646   : > { %5080 = vst.msk [vmem:[#allocation3 + $0x168] sm:$0xff] %vm1227_vm3, %v5016_v41 }
 0x647   : > { %v4089_v48 = vpop.f32.mrf.mxu3  ;;  %6765 = vmatmul.msk.bf16.gmra.mxu2 %vm1227_vm3, %v5697_v20 }
 0x648   : > { %v4241_v51 = vadd.f32 %v4177_v61, %v4089_v48  ;;  %v4180_v48 = vld [vmem:[#allocation3 + $0x198] sm:$0xff] }
 0x649   : > { %v4573_v57 = vld [vmem:[#allocation3 + $0x178] sm:$0xff] }
 0x64a   : > { %v4637_v12 = vadd.f32 %v4573_v57, %v9893_v22  ;;  %4305 = vst.msk [vmem:[#allocation3 + $0x180] sm:$0xff] %vm1227_vm3, %v4241_v51  ;;  %v5793_v32 = vpop.f32.mrf.mxu2  ;;  %v5184_v22 = vadd.f32 %v9683_v6, %v5132_v15  ;;  %v9978_v35 = vpop.f32.mrf.mxu1 }
 0x64b   : > { %v4953_v28 = vld [vmem:[#allocation3 + $0x170] sm:$0xff]  ;;  %v5794_v29 = vadd.f32 %v9951_v54, %v5793_v32 }
 0x64c   : > { %v5017_v30 = vadd.f32 %v4953_v28, %v9897_v18  ;;  %4701 = vst.msk [vmem:[#allocation3 + $0x178] sm:$0xff] %vm1227_vm3, %v4637_v12  ;;  %v9959_v18 = vpop.f32.mrf.mxu0  ;;  %v5232_v46 = vmax.f32 %v5184_v22, 0.0  ;;  %v6915_v22 = vld [vmem:[%s7502_s30 + $0x38] sm:$0xff]  }
 0x64d   : > { %v5919_v52 = vadd.f32 %v6868_v44, %v5794_v29  ;;  %v5133_v43 = vld [vmem:[#allocation3 + $0x168] sm:$0xff] }
 0x64e   : > { %5081 = vst.msk [vmem:[#allocation3 + $0x170] sm:$0xff] %vm1227_vm3, %v5017_v30  ;;  %v5185_v5 = vadd.f32 %v9683_v6, %v5133_v43  ;;  %v5280_v53 = vpack.c.bf16 %v5232_v46, %v5232_v46 }
 0x64f   : > { %v5951_v26 = vmax.f32 %v5919_v52, 0.0  ;;  %v4091_v10 = vpop.f32.mrf.mxu3 }
 0x650   : > { %v4242_v33 = vadd.f32 %v4178_v37, %v4091_v10  ;;  %v5233_v40 = vmax.f32 %v5185_v5, 0.0  ;;  %v5541_v23 = vshrl.u32 %v5280_v53, 16 }
 0x651   : > { %v4574_v42 = vld [vmem:[#allocation3 + $0x180] sm:$0xff]  ;;  %v5983_v11 = vpack.c.bf16 %v5951_v26, %v5951_v26 }
 0x652   : > { %v4638_v2 = vadd.f32 %v4574_v42, %v9910_v13  ;;  %4306 = vst.msk [vmem:[#allocation3 + $0x188] sm:$0xff] %vm1227_vm3, %v4242_v33  ;;  %v5795_v7 = vpop.f32.mrf.mxu2  ;;  %v5281_v38 = vpack.c.bf16 %v5233_v40, %v5233_v40  ;;  %v9991_v5 = vpop.f32.mrf.mxu1  ;;  %v4181_v26 = vld [vmem:[#allocation3 + $0x1a0] sm:$0xff]  ;;  %v6872_v33 = vunpack.c.l.bf16 %v6915_v22 }
 0x653   : > { %v4954_v25 = vld [vmem:[#allocation3 + $0x178] sm:$0xff]  ;;  %6016 = vst.msk [vmem:[%s9645_s27 + $0x30] sm:$0xf] %vm6003_vm9, %v5983_v11  ;;  %v5796_v4 = vadd.f32 %v9951_v54, %v5795_v7 }
 0x654   : > { %v5018_v16 = vadd.f32 %v4954_v25, %v9916_v45  ;;  %4702 = vst.msk [vmem:[#allocation3 + $0x180] sm:$0xff] %vm1227_vm3, %v4638_v2  ;;  %v5546_v24 = vshrl.u32 %v5281_v38, 16  ;;  %v5549_v55 = vshll.u32 %v5281_v38, 16  ;;  %v10003_v38 = vld [vmem:[%s10182_s7] ss:$0 sm:$0xff] }
 0x655   : > { %v5920_v17 = vadd.f32 %v6869_v36, %v5796_v4  ;;  %v5134_v60 = vld [vmem:[#allocation3 + $0x170] sm:$0xff] }
 0x656   : > { %5082 = vst.msk [vmem:[#allocation3 + $0x178] sm:$0xff] %vm1227_vm3, %v5018_v16  ;;  %v5186_v13 = vadd.f32 %v9683_v6, %v5134_v60  ;;  %v5548_v39 = vrot.slane %v5546_v24, 7  ;;  %v4496_v6 = vpop.f32.mrf.mxu0  ;;  %v4182_v24 = vld [vmem:[#allocation3 + $0x1a8] sm:$0xff] }
 0x657   : > { %v5952_v56 = vmax.f32 %v5920_v17, 0.0  ;;  %v4094_v50 = vpop.f32.mrf.mxu3 }
 0x658   : > { %v4243_v47 = vadd.f32 %v4179_v1, %v4094_v50  ;;  %v5234_v14 = vmax.f32 %v5186_v13, 0.0  ;;  %v5551_v8 = vor.u32 %v5549_v55, %v5548_v39  ;;  %v5553_v57 = vrot.slane %v5548_v39, 4 }
 0x659   : > { %v4575_v0 = vld [vmem:[#allocation3 + $0x188] sm:$0xff]  ;;  %v5984_v63 = vpack.c.bf16 %v5952_v56, %v5952_v56  ;;  %v6873_v50 = vunpack.c.h.bf16 %v6915_v22  ;;  %v4184_v22 = vld [vmem:[#allocation3 + $0x1b8] sm:$0xff] }
 0x65a   : > { %v4639_v45 = vadd.f32 %v4575_v0, %v9926_v31  ;;  %4307 = vst.msk [vmem:[#allocation3 + $0x190] sm:$0xff] %vm1227_vm3, %v4243_v47  ;;  %v5282_v9 = vpack.c.bf16 %v5234_v14, %v5234_v14  ;;  %v6750_v31 = vrot.slane %v5541_v23, 11  ;;  %v4879_v13 = vpop.f32.mrf.mxu1 }
 0x65b   : > { %v4955_v19 = vld [vmem:[#allocation3 + $0x180] sm:$0xff]  ;;  %6017 = vst.msk [vmem:[%s9645_s27 + $0x34] sm:$0xf] %vm6003_vm9, %v5984_v63 }
 0x65c   : > { %v5019_v58 = vadd.f32 %v4955_v19, %v9929_v49  ;;  %4703 = vst.msk [vmem:[#allocation3 + $0x188] sm:$0xff] %vm1227_vm3, %v4639_v45  ;;  %v5555_v62 = vshrl.u32 %v5282_v9, 16  ;;  %v5558_v20 = vshll.u32 %v5282_v9, 16  ;;  %v5552_v51 = vsel %vm9414_vm8, %v6750_v31, %v5551_v8 }
 0x65d   : > { %v5677_v29 = vunpack.c.l.b16 %v5552_v51 }
 0x65e   : > { %5083 = vst.msk [vmem:[#allocation3 + $0x180] sm:$0xff] %vm1227_vm3, %v5019_v58  ;;  %v5557_v41 = vrot.slane %v5555_v62, 7  ;;  %v4498_v43 = vpop.f32.mrf.mxu0  ;;  %v4183_v62 = vld [vmem:[#allocation3 + $0x1b0] sm:$0xff] }
 0x65f   : > { %v4096_v27 = vpop.f32.mrf.mxu3 }
 0x660   : > { %v4244_v61 = vadd.f32 %v4180_v48, %v4096_v27  ;;  %v5560_v49 = vor.u32 %v5558_v20, %v5557_v41 }
 0x661   : > { %v4576_v44 = vld [vmem:[#allocation3 + $0x190] sm:$0xff] }
 0x662   : > { %v4640_v12 = vadd.f32 %v4576_v44, %v9942_v59  ;;  %4308 = vst.msk [vmem:[#allocation3 + $0x198] sm:$0xff] %vm1227_vm3, %v4244_v61  ;;  %v5561_v32 = vsel %vm9414_vm8, %v5553_v57, %v5560_v49  ;;  %v4882_v44 = vpop.f32.mrf.mxu1 }
 0x663   : > { %v4956_v28 = vld [vmem:[#allocation3 + $0x188] sm:$0xff]  ;;  %v5678_v15 = vunpack.c.l.b16 %v5561_v32 }
 0x664   : > { %v5020_v30 = vadd.f32 %v4956_v28, %v9944_v3  ;;  %4704 = vst.msk [vmem:[#allocation3 + $0x190] sm:$0xff] %vm1227_vm3, %v4640_v12 }
 0x665   : > { %v5698_v52 = vpack.c.b16 %v5678_v15, %v5677_v29  ;;  %v5135_v36 = vld [vmem:[#allocation3 + $0x180] sm:$0xff] }
 0x666   : > { %5084 = vst.msk [vmem:[#allocation3 + $0x188] sm:$0xff] %vm1227_vm3, %v5020_v30 }
 0x667   : > { %v4099_v59 = vpop.f32.mrf.mxu3  ;;  %6766 = vmatmul.msk.bf16.gmra.mxu2 %vm1227_vm3, %v5698_v52 }
 0x668   : > { %v4245_v10 = vadd.f32 %v4181_v26, %v4099_v59 }
 0x669   : > { %v4577_v37 = vld [vmem:[#allocation3 + $0x198] sm:$0xff] }
 0x66a   : > { %v4641_v40 = vadd.f32 %v4577_v37, %v9959_v18  ;;  %4309 = vst.msk [vmem:[#allocation3 + $0x1a0] sm:$0xff] %vm1227_vm3, %v4245_v10  ;;  %v5798_v3 = vpop.f32.mrf.mxu2  ;;  %v5187_v18 = vadd.f32 %v10003_v38, %v5135_v36 }
 0x66b   : > { %v4957_v42 = vld [vmem:[#allocation3 + $0x190] sm:$0xff]  ;;  %v5799_v11 = vadd.f32 %v9951_v54, %v5798_v3 }
 0x66c   : > { %v5021_v2 = vadd.f32 %v4957_v42, %v9963_v34  ;;  %4705 = vst.msk [vmem:[#allocation3 + $0x198] sm:$0xff] %vm1227_vm3, %v4641_v40  ;;  %v4501_v34 = vpop.f32.mrf.mxu0  ;;  %v5235_v14 = vmax.f32 %v5187_v18, 0.0  ;;  %v6916_v18 = vld [vmem:[%s7502_s30 + $0x40] sm:$0xff]  }
 0x66d   : > { %v5921_v7 = vadd.f32 %v6872_v33, %v5799_v11  ;;  %v5136_v46 = vld [vmem:[#allocation3 + $0x188] sm:$0xff] }
 0x66e   : > { %5085 = vst.msk [vmem:[#allocation3 + $0x190] sm:$0xff] %vm1227_vm3, %v5021_v2  ;;  %v5188_v25 = vadd.f32 %v10003_v38, %v5136_v46 }
 0x66f   : > { %v5953_v4 = vmax.f32 %v5921_v7, 0.0  ;;  %v4101_v16 = vpop.f32.mrf.mxu3  ;;  %v4884_v7 = vpop.f32.mrf.mxu1 }
 0x670   : > { %v4246_v17 = vadd.f32 %v4182_v24, %v4101_v16  ;;  %v5236_v60 = vmax.f32 %v5188_v25, 0.0 }
 0x671   : > { %v4578_v53 = vld [vmem:[#allocation3 + $0x1a0] sm:$0xff]  ;;  %v5985_v56 = vpack.c.bf16 %v5953_v4, %v5953_v4 }
 0x672   : > { %v4642_v1 = vadd.f32 %v4578_v53, %v4496_v6  ;;  %4310 = vst.msk [vmem:[#allocation3 + $0x1a8] sm:$0xff] %vm1227_vm3, %v4246_v17  ;;  %v5800_v47 = vpop.f32.mrf.mxu2  ;;  %v5284_v39 = vpack.c.bf16 %v5236_v60, %v5236_v60  ;;  %v5283_v6 = vpack.c.bf16 %v5235_v14, %v5235_v14  ;;  %v4185_v4 = vld [vmem:[#allocation3 + $0x1c0] sm:$0xff] }
 0x673   : > { %v4958_v0 = vld [vmem:[#allocation3 + $0x198] sm:$0xff]  ;;  %6018 = vst.msk [vmem:[%s9645_s27 + $0x38] sm:$0xf] %vm6003_vm9, %v5985_v56  ;;  %v5801_v63 = vadd.f32 %v9951_v54, %v5800_v47 }
 0x674   : > { %v5022_v45 = vadd.f32 %v4958_v0, %v9978_v35  ;;  %4706 = vst.msk [vmem:[#allocation3 + $0x1a0] sm:$0xff] %vm1227_vm3, %v4642_v1  ;;  %v5568_v9 = vshrl.u32 %v5284_v39, 16  ;;  %v4503_v35 = vpop.f32.mrf.mxu0  ;;  %v5563_v57 = vshrl.u32 %v5283_v6, 16  ;;  %v5571_v49 = vshll.u32 %v5284_v39, 16 }
 0x675   : > { %v5922_v23 = vadd.f32 %v6873_v50, %v5801_v63  ;;  %v5137_v55 = vld [vmem:[#allocation3 + $0x190] sm:$0xff] }
 0x676   : > { %5086 = vst.msk [vmem:[#allocation3 + $0x198] sm:$0xff] %vm1227_vm3, %v5022_v45  ;;  %v5189_v19 = vadd.f32 %v10003_v38, %v5137_v55  ;;  %v5570_v20 = vrot.slane %v5568_v9, 7  ;;  %v6751_v15 = vrot.slane %v5563_v57, 11 }
 0x677   : > { %v5954_v58 = vmax.f32 %v5922_v23, 0.0  ;;  %v4104_v8 = vpop.f32.mrf.mxu3  ;;  %v4887_v63 = vpop.f32.mrf.mxu1  ;;  %v4186_v23 = vld [vmem:[#allocation3 + $0x1c8] sm:$0xff] }
 0x678   : > { %v4247_v31 = vadd.f32 %v4183_v62, %v4104_v8  ;;  %v5237_v41 = vmax.f32 %v5189_v19, 0.0  ;;  %v5573_v28 = vor.u32 %v5571_v49, %v5570_v20  ;;  %v5575_v10 = vrot.slane %v5570_v20, 4 }
 0x679   : > { %v4579_v27 = vld [vmem:[#allocation3 + $0x1a8] sm:$0xff]  ;;  %v5986_v48 = vpack.c.bf16 %v5954_v58, %v5954_v58  ;;  %v6877_v8 = vunpack.c.h.bf16 %v6916_v18 }
 0x67a   : > { %v4643_v61 = vadd.f32 %v4579_v27, %v4498_v43  ;;  %4311 = vst.msk [vmem:[#allocation3 + $0x1b0] sm:$0xff] %vm1227_vm3, %v4247_v31  ;;  %v5285_v51 = vpack.c.bf16 %v5237_v41, %v5237_v41  ;;  %v5574_v26 = vsel %vm9414_vm8, %v6751_v15, %v5573_v28  ;;  %v4187_v28 = vld [vmem:[#allocation3 + $0x1d0] sm:$0xff] }
 0x67b   : > { %v4959_v12 = vld [vmem:[#allocation3 + $0x1a0] sm:$0xff]  ;;  %6019 = vst.msk [vmem:[%s9645_s27 + $0x3c] sm:$0xf] %vm6003_vm9, %v5986_v48  ;;  %v5679_v42 = vunpack.c.l.b16 %v5574_v26 }
 0x67c   : > { %v5023_v32 = vadd.f32 %v4959_v12, %v9991_v5  ;;  %4707 = vst.msk [vmem:[#allocation3 + $0x1a8] sm:$0xff] %vm1227_vm3, %v4643_v61  ;;  %v5577_v29 = vshrl.u32 %v5285_v51, 16  ;;  %v5580_v52 = vshll.u32 %v5285_v51, 16  ;;  %v4506_v36 = vpop.f32.mrf.mxu0 }
 0x67e   : > { %5087 = vst.msk [vmem:[#allocation3 + $0x1a0] sm:$0xff] %vm1227_vm3, %v5023_v32  ;;  %v5579_v30 = vrot.slane %v5577_v29, 7 }
 0x67f   : > { %v4106_v43 = vpop.f32.mrf.mxu3 }
 0x680   : > { %v4248_v59 = vadd.f32 %v4184_v22, %v4106_v43  ;;  %v5582_v37 = vor.u32 %v5580_v52, %v5579_v30  ;;  %v4889_v43 = vpop.f32.mrf.mxu1 }
 0x681   : > { %v4580_v33 = vld [vmem:[#allocation3 + $0x1b0] sm:$0xff] }
 0x682   : > { %v4644_v5 = vadd.f32 %v4580_v33, %v4501_v34  ;;  %4312 = vst.msk [vmem:[#allocation3 + $0x1b8] sm:$0xff] %vm1227_vm3, %v4248_v59  ;;  %v5583_v40 = vsel %vm9414_vm8, %v5575_v10, %v5582_v37  ;;  %v6876_v34 = vunpack.c.l.bf16 %v6916_v18 }
 0x683   : > { %v4960_v3 = vld [vmem:[#allocation3 + $0x1a8] sm:$0xff]  ;;  %v5680_v11 = vunpack.c.l.b16 %v5583_v40 }
 0x684   : > { %v5024_v2 = vadd.f32 %v4960_v3, %v4879_v13  ;;  %4708 = vst.msk [vmem:[#allocation3 + $0x1b0] sm:$0xff] %vm1227_vm3, %v4644_v5  ;;  %v4508_v14 = vpop.f32.mrf.mxu0 }
 0x685   : > { %v5699_v46 = vpack.c.b16 %v5680_v11, %v5679_v42  ;;  %v5138_v56 = vld [vmem:[#allocation3 + $0x1a0] sm:$0xff] }
 0x686   : > { %5088 = vst.msk [vmem:[#allocation3 + $0x1a8] sm:$0xff] %vm1227_vm3, %v5024_v2  ;;  %v5190_v39 = vadd.f32 %v10003_v38, %v5138_v56 }
 0x687   : > { %v4109_v25 = vpop.f32.mrf.mxu3  ;;  %6767 = vmatmul.msk.bf16.gmra.mxu2 %vm1227_vm3, %v5699_v46  ;;  %v4188_v46 = vld [vmem:[#allocation3 + $0x1d8] sm:$0xff] }
 0x688   : > { %v4249_v16 = vadd.f32 %v4185_v4, %v4109_v25  ;;  %v5238_v41 = vmax.f32 %v5190_v39, 0.0 }
 0x689   : > { %v4581_v24 = vld [vmem:[#allocation3 + $0x1b8] sm:$0xff] }
 0x68a   : > { %v4645_v17 = vadd.f32 %v4581_v24, %v4503_v35  ;;  %4313 = vst.msk [vmem:[#allocation3 + $0x1c0] sm:$0xff] %vm1227_vm3, %v4249_v16  ;;  %v5803_v60 = vpop.f32.mrf.mxu2 }
 0x68b   : > { %v4961_v53 = vld [vmem:[#allocation3 + $0x1b0] sm:$0xff]  ;;  %v5804_v13 = vadd.f32 %v9951_v54, %v5803_v60 }
 0x68c   : > { %v5025_v50 = vadd.f32 %v4961_v53, %v4882_v44  ;;  %4709 = vst.msk [vmem:[#allocation3 + $0x1b8] sm:$0xff] %vm1227_vm3, %v4645_v17  ;;  %v5286_v44 = vpack.c.bf16 %v5238_v41, %v5238_v41  ;;  %v4511_v29 = vpop.f32.mrf.mxu0  ;;  %v4892_v53 = vpop.f32.mrf.mxu1 }
 0x68d   : > { %v5923_v1 = vadd.f32 %v6876_v34, %v5804_v13  ;;  %v5139_v47 = vld [vmem:[#allocation3 + $0x1a8] sm:$0xff] }
 0x68e   : > { %5089 = vst.msk [vmem:[#allocation3 + $0x1b0] sm:$0xff] %vm1227_vm3, %v5025_v50  ;;  %v5191_v0 = vadd.f32 %v10003_v38, %v5139_v47  ;;  %v5585_v37 = vshrl.u32 %v5286_v44, 16 }
 0x68f   : > { %v5955_v45 = vmax.f32 %v5923_v1, 0.0  ;;  %v4111_v9 = vpop.f32.mrf.mxu3 }
 0x690   : > { %v4250_v55 = vadd.f32 %v4186_v23, %v4111_v9  ;;  %v5239_v19 = vmax.f32 %v5191_v0, 0.0  ;;  %v6752_v11 = vrot.slane %v5585_v37, 11  ;;  %v4189_v0 = vld [vmem:[#allocation3 + $0x1e0] sm:$0xff] }
 0x691   : > { %v4582_v6 = vld [vmem:[#allocation3 + $0x1c0] sm:$0xff]  ;;  %v5987_v58 = vpack.c.bf16 %v5955_v45, %v5955_v45 }
 0x692   : > { %v4646_v62 = vadd.f32 %v4582_v6, %v4506_v36  ;;  %4314 = vst.msk [vmem:[#allocation3 + $0x1c8] sm:$0xff] %vm1227_vm3, %v4250_v55  ;;  %v5805_v31 = vpop.f32.mrf.mxu2  ;;  %v5287_v20 = vpack.c.bf16 %v5239_v19, %v5239_v19 }
 0x693   : > { %v4962_v27 = vld [vmem:[#allocation3 + $0x1b8] sm:$0xff]  ;;  %6020 = vst.msk [vmem:[%s9645_s27 + $0x40] sm:$0xf] %vm6003_vm9, %v5987_v58  ;;  %v5806_v48 = vadd.f32 %v9951_v54, %v5805_v31 }
 0x694   : > { %v5026_v35 = vadd.f32 %v4962_v27, %v4884_v7  ;;  %4710 = vst.msk [vmem:[#allocation3 + $0x1c0] sm:$0xff] %vm1227_vm3, %v4646_v62  ;;  %v5590_v61 = vshrl.u32 %v5287_v20, 16  ;;  %v5593_v33 = vshll.u32 %v5287_v20, 16  ;;  %v4513_v34 = vpop.f32.mrf.mxu0  ;;  %v4894_v31 = vpop.f32.mrf.mxu1 }
 0x695   : > { %v5924_v51 = vadd.f32 %v6877_v8, %v5806_v48  ;;  %v5140_v57 = vld [vmem:[#allocation3 + $0x1b0] sm:$0xff] }
 0x696   : > { %5090 = vst.msk [vmem:[#allocation3 + $0x1b8] sm:$0xff] %vm1227_vm3, %v5026_v35  ;;  %v5192_v49 = vadd.f32 %v10003_v38, %v5140_v57  ;;  %v5592_v52 = vrot.slane %v5590_v61, 7 }
 0x697   : > { %v5956_v12 = vmax.f32 %v5924_v51, 0.0  ;;  %v4114_v32 = vpop.f32.mrf.mxu3  ;;  %v4190_v51 = vld [vmem:[#allocation3 + $0x1e8] sm:$0xff] }
 0x698   : > { %v4251_v15 = vadd.f32 %v4187_v28, %v4114_v32  ;;  %v5240_v30 = vmax.f32 %v5192_v49, 0.0  ;;  %v5595_v3 = vor.u32 %v5593_v33, %v5592_v52  ;;  %v5597_v4 = vrot.slane %v5592_v52, 4 }
 0x699   : > { %v4583_v22 = vld [vmem:[#allocation3 + $0x1c8] sm:$0xff]  ;;  %v5988_v59 = vpack.c.bf16 %v5956_v12, %v5956_v12 }
 0x69a   : > { %v4647_v26 = vadd.f32 %v4583_v22, %v4508_v14  ;;  %4315 = vst.msk [vmem:[#allocation3 + $0x1d0] sm:$0xff] %vm1227_vm3, %v4251_v15  ;;  %v5288_v10 = vpack.c.bf16 %v5240_v30, %v5240_v30  ;;  %v5596_v25 = vsel %vm9414_vm8, %v6752_v11, %v5595_v3  ;;  %v6917_v14 = vld [vmem:[%s7502_s30 + $0x48] sm:$0xff]   ;;  %v4191_v11 = vld [vmem:[#allocation3 + $0x1f0] sm:$0xff] }
 0x69b   : > { %v4963_v5 = vld [vmem:[#allocation3 + $0x1c0] sm:$0xff]  ;;  %6021 = vst.msk [vmem:[%s9645_s27 + $0x44] sm:$0xf] %vm6003_vm9, %v5988_v59  ;;  %v5681_v56 = vunpack.c.l.b16 %v5596_v25  ;;  %v6880_v9 = vunpack.c.l.bf16 %v6917_v14  ;;  %v6881_v32 = vunpack.c.h.bf16 %v6917_v14 }
 0x69c   : > { %v5027_v40 = vadd.f32 %v4963_v5, %v4887_v63  ;;  %4711 = vst.msk [vmem:[#allocation3 + $0x1c8] sm:$0xff] %vm1227_vm3, %v4647_v26  ;;  %v5599_v42 = vshrl.u32 %v5288_v10, 16  ;;  %v5602_v2 = vshll.u32 %v5288_v10, 16  ;;  %v4516_v55 = vpop.f32.mrf.mxu0  ;;  %v4897_v37 = vpop.f32.mrf.mxu1 }
 0x69e   : > { %5091 = vst.msk [vmem:[#allocation3 + $0x1c0] sm:$0xff] %vm1227_vm3, %v5027_v40  ;;  %v5601_v36 = vrot.slane %v5599_v42, 7 }
 0x69f   : > { %v4116_v7 = vpop.f32.mrf.mxu3 }
 0x6a0   : > { %v4252_v18 = vadd.f32 %v4188_v46, %v4116_v7  ;;  %v5604_v16 = vor.u32 %v5602_v2, %v5601_v36 }
 0x6a1   : > { %v4584_v24 = vld [vmem:[#allocation3 + $0x1d0] sm:$0xff] }
 0x6a2   : > { %v4648_v17 = vadd.f32 %v4584_v24, %v4511_v29  ;;  %4316 = vst.msk [vmem:[#allocation3 + $0x1d8] sm:$0xff] %vm1227_vm3, %v4252_v18  ;;  %v5605_v60 = vsel %vm9414_vm8, %v5597_v4, %v5604_v16 }
 0x6a3   : > { %v4964_v13 = vld [vmem:[#allocation3 + $0x1c8] sm:$0xff]  ;;  %v5682_v50 = vunpack.c.l.b16 %v5605_v60 }
 0x6a4   : > { %v5028_v1 = vadd.f32 %v4964_v13, %v4889_v43  ;;  %4712 = vst.msk [vmem:[#allocation3 + $0x1d0] sm:$0xff] %vm1227_vm3, %v4648_v17  ;;  %v4518_v59 = vpop.f32.mrf.mxu0 }
 0x6a5   : > { %v5700_v47 = vpack.c.b16 %v5682_v50, %v5681_v56  ;;  %v5141_v8 = vld [vmem:[#allocation3 + $0x1c0] sm:$0xff] }
 0x6a6   : > { %5092 = vst.msk [vmem:[#allocation3 + $0x1c8] sm:$0xff] %vm1227_vm3, %v5028_v1  ;;  %v5193_v27 = vadd.f32 %v10003_v38, %v5141_v8 }
 0x6a7   : > { %v4119_v39 = vpop.f32.mrf.mxu3  ;;  %6768 = vmatmul.msk.bf16.gmra.mxu2 %vm1227_vm3, %v5700_v47  ;;  %v4899_v47 = vpop.f32.mrf.mxu1 }
 0x6a8   : > { %v4253_v63 = vadd.f32 %v4189_v0, %v4119_v39  ;;  %v5241_v15 = vmax.f32 %v5193_v27, 0.0  ;;  %v4192_v39 = vld [vmem:[#allocation3 + $0x1f8] sm:$0xff] }
 0x6a9   : > { %v4585_v45 = vld [vmem:[#allocation3 + $0x1d8] sm:$0xff] }
 0x6aa   : > { %v4649_v23 = vadd.f32 %v4585_v45, %v4513_v34  ;;  %4317 = vst.msk [vmem:[#allocation3 + $0x1e0] sm:$0xff] %vm1227_vm3, %v4253_v63  ;;  %v5808_v19 = vpop.f32.mrf.mxu2  ;;  %v5289_v40 = vpack.c.bf16 %v5241_v15, %v5241_v15 }
 0x6ab   : > { %v4965_v6 = vld [vmem:[#allocation3 + $0x1d0] sm:$0xff]  ;;  %v5809_v58 = vadd.f32 %v9951_v54, %v5808_v19 }
 0x6ac   : > { %v5029_v62 = vadd.f32 %v4965_v6, %v4892_v53  ;;  %4713 = vst.msk [vmem:[#allocation3 + $0x1d8] sm:$0xff] %vm1227_vm3, %v4649_v23  ;;  %v5607_v16 = vshrl.u32 %v5289_v40, 16  ;;  %v4521_v13 = vpop.f32.mrf.mxu0 }
 0x6ad   : > { %v5925_v41 = vadd.f32 %v6880_v9, %v5809_v58  ;;  %v5142_v20 = vld [vmem:[#allocation3 + $0x1c8] sm:$0xff] }
 0x6ae   : > { %5093 = vst.msk [vmem:[#allocation3 + $0x1d0] sm:$0xff] %vm1227_vm3, %v5029_v62  ;;  %v5194_v48 = vadd.f32 %v10003_v38, %v5142_v20  ;;  %v6753_v56 = vrot.slane %v5607_v16, 11 }
 0x6af   : > { %v5957_v35 = vmax.f32 %v5925_v41, 0.0  ;;  %v4121_v61 = vpop.f32.mrf.mxu3  ;;  %v6918_v41 = vld [vmem:[%s7502_s30 + $0x50] sm:$0xff]  }
 0x6b0   : > { %v4254_v57 = vadd.f32 %v4190_v51, %v4121_v61  ;;  %v5242_v49 = vmax.f32 %v5194_v48, 0.0  ;;  %v4902_v48 = vpop.f32.mrf.mxu1 }
 0x6b1   : > { %v4586_v44 = vld [vmem:[#allocation3 + $0x1e0] sm:$0xff]  ;;  %v5989_v12 = vpack.c.bf16 %v5957_v35, %v5957_v35  ;;  %v6884_v35 = vunpack.c.l.bf16 %v6918_v41 }
 0x6b2   : > { %v4650_v28 = vadd.f32 %v4586_v44, %v4516_v55  ;;  %4318 = vst.msk [vmem:[#allocation3 + $0x1e8] sm:$0xff] %vm1227_vm3, %v4254_v57  ;;  %v5810_v29 = vpop.f32.mrf.mxu2  ;;  %v5290_v30 = vpack.c.bf16 %v5242_v49, %v5242_v49 }
 0x6b3   : > { %v4966_v52 = vld [vmem:[#allocation3 + $0x1d8] sm:$0xff]  ;;  %6022 = vst.msk [vmem:[%s9645_s27 + $0x48] sm:$0xf] %vm6003_vm9, %v5989_v12  ;;  %v5811_v43 = vadd.f32 %v9951_v54, %v5810_v29 }
 0x6b4   : > { %v5030_v22 = vadd.f32 %v4966_v52, %v4894_v31  ;;  %4714 = vst.msk [vmem:[#allocation3 + $0x1e0] sm:$0xff] %vm1227_vm3, %v4650_v28  ;;  %v5612_v26 = vshrl.u32 %v5290_v30, 16  ;;  %v5615_v24 = vshll.u32 %v5290_v30, 16  ;;  %v4523_v20 = vpop.f32.mrf.mxu0 }
 0x6b5   : > { %v5926_v10 = vadd.f32 %v6881_v32, %v5811_v43  ;;  %v5143_v33 = vld [vmem:[#allocation3 + $0x1d0] sm:$0xff] }
 0x6b6   : > { %5094 = vst.msk [vmem:[#allocation3 + $0x1d8] sm:$0xff] %vm1227_vm3, %v5030_v22  ;;  %v5195_v5 = vadd.f32 %v10003_v38, %v5143_v33  ;;  %v5614_v7 = vrot.slane %v5612_v26, 7  ;;  %v6885_v22 = vunpack.c.h.bf16 %v6918_v41  ;;  %v6920_v41 = vld [vmem:[%s7502_s30 + $0x60] sm:$0xff]  }
 0x6b7   : > { %v5958_v3 = vmax.f32 %v5926_v10, 0.0  ;;  %v4124_v42 = vpop.f32.mrf.mxu3 }
 0x6b8   : > { %v4255_v36 = vadd.f32 %v4191_v11, %v4124_v42  ;;  %v5243_v2 = vmax.f32 %v5195_v5, 0.0  ;;  %v5617_v60 = vor.u32 %v5615_v24, %v5614_v7  ;;  %v5619_v45 = vrot.slane %v5614_v7, 4 }
 0x6b9   : > { %v4587_v46 = vld [vmem:[#allocation3 + $0x1e8] sm:$0xff]  ;;  %v5990_v18 = vpack.c.bf16 %v5958_v3, %v5958_v3 }
 0x6ba   : > { %v4651_v25 = vadd.f32 %v4587_v46, %v4518_v59  ;;  %4319 = vst.msk [vmem:[#allocation3 + $0x1f0] sm:$0xff] %vm1227_vm3, %v4255_v36  ;;  %v5291_v4 = vpack.c.bf16 %v5243_v2, %v5243_v2  ;;  %v5618_v63 = vsel %vm9414_vm8, %v6753_v56, %v5617_v60 }
 0x6bb   : > { %6023 = vst.msk [vmem:[%s9645_s27 + $0x4c] sm:$0xf] %vm6003_vm9, %v5990_v18  ;;  %v4967_v34 = vld [vmem:[#allocation3 + $0x1e0] sm:$0xff]  ;;  %v5683_v58 = vunpack.c.l.b16 %v5618_v63 }
 0x6bc   : > { %4715 = vst.msk [vmem:[#allocation3 + $0x1e8] sm:$0xff] %vm1227_vm3, %v4651_v25  ;;  %v5031_v17 = vadd.f32 %v4967_v34, %v4897_v37  ;;  %v5621_v53 = vshrl.u32 %v5291_v4, 16  ;;  %v5624_v1 = vshll.u32 %v5291_v4, 16  ;;  %v4904_v37 = vpop.f32.mrf.mxu1 }
 0x6be   : > { %5095 = vst.msk [vmem:[#allocation3 + $0x1e0] sm:$0xff] %vm1227_vm3, %v5031_v17  ;;  %v5623_v50 = vrot.slane %v5621_v53, 7 }
 0x6bf   : > { %v4126_v14 = vpop.f32.mrf.mxu3 }
 0x6c0   : > { %v4256_v0 = vadd.f32 %v4192_v39, %v4126_v14  ;;  %v5626_v9 = vor.u32 %v5624_v1, %v5623_v50 }
 0x6c1   : > { %v4588_v23 = vld [vmem:[#allocation3 + $0x1f0] sm:$0xff] }
 0x6c2   : > { %v4652_v55 = vadd.f32 %v4588_v23, %v4521_v13  ;;  %4320 = vst.msk [vmem:[#allocation3 + $0x1f8] sm:$0xff] %vm1227_vm3, %v4256_v0  ;;  %v5627_v19 = vsel %vm9414_vm8, %v5619_v45, %v5626_v9  ;;  %v6919_v0 = vld [vmem:[%s7502_s30 + $0x58] sm:$0xff]  }
 0x6c3   : > { %v4968_v6 = vld [vmem:[#allocation3 + $0x1e8] sm:$0xff]  ;;  %v5684_v8 = vunpack.c.l.b16 %v5627_v19  ;;  %v6888_v63 = vunpack.c.l.bf16 %v6919_v0 }
 0x6c4   : > { %4716 = vst.msk [vmem:[#allocation3 + $0x1f0] sm:$0xff] %vm1227_vm3, %v4652_v55  ;;  %v5032_v62 = vadd.f32 %v4968_v6, %v4899_v47  ;;  %v6889_v6 = vunpack.c.h.bf16 %v6919_v0 }
 0x6c5   : > { %v5701_v31 = vpack.c.b16 %v5684_v8, %v5683_v58  ;;  %v5144_v44 = vld [vmem:[#allocation3 + $0x1e0] sm:$0xff] }
 0x6c6   : > { %5096 = vst.msk [vmem:[#allocation3 + $0x1e8] sm:$0xff] %vm1227_vm3, %v5032_v62  ;;  %v5196_v29 = vadd.f32 %v10003_v38, %v5144_v44 }
 0x6c7   : > { %6769 = vmatmul.msk.bf16.gmra.mxu2 %vm1227_vm3, %v5701_v31 }
 0x6c8   : > { %v5244_v26 = vmax.f32 %v5196_v29, 0.0  ;;  %v6921_v29 = vld [vmem:[%s7502_s30 + $0x68] sm:$0xff]  }
 0x6c9   : > { %v4589_v27 = vld [vmem:[#allocation3 + $0x1f8] sm:$0xff] }
 0x6ca   : > { %v4653_v61 = vadd.f32 %v4589_v27, %v4523_v20  ;;  %v5813_v51 = vpop.f32.mrf.mxu2  ;;  %v5292_v2 = vpack.c.bf16 %v5244_v26, %v5244_v26  ;;  %v6892_v20 = vunpack.c.l.bf16 %v6920_v41  ;;  %v6897_v26 = vunpack.c.h.bf16 %v6921_v29 }
 0x6cb   : > { %v4969_v57 = vld [vmem:[#allocation3 + $0x1f0] sm:$0xff]  ;;  %v5814_v49 = vadd.f32 %v9951_v54, %v5813_v51 }
 0x6cc   : > { %4717 = vst.msk [vmem:[#allocation3 + $0x1f8] sm:$0xff] %vm1227_vm3, %v4653_v61  ;;  %v5033_v12 = vadd.f32 %v4969_v57, %v4902_v48  ;;  %v5629_v16 = vshrl.u32 %v5292_v2, 16  ;;  %v6893_v57 = vunpack.c.h.bf16 %v6920_v41 }
 0x6cd   : > { %v5927_v32 = vadd.f32 %v6884_v35, %v5814_v49  ;;  %v5145_v28 = vld [vmem:[#allocation3 + $0x1e8] sm:$0xff] }
 0x6ce   : > { %5097 = vst.msk [vmem:[#allocation3 + $0x1f0] sm:$0xff] %vm1227_vm3, %v5033_v12  ;;  %v5197_v15 = vadd.f32 %v10003_v38, %v5145_v28  ;;  %v6754_v60 = vrot.slane %v5629_v16, 11 }
 0x6cf   : > { %v5959_v30 = vmax.f32 %v5927_v32, 0.0 }
 0x6d0   : > { %v5245_v52 = vmax.f32 %v5197_v15, 0.0  ;;  %v6896_v15 = vunpack.c.l.bf16 %v6921_v29 }
 0x6d1   : > { %v5991_v43 = vpack.c.bf16 %v5959_v30, %v5959_v30 }
 0x6d2   : > { %v5815_v59 = vpop.f32.mrf.mxu2  ;;  %v5293_v10 = vpack.c.bf16 %v5245_v52, %v5245_v52 }
 0x6d3   : > { %6024 = vst.msk [vmem:[%s9645_s27 + $0x50] sm:$0xf] %vm6003_vm9, %v5991_v43  ;;  %v4970_v33 = vld [vmem:[#allocation3 + $0x1f8] sm:$0xff]  ;;  %v5816_v5 = vadd.f32 %v9951_v54, %v5815_v59 }
 0x6d4   : > { %v5034_v40 = vadd.f32 %v4970_v33, %v4904_v37  ;;  %v5634_v3 = vshrl.u32 %v5293_v10, 16  ;;  %v5637_v24 = vshll.u32 %v5293_v10, 16 }
 0x6d5   : > { %v5928_v42 = vadd.f32 %v6885_v22, %v5816_v5  ;;  %v5146_v11 = vld [vmem:[#allocation3 + $0x1f0] sm:$0xff] }
 0x6d6   : > { %5098 = vst.msk [vmem:[#allocation3 + $0x1f8] sm:$0xff] %vm1227_vm3, %v5034_v40  ;;  %v5198_v36 = vadd.f32 %v10003_v38, %v5146_v11  ;;  %v5636_v18 = vrot.slane %v5634_v3, 7  ;;  %v6922_v3 = vld [vmem:[%s7502_s30 + $0x70] sm:$0xff]  }
 0x6d7   : > { %v5960_v7 = vmax.f32 %v5928_v42, 0.0  ;;  %v6900_v42 = vunpack.c.l.bf16 %v6922_v3 }
 0x6d8   : > { %v5246_v46 = vmax.f32 %v5198_v36, 0.0  ;;  %v5639_v34 = vor.u32 %v5637_v24, %v5636_v18  ;;  %v5641_v38 = vrot.slane %v5636_v18, 4  ;;  %v6901_v18 = vunpack.c.h.bf16 %v6922_v3 }
 0x6d9   : > { %v5992_v25 = vpack.c.bf16 %v5960_v7, %v5960_v7 }
 0x6da   : > { %v5294_v4 = vpack.c.bf16 %v5246_v46, %v5246_v46  ;;  %v5640_v56 = vsel %vm9414_vm8, %v6754_v60, %v5639_v34 }
 0x6db   : > { %6025 = vst.msk [vmem:[%s9645_s27 + $0x54] sm:$0xf] %vm6003_vm9, %v5992_v25  ;;  %v5685_v47 = vunpack.c.l.b16 %v5640_v56 }
 0x6dc   : > { %v5643_v17 = vshrl.u32 %v5294_v4, 16  ;;  %v5646_v13 = vshll.u32 %v5294_v4, 16 }
 0x6de   : > { %v5645_v53 = vrot.slane %v5643_v17, 7  ;;  %v6923_v17 = vld [vmem:[%s7502_s30 + $0x78] sm:$0xff]   ;;  %s6052_s30 = sshll.u32 %s9645_s27, 4  ;;  %s6053_s30 = int_to_ptr.vmem [resolvable:$true] %s6052_s30 }
 0x6df   : > { %v6904_v60 = vunpack.c.l.bf16 %v6923_v17 }
 0x6e0   : > { %v5648_v50 = vor.u32 %v5646_v13, %v5645_v53 }
 0x6e2   : > { %v5649_v1 = vsel %vm9414_vm8, %v5641_v38, %v5648_v50 }
 0x6e3   : > { %v5686_v14 = vunpack.c.l.b16 %v5649_v1  ;;  %v6905_v1 = vunpack.c.h.bf16 %v6923_v17 }
 0x6e5   : > { %v5702_v39 = vpack.c.b16 %v5686_v14, %v5685_v47 }
 0x6e7   : > { %6770 = vmatmul.msk.bf16.gmra.mxu2 %vm1227_vm3, %v5702_v39 }
 0x6ea   : > { %v5818_v45 = vpop.f32.mrf.mxu2 }
 0x6eb   : > { %v5819_v9 = vadd.f32 %v9951_v54, %v5818_v45 }
 0x6ed   : > { %v5929_v23 = vadd.f32 %v6888_v63, %v5819_v9 }
 0x6ef   : > { %v5961_v55 = vmax.f32 %v5929_v23, 0.0 }
 0x6f1   : > { %v5993_v19 = vpack.c.bf16 %v5961_v55, %v5961_v55 }
 0x6f2   : > { %v5820_v58 = vpop.f32.mrf.mxu2 }
 0x6f3   : > { %6026 = vst.msk [vmem:[%s9645_s27 + $0x58] sm:$0xf] %vm6003_vm9, %v5993_v19  ;;  %v5821_v21 = vadd.f32 %v9951_v54, %v5820_v58 }
 0x6f5   : > { %v5930_v8 = vadd.f32 %v6889_v6, %v5821_v21 }
 0x6f7   : > { %v5962_v62 = vmax.f32 %v5930_v8, 0.0 }
 0x6f9   : > { %v5994_v31 = vpack.c.bf16 %v5962_v62, %v5962_v62 }
 0x6fb   : > { %6027 = vst.msk [vmem:[%s9645_s27 + $0x5c] sm:$0xf] %vm6003_vm9, %v5994_v31 }
 0x70a   : > { %v5823_v27 = vpop.f32.mrf.mxu2 }
 0x70b   : > { %v5824_v48 = vadd.f32 %v9951_v54, %v5823_v27 }
 0x70d   : > { %v5931_v35 = vadd.f32 %v6892_v20, %v5824_v48 }
 0x70f   : > { %v5963_v61 = vmax.f32 %v5931_v35, 0.0 }
 0x711   : > { %v5995_v51 = vpack.c.bf16 %v5963_v61, %v5963_v61 }
 0x712   : > { %v5825_v49 = vpop.f32.mrf.mxu2 }
 0x713   : > { %6028 = vst.msk [vmem:[%s9645_s27 + $0x60] sm:$0xf] %vm6003_vm9, %v5995_v51  ;;  %v5826_v44 = vadd.f32 %v9951_v54, %v5825_v49 }
 0x715   : > { %v5932_v12 = vadd.f32 %v6893_v57, %v5826_v44 }
 0x717   : > { %v5964_v32 = vmax.f32 %v5932_v12, 0.0 }
 0x719   : > { %v5996_v28 = vpack.c.bf16 %v5964_v32, %v5964_v32 }
 0x71b   : > { %6029 = vst.msk [vmem:[%s9645_s27 + $0x64] sm:$0xf] %vm6003_vm9, %v5996_v28 }
 0x72a   : > { %v5828_v30 = vpop.f32.mrf.mxu2 }
 0x72b   : > { %v5829_v52 = vadd.f32 %v9951_v54, %v5828_v30 }
 0x72d   : > { %v5933_v43 = vadd.f32 %v6896_v15, %v5829_v52 }
 0x72f   : > { %v5965_v22 = vmax.f32 %v5933_v43, 0.0 }
 0x731   : > { %v5997_v59 = vpack.c.bf16 %v5965_v22, %v5965_v22 }
 0x732   : > { %v5830_v10 = vpop.f32.mrf.mxu2 }
 0x733   : > { %6030 = vst.msk [vmem:[%s9645_s27 + $0x68] sm:$0xf] %vm6003_vm9, %v5997_v59  ;;  %v5831_v37 = vadd.f32 %v9951_v54, %v5830_v10 }
 0x735   : > { %v5934_v33 = vadd.f32 %v6897_v26, %v5831_v37 }
 0x737   : > { %v5966_v5 = vmax.f32 %v5934_v33, 0.0 }
 0x739   : > { %v5998_v40 = vpack.c.bf16 %v5966_v5, %v5966_v5 }
 0x73b   : > { %6031 = vst.msk [vmem:[%s9645_s27 + $0x6c] sm:$0xf] %vm6003_vm9, %v5998_v40 }
 0x74a   : > { %v5833_v11 = vpop.f32.mrf.mxu2 }
 0x74b   : > { %v5834_v36 = vadd.f32 %v9951_v54, %v5833_v11 }
 0x74d   : > { %v5935_v2 = vadd.f32 %v6900_v42, %v5834_v36 }
 0x74f   : > { %v5967_v7 = vmax.f32 %v5935_v2, 0.0 }
 0x751   : > { %v5999_v46 = vpack.c.bf16 %v5967_v7, %v5967_v7 }
 0x752   : > { %v5835_v25 = vpop.f32.mrf.mxu2 }
 0x753   : > { %6032 = vst.msk [vmem:[%s9645_s27 + $0x70] sm:$0xf] %vm6003_vm9, %v5999_v46  ;;  %v5836_v4 = vadd.f32 %v9951_v54, %v5835_v25 }
 0x755   : > { %v5936_v16 = vadd.f32 %v6901_v18, %v5836_v4 }
 0x757   : > { %v5968_v24 = vmax.f32 %v5936_v16, 0.0 }
 0x759   : > { %v6000_v34 = vpack.c.bf16 %v5968_v24, %v5968_v24 }
 0x75b   : > { %6033 = vst.msk [vmem:[%s9645_s27 + $0x74] sm:$0xf] %vm6003_vm9, %v6000_v34 }
 0x76a   : > { %v5838_v53 = vpop.f32.mrf.mxu2 }
 0x76b   : > { %v5839_v13 = vadd.f32 %v9951_v54, %v5838_v53 }
 0x76d   : > { %v5937_v56 = vadd.f32 %v6904_v60, %v5839_v13 }
 0x76f   : > { %v5969_v38 = vmax.f32 %v5937_v56, 0.0 }
 0x771   : > { %v6001_v50 = vpack.c.bf16 %v5969_v38, %v5969_v38 }
 0x772   : > { %v5840_v47 = vpop.f32.mrf.mxu2 }
 0x773   : > { %6034 = vst.msk [vmem:[%s9645_s27 + $0x78] sm:$0xf] %vm6003_vm9, %v6001_v50  ;;  %v5841_v14 = vadd.f32 %v9951_v54, %v5840_v47 }
 0x775   : > { %v5938_v39 = vadd.f32 %v6905_v1, %v5841_v14 }
 0x777   : > { %v5970_v0 = vmax.f32 %v5938_v39, 0.0 }
 0x779   : > { %v6002_v63 = vpack.c.bf16 %v5970_v0, %v5970_v0 }
 0x77b   : > { %6035 = vst.msk [vmem:[%s9645_s27 + $0x7c] sm:$0xf] %vm6003_vm9, %v6002_v63 }
 0x77c   : > { %7235 = shalt.err (!%p7232_p13)
}
 0x77d   : > { %s7306_s1 = smov 64   ;;  %s7307_s27 = smov 4  }
 0x77e   : > { %6935 = dma.vmem_to_hbm [thread:$0]  (%p7450_p0), %s6053_s30, 2048, %s6055_s14, %s6037_s18, %s7306_s1, %s7306_s1, %s7307_s27  }
 0x77f PF: > { %s10464_s28 = sld [smem:[#allocation17_spill]]  ;;  %p6952_p4 = pnand %p6205_p3, %p7454_p2 }
 0x780   : > { %s10466_s15 = sld [smem:[#allocation21_spill]] }
 0x781   : > { %p6953_p5 = pneg %p6952_p4 }
 0x785   : > { %s6069_s25 = sand.u32 1, %s10464_s28  }
 0x786   : > { %s6070_s29 = scalar_lea.sflag [#allocation6], %s6069_s25 }
 0x787   : > { %7273 = dma.done.wait (%p6953_p5), %s6070_s29, 2048  }
 0x788   : > { %7275 = vsyncadd (%p6953_p5), %s6070_s29, 4294965248  ;;  %s29_s14 = sadd.s32 1, %s10466_s15   ;;  %s10467_s4 = sld [smem:[#allocation18_spill]] }
 0x789   : > { %p26_p1 = scmp.ge.s32.totalorder %s29_s14, 4   ;;  %s10468_s11 = sld [smem:[#allocation23_spill]] }
 0x78a   : > { %s10469_s12 = sld [smem:[#allocation20_spill]]  ;;  %s10471_s30 = smov %s7282_s10 }
 0x78b   : > { %s10470_s13 = sld [smem:[#allocation22_spill]]  ;;  %28 = sbr.rel (!%p26_p1) target bundleno = 15 (0xf), region = 152 }
 0x78e   : > { %s10472_s10 = smov %s10467_s4 }
 0x790   :  { %6076 = vsyncpa [#allocation5], 1 }
 0x791   :  { %6078 = vsyncpa [#allocation5 + $0x1], 1 }
 0x792   :  { %6079 = vsyncpa [#allocation8], 1 }
 0x793   :  { %6081 = vsyncpa [#allocation8 + $0x1], 1 }
 0x794   :  { %6082 = vsyncpa [#allocation11], 1 }
 0x795   :  { %6083 = vsyncpa [#allocation6], 1 }
 0x796   :  { %6085 = vsyncpa [#allocation6 + $0x1], 1 }

</bundles_post_ra>
